<compile_context>
chip_gen: v7x
topology: tpu7x:2x2x1
jax: 0.10.0
libtpu: 0.0.40
codegen_flags: <defaults>
</compile_context>

<pallas_src>
import functools

import jax
import jax.numpy as jnp
from jax.experimental import pallas as pl
from jax.experimental.pallas import tpu as pltpu


# ----------------------------------------------------------------------------
# Fused ASPP Pallas kernel
# ----------------------------------------------------------------------------
def _aspp_fused_kernel(xp_ref, taps_ref, cbr_ref, wf_ref, wpool_ref, cfin_ref,
                       o_ref, acc_br, acc_pool, *, H, W, P, tap_plan):
    # xp_ref   : (1, H+2P, W+2P, tk)  bf16   padded input, one image, K-slice
    # taps_ref : (n_taps, tk, mid)    bf16   BN-scaled conv weights per tap
    # cbr_ref  : (4, 1, mid)          f32    folded BN bias per conv branch
    # wf_ref   : (4, mid, Cout)       bf16   BN-scaled final 1x1 weights
    # wpool_ref: (tk, Cout)           bf16   pool-branch weights folded through
    #                                        the final conv
    # cfin_ref : (1, Cout)            f32    folded final bias (+ pool bias)
    # o_ref    : (1, H*W, Cout)       f32
    # acc_br   : (4, H*W, mid)        f32    branch pre-activation accumulator
    # acc_pool : (1, Cout)            f32    pooled-branch accumulator
    k = pl.program_id(1)
    nk = pl.num_programs(1)
    M = H * W

    @pl.when(k == 0)
    def _init():
        acc_br[...] = jnp.zeros_like(acc_br)
        acc_pool[...] = jnp.zeros_like(acc_pool)

    # Un-shifted (centre) window: shared by the 1x1 branch, the centre tap of
    # each dilated branch and the image-pool branch.
    center = xp_ref[0, pl.ds(P, H), pl.ds(P, W), :].reshape(M, -1)     # (M, tk)

    # ---- image-pool branch (fully linear, folded through the final conv) ---
    pooled = (jnp.sum(center.astype(jnp.float32), axis=0, keepdims=True)
              * (1.0 / M)).astype(jnp.bfloat16)                        # (1, tk)
    pool_acc = acc_pool[...] + jnp.dot(pooled, wpool_ref[...],
                                       preferred_element_type=jnp.float32)

    # ---- conv branches: 1x1 + three dilated 3x3 (28 shifted-window taps) ---
    acc = [acc_br[j] for j in range(4)]                                # (M, mid)
    for br, dy, dx, t in tap_plan:
        if dy == 0 and dx == 0:
            a = center
        else:
            a = xp_ref[0, pl.ds(P + dy, H), pl.ds(P + dx, W), :].reshape(M, -1)
        acc[br] = acc[br] + jnp.dot(a, taps_ref[t],
                                    preferred_element_type=jnp.float32)

    # ---- carry partial sums (only when more K blocks follow) ---------------
    @pl.when(k < nk - 1)
    def _carry():
        for j in range(4):
            acc_br[j] = acc[j]
        acc_pool[...] = pool_acc

    # ---- last K step: BN bias + ReLU per branch, fused final 1x1 + ReLU ----
    @pl.when(k == nk - 1)
    def _finalize():
        u = pool_acc + cfin_ref[...]                                   # (1, Cout)
        for j in range(4):
            zj = jnp.maximum(acc[j] + cbr_ref[j], 0.0).astype(jnp.bfloat16)
            u = u + jnp.dot(zj, wf_ref[j], preferred_element_type=jnp.float32)
        o_ref[...] = jnp.maximum(u, 0.0)[None].astype(o_ref.dtype)     # (1,M,Cout)


# ----------------------------------------------------------------------------
# Parameter folding (BN eval-mode + pool-branch linearization), plain JAX
# ----------------------------------------------------------------------------
def fold_bn(gamma, beta, mean, var, conv_bias, eps=1e-5):
    scale = gamma / jnp.sqrt(var + eps)
    bias = beta + scale * (conv_bias - mean)
    return scale, bias


def prepare_fused_params(params, cin, dilations=(6, 12, 18)):
    f32 = jnp.float32
    mid = params["b0"]["w"].shape[1]
    cout = params["final"]["w"].shape[1]

    def fold(p):
        return fold_bn(p["gamma"].astype(f32), p["beta"].astype(f32),
                       p["mean"].astype(f32), p["var"].astype(f32),
                       p["b"].astype(f32))

    # Conv branches: BN scale folded into the (per-tap) weights.
    s0, c0 = fold(params["b0"])
    taps = [(params["b0"]["w"].astype(f32) * s0)[None]]          # (1, Cin, mid)
    cbr = [c0]
    for name in ("b1", "b2", "b3"):
        s, c = fold(params[name])
        taps.append(params[name]["w"].astype(f32).reshape(9, cin, mid) * s)
        cbr.append(c)
    taps = jnp.concatenate(taps, axis=0)                          # (28, Cin, mid)
    cbr = jnp.stack(cbr, axis=0).reshape(4, 1, mid)

    # Final ConvBnRelu: fold its BN scale into its weights; fold the (linear)
    # pooled branch through its slice of the final weights.
    sf, cf = fold(params["final"])
    wf_all = params["final"]["w"].astype(f32) * sf                # (5*mid, Cout)
    wf = wf_all[: 4 * mid].reshape(4, mid, cout)
    wf4 = wf_all[4 * mid:]                                        # (mid, Cout)
    wpool = params["pool"]["w"].astype(f32) @ wf4                 # (Cin, Cout)
    cfin = (cf + params["pool"]["b"].astype(f32) @ wf4).reshape(1, cout)

    return dict(taps=taps.astype(jnp.bfloat16), cbr=cbr,
                wf=wf.astype(jnp.bfloat16), wpool=wpool.astype(jnp.bfloat16),
                cfin=cfin, mid=mid, cout=cout)


# ----------------------------------------------------------------------------
# Forward wrapper
# ----------------------------------------------------------------------------
def aspp_forward(x_nchw, params, dilations=(6, 12, 18)):
    """ASPP forward (inference-mode BatchNorm), single fused Pallas kernel."""
    N, Cin, H, W = x_nchw.shape
    fp = prepare_fused_params(params, Cin, dilations)
    mid, cout = fp["mid"], fp["cout"]
    P = max(dilations)
    n_taps = 1 + 9 * len(dilations)

    # Input-channel (K) tiling keeps resident blocks inside scoped VMEM on all
    # generations (v7x has only 64 MiB physical).  tk is a multiple of 128
    # whenever the channel axis is actually split.
    tk = Cin if Cin <= 512 else 512
    nk = pl.cdiv(Cin, tk)
    cin_pad = nk * tk

    x = jnp.transpose(x_nchw, (0, 2, 3, 1)).astype(jnp.bfloat16)   # NHWC, bf16
    taps, wpool = fp["taps"], fp["wpool"]
    if cin_pad != Cin:
        x = jnp.pad(x, ((0, 0), (0, 0), (0, 0), (0, cin_pad - Cin)))
        taps = jnp.pad(taps, ((0, 0), (0, cin_pad - Cin), (0, 0)))
        wpool = jnp.pad(wpool, ((0, cin_pad - Cin), (0, 0)))

    # One-time spatial zero pad (== the convs' padding=dilation); the kernel
    # reads statically shifted windows of this instead of an im2col expansion.
    xp = jnp.pad(x, ((0, 0), (P, P), (P, P), (0, 0)))
    Hp, Wp = H + 2 * P, W + 2 * P

    # (branch, row_shift, col_shift, tap_index); tap 0 is the 1x1 branch.
    tap_plan = [(0, 0, 0, 0)]
    t = 1
    for j, d in enumerate(dilations):
        for ky in range(3):
            for kx in range(3):
                tap_plan.append((j + 1, (ky - 1) * d, (kx - 1) * d, t))
                t += 1

    kernel = functools.partial(_aspp_fused_kernel, H=H, W=W, P=P,
                               tap_plan=tuple(tap_plan))

    out_flat = pl.pallas_call(
        kernel,
        out_shape=jax.ShapeDtypeStruct((N, H * W, cout), jnp.float32),
        grid_spec=pltpu.PrefetchScalarGridSpec(
            num_scalar_prefetch=0,
            grid=(N, nk),                                   # reduction axis last
            in_specs=[
                pl.BlockSpec((1, Hp, Wp, tk), lambda n, k: (n, 0, 0, k)),   # xp
                pl.BlockSpec((n_taps, tk, mid), lambda n, k: (0, k, 0)),    # taps
                pl.BlockSpec((4, 1, mid), lambda n, k: (0, 0, 0)),          # cbr
                pl.BlockSpec((4, mid, cout), lambda n, k: (0, 0, 0)),       # wf
                pl.BlockSpec((tk, cout), lambda n, k: (k, 0)),              # wpool
                pl.BlockSpec((1, cout), lambda n, k: (0, 0)),               # cfin
            ],
            out_specs=pl.BlockSpec((1, H * W, cout), lambda n, k: (n, 0, 0)),
            scratch_shapes=[
                pltpu.VMEM((4, H * W, mid), jnp.float32),   # branch pre-act acc
                pltpu.VMEM((1, cout), jnp.float32),         # pooled-branch acc
            ],
        ),
        compiler_params=pltpu.CompilerParams(
            dimension_semantics=("parallel", "arbitrary"),
            vmem_limit_bytes=48 * 1024 * 1024,              # < 64 MiB (v7x phys)
        ),
    )(xp, taps, fp["cbr"], fp["wf"], wpool, fp["cfin"])

    out_nhwc = out_flat.reshape(N, H, W, cout)
    return jnp.transpose(out_nhwc, (0, 3, 1, 2))             # NHWC -> NCHW


# ----------------------------------------------------------------------------
# Pure-JAX (f32) reference with identical eval-mode-BN semantics
# ----------------------------------------------------------------------------
def aspp_reference(x_nchw, params, dilations=(6, 12, 18)):
    x = jnp.transpose(x_nchw, (0, 2, 3, 1)).astype(jnp.float32)
    N, H, W, C = x.shape
    M = N * H * W

    def convbnrelu(a2d, p):
        s, c = fold_bn(p["gamma"], p["beta"], p["mean"], p["var"], p["b"])
        return jnp.maximum(a2d @ p["w"].astype(jnp.float32) * s + c, 0.0)

    def im2col(x_nhwc, d):
        xp = jnp.pad(x_nhwc, ((0, 0), (d, d), (d, d), (0, 0)))
        cols = [xp[:, ky * d:ky * d + H, kx * d:kx * d + W, :]
                for ky in range(3) for kx in range(3)]
        return jnp.concatenate(cols, axis=-1)

    branches = [convbnrelu(x.reshape(M, C), params["b0"])]
    for name, d in zip(("b1", "b2", "b3"), dilations):
        branches.append(convbnrelu(im2col(x, d).reshape(M, 9 * C), params[name]))
    pooled = jnp.mean(x, axis=(1, 2))                                   # (N, C)
    yp = pooled @ params["pool"]["w"].astype(jnp.float32) + params["pool"]["b"]
    mid = yp.shape[-1]
    branches.append(jnp.broadcast_to(yp[:, None, :],
                                     (N, H * W, mid)).reshape(M, mid))
    out = convbnrelu(jnp.concatenate(branches, axis=-1), params["final"])
    return jnp.transpose(out.reshape(N, H, W, -1), (0, 3, 1, 2))


# ----------------------------------------------------------------------------
# Parameter init (random, BN running stats for eval mode)
# ----------------------------------------------------------------------------
def init_params(key, in_channels, out_channels, dtype=jnp.float32):
    mid = in_channels // 8
    keys = jax.random.split(key, 32)
    ki = iter(keys)

    def convbn(cin, cout, k):
        kdim = cin * k * k
        return dict(
            w=0.05 * jax.random.normal(next(ki), (kdim, cout), dtype),
            b=0.05 * jax.random.normal(next(ki), (cout,), dtype),
            gamma=1.0 + 0.1 * jax.random.normal(next(ki), (cout,), dtype),
            beta=0.1 * jax.random.normal(next(ki), (cout,), dtype),
            mean=0.1 * jax.random.normal(next(ki), (cout,), dtype),
            var=jnp.abs(jax.random.normal(next(ki), (cout,), dtype)) + 0.5,
        )

    return {
        "b0": convbn(in_channels, mid, 1),
        "b1": convbn(in_channels, mid, 3),
        "b2": convbn(in_channels, mid, 3),
        "b3": convbn(in_channels, mid, 3),
        "pool": dict(
            w=0.05 * jax.random.normal(next(ki), (in_channels, mid), dtype),
            b=0.05 * jax.random.normal(next(ki), (mid,), dtype),
        ),
        "final": convbn(mid * 5, out_channels, 1),
    }


if __name__ == "__main__":
    key = jax.random.PRNGKey(0)
    kx_, kp_ = jax.random.split(key)
    in_channels, out_channels = 32, 8          # mid = 32 // 8 = 4
    x = jax.random.normal(kx_, (2, in_channels, 16, 16), jnp.float32)
    params = init_params(kp_, in_channels, out_channels)

    fwd = jax.jit(aspp_forward)
    out = fwd(x, params)
    jax.block_until_ready(out)

    assert out.shape == (2, out_channels, 16, 16), out.shape
    assert bool(jnp.all(jnp.isfinite(out)))

    ref = aspp_reference(x, params)
    max_err = float(jnp.max(jnp.abs(out - ref)))
    assert max_err < 5e-2, f"kernel vs reference max |err| = {max_err:.4f}"
    print("KERNEL_OK")
</pallas_src>

<mosaic_0001>
module attributes {stable_mosaic.version = 11 : i64} {
  func.func @_aspp_fused_kernel(%arg0: i32, %arg1: i32, %arg2: memref<1x52x52x32xbf16, #tpu.memory_space<vmem>>, %arg3: memref<28x32x4xbf16, #tpu.memory_space<vmem>>, %arg4: memref<4x1x4xf32, #tpu.memory_space<vmem>>, %arg5: memref<4x4x8xbf16, #tpu.memory_space<vmem>>, %arg6: memref<32x8xbf16, #tpu.memory_space<vmem>>, %arg7: memref<1x8xf32, #tpu.memory_space<vmem>>, %arg8: memref<1x256x8xf32, #tpu.memory_space<vmem>>, %arg9: memref<4x256x4xf32, #tpu.memory_space<vmem>>, %arg10: memref<1x8xf32, #tpu.memory_space<vmem>>) attributes {dimension_semantics = [#tpu.dimension_semantics<parallel>, #tpu.dimension_semantics<arbitrary>], iteration_bounds = array<i64: 2, 1>, scalar_prefetch = 0 : i64, scratch_operands = 2 : i64, tpu.core_type = #tpu.core_type<tc>, window_params = [{transform_indices = @transform_0, window_bounds = array<i64: 1, 52, 52, 32>}, {transform_indices = @transform_1, window_bounds = array<i64: 28, 32, 4>}, {pipeline_mode = #tpu.pipeline_mode<synchronous>, transform_indices = @transform_2, window_bounds = array<i64: 4, 1, 4>}, {pipeline_mode = #tpu.pipeline_mode<synchronous>, transform_indices = @transform_3, window_bounds = array<i64: 4, 4, 8>}, {transform_indices = @transform_4, window_bounds = array<i64: 32, 8>}, {pipeline_mode = #tpu.pipeline_mode<synchronous>, transform_indices = @transform_5, window_bounds = array<i64: 1, 8>}, {transform_indices = @transform_6, window_bounds = array<i64: 1, 256, 8>}]} {
    %c0_i32 = arith.constant 0 : i32
    %0 = arith.cmpi eq, %arg1, %c0_i32 : i32
    %1 = arith.extui %0 : i1 to i32
    %c0_i32_0 = arith.constant 0 : i32
    %2 = arith.cmpi ne, %1, %c0_i32_0 : i32
    scf.if %2 {
      %cst_205 = arith.constant 0.000000e+00 : f32
      %214 = vector.broadcast %cst_205 : f32 to vector<4x256x4xf32>
      %c0_206 = arith.constant 0 : index
      %c0_207 = arith.constant 0 : index
      %c0_208 = arith.constant 0 : index
      %215 = vector.load %arg9[%c0_206, %c0_207, %c0_208] : memref<4x256x4xf32, #tpu.memory_space<vmem>>, vector<4x256x4xf32>
      tpu.vector_store %arg9[%c0_206, %c0_207, %c0_208], %214 {strides = array<i32>} : memref<4x256x4xf32, #tpu.memory_space<vmem>>, vector<4x256x4xf32>,
      %cst_209 = arith.constant 0.000000e+00 : f32
      %216 = vector.broadcast %cst_209 : f32 to vector<1x8xf32>
      %c0_210 = arith.constant 0 : index
      %c0_211 = arith.constant 0 : index
      %217 = vector.load %arg10[%c0_210, %c0_211] : memref<1x8xf32, #tpu.memory_space<vmem>>, vector<1x8xf32>
      tpu.vector_store %arg10[%c0_210, %c0_211], %216 {strides = array<i32>} : memref<1x8xf32, #tpu.memory_space<vmem>>, vector<1x8xf32>,
    } else {
    }
    %c0 = arith.constant 0 : index
    %c18 = arith.constant 18 : index
    %c18_1 = arith.constant 18 : index
    %c0_2 = arith.constant 0 : index
    %3 = vector.load %arg2[%c0, %c18, %c18_1, %c0_2] : memref<1x52x52x32xbf16, #tpu.memory_space<vmem>>, vector<1x16x16x32xbf16>
    %4 = vector.shape_cast %3 : vector<1x16x16x32xbf16> to vector<16x16x32xbf16>
    %5 = vector.shape_cast %4 : vector<16x16x32xbf16> to vector<256x32xbf16>
    %6 = arith.extf %5 : vector<256x32xbf16> to vector<256x32xf32>
    %cst = arith.constant dense<0.000000e+00> : vector<32xf32>
    %7 = vector.multi_reduction <add>, %6, %cst [0] : vector<256x32xf32> to vector<32xf32>
    %8 = vector.shape_cast %7 : vector<32xf32> to vector<1x32xf32>
    %cst_3 = arith.constant 3.906250e-03 : f32
    %9 = vector.broadcast %cst_3 : f32 to vector<1x32xf32>
    %10 = arith.mulf %8, %9 : vector<1x32xf32>
    %11 = arith.truncf %10 : vector<1x32xf32> to vector<1x32xbf16>
    %c0_4 = arith.constant 0 : index
    %c0_5 = arith.constant 0 : index
    %12 = vector.load %arg10[%c0_4, %c0_5] : memref<1x8xf32, #tpu.memory_space<vmem>>, vector<1x8xf32>
    %c0_6 = arith.constant 0 : index
    %c0_7 = arith.constant 0 : index
    %13 = vector.load %arg6[%c0_6, %c0_7] : memref<32x8xbf16, #tpu.memory_space<vmem>>, vector<32x8xbf16>
    %cst_8 = arith.constant dense<0.000000e+00> : vector<1x8xf32>
    %14 = tpu.matmul %11, %13, %cst_8 {dimension_numbers = #tpu.dot_dimension_numbers<[1], [0], [0], [1], [0, 0, 1, 1], [], []>} : vector<1x32xbf16>, vector<32x8xbf16>, vector<1x8xf32> -> vector<1x8xf32>
    %15 = arith.addf %12, %14 : vector<1x8xf32>
    %c0_9 = arith.constant 0 : index
    %c0_10 = arith.constant 0 : index
    %c0_11 = arith.constant 0 : index
    %16 = vector.load %arg9[%c0_9, %c0_10, %c0_11] : memref<4x256x4xf32, #tpu.memory_space<vmem>>, vector<1x256x4xf32>
    %17 = vector.shape_cast %16 : vector<1x256x4xf32> to vector<256x4xf32>
    %c1 = arith.constant 1 : index
    %c0_12 = arith.constant 0 : index
    %c0_13 = arith.constant 0 : index
    %18 = vector.load %arg9[%c1, %c0_12, %c0_13] : memref<4x256x4xf32, #tpu.memory_space<vmem>>, vector<1x256x4xf32>
    %19 = vector.shape_cast %18 : vector<1x256x4xf32> to vector<256x4xf32>
    %c2 = arith.constant 2 : index
    %c0_14 = arith.constant 0 : index
    %c0_15 = arith.constant 0 : index
    %20 = vector.load %arg9[%c2, %c0_14, %c0_15] : memref<4x256x4xf32, #tpu.memory_space<vmem>>, vector<1x256x4xf32>
    %21 = vector.shape_cast %20 : vector<1x256x4xf32> to vector<256x4xf32>
    %c3 = arith.constant 3 : index
    %c0_16 = arith.constant 0 : index
    %c0_17 = arith.constant 0 : index
    %22 = vector.load %arg9[%c3, %c0_16, %c0_17] : memref<4x256x4xf32, #tpu.memory_space<vmem>>, vector<1x256x4xf32>
    %23 = vector.shape_cast %22 : vector<1x256x4xf32> to vector<256x4xf32>
    %c0_18 = arith.constant 0 : index
    %c0_19 = arith.constant 0 : index
    %c0_20 = arith.constant 0 : index
    %24 = vector.load %arg3[%c0_18, %c0_19, %c0_20] : memref<28x32x4xbf16, #tpu.memory_space<vmem>>, vector<1x32x4xbf16>
    %25 = vector.shape_cast %24 : vector<1x32x4xbf16> to vector<32x4xbf16>
    %cst_21 = arith.constant dense<0.000000e+00> : vector<256x4xf32>
    %26 = tpu.matmul %5, %25, %cst_21 {dimension_numbers = #tpu.dot_dimension_numbers<[1], [0], [0], [1], [0, 0, 1, 1], [], []>} : vector<256x32xbf16>, vector<32x4xbf16>, vector<256x4xf32> -> vector<256x4xf32>
    %27 = arith.addf %17, %26 : vector<256x4xf32>
    %c0_22 = arith.constant 0 : index
    %c12 = arith.constant 12 : index
    %c12_23 = arith.constant 12 : index
    %c0_24 = arith.constant 0 : index
    %28 = vector.load %arg2[%c0_22, %c12, %c12_23, %c0_24] : memref<1x52x52x32xbf16, #tpu.memory_space<vmem>>, vector<1x16x16x32xbf16>
    %29 = vector.shape_cast %28 : vector<1x16x16x32xbf16> to vector<16x16x32xbf16>
    %30 = vector.shape_cast %29 : vector<16x16x32xbf16> to vector<256x32xbf16>
    %c1_25 = arith.constant 1 : index
    %c0_26 = arith.constant 0 : index
    %c0_27 = arith.constant 0 : index
    %31 = vector.load %arg3[%c1_25, %c0_26, %c0_27] : memref<28x32x4xbf16, #tpu.memory_space<vmem>>, vector<1x32x4xbf16>
    %32 = vector.shape_cast %31 : vector<1x32x4xbf16> to vector<32x4xbf16>
    %cst_28 = arith.constant dense<0.000000e+00> : vector<256x4xf32>
    %33 = tpu.matmul %30, %32, %cst_28 {dimension_numbers = #tpu.dot_dimension_numbers<[1], [0], [0], [1], [0, 0, 1, 1], [], []>} : vector<256x32xbf16>, vector<32x4xbf16>, vector<256x4xf32> -> vector<256x4xf32>
    %34 = arith.addf %19, %33 : vector<256x4xf32>
    %c0_29 = arith.constant 0 : index
    %c12_30 = arith.constant 12 : index
    %c18_31 = arith.constant 18 : index
    %c0_32 = arith.constant 0 : index
    %35 = vector.load %arg2[%c0_29, %c12_30, %c18_31, %c0_32] : memref<1x52x52x32xbf16, #tpu.memory_space<vmem>>, vector<1x16x16x32xbf16>
    %36 = vector.shape_cast %35 : vector<1x16x16x32xbf16> to vector<16x16x32xbf16>
    %37 = vector.shape_cast %36 : vector<16x16x32xbf16> to vector<256x32xbf16>
    %c2_33 = arith.constant 2 : index
    %c0_34 = arith.constant 0 : index
    %c0_35 = arith.constant 0 : index
    %38 = vector.load %arg3[%c2_33, %c0_34, %c0_35] : memref<28x32x4xbf16, #tpu.memory_space<vmem>>, vector<1x32x4xbf16>
    %39 = vector.shape_cast %38 : vector<1x32x4xbf16> to vector<32x4xbf16>
    %cst_36 = arith.constant dense<0.000000e+00> : vector<256x4xf32>
    %40 = tpu.matmul %37, %39, %cst_36 {dimension_numbers = #tpu.dot_dimension_numbers<[1], [0], [0], [1], [0, 0, 1, 1], [], []>} : vector<256x32xbf16>, vector<32x4xbf16>, vector<256x4xf32> -> vector<256x4xf32>
    %41 = arith.addf %34, %40 : vector<256x4xf32>
    %c0_37 = arith.constant 0 : index
    %c12_38 = arith.constant 12 : index
    %c24 = arith.constant 24 : index
    %c0_39 = arith.constant 0 : index
    %42 = vector.load %arg2[%c0_37, %c12_38, %c24, %c0_39] : memref<1x52x52x32xbf16, #tpu.memory_space<vmem>>, vector<1x16x16x32xbf16>
    %43 = vector.shape_cast %42 : vector<1x16x16x32xbf16> to vector<16x16x32xbf16>
    %44 = vector.shape_cast %43 : vector<16x16x32xbf16> to vector<256x32xbf16>
    %c3_40 = arith.constant 3 : index
    %c0_41 = arith.constant 0 : index
    %c0_42 = arith.constant 0 : index
    %45 = vector.load %arg3[%c3_40, %c0_41, %c0_42] : memref<28x32x4xbf16, #tpu.memory_space<vmem>>, vector<1x32x4xbf16>
    %46 = vector.shape_cast %45 : vector<1x32x4xbf16> to vector<32x4xbf16>
    %cst_43 = arith.constant dense<0.000000e+00> : vector<256x4xf32>
    %47 = tpu.matmul %44, %46, %cst_43 {dimension_numbers = #tpu.dot_dimension_numbers<[1], [0], [0], [1], [0, 0, 1, 1], [], []>} : vector<256x32xbf16>, vector<32x4xbf16>, vector<256x4xf32> -> vector<256x4xf32>
    %48 = arith.addf %41, %47 : vector<256x4xf32>
    %c0_44 = arith.constant 0 : index
    %c18_45 = arith.constant 18 : index
    %c12_46 = arith.constant 12 : index
    %c0_47 = arith.constant 0 : index
    %49 = vector.load %arg2[%c0_44, %c18_45, %c12_46, %c0_47] : memref<1x52x52x32xbf16, #tpu.memory_space<vmem>>, vector<1x16x16x32xbf16>
    %50 = vector.shape_cast %49 : vector<1x16x16x32xbf16> to vector<16x16x32xbf16>
    %51 = vector.shape_cast %50 : vector<16x16x32xbf16> to vector<256x32xbf16>
    %c4 = arith.constant 4 : index
    %c0_48 = arith.constant 0 : index
    %c0_49 = arith.constant 0 : index
    %52 = vector.load %arg3[%c4, %c0_48, %c0_49] : memref<28x32x4xbf16, #tpu.memory_space<vmem>>, vector<1x32x4xbf16>
    %53 = vector.shape_cast %52 : vector<1x32x4xbf16> to vector<32x4xbf16>
    %cst_50 = arith.constant dense<0.000000e+00> : vector<256x4xf32>
    %54 = tpu.matmul %51, %53, %cst_50 {dimension_numbers = #tpu.dot_dimension_numbers<[1], [0], [0], [1], [0, 0, 1, 1], [], []>} : vector<256x32xbf16>, vector<32x4xbf16>, vector<256x4xf32> -> vector<256x4xf32>
    %55 = arith.addf %48, %54 : vector<256x4xf32>
    %c5 = arith.constant 5 : index
    %c0_51 = arith.constant 0 : index
    %c0_52 = arith.constant 0 : index
    %56 = vector.load %arg3[%c5, %c0_51, %c0_52] : memref<28x32x4xbf16, #tpu.memory_space<vmem>>, vector<1x32x4xbf16>
    %57 = vector.shape_cast %56 : vector<1x32x4xbf16> to vector<32x4xbf16>
    %cst_53 = arith.constant dense<0.000000e+00> : vector<256x4xf32>
    %58 = tpu.matmul %5, %57, %cst_53 {dimension_numbers = #tpu.dot_dimension_numbers<[1], [0], [0], [1], [0, 0, 1, 1], [], []>} : vector<256x32xbf16>, vector<32x4xbf16>, vector<256x4xf32> -> vector<256x4xf32>
    %59 = arith.addf %55, %58 : vector<256x4xf32>
    %c0_54 = arith.constant 0 : index
    %c18_55 = arith.constant 18 : index
    %c24_56 = arith.constant 24 : index
    %c0_57 = arith.constant 0 : index
    %60 = vector.load %arg2[%c0_54, %c18_55, %c24_56, %c0_57] : memref<1x52x52x32xbf16, #tpu.memory_space<vmem>>, vector<1x16x16x32xbf16>
    %61 = vector.shape_cast %60 : vector<1x16x16x32xbf16> to vector<16x16x32xbf16>
    %62 = vector.shape_cast %61 : vector<16x16x32xbf16> to vector<256x32xbf16>
    %c6 = arith.constant 6 : index
    %c0_58 = arith.constant 0 : index
    %c0_59 = arith.constant 0 : index
    %63 = vector.load %arg3[%c6, %c0_58, %c0_59] : memref<28x32x4xbf16, #tpu.memory_space<vmem>>, vector<1x32x4xbf16>
    %64 = vector.shape_cast %63 : vector<1x32x4xbf16> to vector<32x4xbf16>
    %cst_60 = arith.constant dense<0.000000e+00> : vector<256x4xf32>
    %65 = tpu.matmul %62, %64, %cst_60 {dimension_numbers = #tpu.dot_dimension_numbers<[1], [0], [0], [1], [0, 0, 1, 1], [], []>} : vector<256x32xbf16>, vector<32x4xbf16>, vector<256x4xf32> -> vector<256x4xf32>
    %66 = arith.addf %59, %65 : vector<256x4xf32>
    %c0_61 = arith.constant 0 : index
    %c24_62 = arith.constant 24 : index
    %c12_63 = arith.constant 12 : index
    %c0_64 = arith.constant 0 : index
    %67 = vector.load %arg2[%c0_61, %c24_62, %c12_63, %c0_64] : memref<1x52x52x32xbf16, #tpu.memory_space<vmem>>, vector<1x16x16x32xbf16>
    %68 = vector.shape_cast %67 : vector<1x16x16x32xbf16> to vector<16x16x32xbf16>
    %69 = vector.shape_cast %68 : vector<16x16x32xbf16> to vector<256x32xbf16>
    %c7 = arith.constant 7 : index
    %c0_65 = arith.constant 0 : index
    %c0_66 = arith.constant 0 : index
    %70 = vector.load %arg3[%c7, %c0_65, %c0_66] : memref<28x32x4xbf16, #tpu.memory_space<vmem>>, vector<1x32x4xbf16>
    %71 = vector.shape_cast %70 : vector<1x32x4xbf16> to vector<32x4xbf16>
    %cst_67 = arith.constant dense<0.000000e+00> : vector<256x4xf32>
    %72 = tpu.matmul %69, %71, %cst_67 {dimension_numbers = #tpu.dot_dimension_numbers<[1], [0], [0], [1], [0, 0, 1, 1], [], []>} : vector<256x32xbf16>, vector<32x4xbf16>, vector<256x4xf32> -> vector<256x4xf32>
    %73 = arith.addf %66, %72 : vector<256x4xf32>
    %c0_68 = arith.constant 0 : index
    %c24_69 = arith.constant 24 : index
    %c18_70 = arith.constant 18 : index
    %c0_71 = arith.constant 0 : index
    %74 = vector.load %arg2[%c0_68, %c24_69, %c18_70, %c0_71] : memref<1x52x52x32xbf16, #tpu.memory_space<vmem>>, vector<1x16x16x32xbf16>
    %75 = vector.shape_cast %74 : vector<1x16x16x32xbf16> to vector<16x16x32xbf16>
    %76 = vector.shape_cast %75 : vector<16x16x32xbf16> to vector<256x32xbf16>
    %c8 = arith.constant 8 : index
    %c0_72 = arith.constant 0 : index
    %c0_73 = arith.constant 0 : index
    %77 = vector.load %arg3[%c8, %c0_72, %c0_73] : memref<28x32x4xbf16, #tpu.memory_space<vmem>>, vector<1x32x4xbf16>
    %78 = vector.shape_cast %77 : vector<1x32x4xbf16> to vector<32x4xbf16>
    %cst_74 = arith.constant dense<0.000000e+00> : vector<256x4xf32>
    %79 = tpu.matmul %76, %78, %cst_74 {dimension_numbers = #tpu.dot_dimension_numbers<[1], [0], [0], [1], [0, 0, 1, 1], [], []>} : vector<256x32xbf16>, vector<32x4xbf16>, vector<256x4xf32> -> vector<256x4xf32>
    %80 = arith.addf %73, %79 : vector<256x4xf32>
    %c0_75 = arith.constant 0 : index
    %c24_76 = arith.constant 24 : index
    %c24_77 = arith.constant 24 : index
    %c0_78 = arith.constant 0 : index
    %81 = vector.load %arg2[%c0_75, %c24_76, %c24_77, %c0_78] : memref<1x52x52x32xbf16, #tpu.memory_space<vmem>>, vector<1x16x16x32xbf16>
    %82 = vector.shape_cast %81 : vector<1x16x16x32xbf16> to vector<16x16x32xbf16>
    %83 = vector.shape_cast %82 : vector<16x16x32xbf16> to vector<256x32xbf16>
    %c9 = arith.constant 9 : index
    %c0_79 = arith.constant 0 : index
    %c0_80 = arith.constant 0 : index
    %84 = vector.load %arg3[%c9, %c0_79, %c0_80] : memref<28x32x4xbf16, #tpu.memory_space<vmem>>, vector<1x32x4xbf16>
    %85 = vector.shape_cast %84 : vector<1x32x4xbf16> to vector<32x4xbf16>
    %cst_81 = arith.constant dense<0.000000e+00> : vector<256x4xf32>
    %86 = tpu.matmul %83, %85, %cst_81 {dimension_numbers = #tpu.dot_dimension_numbers<[1], [0], [0], [1], [0, 0, 1, 1], [], []>} : vector<256x32xbf16>, vector<32x4xbf16>, vector<256x4xf32> -> vector<256x4xf32>
    %87 = arith.addf %80, %86 : vector<256x4xf32>
    %c0_82 = arith.constant 0 : index
    %c6_83 = arith.constant 6 : index
    %c6_84 = arith.constant 6 : index
    %c0_85 = arith.constant 0 : index
    %88 = vector.load %arg2[%c0_82, %c6_83, %c6_84, %c0_85] : memref<1x52x52x32xbf16, #tpu.memory_space<vmem>>, vector<1x16x16x32xbf16>
    %89 = vector.shape_cast %88 : vector<1x16x16x32xbf16> to vector<16x16x32xbf16>
    %90 = vector.shape_cast %89 : vector<16x16x32xbf16> to vector<256x32xbf16>
    %c10 = arith.constant 10 : index
    %c0_86 = arith.constant 0 : index
    %c0_87 = arith.constant 0 : index
    %91 = vector.load %arg3[%c10, %c0_86, %c0_87] : memref<28x32x4xbf16, #tpu.memory_space<vmem>>, vector<1x32x4xbf16>
    %92 = vector.shape_cast %91 : vector<1x32x4xbf16> to vector<32x4xbf16>
    %cst_88 = arith.constant dense<0.000000e+00> : vector<256x4xf32>
    %93 = tpu.matmul %90, %92, %cst_88 {dimension_numbers = #tpu.dot_dimension_numbers<[1], [0], [0], [1], [0, 0, 1, 1], [], []>} : vector<256x32xbf16>, vector<32x4xbf16>, vector<256x4xf32> -> vector<256x4xf32>
    %94 = arith.addf %21, %93 : vector<256x4xf32>
    %c0_89 = arith.constant 0 : index
    %c6_90 = arith.constant 6 : index
    %c18_91 = arith.constant 18 : index
    %c0_92 = arith.constant 0 : index
    %95 = vector.load %arg2[%c0_89, %c6_90, %c18_91, %c0_92] : memref<1x52x52x32xbf16, #tpu.memory_space<vmem>>, vector<1x16x16x32xbf16>
    %96 = vector.shape_cast %95 : vector<1x16x16x32xbf16> to vector<16x16x32xbf16>
    %97 = vector.shape_cast %96 : vector<16x16x32xbf16> to vector<256x32xbf16>
    %c11 = arith.constant 11 : index
    %c0_93 = arith.constant 0 : index
    %c0_94 = arith.constant 0 : index
    %98 = vector.load %arg3[%c11, %c0_93, %c0_94] : memref<28x32x4xbf16, #tpu.memory_space<vmem>>, vector<1x32x4xbf16>
    %99 = vector.shape_cast %98 : vector<1x32x4xbf16> to vector<32x4xbf16>
    %cst_95 = arith.constant dense<0.000000e+00> : vector<256x4xf32>
    %100 = tpu.matmul %97, %99, %cst_95 {dimension_numbers = #tpu.dot_dimension_numbers<[1], [0], [0], [1], [0, 0, 1, 1], [], []>} : vector<256x32xbf16>, vector<32x4xbf16>, vector<256x4xf32> -> vector<256x4xf32>
    %101 = arith.addf %94, %100 : vector<256x4xf32>
    %c0_96 = arith.constant 0 : index
    %c6_97 = arith.constant 6 : index
    %c30 = arith.constant 30 : index
    %c0_98 = arith.constant 0 : index
    %102 = vector.load %arg2[%c0_96, %c6_97, %c30, %c0_98] : memref<1x52x52x32xbf16, #tpu.memory_space<vmem>>, vector<1x16x16x32xbf16>
    %103 = vector.shape_cast %102 : vector<1x16x16x32xbf16> to vector<16x16x32xbf16>
    %104 = vector.shape_cast %103 : vector<16x16x32xbf16> to vector<256x32xbf16>
    %c12_99 = arith.constant 12 : index
    %c0_100 = arith.constant 0 : index
    %c0_101 = arith.constant 0 : index
    %105 = vector.load %arg3[%c12_99, %c0_100, %c0_101] : memref<28x32x4xbf16, #tpu.memory_space<vmem>>, vector<1x32x4xbf16>
    %106 = vector.shape_cast %105 : vector<1x32x4xbf16> to vector<32x4xbf16>
    %cst_102 = arith.constant dense<0.000000e+00> : vector<256x4xf32>
    %107 = tpu.matmul %104, %106, %cst_102 {dimension_numbers = #tpu.dot_dimension_numbers<[1], [0], [0], [1], [0, 0, 1, 1], [], []>} : vector<256x32xbf16>, vector<32x4xbf16>, vector<256x4xf32> -> vector<256x4xf32>
    %108 = arith.addf %101, %107 : vector<256x4xf32>
    %c0_103 = arith.constant 0 : index
    %c18_104 = arith.constant 18 : index
    %c6_105 = arith.constant 6 : index
    %c0_106 = arith.constant 0 : index
    %109 = vector.load %arg2[%c0_103, %c18_104, %c6_105, %c0_106] : memref<1x52x52x32xbf16, #tpu.memory_space<vmem>>, vector<1x16x16x32xbf16>
    %110 = vector.shape_cast %109 : vector<1x16x16x32xbf16> to vector<16x16x32xbf16>
    %111 = vector.shape_cast %110 : vector<16x16x32xbf16> to vector<256x32xbf16>
    %c13 = arith.constant 13 : index
    %c0_107 = arith.constant 0 : index
    %c0_108 = arith.constant 0 : index
    %112 = vector.load %arg3[%c13, %c0_107, %c0_108] : memref<28x32x4xbf16, #tpu.memory_space<vmem>>, vector<1x32x4xbf16>
    %113 = vector.shape_cast %112 : vector<1x32x4xbf16> to vector<32x4xbf16>
    %cst_109 = arith.constant dense<0.000000e+00> : vector<256x4xf32>
    %114 = tpu.matmul %111, %113, %cst_109 {dimension_numbers = #tpu.dot_dimension_numbers<[1], [0], [0], [1], [0, 0, 1, 1], [], []>} : vector<256x32xbf16>, vector<32x4xbf16>, vector<256x4xf32> -> vector<256x4xf32>
    %115 = arith.addf %108, %114 : vector<256x4xf32>
    %c14 = arith.constant 14 : index
    %c0_110 = arith.constant 0 : index
    %c0_111 = arith.constant 0 : index
    %116 = vector.load %arg3[%c14, %c0_110, %c0_111] : memref<28x32x4xbf16, #tpu.memory_space<vmem>>, vector<1x32x4xbf16>
    %117 = vector.shape_cast %116 : vector<1x32x4xbf16> to vector<32x4xbf16>
    %cst_112 = arith.constant dense<0.000000e+00> : vector<256x4xf32>
    %118 = tpu.matmul %5, %117, %cst_112 {dimension_numbers = #tpu.dot_dimension_numbers<[1], [0], [0], [1], [0, 0, 1, 1], [], []>} : vector<256x32xbf16>, vector<32x4xbf16>, vector<256x4xf32> -> vector<256x4xf32>
    %119 = arith.addf %115, %118 : vector<256x4xf32>
    %c0_113 = arith.constant 0 : index
    %c18_114 = arith.constant 18 : index
    %c30_115 = arith.constant 30 : index
    %c0_116 = arith.constant 0 : index
    %120 = vector.load %arg2[%c0_113, %c18_114, %c30_115, %c0_116] : memref<1x52x52x32xbf16, #tpu.memory_space<vmem>>, vector<1x16x16x32xbf16>
    %121 = vector.shape_cast %120 : vector<1x16x16x32xbf16> to vector<16x16x32xbf16>
    %122 = vector.shape_cast %121 : vector<16x16x32xbf16> to vector<256x32xbf16>
    %c15 = arith.constant 15 : index
    %c0_117 = arith.constant 0 : index
    %c0_118 = arith.constant 0 : index
    %123 = vector.load %arg3[%c15, %c0_117, %c0_118] : memref<28x32x4xbf16, #tpu.memory_space<vmem>>, vector<1x32x4xbf16>
    %124 = vector.shape_cast %123 : vector<1x32x4xbf16> to vector<32x4xbf16>
    %cst_119 = arith.constant dense<0.000000e+00> : vector<256x4xf32>
    %125 = tpu.matmul %122, %124, %cst_119 {dimension_numbers = #tpu.dot_dimension_numbers<[1], [0], [0], [1], [0, 0, 1, 1], [], []>} : vector<256x32xbf16>, vector<32x4xbf16>, vector<256x4xf32> -> vector<256x4xf32>
    %126 = arith.addf %119, %125 : vector<256x4xf32>
    %c0_120 = arith.constant 0 : index
    %c30_121 = arith.constant 30 : index
    %c6_122 = arith.constant 6 : index
    %c0_123 = arith.constant 0 : index
    %127 = vector.load %arg2[%c0_120, %c30_121, %c6_122, %c0_123] : memref<1x52x52x32xbf16, #tpu.memory_space<vmem>>, vector<1x16x16x32xbf16>
    %128 = vector.shape_cast %127 : vector<1x16x16x32xbf16> to vector<16x16x32xbf16>
    %129 = vector.shape_cast %128 : vector<16x16x32xbf16> to vector<256x32xbf16>
    %c16 = arith.constant 16 : index
    %c0_124 = arith.constant 0 : index
    %c0_125 = arith.constant 0 : index
    %130 = vector.load %arg3[%c16, %c0_124, %c0_125] : memref<28x32x4xbf16, #tpu.memory_space<vmem>>, vector<1x32x4xbf16>
    %131 = vector.shape_cast %130 : vector<1x32x4xbf16> to vector<32x4xbf16>
    %cst_126 = arith.constant dense<0.000000e+00> : vector<256x4xf32>
    %132 = tpu.matmul %129, %131, %cst_126 {dimension_numbers = #tpu.dot_dimension_numbers<[1], [0], [0], [1], [0, 0, 1, 1], [], []>} : vector<256x32xbf16>, vector<32x4xbf16>, vector<256x4xf32> -> vector<256x4xf32>
    %133 = arith.addf %126, %132 : vector<256x4xf32>
    %c0_127 = arith.constant 0 : index
    %c30_128 = arith.constant 30 : index
    %c18_129 = arith.constant 18 : index
    %c0_130 = arith.constant 0 : index
    %134 = vector.load %arg2[%c0_127, %c30_128, %c18_129, %c0_130] : memref<1x52x52x32xbf16, #tpu.memory_space<vmem>>, vector<1x16x16x32xbf16>
    %135 = vector.shape_cast %134 : vector<1x16x16x32xbf16> to vector<16x16x32xbf16>
    %136 = vector.shape_cast %135 : vector<16x16x32xbf16> to vector<256x32xbf16>
    %c17 = arith.constant 17 : index
    %c0_131 = arith.constant 0 : index
    %c0_132 = arith.constant 0 : index
    %137 = vector.load %arg3[%c17, %c0_131, %c0_132] : memref<28x32x4xbf16, #tpu.memory_space<vmem>>, vector<1x32x4xbf16>
    %138 = vector.shape_cast %137 : vector<1x32x4xbf16> to vector<32x4xbf16>
    %cst_133 = arith.constant dense<0.000000e+00> : vector<256x4xf32>
    %139 = tpu.matmul %136, %138, %cst_133 {dimension_numbers = #tpu.dot_dimension_numbers<[1], [0], [0], [1], [0, 0, 1, 1], [], []>} : vector<256x32xbf16>, vector<32x4xbf16>, vector<256x4xf32> -> vector<256x4xf32>
    %140 = arith.addf %133, %139 : vector<256x4xf32>
    %c0_134 = arith.constant 0 : index
    %c30_135 = arith.constant 30 : index
    %c30_136 = arith.constant 30 : index
    %c0_137 = arith.constant 0 : index
    %141 = vector.load %arg2[%c0_134, %c30_135, %c30_136, %c0_137] : memref<1x52x52x32xbf16, #tpu.memory_space<vmem>>, vector<1x16x16x32xbf16>
    %142 = vector.shape_cast %141 : vector<1x16x16x32xbf16> to vector<16x16x32xbf16>
    %143 = vector.shape_cast %142 : vector<16x16x32xbf16> to vector<256x32xbf16>
    %c18_138 = arith.constant 18 : index
    %c0_139 = arith.constant 0 : index
    %c0_140 = arith.constant 0 : index
    %144 = vector.load %arg3[%c18_138, %c0_139, %c0_140] : memref<28x32x4xbf16, #tpu.memory_space<vmem>>, vector<1x32x4xbf16>
    %145 = vector.shape_cast %144 : vector<1x32x4xbf16> to vector<32x4xbf16>
    %cst_141 = arith.constant dense<0.000000e+00> : vector<256x4xf32>
    %146 = tpu.matmul %143, %145, %cst_141 {dimension_numbers = #tpu.dot_dimension_numbers<[1], [0], [0], [1], [0, 0, 1, 1], [], []>} : vector<256x32xbf16>, vector<32x4xbf16>, vector<256x4xf32> -> vector<256x4xf32>
    %147 = arith.addf %140, %146 : vector<256x4xf32>
    %c0_142 = arith.constant 0 : index
    %c0_143 = arith.constant 0 : index
    %c0_144 = arith.constant 0 : index
    %c0_145 = arith.constant 0 : index
    %148 = vector.load %arg2[%c0_142, %c0_143, %c0_144, %c0_145] : memref<1x52x52x32xbf16, #tpu.memory_space<vmem>>, vector<1x16x16x32xbf16>
    %149 = vector.shape_cast %148 : vector<1x16x16x32xbf16> to vector<16x16x32xbf16>
    %150 = vector.shape_cast %149 : vector<16x16x32xbf16> to vector<256x32xbf16>
    %c19 = arith.constant 19 : index
    %c0_146 = arith.constant 0 : index
    %c0_147 = arith.constant 0 : index
    %151 = vector.load %arg3[%c19, %c0_146, %c0_147] : memref<28x32x4xbf16, #tpu.memory_space<vmem>>, vector<1x32x4xbf16>
    %152 = vector.shape_cast %151 : vector<1x32x4xbf16> to vector<32x4xbf16>
    %cst_148 = arith.constant dense<0.000000e+00> : vector<256x4xf32>
    %153 = tpu.matmul %150, %152, %cst_148 {dimension_numbers = #tpu.dot_dimension_numbers<[1], [0], [0], [1], [0, 0, 1, 1], [], []>} : vector<256x32xbf16>, vector<32x4xbf16>, vector<256x4xf32> -> vector<256x4xf32>
    %154 = arith.addf %23, %153 : vector<256x4xf32>
    %c0_149 = arith.constant 0 : index
    %c0_150 = arith.constant 0 : index
    %c18_151 = arith.constant 18 : index
    %c0_152 = arith.constant 0 : index
    %155 = vector.load %arg2[%c0_149, %c0_150, %c18_151, %c0_152] : memref<1x52x52x32xbf16, #tpu.memory_space<vmem>>, vector<1x16x16x32xbf16>
    %156 = vector.shape_cast %155 : vector<1x16x16x32xbf16> to vector<16x16x32xbf16>
    %157 = vector.shape_cast %156 : vector<16x16x32xbf16> to vector<256x32xbf16>
    %c20 = arith.constant 20 : index
    %c0_153 = arith.constant 0 : index
    %c0_154 = arith.constant 0 : index
    %158 = vector.load %arg3[%c20, %c0_153, %c0_154] : memref<28x32x4xbf16, #tpu.memory_space<vmem>>, vector<1x32x4xbf16>
    %159 = vector.shape_cast %158 : vector<1x32x4xbf16> to vector<32x4xbf16>
    %cst_155 = arith.constant dense<0.000000e+00> : vector<256x4xf32>
    %160 = tpu.matmul %157, %159, %cst_155 {dimension_numbers = #tpu.dot_dimension_numbers<[1], [0], [0], [1], [0, 0, 1, 1], [], []>} : vector<256x32xbf16>, vector<32x4xbf16>, vector<256x4xf32> -> vector<256x4xf32>
    %161 = arith.addf %154, %160 : vector<256x4xf32>
    %c0_156 = arith.constant 0 : index
    %c0_157 = arith.constant 0 : index
    %c36 = arith.constant 36 : index
    %c0_158 = arith.constant 0 : index
    %162 = vector.load %arg2[%c0_156, %c0_157, %c36, %c0_158] : memref<1x52x52x32xbf16, #tpu.memory_space<vmem>>, vector<1x16x16x32xbf16>
    %163 = vector.shape_cast %162 : vector<1x16x16x32xbf16> to vector<16x16x32xbf16>
    %164 = vector.shape_cast %163 : vector<16x16x32xbf16> to vector<256x32xbf16>
    %c21 = arith.constant 21 : index
    %c0_159 = arith.constant 0 : index
    %c0_160 = arith.constant 0 : index
    %165 = vector.load %arg3[%c21, %c0_159, %c0_160] : memref<28x32x4xbf16, #tpu.memory_space<vmem>>, vector<1x32x4xbf16>
    %166 = vector.shape_cast %165 : vector<1x32x4xbf16> to vector<32x4xbf16>
    %cst_161 = arith.constant dense<0.000000e+00> : vector<256x4xf32>
    %167 = tpu.matmul %164, %166, %cst_161 {dimension_numbers = #tpu.dot_dimension_numbers<[1], [0], [0], [1], [0, 0, 1, 1], [], []>} : vector<256x32xbf16>, vector<32x4xbf16>, vector<256x4xf32> -> vector<256x4xf32>
    %168 = arith.addf %161, %167 : vector<256x4xf32>
    %c0_162 = arith.constant 0 : index
    %c18_163 = arith.constant 18 : index
    %c0_164 = arith.constant 0 : index
    %c0_165 = arith.constant 0 : index
    %169 = vector.load %arg2[%c0_162, %c18_163, %c0_164, %c0_165] : memref<1x52x52x32xbf16, #tpu.memory_space<vmem>>, vector<1x16x16x32xbf16>
    %170 = vector.shape_cast %169 : vector<1x16x16x32xbf16> to vector<16x16x32xbf16>
    %171 = vector.shape_cast %170 : vector<16x16x32xbf16> to vector<256x32xbf16>
    %c22 = arith.constant 22 : index
    %c0_166 = arith.constant 0 : index
    %c0_167 = arith.constant 0 : index
    %172 = vector.load %arg3[%c22, %c0_166, %c0_167] : memref<28x32x4xbf16, #tpu.memory_space<vmem>>, vector<1x32x4xbf16>
    %173 = vector.shape_cast %172 : vector<1x32x4xbf16> to vector<32x4xbf16>
    %cst_168 = arith.constant dense<0.000000e+00> : vector<256x4xf32>
    %174 = tpu.matmul %171, %173, %cst_168 {dimension_numbers = #tpu.dot_dimension_numbers<[1], [0], [0], [1], [0, 0, 1, 1], [], []>} : vector<256x32xbf16>, vector<32x4xbf16>, vector<256x4xf32> -> vector<256x4xf32>
    %175 = arith.addf %168, %174 : vector<256x4xf32>
    %c23 = arith.constant 23 : index
    %c0_169 = arith.constant 0 : index
    %c0_170 = arith.constant 0 : index
    %176 = vector.load %arg3[%c23, %c0_169, %c0_170] : memref<28x32x4xbf16, #tpu.memory_space<vmem>>, vector<1x32x4xbf16>
    %177 = vector.shape_cast %176 : vector<1x32x4xbf16> to vector<32x4xbf16>
    %cst_171 = arith.constant dense<0.000000e+00> : vector<256x4xf32>
    %178 = tpu.matmul %5, %177, %cst_171 {dimension_numbers = #tpu.dot_dimension_numbers<[1], [0], [0], [1], [0, 0, 1, 1], [], []>} : vector<256x32xbf16>, vector<32x4xbf16>, vector<256x4xf32> -> vector<256x4xf32>
    %179 = arith.addf %175, %178 : vector<256x4xf32>
    %c0_172 = arith.constant 0 : index
    %c18_173 = arith.constant 18 : index
    %c36_174 = arith.constant 36 : index
    %c0_175 = arith.constant 0 : index
    %180 = vector.load %arg2[%c0_172, %c18_173, %c36_174, %c0_175] : memref<1x52x52x32xbf16, #tpu.memory_space<vmem>>, vector<1x16x16x32xbf16>
    %181 = vector.shape_cast %180 : vector<1x16x16x32xbf16> to vector<16x16x32xbf16>
    %182 = vector.shape_cast %181 : vector<16x16x32xbf16> to vector<256x32xbf16>
    %c24_176 = arith.constant 24 : index
    %c0_177 = arith.constant 0 : index
    %c0_178 = arith.constant 0 : index
    %183 = vector.load %arg3[%c24_176, %c0_177, %c0_178] : memref<28x32x4xbf16, #tpu.memory_space<vmem>>, vector<1x32x4xbf16>
    %184 = vector.shape_cast %183 : vector<1x32x4xbf16> to vector<32x4xbf16>
    %cst_179 = arith.constant dense<0.000000e+00> : vector<256x4xf32>
    %185 = tpu.matmul %182, %184, %cst_179 {dimension_numbers = #tpu.dot_dimension_numbers<[1], [0], [0], [1], [0, 0, 1, 1], [], []>} : vector<256x32xbf16>, vector<32x4xbf16>, vector<256x4xf32> -> vector<256x4xf32>
    %186 = arith.addf %179, %185 : vector<256x4xf32>
    %c0_180 = arith.constant 0 : index
    %c36_181 = arith.constant 36 : index
    %c0_182 = arith.constant 0 : index
    %c0_183 = arith.constant 0 : index
    %187 = vector.load %arg2[%c0_180, %c36_181, %c0_182, %c0_183] : memref<1x52x52x32xbf16, #tpu.memory_space<vmem>>, vector<1x16x16x32xbf16>
    %188 = vector.shape_cast %187 : vector<1x16x16x32xbf16> to vector<16x16x32xbf16>
    %189 = vector.shape_cast %188 : vector<16x16x32xbf16> to vector<256x32xbf16>
    %c25 = arith.constant 25 : index
    %c0_184 = arith.constant 0 : index
    %c0_185 = arith.constant 0 : index
    %190 = vector.load %arg3[%c25, %c0_184, %c0_185] : memref<28x32x4xbf16, #tpu.memory_space<vmem>>, vector<1x32x4xbf16>
    %191 = vector.shape_cast %190 : vector<1x32x4xbf16> to vector<32x4xbf16>
    %cst_186 = arith.constant dense<0.000000e+00> : vector<256x4xf32>
    %192 = tpu.matmul %189, %191, %cst_186 {dimension_numbers = #tpu.dot_dimension_numbers<[1], [0], [0], [1], [0, 0, 1, 1], [], []>} : vector<256x32xbf16>, vector<32x4xbf16>, vector<256x4xf32> -> vector<256x4xf32>
    %193 = arith.addf %186, %192 : vector<256x4xf32>
    %c0_187 = arith.constant 0 : index
    %c36_188 = arith.constant 36 : index
    %c18_189 = arith.constant 18 : index
    %c0_190 = arith.constant 0 : index
    %194 = vector.load %arg2[%c0_187, %c36_188, %c18_189, %c0_190] : memref<1x52x52x32xbf16, #tpu.memory_space<vmem>>, vector<1x16x16x32xbf16>
    %195 = vector.shape_cast %194 : vector<1x16x16x32xbf16> to vector<16x16x32xbf16>
    %196 = vector.shape_cast %195 : vector<16x16x32xbf16> to vector<256x32xbf16>
    %c26 = arith.constant 26 : index
    %c0_191 = arith.constant 0 : index
    %c0_192 = arith.constant 0 : index
    %197 = vector.load %arg3[%c26, %c0_191, %c0_192] : memref<28x32x4xbf16, #tpu.memory_space<vmem>>, vector<1x32x4xbf16>
    %198 = vector.shape_cast %197 : vector<1x32x4xbf16> to vector<32x4xbf16>
    %cst_193 = arith.constant dense<0.000000e+00> : vector<256x4xf32>
    %199 = tpu.matmul %196, %198, %cst_193 {dimension_numbers = #tpu.dot_dimension_numbers<[1], [0], [0], [1], [0, 0, 1, 1], [], []>} : vector<256x32xbf16>, vector<32x4xbf16>, vector<256x4xf32> -> vector<256x4xf32>
    %200 = arith.addf %193, %199 : vector<256x4xf32>
    %c0_194 = arith.constant 0 : index
    %c36_195 = arith.constant 36 : index
    %c36_196 = arith.constant 36 : index
    %c0_197 = arith.constant 0 : index
    %201 = vector.load %arg2[%c0_194, %c36_195, %c36_196, %c0_197] : memref<1x52x52x32xbf16, #tpu.memory_space<vmem>>, vector<1x16x16x32xbf16>
    %202 = vector.shape_cast %201 : vector<1x16x16x32xbf16> to vector<16x16x32xbf16>
    %203 = vector.shape_cast %202 : vector<16x16x32xbf16> to vector<256x32xbf16>
    %c27 = arith.constant 27 : index
    %c0_198 = arith.constant 0 : index
    %c0_199 = arith.constant 0 : index
    %204 = vector.load %arg3[%c27, %c0_198, %c0_199] : memref<28x32x4xbf16, #tpu.memory_space<vmem>>, vector<1x32x4xbf16>
    %205 = vector.shape_cast %204 : vector<1x32x4xbf16> to vector<32x4xbf16>
    %cst_200 = arith.constant dense<0.000000e+00> : vector<256x4xf32>
    %206 = tpu.matmul %203, %205, %cst_200 {dimension_numbers = #tpu.dot_dimension_numbers<[1], [0], [0], [1], [0, 0, 1, 1], [], []>} : vector<256x32xbf16>, vector<32x4xbf16>, vector<256x4xf32> -> vector<256x4xf32>
    %207 = arith.addf %200, %206 : vector<256x4xf32>
    %c0_i32_201 = arith.constant 0 : i32
    %208 = arith.cmpi slt, %arg1, %c0_i32_201 : i32
    %209 = arith.extui %208 : i1 to i32
    %c0_i32_202 = arith.constant 0 : i32
    %210 = arith.cmpi ne, %209, %c0_i32_202 : i32
    scf.if %210 {
      %c0_205 = arith.constant 0 : index
      %c0_206 = arith.constant 0 : index
      %c0_207 = arith.constant 0 : index
      %214 = vector.load %arg9[%c0_205, %c0_206, %c0_207] : memref<4x256x4xf32, #tpu.memory_space<vmem>>, vector<1x256x4xf32>
      %215 = vector.shape_cast %214 : vector<1x256x4xf32> to vector<256x4xf32>
      %216 = vector.shape_cast %27 : vector<256x4xf32> to vector<1x256x4xf32>
      tpu.vector_store %arg9[%c0_205, %c0_206, %c0_207], %216 {strides = array<i32>} : memref<4x256x4xf32, #tpu.memory_space<vmem>>, vector<1x256x4xf32>,
      %c1_208 = arith.constant 1 : index
      %c0_209 = arith.constant 0 : index
      %c0_210 = arith.constant 0 : index
      %217 = vector.load %arg9[%c1_208, %c0_209, %c0_210] : memref<4x256x4xf32, #tpu.memory_space<vmem>>, vector<1x256x4xf32>
      %218 = vector.shape_cast %217 : vector<1x256x4xf32> to vector<256x4xf32>
      %219 = vector.shape_cast %87 : vector<256x4xf32> to vector<1x256x4xf32>
      tpu.vector_store %arg9[%c1_208, %c0_209, %c0_210], %219 {strides = array<i32>} : memref<4x256x4xf32, #tpu.memory_space<vmem>>, vector<1x256x4xf32>,
      %c2_211 = arith.constant 2 : index
      %c0_212 = arith.constant 0 : index
      %c0_213 = arith.constant 0 : index
      %220 = vector.load %arg9[%c2_211, %c0_212, %c0_213] : memref<4x256x4xf32, #tpu.memory_space<vmem>>, vector<1x256x4xf32>
      %221 = vector.shape_cast %220 : vector<1x256x4xf32> to vector<256x4xf32>
      %222 = vector.shape_cast %147 : vector<256x4xf32> to vector<1x256x4xf32>
      tpu.vector_store %arg9[%c2_211, %c0_212, %c0_213], %222 {strides = array<i32>} : memref<4x256x4xf32, #tpu.memory_space<vmem>>, vector<1x256x4xf32>,
      %c3_214 = arith.constant 3 : index
      %c0_215 = arith.constant 0 : index
      %c0_216 = arith.constant 0 : index
      %223 = vector.load %arg9[%c3_214, %c0_215, %c0_216] : memref<4x256x4xf32, #tpu.memory_space<vmem>>, vector<1x256x4xf32>
      %224 = vector.shape_cast %223 : vector<1x256x4xf32> to vector<256x4xf32>
      %225 = vector.shape_cast %207 : vector<256x4xf32> to vector<1x256x4xf32>
      tpu.vector_store %arg9[%c3_214, %c0_215, %c0_216], %225 {strides = array<i32>} : memref<4x256x4xf32, #tpu.memory_space<vmem>>, vector<1x256x4xf32>,
      %c0_217 = arith.constant 0 : index
      %c0_218 = arith.constant 0 : index
      %226 = vector.load %arg10[%c0_217, %c0_218] : memref<1x8xf32, #tpu.memory_space<vmem>>, vector<1x8xf32>
      tpu.vector_store %arg10[%c0_217, %c0_218], %15 {strides = array<i32>} : memref<1x8xf32, #tpu.memory_space<vmem>>, vector<1x8xf32>,
    } else {
    }
    %c0_i32_203 = arith.constant 0 : i32
    %211 = arith.cmpi eq, %arg1, %c0_i32_203 : i32
    %212 = arith.extui %211 : i1 to i32
    %c0_i32_204 = arith.constant 0 : i32
    %213 = arith.cmpi ne, %212, %c0_i32_204 : i32
    scf.if %213 {
      %c0_205 = arith.constant 0 : index
      %c0_206 = arith.constant 0 : index
      %214 = vector.load %arg7[%c0_205, %c0_206] : memref<1x8xf32, #tpu.memory_space<vmem>>, vector<1x8xf32>
      %215 = arith.addf %15, %214 : vector<1x8xf32>
      %c0_207 = arith.constant 0 : index
      %c0_208 = arith.constant 0 : index
      %c0_209 = arith.constant 0 : index
      %216 = vector.load %arg4[%c0_207, %c0_208, %c0_209] : memref<4x1x4xf32, #tpu.memory_space<vmem>>, vector<1x1x4xf32>
      %217 = vector.shape_cast %216 : vector<1x1x4xf32> to vector<1x4xf32>
      %218 = vector.broadcast %217 : vector<1x4xf32> to vector<256x4xf32>
      %219 = arith.addf %27, %218 : vector<256x4xf32>
      %cst_210 = arith.constant 0.000000e+00 : f32
      %220 = vector.broadcast %cst_210 : f32 to vector<256x4xf32>
      %221 = arith.maximumf %219, %220 : vector<256x4xf32>
      %222 = arith.truncf %221 : vector<256x4xf32> to vector<256x4xbf16>
      %c0_211 = arith.constant 0 : index
      %c0_212 = arith.constant 0 : index
      %c0_213 = arith.constant 0 : index
      %223 = vector.load %arg5[%c0_211, %c0_212, %c0_213] : memref<4x4x8xbf16, #tpu.memory_space<vmem>>, vector<1x4x8xbf16>
      %224 = vector.shape_cast %223 : vector<1x4x8xbf16> to vector<4x8xbf16>
      %cst_214 = arith.constant dense<0.000000e+00> : vector<256x8xf32>
      %225 = tpu.matmul %222, %224, %cst_214 {dimension_numbers = #tpu.dot_dimension_numbers<[1], [0], [0], [1], [0, 0, 1, 1], [], []>} : vector<256x4xbf16>, vector<4x8xbf16>, vector<256x8xf32> -> vector<256x8xf32>
      %226 = vector.broadcast %215 : vector<1x8xf32> to vector<256x8xf32>
      %227 = arith.addf %226, %225 : vector<256x8xf32>
      %c1_215 = arith.constant 1 : index
      %c0_216 = arith.constant 0 : index
      %c0_217 = arith.constant 0 : index
      %228 = vector.load %arg4[%c1_215, %c0_216, %c0_217] : memref<4x1x4xf32, #tpu.memory_space<vmem>>, vector<1x1x4xf32>
      %229 = vector.shape_cast %228 : vector<1x1x4xf32> to vector<1x4xf32>
      %230 = vector.broadcast %229 : vector<1x4xf32> to vector<256x4xf32>
      %231 = arith.addf %87, %230 : vector<256x4xf32>
      %cst_218 = arith.constant 0.000000e+00 : f32
      %232 = vector.broadcast %cst_218 : f32 to vector<256x4xf32>
      %233 = arith.maximumf %231, %232 : vector<256x4xf32>
      %234 = arith.truncf %233 : vector<256x4xf32> to vector<256x4xbf16>
      %c1_219 = arith.constant 1 : index
      %c0_220 = arith.constant 0 : index
      %c0_221 = arith.constant 0 : index
      %235 = vector.load %arg5[%c1_219, %c0_220, %c0_221] : memref<4x4x8xbf16, #tpu.memory_space<vmem>>, vector<1x4x8xbf16>
      %236 = vector.shape_cast %235 : vector<1x4x8xbf16> to vector<4x8xbf16>
      %cst_222 = arith.constant dense<0.000000e+00> : vector<256x8xf32>
      %237 = tpu.matmul %234, %236, %cst_222 {dimension_numbers = #tpu.dot_dimension_numbers<[1], [0], [0], [1], [0, 0, 1, 1], [], []>} : vector<256x4xbf16>, vector<4x8xbf16>, vector<256x8xf32> -> vector<256x8xf32>
      %238 = arith.addf %227, %237 : vector<256x8xf32>
      %c2_223 = arith.constant 2 : index
      %c0_224 = arith.constant 0 : index
      %c0_225 = arith.constant 0 : index
      %239 = vector.load %arg4[%c2_223, %c0_224, %c0_225] : memref<4x1x4xf32, #tpu.memory_space<vmem>>, vector<1x1x4xf32>
      %240 = vector.shape_cast %239 : vector<1x1x4xf32> to vector<1x4xf32>
      %241 = vector.broadcast %240 : vector<1x4xf32> to vector<256x4xf32>
      %242 = arith.addf %147, %241 : vector<256x4xf32>
      %cst_226 = arith.constant 0.000000e+00 : f32
      %243 = vector.broadcast %cst_226 : f32 to vector<256x4xf32>
      %244 = arith.maximumf %242, %243 : vector<256x4xf32>
      %245 = arith.truncf %244 : vector<256x4xf32> to vector<256x4xbf16>
      %c2_227 = arith.constant 2 : index
      %c0_228 = arith.constant 0 : index
      %c0_229 = arith.constant 0 : index
      %246 = vector.load %arg5[%c2_227, %c0_228, %c0_229] : memref<4x4x8xbf16, #tpu.memory_space<vmem>>, vector<1x4x8xbf16>
      %247 = vector.shape_cast %246 : vector<1x4x8xbf16> to vector<4x8xbf16>
      %cst_230 = arith.constant dense<0.000000e+00> : vector<256x8xf32>
      %248 = tpu.matmul %245, %247, %cst_230 {dimension_numbers = #tpu.dot_dimension_numbers<[1], [0], [0], [1], [0, 0, 1, 1], [], []>} : vector<256x4xbf16>, vector<4x8xbf16>, vector<256x8xf32> -> vector<256x8xf32>
      %249 = arith.addf %238, %248 : vector<256x8xf32>
      %c3_231 = arith.constant 3 : index
      %c0_232 = arith.constant 0 : index
      %c0_233 = arith.constant 0 : index
      %250 = vector.load %arg4[%c3_231, %c0_232, %c0_233] : memref<4x1x4xf32, #tpu.memory_space<vmem>>, vector<1x1x4xf32>
      %251 = vector.shape_cast %250 : vector<1x1x4xf32> to vector<1x4xf32>
      %252 = vector.broadcast %251 : vector<1x4xf32> to vector<256x4xf32>
      %253 = arith.addf %207, %252 : vector<256x4xf32>
      %cst_234 = arith.constant 0.000000e+00 : f32
      %254 = vector.broadcast %cst_234 : f32 to vector<256x4xf32>
      %255 = arith.maximumf %253, %254 : vector<256x4xf32>
      %256 = arith.truncf %255 : vector<256x4xf32> to vector<256x4xbf16>
      %c3_235 = arith.constant 3 : index
      %c0_236 = arith.constant 0 : index
      %c0_237 = arith.constant 0 : index
      %257 = vector.load %arg5[%c3_235, %c0_236, %c0_237] : memref<4x4x8xbf16, #tpu.memory_space<vmem>>, vector<1x4x8xbf16>
      %258 = vector.shape_cast %257 : vector<1x4x8xbf16> to vector<4x8xbf16>
      %cst_238 = arith.constant dense<0.000000e+00> : vector<256x8xf32>
      %259 = tpu.matmul %256, %258, %cst_238 {dimension_numbers = #tpu.dot_dimension_numbers<[1], [0], [0], [1], [0, 0, 1, 1], [], []>} : vector<256x4xbf16>, vector<4x8xbf16>, vector<256x8xf32> -> vector<256x8xf32>
      %260 = arith.addf %249, %259 : vector<256x8xf32>
      %cst_239 = arith.constant 0.000000e+00 : f32
      %261 = vector.broadcast %cst_239 : f32 to vector<256x8xf32>
      %262 = arith.maximumf %260, %261 : vector<256x8xf32>
      %263 = vector.shape_cast %262 : vector<256x8xf32> to vector<1x256x8xf32>
      %c0_240 = arith.constant 0 : index
      %c0_241 = arith.constant 0 : index
      %c0_242 = arith.constant 0 : index
      %264 = vector.load %arg8[%c0_240, %c0_241, %c0_242] : memref<1x256x8xf32, #tpu.memory_space<vmem>>, vector<1x256x8xf32>
      tpu.vector_store %arg8[%c0_240, %c0_241, %c0_242], %263 {strides = array<i32>} : memref<1x256x8xf32, #tpu.memory_space<vmem>>, vector<1x256x8xf32>,
    } else {
    }
    return
  }
  func.func @transform_0(%arg0: i32, %arg1: i32) -> (i32, i32, i32, i32) {
    %c0_i32 = arith.constant 0 : i32
    %c0_i32_0 = arith.constant 0 : i32
    %c0_i32_1 = arith.constant 0 : i32
    return %arg0, %c0_i32, %c0_i32_0, %arg1 : i32, i32, i32, i32
  }
  func.func @transform_1(%arg0: i32, %arg1: i32) -> (i32, i32, i32) {
    %c0_i32 = arith.constant 0 : i32
    %c0_i32_0 = arith.constant 0 : i32
    %c0_i32_1 = arith.constant 0 : i32
    return %c0_i32, %arg1, %c0_i32_0 : i32, i32, i32
  }
  func.func @transform_2(%arg0: i32, %arg1: i32) -> (i32, i32, i32) {
    %c0_i32 = arith.constant 0 : i32
    %c0_i32_0 = arith.constant 0 : i32
    %c0_i32_1 = arith.constant 0 : i32
    %c0_i32_2 = arith.constant 0 : i32
    return %c0_i32, %c0_i32_0, %c0_i32_1 : i32, i32, i32
  }
  func.func @transform_3(%arg0: i32, %arg1: i32) -> (i32, i32, i32) {
    %c0_i32 = arith.constant 0 : i32
    %c0_i32_0 = arith.constant 0 : i32
    %c0_i32_1 = arith.constant 0 : i32
    %c0_i32_2 = arith.constant 0 : i32
    return %c0_i32, %c0_i32_0, %c0_i32_1 : i32, i32, i32
  }
  func.func @transform_4(%arg0: i32, %arg1: i32) -> (i32, i32) {
    %c0_i32 = arith.constant 0 : i32
    %c0_i32_0 = arith.constant 0 : i32
    return %arg1, %c0_i32 : i32, i32
  }
  func.func @transform_5(%arg0: i32, %arg1: i32) -> (i32, i32) {
    %c0_i32 = arith.constant 0 : i32
    %c0_i32_0 = arith.constant 0 : i32
    %c0_i32_1 = arith.constant 0 : i32
    return %c0_i32, %c0_i32_0 : i32, i32
  }
  func.func @transform_6(%arg0: i32, %arg1: i32) -> (i32, i32, i32) {
    %c0_i32 = arith.constant 0 : i32
    %c0_i32_0 = arith.constant 0 : i32
    %c0_i32_1 = arith.constant 0 : i32
    return %arg0, %c0_i32, %c0_i32_0 : i32, i32, i32
  }
}

</mosaic_0001>

<bundles_post_ra>
// kernel: aspp_forward.1
= control target key start
LH: loop header
LB: loop body
LE: loop exit
PB: predicated region body
PF: predicated region fallthrough
CT: control target
= control target key end

     0   :  { %s20261_s21 = smov 0   ;;  %s20263_s22 = smov 0   ;;  %s26587_s0 = inlined_call_operand.vmem [shape: bf16[2,52,52,32], index: 0, kind: input, shape index: {}]   ;;  %s26588_s1 = inlined_call_operand.vmem [shape: bf16[28,32,4], index: 1, kind: input, shape index: {}]   ;;  %s26589_s2 = inlined_call_operand.vmem [shape: f32[4,1,4], index: 2, kind: input, shape index: {}]   ;;  %s26590_s3 = inlined_call_operand.vmem [shape: bf16[4,4,8], index: 3, kind: input, shape index: {}]   ;;  %s26591_s4 = inlined_call_operand.vmem [shape: bf16[32,8], index: 4, kind: input, shape index: {}]   ;;  %s26592_s5 = inlined_call_operand.vmem [shape: f32[1,8], index: 5, kind: input, shape index: {}]   ;;  %s26593_s6 = inlined_call_operand.vmem [shape: f32[2,256,8], index: 6, kind: output, shape index: {}]  }
   0x1   :  { %s20265_s23 = smov 0  }
   0x2 LB: > { %s28_s24 = sadd.s32 1, %s20218_s22  ;;  %p14970_p0 = scmp.ge.s32.totalorder %s20222_s23, 1  ;;  %s20222_s23 = sphi %s20265_s23, %s16_s23   ;;  %s20218_s22 = sphi %s20263_s22, %s27311_s22   ;;  %s20214_s21 = sphi %s20261_s21, %s27310_s21  }
   0x3   : > { %p30_p1 = scmp.ge.s32.totalorder %s28_s24, 2  ;;  %p251_p2 = scmp.lt.s32.totalorder %s20222_s23, 3 }
   0x5   : > { %s27313_s24 = smov (%p30_p1, %s28_s24), 0  ;;  %p252_p3 = pnand %p14970_p0, %p251_p2 }
   0x7   : > { %255 = sbr.rel (%p252_p3) target bundleno = 1670 (0x686), region = 44 }
   0xe   : > { %v20048_v0 = vld [vmem:[%s26588_s1] sm:$0xff]   ;;  %p294_p4 = scmp.lt.s32.totalorder %s20214_s21, 1  ;;  %v20049_v1 = vld [vmem:[%s26588_s1 + $0x8] sm:$0xff]   ;;  %vm552_vm0 = vcmask 1042432   ;;  %vm553_vm1 = vcmask 1046532   ;;  %v26719_v2 = vmov 0 }
   0xf   : > { %17881 = vmatprep.subr.bf16.mxu1 %v20048_v0  ;;  %vm20288_vm2 = vmor %vm552_vm0, %vm553_vm1  ;;  %v20295_v3 = vld [vmem:[%s26588_s1 + $0x10] sm:$0xff]   ;;  %v26594_v4 = vmov 0.0   ;;  %v20053_v5 = vld [vmem:[%s26591_s4] sm:$0xff]   ;;  %vm20225_vm3 = vmmov 0   ;;  %vm731_vm4 = vcmask 261120   ;;  %vm1397_vm5 = vcmask 1041408  }
  0x10   : > { %s27315_s21 = smov (!%p294_p4, %s20214_s21), 1  ;;  %17882 = vmatpush3.bf16.msra.mxu1 %v20048_v0  ;;  %v26720_v2 = vsel %vm20288_vm2, 4294967295, %v26719_v2  ;;  %17873 = vmatprep.subr.bf16.mxu0 %v26594_v4  ;;  %v20054_v6 = vld [vmem:[%s26591_s4 + $0x8] sm:$0xff]   ;;  %v20319_v14 = vld [vmem:[%s26588_s1 + $0x30] sm:$0xff]   ;;  %v20052_v46 = vld [vmem:[%s26588_s1 + $0x18] sm:$0xff]   ;;  %vm1398_vm6 = vcmask 1045508  }
  0x11   : > { %17883 = vmatprep.subr.bf16.mxu1 %v20049_v1  ;;  %s20021_s29 = smul.u32 1456, %s27315_s21  ;;  %26721 = vst [vmem:[#allocation4_spill] sm:$0xff] %v26720_v2  ;;  %17877 = vmatprep.mubr.msk.bf16.mxu0 %vm20225_vm3, %v26594_v4  ;;  %vm20527_vm7 = vmor %vm1397_vm5, %vm1398_vm6  ;;  %vm5196_vm8 = vcmask 1040384   ;;  %vm5197_vm9 = vcmask 1044484   ;;  %vm453_vm11 = vcmask 57344   ;;  %vm324_vm12 = vcmask 31744  }
  0x12   : > { %17874 = vmatpush3.bf16.msra.mxu0 %v20053_v5  ;;  %v20370_v5 = vld [vmem:[%s26588_s1 + $0x20] sm:$0xff]   ;;  %vm21049_vm10 = vmor %vm5196_vm8, %vm5197_vm9  ;;  %454 = vst.msk [vmem:[#allocation3] sm:$0x1] %vm453_vm11, %v26594_v4  ;;  %s17297_s8 = sshll.u32 %s27315_s21, 8  ;;  %vm14831_vm13 = vcmask 64512  }
  0x13   : > { %s20305_s12 = scalar_lea.vmem %s26587_s0, %s20021_s29  ;;  %17875 = vmatprep.subr.bf16.mxu0 %v26594_v4  ;;  %s26481_s11 = scalar_lea.vmem %s26593_s6, %s17297_s8 }
  0x14   : > { %17884 = vmatpush3.bf16.msra.mxu1 %v20049_v1  ;;  %v14974_v7 = vld [vmem:[%s20305_s12 + $0x200] sm:$0xe]  ;;  %v14975_v8 = vld [vmem:[%s20305_s12 + $0x204] sm:$0xf]  ;;  %v14976_v9 = vld [vmem:[%s20305_s12 + $0x208] sm:$0x1] }
  0x15   : > { %v15022_v10 = vrot.slane %v14974_v7, 9  ;;  %v557_v11 = vrot.slane %v14975_v8, 5  ;;  %v560_v12 = vrot.slane %v14976_v9, 5  ;;  %v14977_v13 = vld [vmem:[%s20305_s12 + $0x21c] sm:$0xe]  ;;  %17917 = vmatprep.subr.bf16.mxu1 %v20295_v3 }
  0x16   : > { %v14978_v15 = vld [vmem:[%s20305_s12 + $0x220] sm:$0xf]  ;;  %v14979_v16 = vld [vmem:[%s20305_s12 + $0x224] sm:$0x1]  ;;  %v15023_v17 = vrot.slane %v14977_v13, 9  ;;  %17876 = vmatpush3.bf16.msra.mxu0 %v20054_v6 }
  0x17   : > { %v558_v18 = vsel %vm20288_vm2, %v15022_v10, %v557_v11  ;;  %v559_v19 = vrot.slane %v557_v11, 4  ;;  %v564_v20 = vrot.slane %v14978_v15, 5  ;;  %v567_v21 = vrot.slane %v14979_v16, 5  ;;  %v14980_v23 = vld [vmem:[%s20305_s12 + $0x238] sm:$0xe]  ;;  %17989 = vmatprep.subr.bf16.mxu0 %v20319_v14 }
  0x18   : > { %v699_v22 = vunpack.c.l.bf16 %v558_v18  ;;  %v14981_v24 = vld [vmem:[%s20305_s12 + $0x23c] sm:$0xf]  ;;  %v14982_v25 = vld [vmem:[%s20305_s12 + $0x240] sm:$0x1]  ;;  %v15024_v29 = vrot.slane %v14980_v23, 9 }
  0x19   : > { %v561_v26 = vsel %vm20288_vm2, %v559_v19, %v560_v12  ;;  %v565_v27 = vsel %vm20288_vm2, %v15023_v17, %v564_v20  ;;  %v566_v28 = vrot.slane %v564_v20, 4  ;;  %v14983_v30 = vld [vmem:[%s20305_s12 + $0x254] sm:$0xe]  ;;  %v14984_v35 = vld [vmem:[%s20305_s12 + $0x258] sm:$0xf]  ;;  %v571_v38 = vrot.slane %v14981_v24, 5 }
  0x1a   : > { %v700_v31 = vunpack.c.l.bf16 %v561_v26  ;;  %v732_v32 = vsel %vm731_vm4, %v699_v22, 0.0  ;;  %v20335_v33 = vcombine.low %v558_v18, %v561_v26  ;;  %v701_v34 = vunpack.c.l.bf16 %v565_v27  ;;  %v14985_v36 = vld [vmem:[%s20305_s12 + $0x25c] sm:$0x1]  ;;  %v14986_v41 = vld [vmem:[%s20305_s12 + $0x270] sm:$0xe] }
  0x1b   : > { %v568_v37 = vsel %vm20288_vm2, %v566_v28, %v567_v21  ;;  %v574_v39 = vrot.slane %v14982_v25, 5  ;;  %v15025_v40 = vrot.slane %v14983_v30, 9  ;;  %v572_v48 = vsel %vm20288_vm2, %v15024_v29, %v571_v38  ;;  %v14987_v51 = vld [vmem:[%s20305_s12 + $0x274] sm:$0xf]  ;;  %v14988_v55 = vld [vmem:[%s20305_s12 + $0x278] sm:$0x1] }
  0x1c   : > { %26722 = vst [vmem:[#allocation5_spill] sm:$0xff] %v20335_v33  ;;  %v733_v42 = vsel %vm731_vm4, %v700_v31, 0.0  ;;  %17885 = vmatprep.mubr.msk.bf16.mxu1 %vm731_vm4, %v20335_v33  ;;  %v702_v43 = vunpack.c.l.bf16 %v568_v37  ;;  %v735_v44 = vsel %vm731_vm4, %v701_v34, 0.0  ;;  %v20346_v45 = vcombine.low %v565_v27, %v568_v37  ;;  %v14989_v1 = vld [vmem:[%s20305_s12 + $0x28c] sm:$0xe] }
  0x1d   : > { %v734_v47 = vadd.f32 %v733_v42, %v732_v32  ;;  %v573_v49 = vrot.slane %v571_v38, 4  ;;  %v578_v50 = vrot.slane %v14984_v35, 5  ;;  %v703_v53 = vunpack.c.l.bf16 %v572_v48  ;;  %v14990_v9 = vld [vmem:[%s20305_s12 + $0x290] sm:$0xf]  ;;  %v14991_v10 = vld [vmem:[%s20305_s12 + $0x294] sm:$0x1] }
  0x1e   : > { %26723 = vst [vmem:[#allocation6_spill] sm:$0xff] %v20346_v45  ;;  %v737_v52 = vsel %vm731_vm4, %v702_v43, 0.0  ;;  %17886 = vmatmul.mubr.msk.bf16.vlgmr.msra.gmra.mrb[0].mxu1 %vm731_vm4, %v20346_v45  ;;  %v581_v54 = vrot.slane %v14985_v36, 5  ;;  %v15026_v56 = vrot.slane %v14986_v41, 9  ;;  %v588_v8 = vrot.slane %v14988_v55, 5 }
  0x1f   : > { %v736_v57 = vadd.f32 %v735_v44, %v734_v47  ;;  %v575_v58 = vsel %vm20288_vm2, %v573_v49, %v574_v39  ;;  %v579_v59 = vsel %vm20288_vm2, %v15025_v40, %v578_v50  ;;  %v580_v60 = vrot.slane %v578_v50, 4  ;;  %17918 = vmatpush3.bf16.msra.mxu1 %v20295_v3  ;;  %v14992_v15 = vld [vmem:[%s20305_s12 + $0x2a8] sm:$0xe]  ;;  %v14993_v16 = vld [vmem:[%s20305_s12 + $0x2ac] sm:$0xf] }
  0x20   : > { %v704_v61 = vunpack.c.l.bf16 %v575_v58  ;;  %v739_v62 = vsel %vm731_vm4, %v703_v53, 0.0  ;;  %v20364_v63 = vcombine.low %v572_v48, %v575_v58  ;;  %v705_v0 = vunpack.c.l.bf16 %v579_v59  ;;  %17919 = vmatprep.subr.bf16.mxu1 %v20052_v46  ;;  %v14994_v27 = vld [vmem:[%s20305_s12 + $0x2b0] sm:$0x1]  ;;  %v14995_v35 = vld [vmem:[%s20305_s12 + $0x2c4] sm:$0xe] }
  0x21   : > { %v738_v6 = vadd.f32 %v737_v52, %v736_v57  ;;  %v582_v7 = vsel %vm20288_vm2, %v580_v60, %v581_v54  ;;  %v585_v3 = vrot.slane %v14987_v51, 5  ;;  %v15027_v20 = vrot.slane %v14989_v1, 9  ;;  %v14996_v42 = vld [vmem:[%s20305_s12 + $0x2c8] sm:$0xf]  ;;  %v14997_v47 = vld [vmem:[%s20305_s12 + $0x2cc] sm:$0x1] }
  0x22   : > { %26724 = vst [vmem:[#allocation7_spill] sm:$0xff] %v20364_v63  ;;  %v741_v11 = vsel %vm731_vm4, %v704_v61, 0.0  ;;  %17889 = vmatprep.mubr.msk.bf16.mxu1 %vm731_vm4, %v20364_v63  ;;  %v706_v12 = vunpack.c.l.bf16 %v582_v7  ;;  %v20379_v13 = vcombine.low %v579_v59, %v582_v7  ;;  %v743_v21 = vsel %vm731_vm4, %v705_v0, 0.0  ;;  %v14999_v49 = vld [vmem:[%s20305_s12 + $0x2e4] sm:$0xf] }
  0x23   : > { %v740_v17 = vadd.f32 %v739_v62, %v738_v6  ;;  %v586_v18 = vsel %vm20288_vm2, %v15026_v56, %v585_v3  ;;  %v587_v19 = vrot.slane %v585_v3, 4  ;;  %17920 = vmatpush3.bf16.msra.mxu1 %v20052_v46  ;;  %v592_v23 = vrot.slane %v14990_v9, 5  ;;  %v14998_v54 = vld [vmem:[%s20305_s12 + $0x2e0] sm:$0xe]  ;;  %v15000_v58 = vld [vmem:[%s20305_s12 + $0x2e8] sm:$0x1] }
  0x24   : > { %26725 = vst [vmem:[#allocation8_spill] sm:$0xff] %v20379_v13  ;;  %v707_v22 = vunpack.c.l.bf16 %v586_v18  ;;  %v595_v24 = vrot.slane %v14991_v10, 5  ;;  %17953 = vmatprep.subr.bf16.mxu1 %v20370_v5  ;;  %v15028_v28 = vrot.slane %v14992_v15, 9  ;;  %v599_v29 = vrot.slane %v14993_v16, 5  ;;  %v15002_v16 = vld [vmem:[%s20305_s12 + $0x300] sm:$0xf] }
  0x25   : > { %v742_v25 = vadd.f32 %v741_v11, %v740_v17  ;;  %v589_v26 = vsel %vm20288_vm2, %v587_v19, %v588_v8  ;;  %v745_v30 = vsel %vm731_vm4, %v706_v12, 0.0  ;;  %v593_v34 = vsel %vm20288_vm2, %v15027_v20, %v592_v23  ;;  %v15001_v11 = vld [vmem:[%s20305_s12 + $0x2fc] sm:$0xe]  ;;  %v15003_v20 = vld [vmem:[%s20305_s12 + $0x304] sm:$0x1] }
  0x26   : > { %17890 = vmatmul.mubr.msk.bf16.gmra.mrb[4].mxu1 %vm731_vm4, %v20379_v13  ;;  %v708_v31 = vunpack.c.l.bf16 %v589_v26  ;;  %v20393_v32 = vcombine.low %v586_v18, %v589_v26  ;;  %v594_v37 = vrot.slane %v592_v23, 4  ;;  %v747_v38 = vsel %vm731_vm4, %v707_v22, 0.0 }
  0x27   : > { %v744_v36 = vadd.f32 %v743_v21, %v742_v25  ;;  %v709_v39 = vunpack.c.l.bf16 %v593_v34  ;;  %v601_v40 = vrot.slane %v599_v29, 4  ;;  %v602_v41 = vrot.slane %v14994_v27, 5  ;;  %v15005_v21 = vld [vmem:[%s20305_s12 + $0x31c] sm:$0xf]  ;;  %v15006_v25 = vld [vmem:[%s20305_s12 + $0x320] sm:$0x1] }
  0x28   : > { %26726 = vst [vmem:[#allocation9_spill] sm:$0xff] %v20393_v32  ;;  %17893 = vmatprep.mubr.msk.bf16.mxu1 %vm731_vm4, %v20393_v32  ;;  %v596_v44 = vsel %vm20288_vm2, %v594_v37, %v595_v24  ;;  %v600_v46 = vsel %vm20288_vm2, %v15028_v28, %v599_v29  ;;  %v15029_v48 = vrot.slane %v14995_v35, 9  ;;  %v749_v50 = vsel %vm731_vm4, %v708_v31, 0.0 }
  0x29   : > { %v746_v43 = vadd.f32 %v745_v30, %v744_v36  ;;  %v710_v51 = vunpack.c.l.bf16 %v596_v44  ;;  %v20409_v52 = vcombine.low %v593_v34, %v596_v44  ;;  %v603_v53 = vsel %vm20288_vm2, %v601_v40, %v602_v41  ;;  %v15004_v30 = vld [vmem:[%s20305_s12 + $0x318] sm:$0xe] }
  0x2a   : > { %v20414_v56 = vcombine.low %v600_v46, %v603_v53  ;;  %v606_v57 = vrot.slane %v14996_v42, 5  ;;  %v751_v59 = vsel %vm731_vm4, %v709_v39, 0.0  ;;  %v711_v60 = vunpack.c.l.bf16 %v600_v46  ;;  %v15008_v41 = vld [vmem:[%s20305_s12 + $0x338] sm:$0xf] }
  0x2b   : > { %26727 = vst [vmem:[#allocation10_spill] sm:$0xff] %v20409_v52  ;;  %v748_v55 = vadd.f32 %v747_v38, %v746_v43  ;;  %v609_v61 = vrot.slane %v14997_v47, 5  ;;  %v613_v62 = vrot.slane %v14999_v49, 5  ;;  %v15030_v7 = vrot.slane %v14998_v54, 9  ;;  %v15007_v49 = vld [vmem:[%s20305_s12 + $0x334] sm:$0xe] }
  0x2c   : > { %26728 = vst [vmem:[#allocation11_spill] sm:$0xff] %v20414_v56  ;;  %v607_v1 = vsel %vm20288_vm2, %v15029_v48, %v606_v57  ;;  %v608_v6 = vrot.slane %v606_v57, 4  ;;  %v753_v3 = vsel %vm731_vm4, %v710_v51, 0.0  ;;  %v712_v8 = vunpack.c.l.bf16 %v603_v53  ;;  %v15011_v54 = vld [vmem:[%s20305_s12 + $0x354] sm:$0xf] }
  0x2d   : > { %v750_v0 = vadd.f32 %v749_v50, %v748_v55  ;;  %v615_v9 = vrot.slane %v613_v62, 4  ;;  %v616_v10 = vrot.slane %v15000_v58, 5  ;;  %v755_v17 = vsel %vm731_vm4, %v711_v60, 0.0 }
  0x2e   : > { %17894 = vmatmul.mubr.msk.bf16.gmra.mrb[8].mxu1 %vm731_vm4, %v20409_v52  ;;  %v610_v15 = vsel %vm20288_vm2, %v608_v6, %v609_v61  ;;  %v713_v18 = vunpack.c.l.bf16 %v607_v1  ;;  %v614_v23 = vsel %vm20288_vm2, %v15030_v7, %v613_v62  ;;  %v15031_v24 = vrot.slane %v15001_v11, 9 }
  0x2f   : > { %v752_v12 = vadd.f32 %v751_v59, %v750_v0  ;;  %17897 = vmatprep.mubr.msk.bf16.mxu1 %vm731_vm4, %v20414_v56  ;;  %v617_v19 = vsel %vm20288_vm2, %v615_v9, %v616_v10  ;;  %v757_v26 = vsel %vm731_vm4, %v712_v8, 0.0  ;;  %v714_v27 = vunpack.c.l.bf16 %v610_v15  ;;  %v15009_v59 = vld [vmem:[%s20305_s12 + $0x33c] sm:$0x1]  ;;  %v15012_v0 = vld [vmem:[%s20305_s12 + $0x358] sm:$0x1] }
  0x30   : > { %v20438_v28 = vcombine.low %v607_v1, %v610_v15  ;;  %v620_v29 = vrot.slane %v15002_v16, 5  ;;  %v20441_v34 = vcombine.low %v614_v23, %v617_v19  ;;  %v623_v35 = vrot.slane %v15003_v20, 5 }
  0x31   : > { %v754_v22 = vadd.f32 %v753_v3, %v752_v12  ;;  %v627_v36 = vrot.slane %v15005_v21, 5  ;;  %v759_v37 = vsel %vm731_vm4, %v713_v18, 0.0  ;;  %v715_v38 = vunpack.c.l.bf16 %v614_v23  ;;  %v15010_v3 = vld [vmem:[%s20305_s12 + $0x350] sm:$0xe]  ;;  %v15017_v23 = vld [vmem:[%s20305_s12 + $0x38c] sm:$0xf] }
  0x32   : > { %26729 = vst [vmem:[#allocation12_spill] sm:$0xff] %v20438_v28  ;;  %26730 = vst [vmem:[#allocation13_spill] sm:$0xff] %v20441_v34  ;;  %v622_v39 = vrot.slane %v620_v29, 4  ;;  %v630_v40 = vrot.slane %v15006_v25, 5  ;;  %v621_v43 = vsel %vm20288_vm2, %v15031_v24, %v620_v29  ;;  %v15032_v44 = vrot.slane %v15004_v30, 9 }
  0x33   : > { %v756_v31 = vadd.f32 %v755_v17, %v754_v22  ;;  %v629_v46 = vrot.slane %v627_v36, 4  ;;  %v761_v47 = vsel %vm731_vm4, %v714_v27, 0.0  ;;  %v716_v48 = vunpack.c.l.bf16 %v617_v19  ;;  %v15014_v19 = vld [vmem:[%s20305_s12 + $0x370] sm:$0xf]  ;;  %v15015_v30 = vld [vmem:[%s20305_s12 + $0x374] sm:$0x1] }
  0x34   : > { %v624_v51 = vsel %vm20288_vm2, %v622_v39, %v623_v35  ;;  %v634_v53 = vrot.slane %v15008_v41, 5  ;;  %v763_v55 = vsel %vm731_vm4, %v715_v38, 0.0  ;;  %v717_v57 = vunpack.c.l.bf16 %v621_v43  ;;  %v15016_v38 = vld [vmem:[%s20305_s12 + $0x388] sm:$0xe] }
  0x35   : > { %v758_v42 = vadd.f32 %v757_v26, %v756_v31  ;;  %v631_v58 = vsel %vm20288_vm2, %v629_v46, %v630_v40  ;;  %v628_v61 = vsel %vm20288_vm2, %v15032_v44, %v627_v36  ;;  %v15033_v62 = vrot.slane %v15007_v49, 9  ;;  %v15013_v26 = vld [vmem:[%s20305_s12 + $0x36c] sm:$0xe] }
  0x36   : > { %17898 = vmatmul.mubr.msk.bf16.gmra.mrb[12].mxu1 %vm731_vm4, %v20438_v28  ;;  %v765_v1 = vsel %vm731_vm4, %v716_v48, 0.0  ;;  %v718_v6 = vunpack.c.l.bf16 %v624_v51  ;;  %v20464_v7 = vcombine.low %v621_v43, %v624_v51  ;;  %v641_v8 = vrot.slane %v15011_v54, 5  ;;  %v15018_v43 = vld [vmem:[%s20305_s12 + $0x390] sm:$0x1] }
  0x37   : > { %v760_v50 = vadd.f32 %v759_v37, %v758_v42  ;;  %17901 = vmatprep.mubr.msk.bf16.mxu1 %vm731_vm4, %v20441_v34  ;;  %v20467_v10 = vcombine.low %v628_v61, %v631_v58  ;;  %v636_v11 = vrot.slane %v634_v53, 4  ;;  %v637_v12 = vrot.slane %v15009_v59, 5  ;;  %v15020_v59 = vld [vmem:[%s20305_s12 + $0x3a8] sm:$0xf] }
  0x38   : > { %26731 = vst [vmem:[#allocation14_spill] sm:$0xff] %v20464_v7  ;;  %v767_v15 = vsel %vm731_vm4, %v717_v57, 0.0  ;;  %v719_v16 = vunpack.c.l.bf16 %v628_v61  ;;  %v643_v17 = vrot.slane %v641_v8, 4  ;;  %v644_v18 = vrot.slane %v15012_v0, 5 }
  0x39   : > { %v762_v60 = vadd.f32 %v761_v47, %v760_v50  ;;  %26732 = vst [vmem:[#allocation15_spill] sm:$0xff] %v20467_v10  ;;  %v635_v21 = vsel %vm20288_vm2, %v15033_v62, %v634_v53  ;;  %v15034_v22 = vrot.slane %v15010_v3, 9  ;;  %v769_v24 = vsel %vm731_vm4, %v718_v6, 0.0  ;;  %v15076_v62 = vld [vmem:[%s20305_s12 + $0x158] sm:$0xf] }
  0x3a   : > { %v720_v25 = vunpack.c.l.bf16 %v631_v58  ;;  %v638_v29 = vsel %vm20288_vm2, %v636_v11, %v637_v12  ;;  %v648_v31 = vrot.slane %v15014_v19, 5  ;;  %v771_v35 = vsel %vm731_vm4, %v719_v16, 0.0  ;;  %v15019_v6 = vld [vmem:[%s20305_s12 + $0x3a4] sm:$0xe] }
  0x3b   : > { %v764_v9 = vadd.f32 %v763_v55, %v762_v60  ;;  %v721_v36 = vunpack.c.l.bf16 %v635_v21  ;;  %v645_v37 = vsel %vm20288_vm2, %v643_v17, %v644_v18  ;;  %v655_v39 = vrot.slane %v15017_v23, 5  ;;  %v15021_v17 = vld [vmem:[%s20305_s12 + $0x3ac] sm:$0x1] }
  0x3c   : > { %v642_v41 = vsel %vm20288_vm2, %v15034_v22, %v641_v8  ;;  %v15035_v42 = vrot.slane %v15013_v26, 9  ;;  %v773_v44 = vsel %vm731_vm4, %v720_v25, 0.0  ;;  %v722_v46 = vunpack.c.l.bf16 %v638_v29  ;;  %v15077_v22 = vld [vmem:[%s20305_s12 + $0x15c] sm:$0x3] }
  0x3d   : > { %v766_v20 = vadd.f32 %v765_v1, %v764_v9  ;;  %v20491_v47 = vcombine.low %v635_v21, %v638_v29  ;;  %v651_v48 = vrot.slane %v15015_v30, 5  ;;  %v20493_v50 = vcombine.low %v642_v41, %v645_v37  ;;  %v15075_v21 = vld [vmem:[%s20305_s12 + $0x154] sm:$0xc] }
  0x3e   : > { %17902 = vmatmul.mubr.msk.bf16.gmra.mrb[16].mxu1 %vm731_vm4, %v20464_v7  ;;  %v650_v51 = vrot.slane %v648_v31, 4  ;;  %v15036_v53 = vrot.slane %v15016_v38, 9  ;;  %v775_v54 = vsel %vm731_vm4, %v721_v36, 0.0  ;;  %v723_v55 = vunpack.c.l.bf16 %v642_v41 }
  0x3f   : > { %v768_v27 = vadd.f32 %v767_v15, %v766_v20  ;;  %17905 = vmatprep.mubr.msk.bf16.mxu1 %vm731_vm4, %v20467_v10  ;;  %26733 = vst [vmem:[#allocation16_spill] sm:$0xff] %v20491_v47  ;;  %26734 = vst [vmem:[#allocation17_spill] sm:$0xff] %v20493_v50  ;;  %v657_v57 = vrot.slane %v655_v39, 4  ;;  %v658_v58 = vrot.slane %v15018_v43, 5  ;;  %v649_v61 = vsel %vm20288_vm2, %v15035_v42, %v648_v31  ;;  %v15082_v43 = vld [vmem:[%s20305_s12 + $0x190] sm:$0xf] }
  0x40   : > { %v777_v0 = vsel %vm731_vm4, %v722_v46, 0.0  ;;  %v724_v1 = vunpack.c.l.bf16 %v645_v37  ;;  %v652_v8 = vsel %vm20288_vm2, %v650_v51, %v651_v48  ;;  %v656_v9 = vsel %vm20288_vm2, %v15036_v53, %v655_v39  ;;  %v15079_v39 = vld [vmem:[%s20305_s12 + $0x174] sm:$0xf]  ;;  %v15078_v53 = vld [vmem:[%s20305_s12 + $0x170] sm:$0xc] }
  0x41   : > { %v770_v40 = vadd.f32 %v769_v24, %v768_v27  ;;  %v662_v11 = vrot.slane %v15020_v59, 5  ;;  %v779_v12 = vsel %vm731_vm4, %v723_v55, 0.0  ;;  %v725_v15 = vunpack.c.l.bf16 %v649_v61  ;;  %v15080_v59 = vld [vmem:[%s20305_s12 + $0x178] sm:$0x3] }
  0x42   : > { %v659_v16 = vsel %vm20288_vm2, %v657_v57, %v658_v58  ;;  %v1402_v18 = vrot.slane %v15076_v62, 6  ;;  %v15037_v20 = vrot.slane %v15019_v6, 9  ;;  %v781_v23 = vsel %vm731_vm4, %v724_v1, 0.0  ;;  %v15081_v62 = vld [vmem:[%s20305_s12 + $0x18c] sm:$0xc] }
  0x43   : > { %v772_v49 = vadd.f32 %v771_v35, %v770_v40  ;;  %v726_v24 = vunpack.c.l.bf16 %v652_v8  ;;  %v20517_v25 = vcombine.low %v649_v61, %v652_v8  ;;  %v727_v26 = vunpack.c.l.bf16 %v656_v9 }
  0x44   : > { %v20519_v29 = vcombine.low %v656_v9, %v659_v16  ;;  %v664_v30 = vrot.slane %v662_v11, 4  ;;  %v665_v31 = vrot.slane %v15021_v17, 5  ;;  %v783_v35 = vsel %vm731_vm4, %v725_v15, 0.0 }
  0x45   : > { %v774_v60 = vadd.f32 %v773_v44, %v772_v49  ;;  %26735 = vst [vmem:[#allocation18_spill] sm:$0xff] %v20517_v25  ;;  %v15123_v36 = vrot.slane %v15075_v21, 10  ;;  %v1404_v37 = vrot.slane %v1402_v18, 4  ;;  %v1405_v38 = vrot.slane %v15077_v22, 6  ;;  %v15088_v22 = vld [vmem:[%s20305_s12 + $0x1c8] sm:$0xf] }
  0x46   : > { %17906 = vmatmul.mubr.msk.bf16.gmra.mrb[20].mxu1 %vm731_vm4, %v20491_v47  ;;  %26736 = vst [vmem:[#allocation19_spill] sm:$0xff] %v20519_v29  ;;  %v663_v41 = vsel %vm20288_vm2, %v15037_v20, %v662_v11  ;;  %v26737_v42 = vmov 0  ;;  %v785_v44 = vsel %vm731_vm4, %v726_v24, 0.0  ;;  %v728_v46 = vunpack.c.l.bf16 %v659_v16  ;;  %v15085_v20 = vld [vmem:[%s20305_s12 + $0x1ac] sm:$0xf] }
  0x47   : > { %v776_v3 = vadd.f32 %v775_v54, %v774_v60  ;;  %17909 = vmatprep.mubr.msk.bf16.mxu1 %vm731_vm4, %v20493_v50  ;;  %v26738_v42 = vsel %vm20527_vm7, 4294967295, %v26737_v42  ;;  %v787_v49 = vsel %vm731_vm4, %v727_v26, 0.0  ;;  %v666_v51 = vsel %vm20288_vm2, %v664_v30, %v665_v31  ;;  %v15084_v24 = vld [vmem:[%s20305_s12 + $0x1a8] sm:$0xc] }
  0x48   : > { %26739 = vst [vmem:[#allocation20_spill] sm:$0xff] %v26738_v42  ;;  %v1409_v54 = vrot.slane %v15079_v39, 6  ;;  %v729_v55 = vunpack.c.l.bf16 %v663_v41  ;;  %v1403_v57 = vsel %vm20527_vm7, %v15123_v36, %v1402_v18  ;;  %v1406_v58 = vsel %vm20527_vm7, %v1404_v37, %v1405_v38  ;;  %v15086_v37 = vld [vmem:[%s20305_s12 + $0x1b0] sm:$0x3] }
  0x49   : > { %v778_v19 = vadd.f32 %v777_v0, %v776_v3  ;;  %v1416_v60 = vrot.slane %v15082_v43, 6  ;;  %v15083_v0 = vld [vmem:[%s20305_s12 + $0x194] sm:$0x3]  ;;  %v789_v1 = vsel %vm731_vm4, %v728_v46, 0.0  ;;  %v730_v6 = vunpack.c.l.bf16 %v666_v51 }
  0x4a   : > { %v20549_v3 = vcombine.low %v663_v41, %v666_v51  ;;  %v15124_v8 = vrot.slane %v15078_v53, 10  ;;  %v15143_v11 = vcombine.low %v1403_v57, %v1406_v58  ;;  %v1412_v15 = vrot.slane %v15080_v59, 6  ;;  %v15089_v41 = vld [vmem:[%s20305_s12 + $0x1cc] sm:$0x3]  ;;  %v15091_v57 = vld [vmem:[%s20305_s12 + $0x1e4] sm:$0xf] }
  0x4b   : > { %v780_v27 = vadd.f32 %v779_v12, %v778_v19  ;;  %v1411_v12 = vrot.slane %v1409_v54, 4  ;;  %v791_v16 = vsel %vm731_vm4, %v729_v55, 0.0  ;;  %v15125_v17 = vrot.slane %v15081_v62, 10  ;;  %v20070_v58 = vld [vmem:[%s26588_s1 + $0x28] sm:$0xff]  }
  0x4c   : > { %26740 = vst [vmem:[#allocation21_spill] sm:$0xff] %v20549_v3  ;;  %v1418_v18 = vrot.slane %v1416_v60, 4  ;;  %v1419_v19 = vrot.slane %v15083_v0, 6  ;;  %v1423_v31 = vrot.slane %v15085_v20, 6  ;;  %v1430_v38 = vrot.slane %v15088_v22, 6 }
  0x4d   : > { %v782_v40 = vadd.f32 %v781_v23, %v780_v27  ;;  %v793_v23 = vsel %vm731_vm4, %v730_v6, 0.0  ;;  %v1410_v27 = vsel %vm20527_vm7, %v15124_v8, %v1409_v54  ;;  %v1413_v30 = vsel %vm20527_vm7, %v1411_v12, %v1412_v15  ;;  %v20591_v15 = vld [vmem:[%s26588_s1 + $0xa0] sm:$0xff]  }
  0x4e   : > { %17910 = vmatmul.mubr.msk.bf16.gmra.mrb[24].mxu1 %vm731_vm4, %v20517_v25  ;;  %v1420_v36 = vsel %vm20527_vm7, %v1418_v18, %v1419_v19  ;;  %v15144_v43 = vcombine.low %v1410_v27, %v1413_v30  ;;  %v1432_v54 = vrot.slane %v1430_v38, 4  ;;  %v1433_v55 = vrot.slane %v15089_v41, 6  ;;  %v15097_v30 = vld [vmem:[%s20305_s12 + $0x21c] sm:$0xf] }
  0x4f   : > { %v784_v48 = vadd.f32 %v783_v35, %v782_v40  ;;  %17913 = vmatprep.mubr.msk.bf16.mxu1 %vm731_vm4, %v20519_v29  ;;  %v1417_v35 = vsel %vm20527_vm7, %v15125_v17, %v1416_v60  ;;  %v15087_v40 = vld [vmem:[%s20305_s12 + $0x1c4] sm:$0xc]  ;;  %v15094_v60 = vld [vmem:[%s20305_s12 + $0x200] sm:$0xf]  ;;  %v1437_v6 = vrot.slane %v15091_v57, 6  ;;  %v1451_v41 = vrot.slane %v15097_v30, 6 }
  0x50   : > { %v15145_v46 = vcombine.low %v1417_v35, %v1420_v36  ;;  %v15127_v53 = vrot.slane %v15087_v40, 10  ;;  %v1444_v12 = vrot.slane %v15094_v60, 6  ;;  %v15093_v17 = vld [vmem:[%s20305_s12 + $0x1fc] sm:$0xc]  ;;  %v15279_v36 = vld [vmem:[%s20305_s12 + $0x160] sm:$0xf] }
  0x51   : > { %v786_v61 = vadd.f32 %v785_v44, %v784_v48  ;;  %v15126_v44 = vrot.slane %v15084_v24, 10  ;;  %v1425_v48 = vrot.slane %v1423_v31, 4  ;;  %v1439_v22 = vrot.slane %v1437_v6, 4  ;;  %v20598_v35 = vld [vmem:[%s20305_s12 + $0x15c] sm:$0xf] }
  0x52   : > { %v1431_v8 = vsel %vm20527_vm7, %v15127_v53, %v1430_v38  ;;  %v15129_v24 = vrot.slane %v15093_v17, 10  ;;  %v15101_v57 = vld [vmem:[%s20305_s12 + $0x23c] sm:$0x3]  ;;  %v15281_v17 = vld [vmem:[%s20305_s12 + $0x198] sm:$0xf] }
  0x53   : > { %v788_v9 = vadd.f32 %v787_v49, %v786_v61  ;;  %v1426_v49 = vrot.slane %v15086_v37, 6  ;;  %v1424_v61 = vsel %vm20527_vm7, %v15126_v44, %v1423_v31  ;;  %v15100_v37 = vld [vmem:[%s20305_s12 + $0x238] sm:$0xf]  ;;  %v15280_v60 = vld [vmem:[%s20305_s12 + $0x17c] sm:$0xf] }
  0x54   : > { %v1445_v44 = vsel %vm20527_vm7, %v15129_v24, %v1444_v12 }
  0x55   : > { %v790_v21 = vadd.f32 %v789_v1, %v788_v9  ;;  %v1427_v62 = vsel %vm20527_vm7, %v1425_v48, %v1426_v49  ;;  %v15090_v1 = vld [vmem:[%s20305_s12 + $0x1e0] sm:$0xc]  ;;  %v1434_v9 = vsel %vm20527_vm7, %v1432_v54, %v1433_v55  ;;  %v15096_v48 = vld [vmem:[%s20305_s12 + $0x218] sm:$0xc]  ;;  %v15098_v49 = vld [vmem:[%s20305_s12 + $0x220] sm:$0x3] }
  0x56   : > { %17914 = vmatmul.mubr.msk.bf16.gmra.mrb[28].mxu1 %vm731_vm4, %v20549_v3  ;;  %v15146_v18 = vcombine.low %v1424_v61, %v1427_v62  ;;  %v15128_v19 = vrot.slane %v15090_v1, 10  ;;  %v20056_v54 = vld [vmem:[%s26588_s1 + $0x38] sm:$0xff]   ;;  %v15099_v55 = vld [vmem:[%s20305_s12 + $0x234] sm:$0xc]  ;;  %v15130_v62 = vrot.slane %v15096_v48, 10  ;;  %v1454_v1 = vrot.slane %v15098_v49, 6 }
  0x57   : > { %v792_v26 = vadd.f32 %v791_v16, %v790_v21  ;;  %17921 = vmatprep.mubr.msk.bf16.mxu1 %vm731_vm4, %v15143_v11  ;;  %v15092_v11 = vld [vmem:[%s20305_s12 + $0x1e8] sm:$0x3]  ;;  %v15147_v21 = vcombine.low %v1431_v8, %v1434_v9  ;;  %v15131_v8 = vrot.slane %v15099_v55, 10  ;;  %v15283_v55 = vld [vmem:[%s20305_s12 + $0x1d0] sm:$0xf] }
  0x59   : > { %v794_v39 = vadd.f32 %v793_v23, %v792_v26  ;;  %v1440_v23 = vrot.slane %v15092_v11, 6  ;;  %v1446_v26 = vrot.slane %v1444_v12, 4  ;;  %v1461_v11 = vrot.slane %v15101_v57, 6  ;;  %v15103_v12 = vld [vmem:[%s20305_s12 + $0x254] sm:$0xf] }
  0x5a   : > { %v15112_v57 = vld [vmem:[%s20305_s12 + $0x2a8] sm:$0xf] }
  0x5b   : > { %v795_v51 = vrot.slane %v794_v39, 4  ;;  %v1441_v40 = vsel %vm20527_vm7, %v1439_v22, %v1440_v23 }
  0x5d   : > { %v796_v59 = vadd.f32 %v795_v51, %v794_v39  ;;  %v1438_v39 = vsel %vm20527_vm7, %v15128_v19, %v1437_v6  ;;  %v1458_v51 = vrot.slane %v15100_v37, 6  ;;  %v20058_v6 = vld [vmem:[%s26588_s1 + $0x40] sm:$0xff]  }
  0x5e   : > { %17922 = vmatmul.mubr.msk.bf16.vlgmr.msra.gmra.mrb[32].mxu1 %vm731_vm4, %v15144_v43  ;;  %v15299_v43 = vcombine.low %v20598_v35, %v15279_v36  ;;  %v15107_v36 = vld [vmem:[%s20305_s12 + $0x274] sm:$0x3] }
  0x5f   : > { %17925 = vmatprep.mubr.msk.bf16.mxu1 %vm731_vm4, %v15145_v46  ;;  %v797_v0 = vrot.slane %v796_v59, 2  ;;  %17954 = vmatpush3.bf16.msra.mxu1 %v20370_v5  ;;  %v15095_v5 = vld [vmem:[%s20305_s12 + $0x204] sm:$0x3]  ;;  %v1460_v9 = vrot.slane %v1458_v51, 4  ;;  %v1459_v23 = vsel %vm20527_vm7, %v15131_v8, %v1458_v51  ;;  %v1475_v49 = vrot.slane %v15107_v36, 6 }
  0x60   : > { %17955 = vmatprep.subr.bf16.mxu1 %v20070_v58  ;;  %v1447_v27 = vrot.slane %v15095_v5, 6  ;;  %v15106_v5 = vld [vmem:[%s20305_s12 + $0x270] sm:$0xf]  ;;  %v15109_v51 = vld [vmem:[%s20305_s12 + $0x28c] sm:$0xf] }
  0x61   : > { %v798_v16 = vadd.f32 %v797_v0, %v796_v59  ;;  %v20621_v59 = vld [vmem:[%s20305_s12 + $0x178] sm:$0xf]  ;;  %v1453_v0 = vrot.slane %v1451_v41, 4  ;;  %v1462_v24 = vsel %vm20527_vm7, %v1460_v9, %v1461_v11  ;;  %v1472_v30 = vrot.slane %v15106_v5, 6  ;;  %v15108_v8 = vld [vmem:[%s20305_s12 + $0x288] sm:$0xc] }
  0x62   : > { %v1448_v46 = vsel %vm20527_vm7, %v1446_v26, %v1447_v27  ;;  %v15104_v26 = vld [vmem:[%s20305_s12 + $0x258] sm:$0x3]  ;;  %v15105_v27 = vld [vmem:[%s20305_s12 + $0x26c] sm:$0xc]  ;;  %v15110_v9 = vld [vmem:[%s20305_s12 + $0x290] sm:$0x3] }
  0x63   : > { %v799_v20 = vrot.slane %v798_v16, 1  ;;  %17956 = vmatpush3.bf16.msra.mxu1 %v20070_v58  ;;  %v15148_v58 = vcombine.low %v1438_v39, %v1441_v40  ;;  %v15149_v61 = vcombine.low %v1445_v44, %v1448_v46  ;;  %v1455_v19 = vsel %vm20527_vm7, %v1453_v0, %v1454_v1  ;;  %v15282_v39 = vld [vmem:[%s20305_s12 + $0x1b4] sm:$0xf]  ;;  %v15118_v36 = vld [vmem:[%s20305_s12 + $0x2e0] sm:$0xf] }
  0x64   : > { %18241 = vmatprep.subr.bf16.mxu1 %v20591_v15  ;;  %v15151_v40 = vcombine.low %v1459_v23, %v1462_v24  ;;  %v1468_v44 = vrot.slane %v15104_v26, 6  ;;  %v15133_v46 = vrot.slane %v15105_v27, 10  ;;  %v1474_v48 = vrot.slane %v1472_v30, 4  ;;  %v15115_v27 = vld [vmem:[%s20305_s12 + $0x2c4] sm:$0xf] }
  0x65   : > { %v800_v31 = vadd.f32 %v799_v20, %v798_v16  ;;  %v20632_v16 = vld [vmem:[%s20305_s12 + $0x194] sm:$0xf]  ;;  %v15102_v20 = vld [vmem:[%s20305_s12 + $0x250] sm:$0xc]  ;;  %v1486_v11 = vrot.slane %v15112_v57, 6 }
  0x66   : > { %17926 = vmatmul.mubr.msk.bf16.gmra.mrb[36].mxu1 %vm731_vm4, %v15146_v18  ;;  %v1452_v18 = vsel %vm20527_vm7, %v15130_v62, %v1451_v41  ;;  %v15301_v22 = vcombine.low %v20632_v16, %v15281_v17  ;;  %v15132_v41 = vrot.slane %v15102_v20, 10  ;;  %v1479_v62 = vrot.slane %v15109_v51, 6  ;;  %v15113_v17 = vld [vmem:[%s20305_s12 + $0x2ac] sm:$0x3]  ;;  %v15119_v57 = vld [vmem:[%s20305_s12 + $0x2e4] sm:$0x3] }
  0x67   : > { %v801_v38 = vmul.f32 0.00390625, %v800_v31  ;;  %17929 = vmatprep.mubr.msk.bf16.mxu1 %vm731_vm4, %v15147_v21  ;;  %v1465_v21 = vrot.slane %v15103_v12, 6  ;;  %v20067_v31 = vld [vmem:[%s26588_s1 + $0x48] sm:$0xff]   ;;  %v15150_v37 = vcombine.low %v1452_v18, %v1455_v19  ;;  %v1473_v1 = vsel %vm20527_vm7, %v15133_v46, %v1472_v30  ;;  %v15111_v12 = vld [vmem:[%s20305_s12 + $0x2a4] sm:$0xc] }
  0x68   : > { %v15284_v18 = vld [vmem:[%s20305_s12 + $0x1ec] sm:$0xf]  ;;  %v15134_v20 = vrot.slane %v15108_v8, 10  ;;  %v15135_v23 = vrot.slane %v15111_v12, 10  ;;  %v1488_v24 = vrot.slane %v1486_v11, 4  ;;  %v1489_v26 = vrot.slane %v15113_v17, 6 }
  0x69   : > { %v802_v53 = vpack.c.bf16 %v801_v38, %v801_v38  ;;  %v20656_v38 = vld [vmem:[%s20305_s12 + $0x1b0] sm:$0xf]  ;;  %v20697_v30 = vld [vmem:[%s20305_s12 + $0x204] sm:$0xf]  ;;  %v1500_v51 = vrot.slane %v15118_v36, 6 }
  0x6a   : > { %v1490_v46 = vsel %vm20527_vm7, %v1488_v24, %v1489_v26  ;;  %v15121_v12 = vld [vmem:[%s20305_s12 + $0x2fc] sm:$0xf]  ;;  %v15120_v26 = vld [vmem:[%s20305_s12 + $0x2f8] sm:$0xc]  ;;  %v15179_v36 = vld [vmem:[%s20305_s12 + $0x160] sm:$0x1] }
  0x6b   : > { %17878 = vmatmul.mubr.msk.bf16.vlgmr.msra.gmra.mrb[0].mxu0 %vm731_vm4, %v802_v53  ;;  %v20665_v53 = vld [vmem:[%s26588_s1 + $0x50] sm:$0xff]   ;;  %v20725_v17 = vld [vmem:[%s20305_s12 + $0x23c] sm:$0xf] }
  0x6c   : > { %17990 = vmatpush3.bf16.msra.mxu0 %v20319_v14  ;;  %17993 = vmatprep.mubr.msk.bf16.mxu0 %vm731_vm4, %v15299_v43  ;;  %v15300_v14 = vcombine.low %v20621_v59, %v15280_v60  ;;  %v1467_v43 = vrot.slane %v1465_v21, 4  ;;  %v1466_v60 = vsel %vm20527_vm7, %v15132_v41, %v1465_v21  ;;  %v1481_v21 = vrot.slane %v1479_v62, 4 }
  0x6d   : > { %17991 = vmatprep.subr.bf16.mxu0 %v20056_v54  ;;  %v1493_v41 = vrot.slane %v15115_v27, 6  ;;  %v15122_v27 = vld [vmem:[%s20305_s12 + $0x300] sm:$0x3] }
  0x6e   : > { %17930 = vmatmul.mubr.msk.bf16.gmra.mrb[40].mxu1 %vm731_vm4, %v15148_v58  ;;  %v15302_v58 = vcombine.low %v20656_v38, %v15282_v39  ;;  %v1480_v39 = vsel %vm20527_vm7, %v15134_v20, %v1479_v62 }
  0x6f   : > { %17933 = vmatprep.mubr.msk.bf16.mxu1 %vm731_vm4, %v15149_v61  ;;  %v1469_v61 = vsel %vm20527_vm7, %v1467_v43, %v1468_v44  ;;  %v1487_v44 = vsel %vm20527_vm7, %v15135_v23, %v1486_v11  ;;  %v1503_v11 = vrot.slane %v15119_v57, 6  ;;  %v15289_v57 = vld [vmem:[%s20305_s12 + $0x278] sm:$0xf] }
  0x70   : > { %17992 = vmatpush3.bf16.msra.mxu0 %v20056_v54  ;;  %v20668_v54 = vld [vmem:[%s20305_s12 + $0x1cc] sm:$0xf]  ;;  %v15152_v5 = vcombine.low %v1466_v60, %v1469_v61  ;;  %v20718_v60 = vld [vmem:[%s20305_s12 + $0x220] sm:$0xf]  ;;  %v15286_v61 = vld [vmem:[%s20305_s12 + $0x224] sm:$0xf]  ;;  %v15155_v62 = vcombine.low %v1487_v44, %v1490_v46 }
  0x71   : > { %18025 = vmatprep.subr.bf16.mxu0 %v20058_v6  ;;  %v15303_v0 = vcombine.low %v20668_v54, %v15283_v55  ;;  %v15117_v55 = vld [vmem:[%s20305_s12 + $0x2dc] sm:$0xc]  ;;  %v1510_v44 = vrot.slane %v15122_v27, 6  ;;  %v20748_v46 = vld [vmem:[%s20305_s12 + $0x258] sm:$0xf] }
  0x72   : > { %v15137_v8 = vrot.slane %v15117_v55, 10  ;;  %v20752_v55 = vld [vmem:[%s20305_s12 + $0x274] sm:$0xf]  ;;  %v20780_v27 = vld [vmem:[%s20305_s12 + $0x2ac] sm:$0xf] }
  0x73   : > { %17994 = vmatmul.mubr.msk.bf16.vlgmr.msra.gmra.mrb[4].mxu0 %vm731_vm4, %v15300_v14  ;;  %v20690_v14 = vld [vmem:[%s20305_s12 + $0x1e8] sm:$0xf] }
  0x74   : > { %18026 = vmatpush3.bf16.msra.mxu0 %v20058_v6  ;;  %17997 = vmatprep.mubr.msk.bf16.mxu0 %vm731_vm4, %v15301_v22  ;;  %v1476_v6 = vsel %vm20527_vm7, %v1474_v48, %v1475_v49  ;;  %v1482_v22 = vrot.slane %v15110_v9, 6  ;;  %v15114_v48 = vld [vmem:[%s20305_s12 + $0x2c0] sm:$0xc]  ;;  %v15116_v49 = vld [vmem:[%s20305_s12 + $0x2c8] sm:$0x3]  ;;  %v1502_v9 = vrot.slane %v1500_v51, 4 }
  0x75   : > { %18027 = vmatprep.subr.bf16.mxu0 %v20067_v31  ;;  %v15153_v19 = vcombine.low %v1473_v1, %v1476_v6  ;;  %v1495_v1 = vrot.slane %v1493_v41, 4  ;;  %v1496_v6 = vrot.slane %v15116_v49, 6 }
  0x76   : > { %17934 = vmatmul.mubr.msk.bf16.gmra.mrb[44].mxu1 %vm731_vm4, %v15150_v37  ;;  %v15304_v37 = vcombine.low %v20690_v14, %v15284_v18  ;;  %v1916_v18 = vrot.slane %v20598_v35, 5  ;;  %v1501_v35 = vsel %vm20527_vm7, %v15137_v8, %v1500_v51  ;;  %v1504_v24 = vsel %vm20527_vm7, %v1502_v9, %v1503_v11  ;;  %v15180_v8 = vld [vmem:[%s20305_s12 + $0x174] sm:$0xe]  ;;  %v15182_v9 = vld [vmem:[%s20305_s12 + $0x17c] sm:$0x1] }
  0x77   : > { %17937 = vmatprep.mubr.msk.bf16.mxu1 %vm731_vm4, %v15151_v40  ;;  %v1483_v40 = vsel %vm20527_vm7, %v1481_v21, %v1482_v22  ;;  %v1497_v21 = vsel %vm20527_vm7, %v1495_v1, %v1496_v6  ;;  %v1507_v22 = vrot.slane %v15121_v12, 6  ;;  %v1919_v51 = vrot.slane %v15179_v36, 5  ;;  %v15183_v11 = vld [vmem:[%s20305_s12 + $0x190] sm:$0xe]  ;;  %v15185_v12 = vld [vmem:[%s20305_s12 + $0x198] sm:$0x1] }
  0x78   : > { %18028 = vmatpush3.bf16.msra.mxu0 %v20067_v31  ;;  %v15285_v31 = vld [vmem:[%s20305_s12 + $0x208] sm:$0xf]  ;;  %v15309_v6 = vcombine.low %v20752_v55, %v15289_v57  ;;  %v1937_v36 = vrot.slane %v20656_v38, 5 }
  0x79   : > { %18061 = vmatprep.subr.bf16.mxu0 %v20665_v53  ;;  %v15305_v43 = vcombine.low %v20697_v30, %v15285_v31  ;;  %v15177_v31 = vld [vmem:[%s20305_s12 + $0x158] sm:$0xe] }
  0x7a   : > { %v15225_v49 = vrot.slane %v15177_v31, 9  ;;  %v15291_v31 = vld [vmem:[%s20305_s12 + $0x2b0] sm:$0xf]  ;;  %v1939_v57 = vrot.slane %v1937_v36, 4 }
  0x7b   : > { %17998 = vmatmul.mubr.msk.bf16.gmra.mrb[8].mxu0 %vm731_vm4, %v15302_v58  ;;  %v15154_v58 = vcombine.low %v1480_v39, %v1483_v40  ;;  %v15157_v40 = vcombine.low %v1501_v35, %v1504_v24  ;;  %v15290_v35 = vld [vmem:[%s20305_s12 + $0x294] sm:$0xf]  ;;  %v15227_v24 = vrot.slane %v15183_v11, 9 }
  0x7c   : > { %18001 = vmatprep.mubr.msk.bf16.mxu0 %vm731_vm4, %v15303_v0  ;;  %v15136_v0 = vrot.slane %v15114_v48, 10  ;;  %v15288_v48 = vld [vmem:[%s20305_s12 + $0x25c] sm:$0xf] }
  0x7e   : > { %17938 = vmatmul.mubr.msk.bf16.gmra.mrb[48].mxu1 %vm731_vm4, %v15152_v5  ;;  %v15287_v5 = vld [vmem:[%s20305_s12 + $0x240] sm:$0xf]  ;;  %v1494_v20 = vsel %vm20527_vm7, %v15136_v0, %v1493_v41  ;;  %v15138_v41 = vrot.slane %v15120_v26, 10  ;;  %v1933_v26 = vrot.slane %v15185_v12, 5  ;;  %v20812_v12 = vld [vmem:[%s20305_s12 + $0x2e4] sm:$0xf] }
  0x7f   : > { %17941 = vmatprep.mubr.msk.bf16.mxu1 %vm731_vm4, %v15153_v19  ;;  %v15306_v19 = vcombine.low %v20718_v60, %v15286_v61  ;;  %v15307_v23 = vcombine.low %v20725_v17, %v15287_v5  ;;  %v15156_v39 = vcombine.low %v1494_v20, %v1497_v21  ;;  %v1930_v61 = vrot.slane %v20632_v16, 5 }
  0x80   : > { %v1508_v0 = vsel %vm20527_vm7, %v15138_v41, %v1507_v22 }
  0x81   : > { %v1932_v20 = vrot.slane %v1930_v61, 4  ;;  %v1931_v38 = vsel %vm20288_vm2, %v15227_v24, %v1930_v61 }
  0x83   : > { %18002 = vmatmul.mubr.msk.bf16.gmra.mrb[12].mxu0 %vm731_vm4, %v15304_v37  ;;  %v1918_v37 = vrot.slane %v1916_v18, 4 }
  0x84   : > { %18005 = vmatprep.mubr.msk.bf16.mxu0 %vm731_vm4, %v15305_v43  ;;  %v1509_v43 = vrot.slane %v1507_v22, 4  ;;  %v15226_v22 = vrot.slane %v15180_v8, 9  ;;  %v15292_v8 = vld [vmem:[%s20305_s12 + $0x2cc] sm:$0xf] }
  0x85   : > { %v1920_v16 = vsel %vm20288_vm2, %v1918_v37, %v1919_v51  ;;  %v1944_v37 = vrot.slane %v20668_v54, 5  ;;  %v15186_v54 = vld [vmem:[%s20305_s12 + $0x1ac] sm:$0xe]  ;;  %v15191_v51 = vld [vmem:[%s20305_s12 + $0x1d0] sm:$0x1] }
  0x86   : > { %17942 = vmatmul.mubr.msk.bf16.gmra.mrb[52].mxu1 %vm731_vm4, %v15154_v58  ;;  %v1923_v58 = vrot.slane %v20621_v59, 5  ;;  %v1511_v1 = vsel %vm20527_vm7, %v1509_v43, %v1510_v44  ;;  %v1917_v59 = vsel %vm20288_vm2, %v15225_v49, %v1916_v18  ;;  %v20776_v18 = vld [vmem:[%s20305_s12 + $0x290] sm:$0xf]  ;;  %v15311_v43 = vcombine.low %v20780_v27, %v15291_v31  ;;  %v15189_v49 = vld [vmem:[%s20305_s12 + $0x1c8] sm:$0xe] }
  0x87   : > { %17945 = vmatprep.mubr.msk.bf16.mxu1 %vm731_vm4, %v15155_v62  ;;  %v15308_v62 = vcombine.low %v20748_v46, %v15288_v48  ;;  %v15245_v21 = vcombine.low %v1917_v59, %v1920_v16  ;;  %v1934_v44 = vsel %vm20288_vm2, %v1932_v20, %v1933_v26  ;;  %v15188_v48 = vld [vmem:[%s20305_s12 + $0x1b4] sm:$0x1]  ;;  %v20080_v59 = vld [vmem:[%s26588_s1 + $0xa8] sm:$0xff]   ;;  %v1947_v11 = vrot.slane %v15191_v51, 5  ;;  %v15192_v26 = vld [vmem:[%s20305_s12 + $0x1e4] sm:$0xe] }
  0x88   : > { %v1925_v5 = vrot.slane %v1923_v58, 4  ;;  %v15247_v61 = vcombine.low %v1931_v38, %v1934_v44  ;;  %v20808_v16 = vld [vmem:[%s20305_s12 + $0x2c8] sm:$0xf]  ;;  %v1951_v20 = vrot.slane %v20690_v14, 5  ;;  %v15194_v31 = vld [vmem:[%s20305_s12 + $0x1ec] sm:$0x1] }
  0x89   : > { %v1958_v14 = vrot.slane %v20697_v30, 5  ;;  %v15340_v51 = vld [vmem:[%s20305_s12 + $0x238] sm:$0xf] }
  0x8b   : > { %18006 = vmatmul.mubr.msk.bf16.gmra.mrb[16].mxu0 %vm731_vm4, %v15306_v19  ;;  %v15158_v19 = vcombine.low %v1508_v0, %v1511_v1  ;;  %v1946_v0 = vrot.slane %v1944_v37, 4  ;;  %v15228_v1 = vrot.slane %v15186_v54, 9  ;;  %v15197_v54 = vld [vmem:[%s20305_s12 + $0x208] sm:$0x1] }
  0x8c   : > { %18009 = vmatprep.mubr.msk.bf16.mxu0 %vm731_vm4, %v15307_v23  ;;  %v1926_v23 = vrot.slane %v15182_v9, 5  ;;  %v15229_v9 = vrot.slane %v15189_v49, 9 }
  0x8e   : > { %17946 = vmatmul.mubr.msk.bf16.gmra.mrb[56].mxu1 %vm731_vm4, %v15156_v39  ;;  %v15310_v39 = vcombine.low %v20776_v18, %v15290_v35  ;;  %v1927_v41 = vsel %vm20288_vm2, %v1925_v5, %v1926_v23  ;;  %v15293_v5 = vld [vmem:[%s20305_s12 + $0x2e8] sm:$0xf]  ;;  %v15312_v23 = vcombine.low %v20808_v16, %v15292_v8  ;;  %v1938_v35 = vsel %vm20288_vm2, %v15228_v1, %v1937_v36 }
  0x8f   : > { %17949 = vmatprep.mubr.msk.bf16.mxu1 %vm731_vm4, %v15157_v40  ;;  %v1924_v40 = vsel %vm20288_vm2, %v15226_v22, %v1923_v58  ;;  %v15335_v22 = vld [vmem:[%s20305_s12 + $0x204] sm:$0x3]  ;;  %v1948_v36 = vsel %vm20288_vm2, %v1946_v0, %v1947_v11  ;;  %v1954_v0 = vrot.slane %v15194_v31, 5  ;;  %v1960_v1 = vrot.slane %v1958_v14, 4 }
  0x90   : > { %v15246_v58 = vcombine.low %v1924_v40, %v1927_v41  ;;  %v1945_v40 = vsel %vm20288_vm2, %v15229_v9, %v1944_v37  ;;  %v15337_v41 = vld [vmem:[%s20305_s12 + $0x21c] sm:$0xf]  ;;  %v2771_v44 = vrot.slane %v15335_v22, 6  ;;  %v20843_v37 = vld [vmem:[%s20305_s12 + $0x300] sm:$0xf]  ;;  %v1961_v11 = vrot.slane %v15197_v54, 5 }
  0x91   : > { %v2775_v8 = vrot.slane %v15337_v41, 6  ;;  %v2782_v22 = vrot.slane %v15340_v51, 6 }
  0x93   : > { %18010 = vmatmul.mubr.msk.bf16.gmra.mrb[20].mxu0 %vm731_vm4, %v15308_v62  ;;  %v15334_v62 = vld [vmem:[%s20305_s12 + $0x200] sm:$0xf]  ;;  %v2777_v41 = vrot.slane %v2775_v8, 4  ;;  %v2784_v54 = vrot.slane %v2782_v22, 4 }
  0x94   : > { %18013 = vmatprep.mubr.msk.bf16.mxu0 %vm731_vm4, %v15309_v6  ;;  %v1940_v6 = vrot.slane %v15188_v48, 5  ;;  %v1953_v48 = vrot.slane %v1951_v20, 4 }
  0x96   : > { %17950 = vmatmul.mubr.msk.bf16.gmra.mrb[60].mxu1 %vm731_vm4, %v15158_v19  ;;  %v2768_v19 = vrot.slane %v15334_v62, 6  ;;  %v1941_v24 = vsel %vm20288_vm2, %v1939_v57, %v1940_v6  ;;  %v15294_v57 = vld [vmem:[%s20305_s12 + $0x304] sm:$0xf]  ;;  %v15230_v62 = vrot.slane %v15192_v26, 9  ;;  %v15338_v6 = vld [vmem:[%s20305_s12 + $0x220] sm:$0x3]  ;;  %v1955_v31 = vsel %vm20288_vm2, %v1953_v48, %v1954_v0 }
  0x97   : > { %17957 = vmatprep.mubr.msk.bf16.mxu1 %vm731_vm4, %v15245_v21  ;;  %v15333_v21 = vld [vmem:[%s20305_s12 + $0x1fc] sm:$0xc]  ;;  %v15248_v49 = vcombine.low %v1938_v35, %v1941_v24  ;;  %v15314_v35 = vcombine.low %v20843_v37, %v15294_v57  ;;  %v15339_v24 = vld [vmem:[%s20305_s12 + $0x234] sm:$0xc]  ;;  %v15341_v26 = vld [vmem:[%s20305_s12 + $0x23c] sm:$0x3] }
  0x98   : > { %v15381_v38 = vrot.slane %v15333_v21, 10  ;;  %v2770_v30 = vrot.slane %v2768_v19, 4  ;;  %v2785_v48 = vrot.slane %v15341_v26, 6 }
  0x9a   : > { %v2772_v21 = vsel %vm20527_vm7, %v2770_v30, %v2771_v44  ;;  %v15343_v30 = vld [vmem:[%s20305_s12 + $0x254] sm:$0xf]  ;;  %v15201_v44 = vld [vmem:[%s20305_s12 + $0x238] sm:$0xe] }
  0x9b   : > { %18014 = vmatmul.mubr.msk.bf16.gmra.mrb[24].mxu0 %vm731_vm4, %v15310_v39  ;;  %v15313_v39 = vcombine.low %v20812_v12, %v15293_v5  ;;  %v2769_v5 = vsel %vm20527_vm7, %v15381_v38, %v2768_v19  ;;  %v1952_v19 = vsel %vm20288_vm2, %v15230_v62, %v1951_v20  ;;  %v1962_v38 = vsel %vm20288_vm2, %v1960_v1, %v1961_v11  ;;  %v15346_v62 = vld [vmem:[%s20305_s12 + $0x270] sm:$0xf]  ;;  %v15344_v11 = vld [vmem:[%s20305_s12 + $0x258] sm:$0x3] }
  0x9c   : > { %18017 = vmatprep.mubr.msk.bf16.mxu0 %vm731_vm4, %v15311_v43  ;;  %v15195_v43 = vld [vmem:[%s20305_s12 + $0x200] sm:$0xe]  ;;  %v15383_v20 = vrot.slane %v15339_v24, 10  ;;  %v15250_v57 = vcombine.low %v1952_v19, %v1955_v31  ;;  %v2796_v26 = vrot.slane %v15346_v62, 6  ;;  %v1979_v19 = vrot.slane %v20748_v46, 5 }
  0x9d   : > { %v15231_v9 = vrot.slane %v15195_v43, 9  ;;  %v1986_v31 = vrot.slane %v20752_v55, 5  ;;  %v2792_v46 = vrot.slane %v15344_v11, 6  ;;  %v15206_v55 = vld [vmem:[%s20305_s12 + $0x25c] sm:$0x1]  ;;  %v1993_v62 = vrot.slane %v20776_v18, 5 }
  0x9e   : > { %17958 = vmatmul.mubr.msk.bf16.vlgmr.msra.gmra.mrb[32].mxu1 %vm731_vm4, %v15246_v58  ;;  %v15249_v58 = vcombine.low %v1945_v40, %v1948_v36  ;;  %v15200_v40 = vld [vmem:[%s20305_s12 + $0x224] sm:$0x1]  ;;  %v15401_v36 = vcombine.low %v2769_v5, %v2772_v21  ;;  %v2789_v5 = vrot.slane %v15343_v30, 6  ;;  %v15233_v21 = vrot.slane %v15201_v44, 9  ;;  %v20906_v44 = vld [vmem:[%s20305_s12 + $0x28c] sm:$0xf] }
  0x9f   : > { %17961 = vmatprep.mubr.msk.bf16.mxu1 %vm731_vm4, %v15247_v61  ;;  %18242 = vmatpush3.bf16.msra.mxu1 %v20591_v15  ;;  %v20839_v15 = vld [vmem:[%s26588_s1 + $0xb0] sm:$0xff]   ;;  %v15336_v61 = vld [vmem:[%s20305_s12 + $0x218] sm:$0xc]  ;;  %v1959_v43 = vsel %vm20288_vm2, %v15231_v9, %v1958_v14  ;;  %v1968_v1 = vrot.slane %v15200_v40, 5  ;;  %v15348_v11 = vld [vmem:[%s20305_s12 + $0x288] sm:$0xc] }
  0xa0   : > { %18243 = vmatprep.subr.bf16.mxu1 %v20080_v59 }
  0xa3   : > { %18018 = vmatmul.mubr.msk.bf16.gmra.mrb[28].mxu0 %vm731_vm4, %v15312_v23  ;;  %18244 = vmatpush3.bf16.msra.mxu1 %v20080_v59  ;;  %v1965_v59 = vrot.slane %v20718_v60, 5  ;;  %v1972_v23 = vrot.slane %v20725_v17, 5  ;;  %v15382_v60 = vrot.slane %v15336_v61, 10  ;;  %v15198_v17 = vld [vmem:[%s20305_s12 + $0x21c] sm:$0xe]  ;;  %v15251_v61 = vcombine.low %v1959_v43, %v1962_v38 }
  0xa4   : > { %18021 = vmatprep.mubr.msk.bf16.mxu0 %vm731_vm4, %v15313_v39  ;;  %18277 = vmatprep.subr.bf16.mxu1 %v20839_v15  ;;  %v2778_v39 = vrot.slane %v15338_v6, 6  ;;  %v15342_v6 = vld [vmem:[%s20305_s12 + $0x250] sm:$0xc]  ;;  %v2791_v38 = vrot.slane %v2789_v5, 4 }
  0xa5   : > { %v1967_v51 = vrot.slane %v1965_v59, 4  ;;  %v1974_v0 = vrot.slane %v1972_v23, 4  ;;  %v2776_v14 = vsel %vm20527_vm7, %v15382_v60, %v2775_v8  ;;  %v2786_v8 = vsel %vm20527_vm7, %v2784_v54, %v2785_v48 }
  0xa6   : > { %17962 = vmatmul.mubr.msk.bf16.gmra.mrb[36].mxu1 %vm731_vm4, %v15248_v49  ;;  %v15203_v49 = vld [vmem:[%s20305_s12 + $0x240] sm:$0x1]  ;;  %v2779_v9 = vsel %vm20527_vm7, %v2777_v41, %v2778_v39  ;;  %v15345_v39 = vld [vmem:[%s20305_s12 + $0x26c] sm:$0xc]  ;;  %v15204_v41 = vld [vmem:[%s20305_s12 + $0x254] sm:$0xe]  ;;  %v1973_v30 = vsel %vm20288_vm2, %v15233_v21, %v1972_v23  ;;  %v2793_v21 = vsel %vm20527_vm7, %v2791_v38, %v2792_v46 }
  0xa7   : > { %17965 = vmatprep.mubr.msk.bf16.mxu1 %vm731_vm4, %v15249_v58  ;;  %v15232_v58 = vrot.slane %v15198_v17, 9  ;;  %v1975_v24 = vrot.slane %v15203_v49, 5  ;;  %v15347_v17 = vld [vmem:[%s20305_s12 + $0x274] sm:$0x3]  ;;  %v15402_v40 = vcombine.low %v2776_v14, %v2779_v9  ;;  %v15385_v54 = vrot.slane %v15345_v39, 10 }
  0xa8   : > { %v2798_v48 = vrot.slane %v2796_v26, 4  ;;  %v2799_v49 = vrot.slane %v15347_v17, 6  ;;  %v15234_v14 = vrot.slane %v15204_v41, 9  ;;  %v1982_v9 = vrot.slane %v15206_v55, 5  ;;  %v15353_v46 = vld [vmem:[%s20305_s12 + $0x2ac] sm:$0x3] }
  0xa9   : > { %v1966_v60 = vsel %vm20288_vm2, %v15232_v58, %v1965_v59  ;;  %v1976_v59 = vsel %vm20288_vm2, %v1974_v0, %v1975_v24  ;;  %v1981_v58 = vrot.slane %v1979_v19, 4  ;;  %v1988_v0 = vrot.slane %v1986_v31, 4  ;;  %v15350_v24 = vld [vmem:[%s20305_s12 + $0x290] sm:$0x3]  ;;  %v15210_v38 = vld [vmem:[%s20305_s12 + $0x28c] sm:$0xe] }
  0xaa   : > { %v2797_v39 = vsel %vm20527_vm7, %v15385_v54, %v2796_v26  ;;  %v15386_v55 = vrot.slane %v15348_v11, 10  ;;  %v15355_v54 = vld [vmem:[%s20305_s12 + $0x2c4] sm:$0xf]  ;;  %v15356_v11 = vld [vmem:[%s20305_s12 + $0x2c8] sm:$0x3] }
  0xab   : > { %18022 = vmatmul.mubr.msk.bf16.gmra.mrb[32].mxu0 %vm731_vm4, %v15314_v35  ;;  %v2783_v35 = vsel %vm20527_vm7, %v15383_v20, %v2782_v22  ;;  %v1969_v22 = vsel %vm20288_vm2, %v1967_v51, %v1968_v1  ;;  %v15207_v20 = vld [vmem:[%s20305_s12 + $0x270] sm:$0xe]  ;;  %v15209_v51 = vld [vmem:[%s20305_s12 + $0x278] sm:$0x1]  ;;  %v1983_v41 = vsel %vm20288_vm2, %v1981_v58, %v1982_v9 }
  0xac   : > { %18029 = vmatprep.mubr.msk.bf16.mxu0 %vm731_vm4, %v15401_v36  ;;  %v15384_v36 = vrot.slane %v15342_v6, 10  ;;  %v15403_v43 = vcombine.low %v2783_v35, %v2786_v8  ;;  %v15252_v23 = vcombine.low %v1966_v60, %v1969_v22  ;;  %v15253_v6 = vcombine.low %v1973_v30, %v1976_v59  ;;  %v15212_v30 = vld [vmem:[%s20305_s12 + $0x294] sm:$0x1] }
  0xad   : > { %v2803_v35 = vrot.slane %v20906_v44, 6  ;;  %v15235_v8 = vrot.slane %v15207_v20, 9  ;;  %v1989_v60 = vrot.slane %v15209_v51, 5  ;;  %v1980_v22 = vsel %vm20288_vm2, %v15234_v14, %v1979_v19  ;;  %v15215_v14 = vld [vmem:[%s20305_s12 + $0x2b0] sm:$0x1] }
  0xae   : > { %17966 = vmatmul.mubr.msk.bf16.gmra.mrb[40].mxu1 %vm731_vm4, %v15250_v57  ;;  %v20078_v57 = vld [vmem:[%s26588_s1 + $0x58] sm:$0xff]   ;;  %v2790_v1 = vsel %vm20527_vm7, %v15384_v36, %v2789_v5  ;;  %v2000_v5 = vrot.slane %v20780_v27, 5  ;;  %v15351_v36 = vld [vmem:[%s20305_s12 + $0x2a4] sm:$0xc] }
  0xaf   : > { %17969 = vmatprep.mubr.msk.bf16.mxu1 %vm731_vm4, %v15251_v61  ;;  %v15352_v61 = vld [vmem:[%s20305_s12 + $0x2a8] sm:$0xf]  ;;  %v15404_v26 = vcombine.low %v2790_v1, %v2793_v21  ;;  %v2805_v44 = vrot.slane %v2803_v35, 4  ;;  %v1987_v19 = vsel %vm20288_vm2, %v15235_v8, %v1986_v31  ;;  %v1990_v20 = vsel %vm20288_vm2, %v1988_v0, %v1989_v60  ;;  %v15358_v0 = vld [vmem:[%s20305_s12 + $0x2e0] sm:$0xf] }
  0xb0   : > { %v2810_v17 = vrot.slane %v15352_v61, 6  ;;  %v15387_v51 = vrot.slane %v15351_v36, 10  ;;  %v2002_v61 = vrot.slane %v2000_v5, 4  ;;  %v15254_v31 = vcombine.low %v1980_v22, %v1983_v41  ;;  %v15357_v41 = vld [vmem:[%s20305_s12 + $0x2dc] sm:$0xc] }
  0xb1   : > { %v15236_v1 = vrot.slane %v15210_v38, 9  ;;  %v15255_v9 = vcombine.low %v1987_v19, %v1990_v20  ;;  %v2817_v21 = vrot.slane %v15355_v54, 6  ;;  %v2824_v36 = vrot.slane %v15358_v0, 6  ;;  %v15216_v38 = vld [vmem:[%s20305_s12 + $0x2c4] sm:$0xe] }
  0xb2   : > { %v2812_v58 = vrot.slane %v2810_v17, 4  ;;  %v15361_v19 = vld [vmem:[%s20305_s12 + $0x2fc] sm:$0xf]  ;;  %v15219_v20 = vld [vmem:[%s20305_s12 + $0x2e0] sm:$0xe]  ;;  %v15389_v54 = vrot.slane %v15357_v41, 10 }
  0xb3   : > { %18030 = vmatmul.mubr.msk.bf16.vlgmr.msra.gmra.mrb[4].mxu0 %vm731_vm4, %v15402_v40  ;;  %v20933_v40 = vld [vmem:[%s26588_s1 + $0x60] sm:$0xff]   ;;  %v2819_v18 = vrot.slane %v2817_v21, 4 }
  0xb4   : > { %18062 = vmatpush3.bf16.msra.mxu0 %v20665_v53  ;;  %18033 = vmatprep.mubr.msk.bf16.mxu0 %vm731_vm4, %v15403_v43  ;;  %v2800_v53 = vsel %vm20527_vm7, %v2798_v48, %v2799_v49  ;;  %v2806_v43 = vrot.slane %v15350_v24, 6  ;;  %v15213_v48 = vld [vmem:[%s20305_s12 + $0x2a8] sm:$0xe]  ;;  %v1995_v49 = vrot.slane %v1993_v62, 4  ;;  %v2804_v24 = vsel %vm20527_vm7, %v15386_v55, %v2803_v35  ;;  %v15359_v55 = vld [vmem:[%s20305_s12 + $0x2e4] sm:$0x3] }
  0xb5   : > { %18063 = vmatprep.subr.bf16.mxu0 %v20078_v57  ;;  %v15405_v59 = vcombine.low %v2797_v39, %v2800_v53  ;;  %v15237_v60 = vrot.slane %v15213_v48, 9  ;;  %v2003_v39 = vrot.slane %v15215_v14, 5  ;;  %v2811_v53 = vsel %vm20527_vm7, %v15387_v51, %v2810_v17  ;;  %v15221_v51 = vld [vmem:[%s20305_s12 + $0x2e8] sm:$0x1]  ;;  %v15224_v41 = vld [vmem:[%s20305_s12 + $0x304] sm:$0x1] }
  0xb6   : > { %17970 = vmatmul.mubr.msk.bf16.gmra.mrb[44].mxu1 %vm731_vm4, %v15252_v23  ;;  %v2813_v23 = vrot.slane %v15353_v46, 6  ;;  %v2807_v8 = vsel %vm20527_vm7, %v2805_v44, %v2806_v43  ;;  %v2007_v46 = vrot.slane %v20808_v16, 5  ;;  %v1994_v35 = vsel %vm20288_vm2, %v15236_v1, %v1993_v62  ;;  %v15364_v1 = vld [vmem:[%s20305_s12 + $0x318] sm:$0xf] }
  0xb7   : > { %17973 = vmatprep.mubr.msk.bf16.mxu1 %vm731_vm4, %v15253_v6  ;;  %v15354_v6 = vld [vmem:[%s20305_s12 + $0x2c0] sm:$0xc]  ;;  %v15406_v17 = vcombine.low %v2804_v24, %v2807_v8  ;;  %v2001_v62 = vsel %vm20288_vm2, %v15237_v60, %v2000_v5  ;;  %v2004_v44 = vsel %vm20288_vm2, %v2002_v61, %v2003_v39  ;;  %v2826_v48 = vrot.slane %v2824_v36, 4 }
  0xb8   : > { %18064 = vmatpush3.bf16.msra.mxu0 %v20078_v57  ;;  %v1996_v57 = vrot.slane %v15212_v30, 5  ;;  %v2814_v22 = vsel %vm20527_vm7, %v2812_v58, %v2813_v23  ;;  %v15388_v43 = vrot.slane %v15354_v6, 10  ;;  %v15218_v30 = vld [vmem:[%s20305_s12 + $0x2cc] sm:$0x1]  ;;  %v2009_v58 = vrot.slane %v2007_v46, 4 }
  0xb9   : > { %18097 = vmatprep.subr.bf16.mxu0 %v20933_v40  ;;  %v15238_v14 = vrot.slane %v15216_v38, 9  ;;  %v15257_v5 = vcombine.low %v2001_v62, %v2004_v44  ;;  %v2831_v6 = vrot.slane %v15361_v19, 6  ;;  %v2017_v24 = vrot.slane %v15221_v51, 5  ;;  %v15771_v62 = vld [vmem:[%s20305_s12 + $0xb0] sm:$0x7] }
  0xba   : > { %v1997_v16 = vsel %vm20288_vm2, %v1995_v49, %v1996_v57  ;;  %v2827_v49 = vrot.slane %v15359_v55, 6  ;;  %v2818_v61 = vsel %vm20527_vm7, %v15388_v43, %v2817_v21  ;;  %v15362_v57 = vld [vmem:[%s20305_s12 + $0x300] sm:$0x3]  ;;  %v2021_v8 = vrot.slane %v20843_v37, 5  ;;  %v15222_v37 = vld [vmem:[%s20305_s12 + $0x2fc] sm:$0xe] }
  0xbb   : > { %18034 = vmatmul.mubr.msk.bf16.gmra.mrb[8].mxu0 %vm731_vm4, %v15404_v26  ;;  %v2014_v26 = vrot.slane %v20812_v12, 5  ;;  %v2820_v12 = vrot.slane %v15356_v11, 6  ;;  %v15256_v23 = vcombine.low %v1994_v35, %v1997_v16  ;;  %v15239_v11 = vrot.slane %v15219_v20, 9  ;;  %v15363_v55 = vld [vmem:[%s20305_s12 + $0x314] sm:$0xc] }
  0xbc   : > { %18037 = vmatprep.mubr.msk.bf16.mxu0 %vm731_vm4, %v15405_v59  ;;  %v15407_v59 = vcombine.low %v2811_v53, %v2814_v22  ;;  %v2825_v60 = vsel %vm20527_vm7, %v15389_v54, %v2824_v36  ;;  %v2828_v39 = vsel %vm20527_vm7, %v2826_v48, %v2827_v49  ;;  %v2838_v21 = vrot.slane %v15364_v1, 6  ;;  %v21008_v53 = vld [vmem:[%s20305_s12 + $0xac] sm:$0xf]  ;;  %v15365_v36 = vld [vmem:[%s20305_s12 + $0x31c] sm:$0x3] }
  0xbd   : > { %v2016_v27 = vrot.slane %v2014_v26, 4  ;;  %v2821_v0 = vsel %vm20527_vm7, %v2819_v18, %v2820_v12  ;;  %v2008_v22 = vsel %vm20288_vm2, %v15238_v14, %v2007_v46  ;;  %v2833_v12 = vrot.slane %v2831_v6, 4  ;;  %v15366_v1 = vld [vmem:[%s20305_s12 + $0x330] sm:$0xc] }
  0xbe   : > { %17974 = vmatmul.mubr.msk.bf16.gmra.mrb[48].mxu1 %vm731_vm4, %v15254_v31  ;;  %v2010_v31 = vrot.slane %v15218_v30, 5  ;;  %v15408_v16 = vcombine.low %v2818_v61, %v2821_v0  ;;  %v2834_v38 = vrot.slane %v15362_v57, 6  ;;  %v15769_v30 = vld [vmem:[%s20305_s12 + $0xa8] sm:$0x8]  ;;  %v2015_v46 = vsel %vm20288_vm2, %v15239_v11, %v2014_v26 }
  0xbf   : > { %17977 = vmatprep.mubr.msk.bf16.mxu1 %vm731_vm4, %v15255_v9  ;;  %v15360_v9 = vld [vmem:[%s20305_s12 + $0x2f8] sm:$0xc]  ;;  %v2018_v18 = vsel %vm20288_vm2, %v2016_v27, %v2017_v24  ;;  %v5201_v44 = vrot.slane %v21008_v53, 7  ;;  %v2023_v19 = vrot.slane %v2021_v8, 4  ;;  %v15391_v20 = vrot.slane %v15363_v55, 10 }
  0xc0   : > { %v2011_v35 = vsel %vm20288_vm2, %v2009_v58, %v2010_v31  ;;  %v15390_v43 = vrot.slane %v15360_v9, 10  ;;  %v2840_v54 = vrot.slane %v2838_v21, 4  ;;  %v2841_v48 = vrot.slane %v15365_v36, 6  ;;  %v21032_v58 = vld [vmem:[%s20305_s12 + $0x350] sm:$0xf] }
  0xc1   : > { %v15258_v49 = vcombine.low %v2008_v22, %v2011_v35  ;;  %v15240_v14 = vrot.slane %v15222_v37, 9  ;;  %v2024_v31 = vrot.slane %v15224_v41, 5  ;;  %v15368_v27 = vld [vmem:[%s20305_s12 + $0x338] sm:$0x3]  ;;  %v15817_v61 = vrot.slane %v15769_v30, 11 }
  0xc2   : > { %v2832_v26 = vsel %vm20527_vm7, %v15390_v43, %v2831_v6  ;;  %v5203_v0 = vrot.slane %v5201_v44, 4  ;;  %v5204_v9 = vrot.slane %v15771_v62, 7  ;;  %v15773_v57 = vld [vmem:[%s20305_s12 + $0xc8] sm:$0xf]  ;;  %v2839_v11 = vsel %vm20527_vm7, %v15391_v20, %v2838_v21  ;;  %v15776_v53 = vld [vmem:[%s20305_s12 + $0xe4] sm:$0xf] }
  0xc3   : > { %18038 = vmatmul.mubr.msk.bf16.gmra.mrb[12].mxu0 %vm731_vm4, %v15406_v17  ;;  %v21020_v17 = vld [vmem:[%s20305_s12 + $0x334] sm:$0xf]  ;;  %v2842_v6 = vsel %vm20527_vm7, %v2840_v54, %v2841_v48  ;;  %v26741_v24 = vmov 0  ;;  %v15392_v21 = vrot.slane %v15366_v1, 10  ;;  %v2848_v35 = vrot.slane %v15368_v27, 6 }
  0xc4   : > { %18041 = vmatprep.mubr.msk.bf16.mxu0 %vm731_vm4, %v15407_v59  ;;  %v15409_v59 = vcombine.low %v2825_v60, %v2828_v39  ;;  %v2845_v51 = vrot.slane %v21020_v17, 6  ;;  %v26742_v24 = vsel %vm21049_vm10, 4294967295, %v26741_v24  ;;  %v15369_v60 = vld [vmem:[%s20305_s12 + $0x34c] sm:$0xc]  ;;  %v2852_v39 = vrot.slane %v21032_v58, 6 }
  0xc5   : > { %26743 = vst [vmem:[#allocation22_spill] sm:$0xff] %v26742_v24  ;;  %v15371_v37 = vld [vmem:[%s20305_s12 + $0x354] sm:$0x3]  ;;  %v2022_v55 = vsel %vm20288_vm2, %v15240_v14, %v2021_v8  ;;  %v2025_v36 = vsel %vm20288_vm2, %v2023_v19, %v2024_v31  ;;  %v15772_v17 = vld [vmem:[%s20305_s12 + $0xc4] sm:$0x8]  ;;  %v5208_v43 = vrot.slane %v15773_v57, 7  ;;  %v5205_v30 = vsel %vm21049_vm10, %v5203_v0, %v5204_v9 }
  0xc6   : > { %17978 = vmatmul.mubr.msk.bf16.gmra.mrb[52].mxu1 %vm731_vm4, %v15256_v23  ;;  %v15259_v23 = vcombine.low %v2015_v46, %v2018_v18  ;;  %v2847_v22 = vrot.slane %v2845_v51, 4  ;;  %v15775_v46 = vld [vmem:[%s20305_s12 + $0xe0] sm:$0x8]  ;;  %v5215_v18 = vrot.slane %v15776_v53, 7  ;;  %v15393_v8 = vrot.slane %v15369_v60, 10 }
  0xc7   : > { %17981 = vmatprep.mubr.msk.bf16.mxu1 %vm731_vm4, %v15257_v5  ;;  %v2835_v5 = vsel %vm20527_vm7, %v2833_v12, %v2834_v38  ;;  %v15411_v12 = vcombine.low %v2839_v11, %v2842_v6  ;;  %v5202_v38 = vsel %vm21049_vm10, %v15817_v61, %v5201_v44  ;;  %v2854_v62 = vrot.slane %v2852_v39, 4  ;;  %v15777_v19 = vld [vmem:[%s20305_s12 + $0xe8] sm:$0x7]  ;;  %v15374_v1 = vld [vmem:[%s20305_s12 + $0x370] sm:$0x3] }
  0xc8   : > { %v15410_v41 = vcombine.low %v2832_v26, %v2835_v5  ;;  %v2855_v20 = vrot.slane %v15371_v37, 6  ;;  %v15260_v54 = vcombine.low %v2022_v55, %v2025_v36  ;;  %v2846_v48 = vsel %vm20527_vm7, %v15392_v21, %v2845_v51  ;;  %v15372_v58 = vld [vmem:[%s20305_s12 + $0x368] sm:$0xc]  ;;  %v15779_v0 = vld [vmem:[%s20305_s12 + $0x100] sm:$0xf] }
  0xc9   : > { %v15818_v44 = vrot.slane %v15772_v17, 11  ;;  %v15376_v26 = vld [vmem:[%s20305_s12 + $0x388] sm:$0xf]  ;;  %v5210_v14 = vrot.slane %v5208_v43, 4  ;;  %v15819_v51 = vrot.slane %v15775_v46, 11  ;;  %v5217_v5 = vrot.slane %v5215_v18, 4 }
  0xca   : > { %v5218_v61 = vrot.slane %v15777_v19, 7  ;;  %v2853_v9 = vsel %vm20527_vm7, %v15393_v8, %v2852_v39  ;;  %v2856_v57 = vsel %vm20527_vm7, %v2854_v62, %v2855_v20  ;;  %v15778_v11 = vld [vmem:[%s20305_s12 + $0xfc] sm:$0x8]  ;;  %v2866_v6 = vrot.slane %v15376_v26, 6  ;;  %v15377_v37 = vld [vmem:[%s20305_s12 + $0x38c] sm:$0x3] }
  0xcb   : > { %18042 = vmatmul.mubr.msk.bf16.gmra.mrb[16].mxu0 %vm731_vm4, %v15408_v16  ;;  %v15774_v16 = vld [vmem:[%s20305_s12 + $0xcc] sm:$0x7]  ;;  %v15782_v60 = vld [vmem:[%s20305_s12 + $0x11c] sm:$0xf]  ;;  %v5209_v21 = vsel %vm21049_vm10, %v15818_v44, %v5208_v43  ;;  %v2862_v55 = vrot.slane %v15374_v1, 6  ;;  %v5222_v17 = vrot.slane %v15779_v0, 7 }
  0xcc   : > { %18045 = vmatprep.mubr.msk.bf16.mxu0 %vm731_vm4, %v15409_v59  ;;  %v15373_v59 = vld [vmem:[%s20305_s12 + $0x36c] sm:$0xf]  ;;  %v5211_v31 = vrot.slane %v15774_v16, 7  ;;  %v15780_v36 = vld [vmem:[%s20305_s12 + $0x104] sm:$0x7]  ;;  %v15413_v16 = vcombine.low %v2853_v9, %v2856_v57  ;;  %v5219_v43 = vsel %vm21049_vm10, %v5217_v5, %v5218_v61  ;;  %v2868_v8 = vrot.slane %v2866_v6, 4 }
  0xcd   : > { %v2859_v27 = vrot.slane %v15373_v59, 6  ;;  %v5229_v59 = vrot.slane %v15782_v60, 7  ;;  %v2869_v62 = vrot.slane %v15377_v37, 6  ;;  %v15783_v20 = vld [vmem:[%s20305_s12 + $0x120] sm:$0x7]  ;;  %v20084_v5 = vld [vmem:[%s26588_s1 + $0xb8] sm:$0xff]  }
  0xce   : > { %17982 = vmatmul.mubr.msk.bf16.gmra.mrb[56].mxu1 %vm731_vm4, %v15258_v49  ;;  %v2849_v49 = vsel %vm20527_vm7, %v2847_v22, %v2848_v35  ;;  %v15394_v22 = vrot.slane %v15372_v58, 10  ;;  %v15375_v35 = vld [vmem:[%s20305_s12 + $0x384] sm:$0xc]  ;;  %v5212_v39 = vsel %vm21049_vm10, %v5210_v14, %v5211_v31  ;;  %v15378_v44 = vld [vmem:[%s20305_s12 + $0x3a0] sm:$0xc] }
  0xcf   : > { %17985 = vmatprep.mubr.msk.bf16.mxu1 %vm731_vm4, %v15259_v23  ;;  %v15837_v23 = vcombine.low %v5202_v38, %v5205_v30  ;;  %v15412_v53 = vcombine.low %v2846_v48, %v2849_v49  ;;  %v15379_v38 = vld [vmem:[%s20305_s12 + $0x3a4] sm:$0xf]  ;;  %v15781_v30 = vld [vmem:[%s20305_s12 + $0x118] sm:$0x8]  ;;  %v15395_v46 = vrot.slane %v15375_v35, 10  ;;  %v15838_v19 = vcombine.low %v5209_v21, %v5212_v39 }
  0xd0   : > { %v15820_v48 = vrot.slane %v15778_v11, 11  ;;  %v5225_v49 = vrot.slane %v15780_v36, 7  ;;  %v2873_v14 = vrot.slane %v15379_v38, 6  ;;  %v15821_v31 = vrot.slane %v15781_v30, 11  ;;  %v15788_v9 = vld [vmem:[%s20305_s12 + $0x154] sm:$0xf] }
  0xd1   : > { %v5231_v1 = vrot.slane %v5229_v59, 4  ;;  %v2867_v61 = vsel %vm20527_vm7, %v15395_v46, %v2866_v6  ;;  %v2870_v0 = vsel %vm20527_vm7, %v2868_v8, %v2869_v62  ;;  %v15396_v60 = vrot.slane %v15378_v44, 10  ;;  %v15786_v21 = vld [vmem:[%s20305_s12 + $0x13c] sm:$0x7]  ;;  %v21594_v24 = vld [vmem:[%s20305_s12 + $0xb4] sm:$0x8] }
  0xd2   : > { %v5223_v11 = vsel %vm21049_vm10, %v15820_v48, %v5222_v17  ;;  %v15415_v39 = vcombine.low %v2867_v61, %v2870_v0  ;;  %v5243_v36 = vrot.slane %v15788_v9, 7  ;;  %v5239_v46 = vrot.slane %v15786_v21, 7  ;;  %v15794_v48 = vld [vmem:[%s20305_s12 + $0x18c] sm:$0xf]  ;;  %v15797_v21 = vld [vmem:[%s20305_s12 + $0x1a8] sm:$0xf] }
  0xd3   : > { %18046 = vmatmul.mubr.msk.bf16.gmra.mrb[20].mxu0 %vm731_vm4, %v15410_v41  ;;  %v2861_v41 = vrot.slane %v2859_v27, 4 }
  0xd4   : > { %18049 = vmatprep.mubr.msk.bf16.mxu0 %vm731_vm4, %v15411_v12  ;;  %v5216_v12 = vsel %vm21049_vm10, %v15819_v51, %v5215_v18  ;;  %v15380_v18 = vld [vmem:[%s20305_s12 + $0x3a8] sm:$0x3]  ;;  %v15785_v51 = vld [vmem:[%s20305_s12 + $0x138] sm:$0xf] }
  0xd5   : > { %v2863_v58 = vsel %vm20527_vm7, %v2861_v41, %v2862_v55  ;;  %v15839_v26 = vcombine.low %v5216_v12, %v5219_v43  ;;  %v2876_v35 = vrot.slane %v15380_v18, 6  ;;  %v5236_v37 = vrot.slane %v15785_v51, 7  ;;  %v15789_v12 = vld [vmem:[%s20305_s12 + $0x158] sm:$0x7]  ;;  %v15795_v51 = vld [vmem:[%s20305_s12 + $0x190] sm:$0x7] }
  0xd6   : > { %17986 = vmatmul.mubr.msk.bf16.gmra.mrb[60].mxu1 %vm731_vm4, %v15260_v54  ;;  %v2860_v54 = vsel %vm20527_vm7, %v15394_v22, %v2859_v27  ;;  %v5232_v27 = vrot.slane %v15783_v20, 7  ;;  %v2875_v22 = vrot.slane %v2873_v14, 4  ;;  %v5230_v41 = vsel %vm21049_vm10, %v15821_v31, %v5229_v59  ;;  %v15792_v31 = vld [vmem:[%s20305_s12 + $0x174] sm:$0x7] }
  0xd7   : > { %18245 = vmatprep.mubr.msk.bf16.mxu1 %vm731_vm4, %v15837_v23  ;;  %v5224_v23 = vrot.slane %v5222_v17, 4  ;;  %v15414_v57 = vcombine.low %v2860_v54, %v2863_v58  ;;  %v21138_v17 = vld [vmem:[%s26588_s1 + $0xc0] sm:$0xff]   ;;  %v5238_v59 = vrot.slane %v5236_v37, 4  ;;  %v5245_v20 = vrot.slane %v5243_v36, 4  ;;  %v15791_v54 = vld [vmem:[%s20305_s12 + $0x170] sm:$0xf] }
  0xd8   : > { %v5233_v55 = vsel %vm21049_vm10, %v5231_v1, %v5232_v27  ;;  %v2877_v8 = vsel %vm20527_vm7, %v2875_v22, %v2876_v35  ;;  %v5250_v58 = vrot.slane %v15791_v54, 7  ;;  %v5257_v1 = vrot.slane %v15794_v48, 7  ;;  %v15793_v27 = vld [vmem:[%s20305_s12 + $0x188] sm:$0x8]  ;;  %v15803_v54 = vld [vmem:[%s20305_s12 + $0x1e0] sm:$0xf] }
  0xd9   : > { %v5226_v6 = vsel %vm21049_vm10, %v5224_v23, %v5225_v49  ;;  %v15841_v38 = vcombine.low %v5230_v41, %v5233_v55  ;;  %v5240_v18 = vsel %vm21049_vm10, %v5238_v59, %v5239_v46  ;;  %v5264_v41 = vrot.slane %v15797_v21, 7  ;;  %v15806_v48 = vld [vmem:[%s20305_s12 + $0x1fc] sm:$0xf]  ;;  %v15808_v21 = vld [vmem:[%s20305_s12 + $0x214] sm:$0x8] }
  0xda   : > { %v15840_v43 = vcombine.low %v5223_v11, %v5226_v6  ;;  %v5252_v9 = vrot.slane %v5250_v58, 4  ;;  %v15825_v11 = vrot.slane %v15793_v27, 11  ;;  %v15800_v6 = vld [vmem:[%s20305_s12 + $0x1c4] sm:$0xf]  ;;  %v15807_v27 = vld [vmem:[%s20305_s12 + $0x200] sm:$0x7] }
  0xdb   : > { %18050 = vmatmul.mubr.msk.bf16.gmra.mrb[24].mxu0 %vm731_vm4, %v15412_v53  ;;  %v15784_v53 = vld [vmem:[%s20305_s12 + $0x134] sm:$0x8]  ;;  %v5266_v46 = vrot.slane %v5264_v41, 4 }
  0xdc   : > { %18053 = vmatprep.mubr.msk.bf16.mxu0 %vm731_vm4, %v15413_v16  ;;  %v15787_v16 = vld [vmem:[%s20305_s12 + $0x150] sm:$0x8]  ;;  %v15822_v30 = vrot.slane %v15784_v53, 11  ;;  %v5260_v53 = vrot.slane %v15795_v51, 7  ;;  %v5258_v55 = vsel %vm21049_vm10, %v15825_v11, %v5257_v1 }
  0xdd   : > { %v15823_v62 = vrot.slane %v15787_v16, 11  ;;  %v5271_v16 = vrot.slane %v15800_v6, 7 }
  0xde   : > { %18246 = vmatmul.mubr.msk.bf16.vlgmr.msra.gmra.mrb[64].mxu1 %vm731_vm4, %v15838_v19  ;;  %v5246_v19 = vrot.slane %v15789_v12, 7  ;;  %v5237_v44 = vsel %vm21049_vm10, %v15822_v30, %v5236_v37  ;;  %v15796_v37 = vld [vmem:[%s20305_s12 + $0x1a4] sm:$0x8]  ;;  %v15799_v12 = vld [vmem:[%s20305_s12 + $0x1c0] sm:$0x8] }
  0xdf   : > { %18249 = vmatprep.mubr.msk.bf16.mxu1 %vm731_vm4, %v15839_v26  ;;  %18278 = vmatpush3.bf16.msra.mxu1 %v20839_v15  ;;  %v2874_v15 = vsel %vm20527_vm7, %v15396_v60, %v2873_v14  ;;  %v5244_v26 = vsel %vm21049_vm10, %v15823_v62, %v5243_v36  ;;  %v15790_v14 = vld [vmem:[%s20305_s12 + $0x16c] sm:$0x8]  ;;  %v5259_v60 = vrot.slane %v5257_v1, 4  ;;  %v15826_v59 = vrot.slane %v15796_v37, 11  ;;  %v15805_v1 = vld [vmem:[%s20305_s12 + $0x1f8] sm:$0x8] }
  0xe0   : > { %18279 = vmatprep.subr.bf16.mxu1 %v20084_v5  ;;  %v15416_v49 = vcombine.low %v2874_v15, %v2877_v8  ;;  %v5247_v23 = vsel %vm21049_vm10, %v5245_v20, %v5246_v19  ;;  %v15824_v0 = vrot.slane %v15790_v14, 11  ;;  %v20082_v15 = vld [vmem:[%s26588_s1 + $0x68] sm:$0xff]   ;;  %v15827_v62 = vrot.slane %v15799_v12, 11  ;;  %v15804_v14 = vld [vmem:[%s20305_s12 + $0x1e4] sm:$0x7] }
  0xe1   : > { %v15843_v61 = vcombine.low %v5244_v26, %v5247_v23  ;;  %v5261_v36 = vsel %vm21049_vm10, %v5259_v60, %v5260_v53  ;;  %v5273_v20 = vrot.slane %v5271_v16, 4  ;;  %v15802_v23 = vld [vmem:[%s20305_s12 + $0x1dc] sm:$0x8]  ;;  %v15829_v11 = vrot.slane %v15805_v1, 11 }
  0xe2   : > { %v5251_v22 = vsel %vm21049_vm10, %v15824_v0, %v5250_v58  ;;  %v15845_v30 = vcombine.low %v5258_v55, %v5261_v36  ;;  %v5272_v58 = vsel %vm21049_vm10, %v15827_v62, %v5271_v16  ;;  %v15828_v0 = vrot.slane %v15802_v23, 11  ;;  %v15813_v55 = vld [vmem:[%s20305_s12 + $0x238] sm:$0x7]  ;;  %v21231_v36 = vld [vmem:[%s20305_s12 + $0x250] sm:$0xf] }
  0xe3   : > { %18054 = vmatmul.mubr.msk.bf16.gmra.mrb[28].mxu0 %vm731_vm4, %v15414_v57  ;;  %18280 = vmatpush3.bf16.msra.mxu1 %v20084_v5  ;;  %v15842_v5 = vcombine.low %v5237_v44, %v5240_v18  ;;  %v5253_v57 = vrot.slane %v15792_v31, 7  ;;  %v5278_v18 = vrot.slane %v15803_v54, 7  ;;  %v5285_v31 = vrot.slane %v15806_v48, 7  ;;  %v21247_v62 = vld [vmem:[%s20305_s12 + $0xd0] sm:$0xf] }
  0xe4   : > { %18057 = vmatprep.mubr.msk.bf16.mxu0 %vm731_vm4, %v15415_v39  ;;  %18313 = vmatprep.subr.bf16.mxu1 %v21138_v17  ;;  %v15798_v39 = vld [vmem:[%s20305_s12 + $0x1ac] sm:$0x7]  ;;  %v5288_v53 = vrot.slane %v15807_v27, 7  ;;  %v5306_v54 = vrot.slane %v21231_v36, 7  ;;  %v15871_v48 = vld [vmem:[%s20305_s12 + $0xb0] sm:$0xe] }
  0xe5   : > { %v5254_v35 = vsel %vm21049_vm10, %v5252_v9, %v5253_v57  ;;  %v5267_v8 = vrot.slane %v15798_v39, 7  ;;  %v5280_v9 = vrot.slane %v5278_v18, 4  ;;  %v5281_v57 = vrot.slane %v15804_v14, 7  ;;  %v21259_v23 = vld [vmem:[%s20305_s12 + $0xec] sm:$0xf] }
  0xe6   : > { %18250 = vmatmul.mubr.msk.bf16.gmra.mrb[68].mxu1 %vm731_vm4, %v15840_v43  ;;  %v15801_v43 = vld [vmem:[%s20305_s12 + $0x1c8] sm:$0x7]  ;;  %v5287_v60 = vrot.slane %v5285_v31, 4  ;;  %v5279_v37 = vsel %vm21049_vm10, %v15828_v0, %v5278_v18  ;;  %v5286_v16 = vsel %vm21049_vm10, %v15829_v11, %v5285_v31  ;;  %v5302_v18 = vrot.slane %v15813_v55, 7  ;;  %v21264_v31 = vld [vmem:[%s20305_s12 + $0xd4] sm:$0x1] }
  0xe7   : > { %18253 = vmatprep.mubr.msk.bf16.mxu1 %vm731_vm4, %v15841_v38  ;;  %v15844_v38 = vcombine.low %v5251_v22, %v5254_v35  ;;  %v5274_v19 = vrot.slane %v15801_v43, 7  ;;  %v5268_v44 = vsel %vm21049_vm10, %v5266_v46, %v5267_v8  ;;  %v15812_v22 = vld [vmem:[%s20305_s12 + $0x234] sm:$0xf]  ;;  %v15810_v35 = vld [vmem:[%s20305_s12 + $0x21c] sm:$0x7]  ;;  %v5282_v39 = vsel %vm21049_vm10, %v5280_v9, %v5281_v57 }
  0xe8   : > { %v5289_v12 = vsel %vm21049_vm10, %v5287_v60, %v5288_v53  ;;  %v15830_v43 = vrot.slane %v15808_v21, 11  ;;  %v5295_v46 = vrot.slane %v15810_v35, 7  ;;  %v21244_v8 = vld [vmem:[%s20305_s12 + $0x254] sm:$0x7]  ;;  %v5722_v1 = vrot.slane %v21247_v62, 5 }
  0xe9   : > { %v5275_v26 = vsel %vm21049_vm10, %v5273_v20, %v5274_v19  ;;  %v15848_v20 = vcombine.low %v5279_v37, %v5282_v39  ;;  %v21268_v27 = vld [vmem:[%s20305_s12 + $0xe8] sm:$0xe]  ;;  %v5309_v0 = vrot.slane %v21244_v8, 7  ;;  %v21277_v9 = vld [vmem:[%s20305_s12 + $0xf0] sm:$0x1]  ;;  %v5308_v57 = vrot.slane %v5306_v54, 4 }
  0xea   : > { %v15919_v11 = vrot.slane %v15871_v48, 9  ;;  %v26596_v53 = vrot.slane %v21259_v23, 5  ;;  %v21286_v37 = vld [vmem:[%s20305_s12 + $0x104] sm:$0xe]  ;;  %v21294_v55 = vrot.slane %v5722_v1, 4 }
  0xeb   : > { %18058 = vmatmul.mubr.msk.bf16.gmra.mrb[32].mxu0 %vm731_vm4, %v15416_v49  ;;  %v21197_v49 = vld [vmem:[%s26588_s1 + $0x70] sm:$0xff]   ;;  %v21318_v8 = vld [vmem:[%s20305_s12 + $0x128] sm:$0x1]  ;;  %v21439_v62 = vld [vmem:[%s20305_s12 + $0x204] sm:$0xf] }
  0xec   : > { %18065 = vmatprep.mubr.msk.bf16.mxu0 %vm731_vm4, %v20335_v33  ;;  %v21358_v35 = vld [vmem:[%s20305_s12 + $0x174] sm:$0xe]  ;;  %v26763_v42 = vrot.slane %v21318_v8, 5 }
  0xee   : > { %18254 = vmatmul.mubr.msk.bf16.gmra.mrb[72].mxu1 %vm731_vm4, %v15842_v5  ;;  %v15809_v5 = vld [vmem:[%s20305_s12 + $0x218] sm:$0xf] }
  0xef   : > { %18257 = vmatprep.mubr.msk.bf16.mxu1 %vm731_vm4, %v15843_v61  ;;  %v15847_v61 = vcombine.low %v5272_v58, %v5275_v26  ;;  %v5292_v6 = vrot.slane %v15809_v5, 7  ;;  %v21256_v26 = vld [vmem:[%s20305_s12 + $0xcc] sm:$0xe] }
  0xf3   : > { %18066 = vmatmul.mubr.msk.bf16.vlgmr.msra.gmra.mrb[4].mxu0 %vm731_vm4, %v20346_v45  ;;  %v26756_v45 = vrot.slane %v21286_v37, 9  ;;  %v21550_v37 = vld [vmem:[%s20305_s12 + $0x208] sm:$0xf] }
  0xf4   : > { %18098 = vmatpush3.bf16.msra.mxu0 %v20933_v40  ;;  %18069 = vmatprep.mubr.msk.bf16.mxu0 %vm731_vm4, %v20364_v63  ;;  %v5265_v40 = vsel %vm21049_vm10, %v15826_v59, %v5264_v41  ;;  %v15811_v41 = vld [vmem:[%s20305_s12 + $0x230] sm:$0x8]  ;;  %v5294_v59 = vrot.slane %v5292_v6, 4 }
  0xf5   : > { %18099 = vmatprep.subr.bf16.mxu0 %v20082_v15  ;;  %v15846_v51 = vcombine.low %v5265_v40, %v5268_v44  ;;  %v15831_v19 = vrot.slane %v15811_v41, 11  ;;  %v15873_v40 = vld [vmem:[%s20305_s12 + $0xb8] sm:$0x1]  ;;  %v15849_v44 = vcombine.low %v5286_v16, %v5289_v12  ;;  %v21298_v16 = vld [vmem:[%s20305_s12 + $0x108] sm:$0xf] }
  0xf6   : > { %18258 = vmatmul.mubr.msk.bf16.gmra.mrb[76].mxu1 %vm731_vm4, %v15844_v38  ;;  %v21238_v38 = vld [vmem:[%s20305_s12 + $0x24c] sm:$0x8]  ;;  %v5296_v5 = vsel %vm21049_vm10, %v5294_v59, %v5295_v46  ;;  %v5718_v60 = vrot.slane %v15873_v40, 5  ;;  %v21301_v12 = vld [vmem:[%s20305_s12 + $0x124] sm:$0xf]  ;;  %v21314_v59 = vrot.slane %v26596_v53, 4 }
  0xf7   : > { %18261 = vmatprep.mubr.msk.bf16.mxu1 %vm731_vm4, %v15845_v30  ;;  %v21241_v30 = vld [vmem:[%s20305_s12 + $0xb4] sm:$0xf]  ;;  %v26599_v48 = vrot.slane %v21298_v16, 5  ;;  %v26598_v40 = vrot.slane %v21301_v12, 5  ;;  %v21361_v53 = vld [vmem:[%s20305_s12 + $0x17c] sm:$0x1] }
  0xf8   : > { %18100 = vmatpush3.bf16.msra.mxu0 %v20082_v15  ;;  %v5299_v15 = vrot.slane %v15812_v22, 7  ;;  %v5715_v58 = vrot.slane %v21241_v30, 5  ;;  %v21355_v22 = vld [vmem:[%s20305_s12 + $0x160] sm:$0x1]  ;;  %v26755_v63 = vrot.slane %v21298_v16, 5 }
  0xf9   : > { %18133 = vmatprep.subr.bf16.mxu0 %v21197_v49 }
  0xfa   : > { %v5301_v14 = vrot.slane %v5299_v15, 4  ;;  %v5717_v21 = vrot.slane %v5715_v58, 4  ;;  %v5300_v39 = vsel %vm21049_vm10, %v15831_v19, %v5299_v15  ;;  %v21310_v15 = vld [vmem:[%s20305_s12 + $0x140] sm:$0xf]  ;;  %v5716_v36 = vsel %vm20288_vm2, %v15919_v11, %v5715_v58 }
  0xfb   : > { %18070 = vmatmul.mubr.msk.bf16.gmra.mrb[8].mxu0 %vm731_vm4, %v20379_v13  ;;  %v21370_v58 = vrot.slane %v26598_v40, 4  ;;  %v21525_v13 = vld [vmem:[%s20305_s12 + $0x258] sm:$0xf] }
  0xfc   : > { %18073 = vmatprep.mubr.msk.bf16.mxu0 %vm731_vm4, %v20393_v32  ;;  %v5303_v41 = vsel %vm21049_vm10, %v5301_v14, %v5302_v18  ;;  %v26597_v14 = vrot.slane %v21310_v15, 5  ;;  %v5310_v18 = vsel %vm21049_vm10, %v5308_v57, %v5309_v0  ;;  %v26745_v57 = vrot.slane %v21259_v23, 5  ;;  %v21485_v32 = vld [vmem:[%s20305_s12 + $0x208] sm:$0x1] }
  0xfd   : > { %v15851_v19 = vcombine.low %v5300_v39, %v5303_v41  ;;  %v21339_v39 = vld [vmem:[%s20305_s12 + $0x144] sm:$0x1]  ;;  %v21342_v41 = vld [vmem:[%s20305_s12 + $0x158] sm:$0xe] }
  0xfe   : > { %18262 = vmatmul.mubr.msk.bf16.gmra.mrb[80].mxu1 %vm731_vm4, %v15846_v51  ;;  %v5293_v51 = vsel %vm21049_vm10, %v15830_v43, %v5292_v6  ;;  %v21304_v43 = vld [vmem:[%s20305_s12 + $0x10c] sm:$0x1]  ;;  %v21377_v11 = vrot.slane %v26597_v14, 4  ;;  %v21408_v14 = vld [vmem:[%s20305_s12 + $0x1ac] sm:$0xe] }
  0xff   : > { %18265 = vmatprep.mubr.msk.bf16.mxu1 %vm731_vm4, %v15847_v61  ;;  %v15832_v61 = vrot.slane %v21238_v38, 11  ;;  %v21307_v38 = vld [vmem:[%s20305_s12 + $0x120] sm:$0xe]  ;;  %v15850_v30 = vcombine.low %v5293_v51, %v5296_v5  ;;  %v21335_v51 = vld [vmem:[%s20305_s12 + $0x178] sm:$0xf]  ;;  %v5719_v5 = vsel %vm20288_vm2, %v5717_v21, %v5718_v60  ;;  %v26757_v33 = vrot.slane %v21304_v43, 5 }
 0x100   : > { %v26601_v0 = vrot.slane %v21335_v51, 5  ;;  %v21395_v60 = vld [vmem:[%s20305_s12 + $0x198] sm:$0x1]  ;;  %v21398_v21 = vld [vmem:[%s20305_s12 + $0x1b0] sm:$0xf] }
 0x101   : > { %v5307_v46 = vsel %vm21049_vm10, %v15832_v61, %v5306_v54  ;;  %v21366_v54 = vrot.slane %v26599_v48, 4  ;;  %v21392_v48 = vld [vmem:[%s20305_s12 + $0x190] sm:$0xe]  ;;  %v21417_v6 = vld [vmem:[%s20305_s12 + $0x1b4] sm:$0x1] }
 0x102   : > { %v15852_v40 = vcombine.low %v5307_v46, %v5310_v18  ;;  %v21404_v61 = vrot.slane %v26601_v0, 4  ;;  %v21413_v46 = vld [vmem:[%s20305_s12 + $0x1cc] sm:$0xf]  ;;  %v26746_v18 = vrot.slane %v21268_v27, 9  ;;  %v21573_v43 = vld [vmem:[%s20305_s12 + $0xb8] sm:$0xf] }
 0x103   : > { %18074 = vmatmul.mubr.msk.bf16.gmra.mrb[12].mxu0 %vm731_vm4, %v20409_v52  ;;  %v21506_v52 = vld [vmem:[%s20305_s12 + $0x224] sm:$0x1] }
 0x104   : > { %18077 = vmatprep.mubr.msk.bf16.mxu0 %vm731_vm4, %v20414_v56 }
 0x106   : > { %18266 = vmatmul.mubr.msk.bf16.gmra.mrb[84].mxu1 %vm731_vm4, %v15848_v20  ;;  %v21321_v20 = vld [vmem:[%s20305_s12 + $0x15c] sm:$0xf] }
 0x107   : > { %18269 = vmatprep.mubr.msk.bf16.mxu1 %vm731_vm4, %v15849_v44  ;;  %v21328_v44 = vld [vmem:[%s20305_s12 + $0x13c] sm:$0xe]  ;;  %v26600_v4 = vrot.slane %v21321_v20, 5 }
 0x10b   : > { %18078 = vmatmul.mubr.msk.bf16.gmra.mrb[16].mxu0 %vm731_vm4, %v20438_v28 }
 0x10c   : > { %18081 = vmatprep.mubr.msk.bf16.mxu0 %vm731_vm4, %v20441_v34 }
 0x10e   : > { %18270 = vmatmul.mubr.msk.bf16.gmra.mrb[88].mxu1 %vm731_vm4, %v15850_v30  ;;  %v21382_v30 = vld [vmem:[%s20305_s12 + $0x194] sm:$0xf] }
 0x10f   : > { %18273 = vmatprep.mubr.msk.bf16.mxu1 %vm731_vm4, %v15851_v19  ;;  %v21386_v19 = vrot.slane %v26600_v4, 4  ;;  %v15939_v4 = vcombine.low %v5716_v36, %v5719_v5  ;;  %v26744_v5 = vrot.slane %v21256_v26, 9  ;;  %v26747_v26 = vrot.slane %v21264_v31, 5  ;;  %v21479_v36 = vld [vmem:[%s20305_s12 + $0x200] sm:$0xe] }
 0x111   : > { %v5723_v0 = vsel %vm20288_vm2, %v26744_v5, %v5722_v1  ;;  %v5726_v23 = vsel %vm20288_vm2, %v21294_v55, %v26747_v26  ;;  %v26748_v1 = vrot.slane %v21277_v9, 5  ;;  %v21457_v5 = vld [vmem:[%s20305_s12 + $0x1c8] sm:$0xe]  ;;  %v21467_v55 = vld [vmem:[%s20305_s12 + $0x1ec] sm:$0x1] }
 0x112   : > { %v21470_v9 = vld [vmem:[%s20305_s12 + $0x220] sm:$0xf]  ;;  %v15940_v34 = vcombine.low %v5723_v0, %v5726_v23  ;;  %v21499_v0 = vld [vmem:[%s20305_s12 + $0x21c] sm:$0xe]  ;;  %v26754_v23 = vrot.slane %v21439_v62, 5 }
 0x113   : > { %18082 = vmatmul.mubr.msk.bf16.gmra.mrb[20].mxu0 %vm731_vm4, %v20464_v7  ;;  %v5733_v27 = vsel %vm20288_vm2, %v21314_v59, %v26748_v1  ;;  %v21464_v7 = vld [vmem:[%s20305_s12 + $0x1e4] sm:$0xe]  ;;  %v26750_v59 = vrot.slane %v21398_v21, 5  ;;  %v26751_v1 = vrot.slane %v21413_v46, 5 }
 0x114   : > { %18085 = vmatprep.mubr.msk.bf16.mxu0 %vm731_vm4, %v20467_v10  ;;  %v5730_v10 = vsel %vm20288_vm2, %v26746_v18, %v26745_v57  ;;  %v26749_v57 = vrot.slane %v21382_v30, 5 }
 0x115   : > { %v21474_v26 = vrot.slane %v26750_v59, 4  ;;  %v15941_v28 = vcombine.low %v5730_v10, %v5733_v27  ;;  %v21488_v59 = vld [vmem:[%s20305_s12 + $0x23c] sm:$0xf]  ;;  %v20091_v10 = vld [vmem:[%s26588_s1 + $0xc8] sm:$0xff]   ;;  %v21543_v27 = vld [vmem:[%s20305_s12 + $0x254] sm:$0xe] }
 0x116   : > { %18274 = vmatmul.mubr.msk.bf16.gmra.mrb[92].mxu1 %vm731_vm4, %v15852_v40  ;;  %v21436_v40 = vld [vmem:[%s20305_s12 + $0x1e8] sm:$0xf]  ;;  %v21454_v18 = vrot.slane %v26749_v57, 4  ;;  %v21494_v57 = vrot.slane %v26751_v1, 4  ;;  %v21509_v1 = vld [vmem:[%s20305_s12 + $0x238] sm:$0xe] }
 0x117   : > { %18281 = vmatprep.mubr.msk.bf16.mxu1 %vm731_vm4, %v15939_v4  ;;  %v21460_v4 = vld [vmem:[%s20305_s12 + $0x1d0] sm:$0x1]  ;;  %26752 = vst [vmem:[#allocation23_spill] sm:$0xff] %v21509_v1  ;;  %v26753_v31 = vrot.slane %v21436_v40, 5  ;;  %v21597_v1 = vld [vmem:[%s20305_s12 + $0xbc] sm:$0x7] }
 0x119   : > { %v21516_v56 = vrot.slane %v26753_v31, 4  ;;  %v5737_v31 = vsel %vm20288_vm2, %v26756_v45, %v26755_v63  ;;  %v26759_v63 = vrot.slane %v21470_v9, 5 }
 0x11b   : > { %18086 = vmatmul.mubr.msk.bf16.gmra.mrb[24].mxu0 %vm731_vm4, %v20491_v47  ;;  %v21520_v47 = vrot.slane %v26754_v23, 4  ;;  %v5740_v23 = vsel %vm20288_vm2, %v21366_v54, %v26757_v33  ;;  %v21555_v16 = vrot.slane %v26759_v63, 4  ;;  %v26761_v54 = vrot.slane %v21301_v12, 5  ;;  %v21581_v12 = vld [vmem:[%s26588_s1 + $0xd0] sm:$0xff]  }
 0x11c   : > { %18089 = vmatprep.mubr.msk.bf16.mxu0 %vm731_vm4, %v20493_v50  ;;  %v21540_v50 = vld [vmem:[%s20305_s12 + $0x240] sm:$0x1]  ;;  %v5747_v63 = vsel %vm20288_vm2, %v21370_v58, %v26763_v42  ;;  %26764 = vst [vmem:[#allocation26_spill] sm:$0xff] %v21581_v12  ;;  %v15942_v33 = vcombine.low %v5737_v31, %v5740_v23  ;;  %v21607_v42 = vld [vmem:[%s20305_s12 + $0x10c] sm:$0xf]  ;;  %v26772_v58 = vrot.slane %v21328_v44, 9 }
 0x11d   : > { %26760 = vst [vmem:[#allocation25_spill] sm:$0xff] %v21555_v16  ;;  %v21600_v16 = vld [vmem:[%s20305_s12 + $0xd0] sm:$0x8]  ;;  %26767 = vst [vmem:[#allocation28_spill] sm:$0xff] %v21607_v42  ;;  %v20179_v31 = vld [vmem:[%s20305_s12 + $0x204] sm:$0xf] }
 0x11e   : > { %18282 = vmatmul.mubr.msk.bf16.vlgmr.msra.gmra.mrb[64].mxu1 %vm731_vm4, %v15940_v34  ;;  %v21546_v34 = vld [vmem:[%s20305_s12 + $0x25c] sm:$0x1]  ;;  %v15477_v23 = vcombine.low %v20179_v31, %v21550_v37  ;;  %v26773_v37 = vrot.slane %v21339_v39, 5  ;;  %v26774_v31 = vrot.slane %v21321_v20, 5  ;;  %v21651_v39 = vld [vmem:[%s20305_s12 + $0x108] sm:$0x8] }
 0x11f   : > { %26758 = vst [vmem:[#allocation24_spill] sm:$0xff] %v21546_v34  ;;  %18285 = vmatprep.mubr.msk.bf16.mxu1 %vm731_vm4, %v15941_v28  ;;  %18314 = vmatpush3.bf16.msra.mxu1 %v21138_v17  ;;  %v26762_v28 = vrot.slane %v21307_v38, 9  ;;  %v21576_v17 = vld [vmem:[%s20305_s12 + $0xd4] sm:$0xf]  ;;  %v26765_v38 = vrot.slane %v21488_v59, 5  ;;  %v26768_v34 = vrot.slane %v21525_v13, 5 }
 0x120   : > { %18315 = vmatprep.subr.bf16.mxu1 %v20091_v10  ;;  %26777 = vst [vmem:[#allocation31_spill] sm:$0xff] %v21651_v39 }
 0x121   : > { %v5744_v45 = vsel %vm20288_vm2, %v26762_v28, %v26761_v54  ;;  %v21585_v8 = vrot.slane %v26765_v38, 4  ;;  %v21591_v28 = vld [vmem:[%s20305_s12 + $0xf0] sm:$0xf]  ;;  %v26771_v54 = vrot.slane %v21310_v15, 5  ;;  %v26776_v15 = vrot.slane %v21355_v22, 5 }
 0x122   : > { %26766 = vst [vmem:[#allocation27_spill] sm:$0xff] %v21591_v28  ;;  %v15943_v38 = vcombine.low %v5744_v45, %v5747_v63  ;;  %v21621_v45 = vld [vmem:[%s20305_s12 + $0xec] sm:$0x8]  ;;  %v26782_v22 = vrot.slane %v21591_v28, 7  ;;  %v15459_v28 = vld [vmem:[%s20305_s12 + $0x240] sm:$0xf] }
 0x123   : > { %18090 = vmatmul.mubr.msk.bf16.gmra.mrb[28].mxu0 %vm731_vm4, %v20517_v25  ;;  %18316 = vmatpush3.bf16.msra.mxu1 %v20091_v10  ;;  %v21615_v25 = vrot.slane %v26768_v34, 4  ;;  %v21618_v10 = vld [vmem:[%s20305_s12 + $0xd8] sm:$0x7]  ;;  %26770 = vst [vmem:[#allocation30_spill] sm:$0xff] %v21621_v45  ;;  %v5754_v34 = vsel %vm20288_vm2, %v21377_v11, %v26773_v37  ;;  %v5761_v44 = vsel %vm20288_vm2, %v21386_v19, %v26776_v15  ;;  %v26779_v11 = vrot.slane %v21573_v43, 7 }
 0x124   : > { %18093 = vmatprep.mubr.msk.bf16.mxu0 %vm731_vm4, %v20519_v29  ;;  %18349 = vmatprep.subr.bf16.mxu1 %v21581_v12  ;;  %v5751_v29 = vsel %vm20288_vm2, %v26772_v58, %v26771_v54  ;;  %v21648_v58 = vld [vmem:[%s20305_s12 + $0xf4] sm:$0x7]  ;;  %v21654_v54 = vld [vmem:[%s20305_s12 + $0x110] sm:$0x7]  ;;  %v21677_v20 = vrot.slane %v26782_v22, 4  ;;  %v26786_v22 = vrot.slane %v21607_v42, 7 }
 0x125   : > { %26769 = vst [vmem:[#allocation29_spill] sm:$0xff] %v21615_v25  ;;  %v26775_v25 = vrot.slane %v21342_v41, 9  ;;  %26778 = vst [vmem:[#allocation32_spill] sm:$0xff] %v21654_v54  ;;  %v21664_v19 = vrot.slane %v26779_v11, 4  ;;  %v15458_v41 = vld [vmem:[%s20305_s12 + $0x224] sm:$0xf]  ;;  %v15944_v45 = vcombine.low %v5751_v29, %v5754_v34 }
 0x126   : > { %18286 = vmatmul.mubr.msk.bf16.gmra.mrb[68].mxu1 %vm731_vm4, %v15942_v33  ;;  %v26780_v33 = vrot.slane %v21576_v17, 7  ;;  %26783 = vst [vmem:[#allocation34_spill] sm:$0xff] %v21677_v20  ;;  %v21684_v12 = vld [vmem:[%s20305_s12 + $0x128] sm:$0xf]  ;;  %v21690_v15 = vld [vmem:[%s20305_s12 + $0x144] sm:$0xf] }
 0x127   : > { %v5758_v63 = vsel %vm20288_vm2, %v26775_v25, %v26774_v31  ;;  %18289 = vmatprep.mubr.msk.bf16.mxu1 %vm731_vm4, %v15943_v38  ;;  %v21673_v25 = vld [vmem:[%s20305_s12 + $0x124] sm:$0x8]  ;;  %v21687_v31 = vld [vmem:[%s20305_s12 + $0x12c] sm:$0x7]  ;;  %26785 = vst [vmem:[#allocation36_spill] sm:$0xff] %v21690_v15  ;;  %v21695_v20 = vrot.slane %v26786_v22, 4 }
 0x128   : > { %v21668_v37 = vrot.slane %v26780_v33, 4  ;;  %26781 = vst [vmem:[#allocation33_spill] sm:$0xff] %v21673_v25  ;;  %26784 = vst [vmem:[#allocation35_spill] sm:$0xff] %v21687_v31  ;;  %v21699_v33 = vld [vmem:[%s20305_s12 + $0x2a8] sm:$0xf]  ;;  %v15945_v38 = vcombine.low %v5758_v63, %v5761_v44  ;;  %v26790_v34 = vrot.slane %v21335_v51, 5 }
 0x129   : > { %26787 = vst [vmem:[#allocation37_spill] sm:$0xff] %v21695_v20  ;;  %v21704_v54 = vld [vmem:[%s20305_s12 + $0x140] sm:$0x8]  ;;  %v21707_v29 = vld [vmem:[%s20305_s12 + $0x2c4] sm:$0xf]  ;;  %v26791_v22 = vrot.slane %v21358_v35, 9 }
 0x12a   : > { %26788 = vst [vmem:[#allocation38_spill] sm:$0xff] %v21704_v54  ;;  %26789 = vst [vmem:[#allocation39_spill] sm:$0xff] %v21707_v29  ;;  %v26792_v25 = vrot.slane %v21361_v53, 5  ;;  %v21728_v20 = vld [vmem:[%s20305_s12 + $0x2a4] sm:$0xc]  ;;  %v26796_v53 = vrot.slane %v21382_v30, 5 }
 0x12b   : > { %18094 = vmatmul.mubr.msk.bf16.gmra.mrb[32].mxu0 %vm731_vm4, %v20549_v3  ;;  %v5765_v11 = vsel %vm20288_vm2, %v26791_v22, %v26790_v34  ;;  %v21723_v3 = vld [vmem:[%s20305_s12 + $0x148] sm:$0x7]  ;;  %v21731_v35 = vld [vmem:[%s20305_s12 + $0x2ac] sm:$0x3]  ;;  %v20180_v34 = vld [vmem:[%s20305_s12 + $0x220] sm:$0xf] }
 0x12c   : > { %18101 = vmatprep.mubr.msk.bf16.mxu0 %vm731_vm4, %v15477_v23  ;;  %v5768_v63 = vsel %vm20288_vm2, %v21404_v61, %v26792_v25  ;;  %26793 = vst [vmem:[#allocation40_spill] sm:$0xff] %v21723_v3  ;;  %v15478_v61 = vcombine.low %v20180_v34, %v15458_v41  ;;  %v21738_v22 = vld [vmem:[%s20305_s12 + $0x2c0] sm:$0xc]  ;;  %v21741_v23 = vld [vmem:[%s20305_s12 + $0x2c8] sm:$0x3]  ;;  %v26797_v42 = vrot.slane %v21392_v48, 9 }
 0x12d   : > { %26794 = vst [vmem:[#allocation41_spill] sm:$0xff] %v21738_v22  ;;  %26795 = vst [vmem:[#allocation42_spill] sm:$0xff] %v21741_v23  ;;  %v15946_v44 = vcombine.low %v5765_v11, %v5768_v63  ;;  %v20181_v31 = vld [vmem:[%s20305_s12 + $0x23c] sm:$0xf]  ;;  %v26798_v41 = vrot.slane %v21395_v60, 5  ;;  %v26800_v60 = vrot.slane %v21684_v12, 7 }
 0x12e   : > { %18290 = vmatmul.mubr.msk.bf16.gmra.mrb[72].mxu1 %vm731_vm4, %v15944_v45  ;;  %v15479_v39 = vcombine.low %v20181_v31, %v15459_v28  ;;  %v5772_v45 = vsel %vm20288_vm2, %v26797_v42, %v26796_v53  ;;  %v21758_v25 = vld [vmem:[%s20305_s12 + $0x15c] sm:$0x8]  ;;  %v26801_v31 = vrot.slane %v21690_v15, 7  ;;  %v26803_v53 = vrot.slane %v21699_v33, 6  ;;  %v15461_v11 = vld [vmem:[%s20305_s12 + $0x278] sm:$0xf] }
 0x12f   : > { %18293 = vmatprep.mubr.msk.bf16.mxu1 %vm731_vm4, %v15945_v38  ;;  %v5775_v34 = vsel %vm20288_vm2, %v21454_v18, %v26798_v41  ;;  %v21761_v38 = vld [vmem:[%s20305_s12 + $0x160] sm:$0xf]  ;;  %v21764_v28 = vld [vmem:[%s20305_s12 + $0x17c] sm:$0xf]  ;;  %v21774_v42 = vrot.slane %v26800_v60, 4 }
 0x130   : > { %26799 = vst [vmem:[#allocation43_spill] sm:$0xff] %v21764_v28  ;;  %v21767_v30 = vld [vmem:[%s20305_s12 + $0x25c] sm:$0xf]  ;;  %v21778_v18 = vrot.slane %v26801_v31, 4  ;;  %v21784_v41 = vrot.slane %v26803_v53, 4  ;;  %v15947_v60 = vcombine.low %v5772_v45, %v5775_v34  ;;  %v21807_v51 = vld [vmem:[%s26588_s1 + $0x80] sm:$0xff]  }
 0x131   : > { %v20089_v48 = vld [vmem:[%s26588_s1 + $0x78] sm:$0xff]   ;;  %v21790_v31 = vld [vmem:[%s20305_s12 + $0x164] sm:$0x7]  ;;  %26807 = vst [vmem:[#allocation47_spill] sm:$0xff] %v21807_v51  ;;  %v26809_v34 = vrot.slane %v21398_v21, 5  ;;  %v26810_v53 = vrot.slane %v21408_v14, 9 }
 0x132   : > { %26802 = vst [vmem:[#allocation44_spill] sm:$0xff] %v21778_v18  ;;  %v26804_v18 = vrot.slane %v21707_v29, 6  ;;  %v21800_v15 = vld [vmem:[%s20305_s12 + $0x178] sm:$0x8]  ;;  %v21818_v3 = vld [vmem:[%s20305_s12 + $0x2dc] sm:$0xc] }
 0x133   : > { %26806 = vst [vmem:[#allocation46_spill] sm:$0xff] %v21800_v15  ;;  %18102 = vmatmul.mubr.msk.bf16.vlgmr.msra.gmra.mrb[4].mxu0 %vm731_vm4, %v15478_v61  ;;  %v21821_v54 = vld [vmem:[%s20305_s12 + $0x2e4] sm:$0x3]  ;;  %v20182_v61 = vld [vmem:[%s20305_s12 + $0x258] sm:$0xf]  ;;  %v5779_v23 = vsel %vm20288_vm2, %v26810_v53, %v26809_v34  ;;  %v26812_v21 = vrot.slane %v21761_v38, 7 }
 0x134   : > { %v21795_v63 = vrot.slane %v26804_v18, 4  ;;  %v21810_v18 = vld [vmem:[%s20305_s12 + $0x180] sm:$0x7]  ;;  %18134 = vmatpush3.bf16.msra.mxu0 %v21197_v49  ;;  %18105 = vmatprep.mubr.msk.bf16.mxu0 %vm731_vm4, %v15479_v39  ;;  %v15480_v45 = vcombine.low %v20182_v61, %v21767_v30  ;;  %v21834_v22 = vld [vmem:[%s20305_s12 + $0x2f8] sm:$0xc]  ;;  %v26813_v30 = vrot.slane %v21764_v28, 7 }
 0x135   : > { %26808 = vst [vmem:[#allocation48_spill] sm:$0xff] %v21810_v18  ;;  %18135 = vmatprep.subr.bf16.mxu0 %v20089_v48  ;;  %26811 = vst [vmem:[#allocation49_spill] sm:$0xff] %v21834_v22  ;;  %v21837_v29 = vld [vmem:[%s20305_s12 + $0x2fc] sm:$0xf]  ;;  %v21842_v14 = vrot.slane %v26812_v21, 4  ;;  %v26815_v39 = vrot.slane %v21417_v6, 5 }
 0x136   : > { %26805 = vst [vmem:[#allocation45_spill] sm:$0xff] %v21795_v63  ;;  %v21813_v63 = vld [vmem:[%s20305_s12 + $0x2e0] sm:$0xf]  ;;  %18294 = vmatmul.mubr.msk.bf16.gmra.mrb[76].mxu1 %vm731_vm4, %v15946_v44  ;;  %v21846_v53 = vrot.slane %v26813_v30, 4  ;;  %v20183_v21 = vld [vmem:[%s20305_s12 + $0x274] sm:$0xf] }
 0x137   : > { %18297 = vmatprep.mubr.msk.bf16.mxu1 %vm731_vm4, %v15947_v60  ;;  %v5782_v44 = vsel %vm20288_vm2, %v21474_v26, %v26815_v39  ;;  %v15481_v49 = vcombine.low %v20183_v21, %v15461_v11  ;;  %v21858_v30 = vld [vmem:[%s20305_s12 + $0x294] sm:$0xf]  ;;  %v21866_v60 = vld [vmem:[%s20305_s12 + $0x198] sm:$0xf]  ;;  %v26817_v6 = vrot.slane %v21413_v46, 5  ;;  %v26818_v18 = vrot.slane %v21457_v5, 9 }
 0x138   : > { %26814 = vst [vmem:[#allocation50_spill] sm:$0xff] %v21846_v53  ;;  %v21863_v53 = vld [vmem:[%s20305_s12 + $0x300] sm:$0x3]  ;;  %v26819_v11 = vrot.slane %v21460_v4, 5  ;;  %v21880_v21 = vld [vmem:[%s20305_s12 + $0x2b0] sm:$0xf]  ;;  %18136 = vmatpush3.bf16.msra.mxu0 %v20089_v48  ;;  %v15948_v48 = vcombine.low %v5779_v23, %v5782_v44 }
 0x139   : > { %26816 = vst [vmem:[#allocation51_spill] sm:$0xff] %v21863_v53  ;;  %v5786_v26 = vsel %vm20288_vm2, %v26818_v18, %v26817_v6  ;;  %v21885_v61 = vld [vmem:[%s20305_s12 + $0x194] sm:$0x8]  ;;  %18169 = vmatprep.subr.bf16.mxu0 %v21807_v51  ;;  %v21892_v4 = vld [vmem:[%s20305_s12 + $0x19c] sm:$0x7]  ;;  %v26822_v6 = vrot.slane %v21813_v63, 6 }
 0x13a   : > { %v5789_v39 = vsel %vm20288_vm2, %v21494_v57, %v26819_v11  ;;  %v21888_v5 = vld [vmem:[%s20305_s12 + $0x1b4] sm:$0xf]  ;;  %v21895_v18 = vld [vmem:[%s20305_s12 + $0x1b0] sm:$0x8]  ;;  %v21898_v57 = vld [vmem:[%s20305_s12 + $0x318] sm:$0xf] }
 0x13b   : > { %26820 = vst [vmem:[#allocation52_spill] sm:$0xff] %v21888_v5  ;;  %26821 = vst [vmem:[#allocation53_spill] sm:$0xff] %v21895_v18  ;;  %v21902_v11 = vrot.slane %v26822_v6, 4  ;;  %v21906_v46 = vld [vmem:[%s20305_s12 + $0x1b8] sm:$0x7]  ;;  %18106 = vmatmul.mubr.msk.bf16.gmra.mrb[8].mxu0 %vm731_vm4, %v15480_v45  ;;  %v15949_v22 = vcombine.low %v5786_v26, %v5789_v39  ;;  %v26825_v6 = vrot.slane %v21837_v29, 6 }
 0x13c   : > { %26823 = vst [vmem:[#allocation54_spill] sm:$0xff] %v21906_v46  ;;  %v21912_v28 = vld [vmem:[%s20305_s12 + $0x334] sm:$0xf]  ;;  %18109 = vmatprep.mubr.msk.bf16.mxu0 %vm731_vm4, %v15481_v49  ;;  %v20184_v23 = vld [vmem:[%s20305_s12 + $0x290] sm:$0xf]  ;;  %v26827_v39 = vrot.slane %v21436_v40, 5 }
 0x13d   : > { %26824 = vst [vmem:[#allocation55_spill] sm:$0xff] %v21912_v28  ;;  %v15482_v44 = vcombine.low %v20184_v23, %v21858_v30  ;;  %v21919_v34 = vrot.slane %v26825_v6, 4  ;;  %v21922_v45 = vld [vmem:[%s20305_s12 + $0x314] sm:$0xc]  ;;  %v26828_v51 = vrot.slane %v21464_v7, 9  ;;  %v26831_v40 = vrot.slane %v21439_v62, 5 }
 0x13e   : > { %v20185_v49 = vld [vmem:[%s20305_s12 + $0x2ac] sm:$0xf]  ;;  %v21939_v53 = vld [vmem:[%s20305_s12 + $0x330] sm:$0xc]  ;;  %18298 = vmatmul.mubr.msk.bf16.gmra.mrb[80].mxu1 %vm731_vm4, %v15948_v48  ;;  %v21942_v7 = vpop.f32.mrb[0].mxu0  ;;  %v26835_v62 = vrot.slane %v21467_v55, 5 }
 0x13f   : > { %26826 = vst [vmem:[#allocation56_spill] sm:$0xff] %v21919_v34  ;;  %v5793_v15 = vsel %vm20288_vm2, %v26828_v51, %v26827_v39  ;;  %v15483_v30 = vcombine.low %v20185_v49, %v21880_v21  ;;  %v21936_v34 = vld [vmem:[%s20305_s12 + $0x31c] sm:$0x3]  ;;  %26829 = vst [vmem:[#allocation57_spill] sm:$0xff] %v21939_v53  ;;  %v26832_v51 = vrot.slane %v21479_v36, 9  ;;  %v26833_v39 = vrot.slane %v21866_v60, 7  ;;  %18301 = vmatprep.mubr.msk.bf16.mxu1 %vm731_vm4, %v15949_v22 }
 0x140   : > { %26830 = vst [vmem:[#allocation58_spill] sm:$0xff] %v21942_v7  ;;  %v21956_v23 = vld [vmem:[%s20305_s12 + $0x338] sm:$0x3]  ;;  %v17879_v26 = vpop.f32.mrb[1].mxu0  ;;  %v5796_v36 = vsel %vm20288_vm2, %v21516_v56, %v26835_v62  ;;  %v21978_v55 = vld [vmem:[%s20305_s12 + $0x1d0] sm:$0xf] }
 0x141   : > { %v5800_v21 = vsel %vm20288_vm2, %v26832_v51, %v26831_v40  ;;  %v21952_v49 = vrot.slane %v26833_v39, 4  ;;  %26834 = vst [vmem:[#allocation59_spill] sm:$0xff] %v21956_v23  ;;  %v21966_v40 = vld [vmem:[%s20305_s12 + $0x2cc] sm:$0xf]  ;;  %v21969_v51 = vld [vmem:[%s20305_s12 + $0x2e8] sm:$0xf] }
 0x142   : > { %v26836_v39 = vrot.slane %v21888_v5, 7  ;;  %v860_v48 = vpop.f32.mrb[2].mxu0  ;;  %v26838_v56 = vrot.slane %v21485_v32, 5  ;;  %v26839_v7 = vrot.slane %v21898_v57, 6  ;;  %v21996_v46 = vld [vmem:[%s20305_s12 + $0x1d4] sm:$0x7] }
 0x143   : > { %v17880_v48 = vpop.f32.mrb[3].mxu0  ;;  %v22007_v22 = vld [vmem:[%s20305_s12 + $0x1e8] sm:$0x8]  ;;  %v22010_v53 = vld [vmem:[%s20305_s12 + $0x350] sm:$0xf]  ;;  %18110 = vmatmul.mubr.msk.bf16.gmra.mrb[12].mxu0 %vm731_vm4, %v15482_v44  ;;  %v26847_v5 = vrot.slane %v21470_v9, 5 }
 0x144   : > { %v21973_v6 = vrot.slane %v26836_v39, 4  ;;  %v5803_v62 = vsel %vm20288_vm2, %v21520_v47, %v26838_v56  ;;  %v21987_v39 = vrot.slane %v26839_v7, 4  ;;  %v21999_v47 = vld [vmem:[%s20305_s12 + $0x1ec] sm:$0xf]  ;;  %v15950_v56 = vcombine.low %v5793_v15, %v5796_v36  ;;  %26843 = vst [vmem:[#allocation63_spill] sm:$0xff] %v22007_v22  ;;  %18113 = vmatprep.mubr.msk.bf16.mxu0 %vm731_vm4, %v15483_v30 }
 0x145   : > { %v26841_v7 = vrot.slane %v21912_v28, 6  ;;  %v15951_v48 = vcombine.low %v5800_v21, %v5803_v62  ;;  %v22014_v32 = vld [vmem:[%s20305_s12 + $0x1f0] sm:$0x7]  ;;  %v22017_v23 = vld [vmem:[%s20305_s12 + $0x36c] sm:$0xf] }
 0x146   : > { %26837 = vst [vmem:[#allocation60_spill] sm:$0xff] %v21973_v6  ;;  %26840 = vst [vmem:[#allocation61_spill] sm:$0xff] %v21987_v39  ;;  %v21992_v6 = vld [vmem:[%s20305_s12 + $0x1cc] sm:$0x8]  ;;  %v22020_v15 = vld [vmem:[%s20305_s12 + $0x208] sm:$0xf]  ;;  %18302 = vmatmul.mubr.msk.bf16.gmra.mrb[84].mxu1 %vm731_vm4, %v15950_v56 }
 0x147   : > { %v22003_v18 = vrot.slane %v26841_v7, 4  ;;  %26844 = vst [vmem:[#allocation64_spill] sm:$0xff] %v22017_v23  ;;  %v20186_v36 = vld [vmem:[%s20305_s12 + $0x2c8] sm:$0xf]  ;;  %v20187_v26 = vld [vmem:[%s20305_s12 + $0x2e4] sm:$0xf]  ;;  %18305 = vmatprep.mubr.msk.bf16.mxu1 %vm731_vm4, %v15951_v48 }
 0x148   : > { %v15484_v7 = vcombine.low %v20186_v36, %v21966_v40  ;;  %v22030_v62 = vld [vmem:[%s20305_s12 + $0x34c] sm:$0xc]  ;;  %v22033_v28 = vld [vmem:[%s20305_s12 + $0x354] sm:$0x3]  ;;  %v26848_v39 = vrot.slane %v21499_v0, 9  ;;  %v26849_v40 = vrot.slane %v21506_v52, 5 }
 0x149   : > { %26842 = vst [vmem:[#allocation62_spill] sm:$0xff] %v22003_v18  ;;  %v15485_v18 = vcombine.low %v20187_v26, %v21969_v51  ;;  %26845 = vst [vmem:[#allocation65_spill] sm:$0xff] %v22030_v62  ;;  %v26850_v36 = vld [vmem:[#allocation25_spill] sm:$0xff]  ;;  %v22052_v9 = vld [vmem:[%s20305_s12 + $0x224] sm:$0xf]  ;;  %v26853_v0 = vrot.slane %v21978_v55, 7 }
 0x14a   : > { %26846 = vst [vmem:[#allocation66_spill] sm:$0xff] %v22033_v28  ;;  %v5807_v30 = vsel %vm20288_vm2, %v26848_v39, %v26847_v5  ;;  %v5810_v51 = vsel %vm20288_vm2, %v26850_v36, %v26849_v40  ;;  %v22049_v21 = vld [vmem:[%s20305_s12 + $0x368] sm:$0xc]  ;;  %26852 = vst [vmem:[#allocation67_spill] sm:$0xff] %v22052_v9  ;;  %v26856_v26 = vrot.slane %v21488_v59, 5  ;;  %v26857_v56 = vld [vmem:[#allocation23_spill] sm:$0xff] }
 0x14b   : > { %26851 = vst [vmem:[#allocation25_spill] sm:$0xff] %v22049_v21  ;;  %v22057_v52 = vrot.slane %v26853_v0, 4  ;;  %v22063_v36 = vld [vmem:[%s20305_s12 + $0x388] sm:$0xf]  ;;  %v26858_v44 = vrot.slane %v26857_v56, 9  ;;  %v26861_v56 = vrot.slane %v21999_v47, 7  ;;  %18114 = vmatmul.mubr.msk.bf16.gmra.mrb[16].mxu0 %vm731_vm4, %v15484_v7 }
 0x14c   : > { %26855 = vst [vmem:[#allocation69_spill] sm:$0xff] %v22063_v36  ;;  %v22080_v48 = vld [vmem:[%s20305_s12 + $0x370] sm:$0x3]  ;;  %v22083_v59 = vld [vmem:[%s20305_s12 + $0x204] sm:$0x8]  ;;  %v26863_v39 = vrot.slane %v22010_v53, 6  ;;  %18117 = vmatprep.mubr.msk.bf16.mxu0 %vm731_vm4, %v15485_v18 }
 0x14d   : > { %26854 = vst [vmem:[#allocation68_spill] sm:$0xff] %v22057_v52  ;;  %v5814_v0 = vsel %vm20288_vm2, %v26858_v44, %v26856_v26  ;;  %v26859_v52 = vrot.slane %v21540_v50, 5  ;;  %26860 = vst [vmem:[#allocation23_spill] sm:$0xff] %v22083_v59  ;;  %v22087_v22 = vrot.slane %v26861_v56, 4  ;;  %v22092_v26 = vld [vmem:[%s20305_s12 + $0x20c] sm:$0x7] }
 0x14e   : > { %v22097_v40 = vrot.slane %v26863_v39, 4  ;;  %v22100_v62 = vld [vmem:[%s20305_s12 + $0x220] sm:$0x8]  ;;  %v22103_v56 = vld [vmem:[%s20305_s12 + $0x228] sm:$0x7]  ;;  %v26867_v44 = vrot.slane %v22017_v23, 6 }
 0x14f   : > { %v5817_v5 = vsel %vm20288_vm2, %v21585_v8, %v26859_v52  ;;  %26862 = vst [vmem:[#allocation70_spill] sm:$0xff] %v22087_v22  ;;  %v15952_v52 = vcombine.low %v5807_v30, %v5810_v51  ;;  %26865 = vst [vmem:[#allocation72_spill] sm:$0xff] %v22100_v62  ;;  %v15466_v50 = vld [vmem:[%s20305_s12 + $0x304] sm:$0xf]  ;;  %v15467_v28 = vld [vmem:[%s20305_s12 + $0x320] sm:$0xf] }
 0x150   : > { %26864 = vst [vmem:[#allocation71_spill] sm:$0xff] %v22097_v40  ;;  %26866 = vst [vmem:[#allocation73_spill] sm:$0xff] %v22103_v56  ;;  %v22110_v21 = vrot.slane %v26867_v44, 4  ;;  %v26868_v51 = vrot.slane %v22020_v15, 7  ;;  %v22119_v40 = vld [vmem:[%s20305_s12 + $0x384] sm:$0xc]  ;;  %v15953_v22 = vcombine.low %v5814_v0, %v5817_v5 }
 0x151   : > { %26870 = vst [vmem:[#allocation75_spill] sm:$0xff] %v22119_v40  ;;  %v22123_v23 = vld [vmem:[%s20305_s12 + $0x38c] sm:$0x3]  ;;  %v22126_v44 = vld [vmem:[%s20305_s12 + $0x3a4] sm:$0xf]  ;;  %v26875_v0 = vrot.slane %v22063_v36, 6  ;;  %18306 = vmatmul.mubr.msk.bf16.gmra.mrb[88].mxu1 %vm731_vm4, %v15952_v52 }
 0x152   : > { %v22116_v39 = vrot.slane %v26868_v51, 4  ;;  %26871 = vst [vmem:[#allocation76_spill] sm:$0xff] %v22123_v23  ;;  %26872 = vst [vmem:[#allocation77_spill] sm:$0xff] %v22126_v44  ;;  %v26873_v51 = vrot.slane %v22052_v9, 7  ;;  %v22142_v18 = vld [vmem:[%s20305_s12 + $0x3a0] sm:$0xc]  ;;  %18309 = vmatprep.mubr.msk.bf16.mxu1 %vm731_vm4, %v15953_v22 }
 0x153   : > { %v22139_v59 = vrot.slane %v26875_v0, 4  ;;  %26877 = vst [vmem:[#allocation80_spill] sm:$0xff] %v22142_v18  ;;  %v22145_v30 = vld [vmem:[%s20305_s12 + $0x240] sm:$0xf]  ;;  %v22150_v8 = vld [vmem:[%s20305_s12 + $0x3a8] sm:$0x3] }
 0x154   : > { %26869 = vst [vmem:[#allocation74_spill] sm:$0xff] %v22116_v39  ;;  %v22133_v39 = vrot.slane %v26873_v51, 4  ;;  %26878 = vst [vmem:[#allocation81_spill] sm:$0xff] %v22145_v30  ;;  %v22154_v7 = vld [vmem:[%s20305_s12 + $0x25c] sm:$0xf]  ;;  %v26880_v40 = vrot.slane %v21525_v13, 5 }
 0x155   : > { %26876 = vst [vmem:[#allocation79_spill] sm:$0xff] %v22139_v59  ;;  %26879 = vst [vmem:[#allocation82_spill] sm:$0xff] %v22150_v8  ;;  %v20188_v0 = vld [vmem:[%s20305_s12 + $0x300] sm:$0xf]  ;;  %v26881_v36 = vrot.slane %v21543_v27, 9  ;;  %v26896_v8 = vrot.slane %v22126_v44, 6 }
 0x156   : > { %26874 = vst [vmem:[#allocation78_spill] sm:$0xff] %v22133_v39  ;;  %v15486_v59 = vcombine.low %v20188_v0, %v15466_v50  ;;  %v26882_v51 = vld [vmem:[#allocation24_spill] sm:$0xff]  ;;  %v26884_v39 = vld [vmem:[#allocation29_spill] sm:$0xff]  ;;  %v20189_v56 = vld [vmem:[%s20305_s12 + $0x31c] sm:$0xf] }
 0x157   : > { %v5821_v52 = vsel %vm20288_vm2, %v26881_v36, %v26880_v40  ;;  %v26883_v23 = vrot.slane %v26882_v51, 5  ;;  %v15487_v50 = vcombine.low %v20189_v56, %v15467_v28  ;;  %v22171_v0 = vld [vmem:[%s20305_s12 + $0x23c] sm:$0x8]  ;;  %v22174_v22 = vld [vmem:[%s20305_s12 + $0x244] sm:$0x7]  ;;  %v26887_v40 = vrot.slane %v21573_v43, 7 }
 0x158   : > { %26885 = vst [vmem:[#allocation24_spill] sm:$0xff] %v22171_v0  ;;  %v22177_v13 = vld [vmem:[%s20305_s12 + $0x3c0] sm:$0xf]  ;;  %v15468_v27 = vld [vmem:[%s20305_s12 + $0x33c] sm:$0xf]  ;;  %v26888_v36 = vrot.slane %v21594_v24, 11  ;;  %18118 = vmatmul.mubr.msk.bf16.gmra.mrb[20].mxu0 %vm731_vm4, %v15486_v59 }
 0x159   : > { %v5824_v5 = vsel %vm20288_vm2, %v26884_v39, %v26883_v23  ;;  %26886 = vst [vmem:[#allocation29_spill] sm:$0xff] %v22177_v13  ;;  %v26890_v23 = vrot.slane %v21597_v1, 7  ;;  %v22192_v56 = vld [vmem:[%s20305_s12 + $0x358] sm:$0xf]  ;;  %v22200_v24 = vld [vmem:[%s20305_s12 + $0x3dc] sm:$0xf]  ;;  %18121 = vmatprep.mubr.msk.bf16.mxu0 %vm731_vm4, %v15487_v50 }
 0x15a   : > { %v6230_v2 = vsel %vm21049_vm10, %v26888_v36, %v26887_v40  ;;  %v22197_v43 = vld [vmem:[%s20305_s12 + $0x258] sm:$0x8]  ;;  %26891 = vst [vmem:[#allocation22_spill] sm:$0xff] %v22200_v24  ;;  %v22204_v40 = vld [vmem:[%s20305_s12 + $0x260] sm:$0x7]  ;;  %v22221_v1 = vrot.slane %v26896_v8, 4 }
 0x15b   : > { %v6233_v28 = vsel %vm21049_vm10, %v21664_v19, %v26890_v23  ;;  %26892 = vst [vmem:[#allocation83_spill] sm:$0xff] %v22204_v40  ;;  %v22208_v36 = vld [vmem:[%s20305_s12 + $0x3bc] sm:$0xc]  ;;  %v15954_v19 = vcombine.low %v5821_v52, %v5824_v5  ;;  %v22212_v39 = vld [vmem:[%s20305_s12 + $0x3c4] sm:$0x3]  ;;  %v26899_v23 = vrot.slane %v22145_v30, 7 }
 0x15c   : > { %26893 = vst [vmem:[#allocation84_spill] sm:$0xff] %v22208_v36  ;;  %26894 = vst [vmem:[#allocation85_spill] sm:$0xff] %v22212_v39  ;;  %v22216_v18 = vld [vmem:[%s20305_s12 + $0x3d8] sm:$0xc]  ;;  %v16041_v9 = vcombine.low %v6230_v2, %v6233_v28  ;;  %v22224_v5 = vld [vmem:[%s20305_s12 + $0x3e0] sm:$0x3] }
 0x15d   : > { %26895 = vst [vmem:[#allocation86_spill] sm:$0xff] %v22216_v18  ;;  %26897 = vst [vmem:[#allocation87_spill] sm:$0xff] %v22221_v1  ;;  %v22230_v62 = vrot.slane %v26899_v23, 4  ;;  %v22236_v28 = vld [vmem:[%s20305_s12 + $0x1fc] sm:$0xf]  ;;  %v26900_v50 = vrot.slane %v22154_v7, 7  ;;  %18310 = vmatmul.mubr.msk.bf16.gmra.mrb[92].mxu1 %vm731_vm4, %v15954_v19 }
 0x15e   : > { %26898 = vst [vmem:[#allocation88_spill] sm:$0xff] %v22224_v5  ;;  %v20190_v8 = vld [vmem:[%s20305_s12 + $0x338] sm:$0xf]  ;;  %v20191_v44 = vld [vmem:[%s20305_s12 + $0x354] sm:$0xf]  ;;  %18317 = vmatprep.mubr.msk.bf16.mxu1 %vm731_vm4, %v16041_v9  ;;  %v26906_v23 = vrot.slane %v21576_v17, 7 }
 0x15f   : > { %v15488_v1 = vcombine.low %v20190_v8, %v15468_v27  ;;  %v15489_v52 = vcombine.low %v20191_v44, %v22192_v56  ;;  %v22243_v30 = vrot.slane %v26900_v50, 4  ;;  %v22247_v0 = vld [vmem:[%s20305_s12 + $0x218] sm:$0xf]  ;;  %v26904_v27 = vrot.slane %v22177_v13, 6  ;;  %v22280_v17 = vld [vmem:[%s20305_s12 + $0x200] sm:$0x7] }
 0x160   : > { %26902 = vst [vmem:[#allocation90_spill] sm:$0xff] %v22247_v0  ;;  %v22250_v2 = vld [vmem:[%s20305_s12 + $0x3f8] sm:$0xf]  ;;  %v26907_v59 = vrot.slane %v21600_v16, 11  ;;  %v26909_v56 = vrot.slane %v22200_v24, 6  ;;  %v26923_v13 = vrot.slane %v22236_v28, 7 }
 0x161   : > { %26901 = vst [vmem:[#allocation89_spill] sm:$0xff] %v22243_v30  ;;  %26903 = vst [vmem:[#allocation91_spill] sm:$0xff] %v22250_v2  ;;  %v22255_v8 = vrot.slane %v26904_v27, 4  ;;  %v26908_v27 = vrot.slane %v21618_v10, 7  ;;  %v22277_v9 = vld [vmem:[%s20305_s12 + $0x1f8] sm:$0x8]  ;;  %18122 = vmatmul.mubr.msk.bf16.gmra.mrb[24].mxu0 %vm731_vm4, %v15488_v1 }
 0x162   : > { %v6237_v19 = vsel %vm21049_vm10, %v26907_v59, %v26906_v23  ;;  %v22274_v50 = vrot.slane %v26909_v56, 4  ;;  %v22284_v5 = vld [vmem:[%s20305_s12 + $0x214] sm:$0x8]  ;;  %v26912_v59 = vld [vmem:[#allocation27_spill] sm:$0xff]  ;;  %v26916_v56 = vrot.slane %v21648_v58, 7  ;;  %18125 = vmatprep.mubr.msk.bf16.mxu0 %vm731_vm4, %v15489_v52  ;;  %v26925_v40 = vrot.slane %v22247_v0, 7 }
 0x163   : > { %26905 = vst [vmem:[#allocation92_spill] sm:$0xff] %v22255_v8  ;;  %v6240_v44 = vsel %vm21049_vm10, %v21668_v37, %v26908_v27  ;;  %26911 = vst [vmem:[#allocation94_spill] sm:$0xff] %v22284_v5  ;;  %v26913_v10 = vrot.slane %v26912_v59, 7  ;;  %v26914_v23 = vld [vmem:[#allocation30_spill] sm:$0xff]  ;;  %v22298_v39 = vld [vmem:[%s20305_s12 + $0x21c] sm:$0x7] }
 0x164   : > { %26910 = vst [vmem:[#allocation93_spill] sm:$0xff] %v22274_v50  ;;  %v26915_v8 = vrot.slane %v26914_v23, 11  ;;  %v26917_v27 = vld [vmem:[#allocation34_spill] sm:$0xff]  ;;  %26918 = vst [vmem:[#allocation27_spill] sm:$0xff] %v22298_v39  ;;  %v22305_v24 = vld [vmem:[%s20305_s12 + $0x3fc] sm:$0x3] }
 0x165   : > { %v6247_v50 = vsel %vm21049_vm10, %v26917_v27, %v26916_v56  ;;  %v22302_v18 = vld [vmem:[%s20305_s12 + $0x3f4] sm:$0xc]  ;;  %26920 = vst [vmem:[#allocation34_spill] sm:$0xff] %v22305_v24  ;;  %v22309_v23 = vld [vmem:[%s20305_s12 + $0x410] sm:$0xc]  ;;  %v22333_v1 = vrot.slane %v26925_v40, 4 }
 0x166   : > { %v6244_v37 = vsel %vm21049_vm10, %v26915_v8, %v26913_v10  ;;  %26919 = vst [vmem:[#allocation30_spill] sm:$0xff] %v22302_v18  ;;  %26921 = vst [vmem:[#allocation95_spill] sm:$0xff] %v22309_v23  ;;  %v22312_v36 = vld [vmem:[%s20305_s12 + $0x414] sm:$0xf]  ;;  %v16042_v8 = vcombine.low %v6237_v19, %v6240_v44  ;;  %v20095_v10 = vld [vmem:[%s26588_s1 + $0xd8] sm:$0xff]   ;;  %v22327_v44 = vrot.slane %v26923_v13, 4 }
 0x167   : > { %v15470_v58 = vld [vmem:[%s20305_s12 + $0x374] sm:$0xf]  ;;  %v16043_v56 = vcombine.low %v6244_v37, %v6247_v50  ;;  %v15471_v27 = vld [vmem:[%s20305_s12 + $0x390] sm:$0xf]  ;;  %v22321_v16 = vld [vmem:[%s20305_s12 + $0x418] sm:$0x3] }
 0x168   : > { %26922 = vst [vmem:[#allocation96_spill] sm:$0xff] %v22321_v16  ;;  %26924 = vst [vmem:[#allocation97_spill] sm:$0xff] %v22327_v44  ;;  %v22339_v13 = vld [vmem:[%s20305_s12 + $0x234] sm:$0xf]  ;;  %18318 = vmatmul.mubr.msk.bf16.vlgmr.msra.gmra.mrb[64].mxu1 %vm731_vm4, %v16042_v8  ;;  %v26927_v30 = vrot.slane %v22250_v2, 6  ;;  %v26929_v37 = vld [vmem:[#allocation28_spill] sm:$0xff] }
 0x169   : > { %26926 = vst [vmem:[#allocation98_spill] sm:$0xff] %v22333_v1  ;;  %v20192_v52 = vld [vmem:[%s20305_s12 + $0x370] sm:$0xf]  ;;  %18321 = vmatprep.mubr.msk.bf16.mxu1 %vm731_vm4, %v16043_v56  ;;  %v26930_v24 = vrot.slane %v26929_v37, 7  ;;  %v26931_v39 = vld [vmem:[#allocation31_spill] sm:$0xff]  ;;  %v26937_v16 = vrot.slane %v21684_v12, 7 }
 0x16a   : > { %v22344_v19 = vrot.slane %v26927_v30, 4  ;;  %v15490_v1 = vcombine.low %v20192_v52, %v15470_v58  ;;  %v26932_v8 = vrot.slane %v26931_v39, 11  ;;  %v26935_v23 = vld [vmem:[#allocation37_spill] sm:$0xff]  ;;  %v26936_v58 = vld [vmem:[#allocation26_spill] sm:$0xff]  ;;  %v20098_v12 = vld [vmem:[%s26588_s1 + $0xe0] sm:$0xff]  }
 0x16b   : > { %v15472_v59 = vld [vmem:[%s20305_s12 + $0x3ac] sm:$0xf]  ;;  %18350 = vmatpush3.bf16.msra.mxu1 %v26936_v58  ;;  %v22365_v52 = vld [vmem:[%s20305_s12 + $0x250] sm:$0xf]  ;;  %v26945_v58 = vrot.slane %v21731_v35, 6 }
 0x16c   : > { %26928 = vst [vmem:[#allocation99_spill] sm:$0xff] %v22344_v19  ;;  %v6251_v30 = vsel %vm21049_vm10, %v26932_v8, %v26930_v24  ;;  %v26933_v19 = vld [vmem:[#allocation32_spill] sm:$0xff]  ;;  %v22368_v56 = vld [vmem:[%s20305_s12 + $0x430] sm:$0xf]  ;;  %v20193_v37 = vld [vmem:[%s20305_s12 + $0x38c] sm:$0xf]  ;;  %18351 = vmatprep.subr.bf16.mxu1 %v20095_v10  ;;  %18126 = vmatmul.mubr.msk.bf16.gmra.mrb[28].mxu0 %vm731_vm4, %v15490_v1 }
 0x16d   : > { %v26934_v40 = vrot.slane %v26933_v19, 7  ;;  %v15491_v39 = vcombine.low %v20193_v37, %v15471_v27  ;;  %v26938_v18 = vld [vmem:[#allocation33_spill] sm:$0xff]  ;;  %v26940_v8 = vld [vmem:[#allocation35_spill] sm:$0xff]  ;;  %v22396_v27 = vld [vmem:[%s20305_s12 + $0x254] sm:$0x7]  ;;  %v3835_v5 = vsel %vm20527_vm7, %v21784_v41, %v26945_v58 }
 0x16e   : > { %v26939_v24 = vrot.slane %v26938_v18, 11  ;;  %v26941_v2 = vrot.slane %v26940_v8, 7  ;;  %v22390_v18 = vld [vmem:[%s20305_s12 + $0x238] sm:$0x7]  ;;  %v22421_v1 = vld [vmem:[%s20305_s12 + $0x42c] sm:$0xc] }
 0x16f   : > { %v6254_v50 = vsel %vm21049_vm10, %v26935_v23, %v26934_v40  ;;  %v22383_v40 = vld [vmem:[%s20305_s12 + $0x230] sm:$0x8]  ;;  %18352 = vmatpush3.bf16.msra.mxu1 %v20095_v10  ;;  %18129 = vmatprep.mubr.msk.bf16.mxu0 %vm731_vm4, %v15491_v39  ;;  %v26950_v10 = vld [vmem:[#allocation40_spill] sm:$0xff] }
 0x170   : > { %v6258_v19 = vsel %vm21049_vm10, %v26939_v24, %v26937_v16  ;;  %v6261_v23 = vsel %vm21049_vm10, %v21774_v42, %v26941_v2  ;;  %v22393_v16 = vld [vmem:[%s20305_s12 + $0x24c] sm:$0x8]  ;;  %v16044_v37 = vcombine.low %v6251_v30, %v6254_v50  ;;  %v26942_v42 = vrot.slane %v21699_v33, 6  ;;  %18385 = vmatprep.subr.bf16.mxu1 %v20098_v12  ;;  %v26952_v58 = vld [vmem:[#allocation44_spill] sm:$0xff] }
 0x171   : > { %v26943_v2 = vrot.slane %v21728_v20, 10  ;;  %v16045_v0 = vcombine.low %v6258_v19, %v6261_v23  ;;  %v26700_v50 = vrot.slane %v22365_v52, 7  ;;  %v20194_v20 = vld [vmem:[%s20305_s12 + $0x3a8] sm:$0xf]  ;;  %v22424_v19 = vld [vmem:[%s20305_s12 + $0x44c] sm:$0xf] }
 0x172   : > { %v15492_v30 = vcombine.low %v20194_v20, %v15472_v59  ;;  %v26951_v23 = vrot.slane %v26950_v10, 7  ;;  %v26953_v59 = vrot.slane %v22312_v36, 6  ;;  %18322 = vmatmul.mubr.msk.bf16.gmra.mrb[68].mxu1 %vm731_vm4, %v16044_v37  ;;  %v26956_v12 = vrot.slane %v22339_v13, 7 }
 0x173   : > { %v3832_v8 = vsel %vm20527_vm7, %v26943_v2, %v26942_v42  ;;  %v26946_v42 = vld [vmem:[#allocation36_spill] sm:$0xff]  ;;  %v26948_v2 = vld [vmem:[#allocation38_spill] sm:$0xff]  ;;  %18325 = vmatprep.mubr.msk.bf16.mxu1 %vm731_vm4, %v16045_v0  ;;  %v26957_v37 = vrot.slane %v22368_v56, 6  ;;  %v26961_v0 = vrot.slane %v21790_v31, 7  ;;  %v26962_v31 = vld [vmem:[#allocation39_spill] sm:$0xff] }
 0x174   : > { %v26947_v35 = vrot.slane %v26946_v42, 7  ;;  %v26949_v44 = vrot.slane %v26948_v2, 11  ;;  %v6268_v39 = vsel %vm21049_vm10, %v26952_v58, %v26951_v23  ;;  %v15579_v33 = vcombine.low %v3832_v8, %v3835_v5  ;;  %v22437_v2 = vld [vmem:[%s20305_s12 + $0x434] sm:$0x3]  ;;  %v22475_v42 = vld [vmem:[%s20305_s12 + $0x450] sm:$0x3]  ;;  %18130 = vmatmul.mubr.msk.bf16.gmra.mrb[32].mxu0 %vm731_vm4, %v15492_v30 }
 0x175   : > { %v22433_v20 = vrot.slane %v26953_v59, 4  ;;  %26954 = vst [vmem:[#allocation28_spill] sm:$0xff] %v22437_v2  ;;  %v22453_v23 = vrot.slane %v26700_v50, 4  ;;  %v22458_v59 = vrot.slane %v26957_v37, 4  ;;  %v26959_v5 = vrot.slane %v21761_v38, 7  ;;  %v26966_v37 = vld [vmem:[#allocation42_spill] sm:$0xff] }
 0x176   : > { %v6265_v41 = vsel %vm21049_vm10, %v26949_v44, %v26947_v35  ;;  %v22440_v44 = vld [vmem:[%s20305_s12 + $0x448] sm:$0xc]  ;;  %v22445_v35 = vrot.slane %v26956_v12, 4  ;;  %v26960_v8 = vrot.slane %v21758_v25, 11  ;;  %v6275_v50 = vsel %vm21049_vm10, %v21842_v14, %v26961_v0  ;;  %v22481_v38 = vld [vmem:[%s20305_s12 + $0x26c] sm:$0xf]  ;;  %18137 = vmatprep.mubr.msk.bf16.mxu0 %vm731_vm4, %v15579_v33 }
 0x177   : > { %26955 = vst [vmem:[#allocation31_spill] sm:$0xff] %v22440_v44  ;;  %26958 = vst [vmem:[#allocation32_spill] sm:$0xff] %v22458_v59  ;;  %v22478_v12 = vld [vmem:[%s20305_s12 + $0x268] sm:$0x8]  ;;  %v16046_v25 = vcombine.low %v6265_v41, %v6268_v39  ;;  %v26967_v58 = vrot.slane %v26966_v37, 6  ;;  %v26969_v41 = vrot.slane %v21813_v63, 6 }
 0x178   : > { %v6272_v10 = vsel %vm21049_vm10, %v26960_v8, %v26959_v5  ;;  %v26963_v8 = vrot.slane %v26962_v31, 6  ;;  %v26964_v59 = vld [vmem:[#allocation41_spill] sm:$0xff]  ;;  %v26970_v30 = vrot.slane %v21818_v3, 10  ;;  %v26971_v33 = vrot.slane %v21821_v54, 6  ;;  %v26973_v54 = vld [vmem:[#allocation43_spill] sm:$0xff]  ;;  %v26975_v31 = vld [vmem:[#allocation46_spill] sm:$0xff] }
 0x179   : > { %v16047_v5 = vcombine.low %v6272_v10, %v6275_v50  ;;  %v26965_v14 = vrot.slane %v26964_v59, 10  ;;  %v26968_v44 = vld [vmem:[#allocation45_spill] sm:$0xff]  ;;  %v26974_v37 = vrot.slane %v26973_v54, 7  ;;  %v26982_v54 = vrot.slane %v21892_v4, 7  ;;  %v27009_v63 = vld [vmem:[#allocation62_spill] sm:$0xff]  ;;  %v27060_v3 = vld [vmem:[#allocation87_spill] sm:$0xff] }
 0x17a   : > { %v3842_v2 = vsel %vm20527_vm7, %v26968_v44, %v26967_v58  ;;  %v3846_v50 = vsel %vm20527_vm7, %v26970_v30, %v26969_v41  ;;  %v3849_v39 = vsel %vm20527_vm7, %v21902_v11, %v26971_v33  ;;  %18326 = vmatmul.mubr.msk.bf16.gmra.mrb[72].mxu1 %vm731_vm4, %v16046_v25  ;;  %v26972_v44 = vrot.slane %v22424_v19, 6  ;;  %v26979_v41 = vld [vmem:[#allocation50_spill] sm:$0xff]  ;;  %v20093_v33 = vld [vmem:[%s26588_s1 + $0x88] sm:$0xff]  }
 0x17b   : > { %v3839_v0 = vsel %vm20527_vm7, %v26965_v14, %v26963_v8  ;;  %v26703_v58 = vrot.slane %v22481_v38, 7  ;;  %18329 = vmatprep.mubr.msk.bf16.mxu1 %vm731_vm4, %v16047_v5  ;;  %v26976_v11 = vrot.slane %v26975_v31, 11  ;;  %v26977_v8 = vld [vmem:[#allocation48_spill] sm:$0xff]  ;;  %v26980_v5 = vrot.slane %v21866_v60, 7  ;;  %v22542_v31 = vld [vmem:[%s20305_s12 + $0x270] sm:$0x7] }
 0x17c   : > { %v22510_v10 = vrot.slane %v26972_v44, 4  ;;  %v15580_v59 = vcombine.low %v3839_v0, %v3842_v2  ;;  %v26978_v14 = vrot.slane %v26977_v8, 7  ;;  %v15581_v2 = vcombine.low %v3846_v50, %v3849_v39  ;;  %v22548_v8 = vld [vmem:[%s20305_s12 + $0x288] sm:$0xf]  ;;  %v26985_v39 = vld [vmem:[#allocation47_spill] sm:$0xff] }
 0x17d   : > { %v6279_v25 = vsel %vm21049_vm10, %v26976_v11, %v26974_v37  ;;  %v26981_v0 = vrot.slane %v21885_v61, 11  ;;  %v6289_v37 = vsel %vm21049_vm10, %v21952_v49, %v26982_v54  ;;  %v22545_v11 = vld [vmem:[%s20305_s12 + $0x284] sm:$0x8]  ;;  %26984 = vst [vmem:[#allocation26_spill] sm:$0xff] %v22548_v8  ;;  %v20096_v61 = vld [vmem:[%s26588_s1 + $0x90] sm:$0xff]   ;;  %v26986_v4 = vrot.slane %v21837_v29, 6 }
 0x17e   : > { %v6282_v30 = vsel %vm21049_vm10, %v26979_v41, %v26978_v14  ;;  %26983 = vst [vmem:[#allocation37_spill] sm:$0xff] %v22545_v11  ;;  %18138 = vmatmul.mubr.msk.bf16.vlgmr.msra.gmra.mrb[4].mxu0 %vm731_vm4, %v15580_v59  ;;  %v26987_v49 = vld [vmem:[#allocation49_spill] sm:$0xff]  ;;  %v26994_v29 = vrot.slane %v21936_v34, 6 }
 0x17f   : > { %v6286_v44 = vsel %vm21049_vm10, %v26981_v0, %v26980_v5  ;;  %v16048_v50 = vcombine.low %v6279_v25, %v6282_v30  ;;  %18170 = vmatpush3.bf16.msra.mxu0 %v26985_v39  ;;  %18141 = vmatprep.mubr.msk.bf16.mxu0 %vm731_vm4, %v15581_v2  ;;  %v26988_v14 = vrot.slane %v26987_v49, 10  ;;  %v26989_v5 = vld [vmem:[#allocation51_spill] sm:$0xff]  ;;  %v26991_v30 = vld [vmem:[#allocation56_spill] sm:$0xff]  ;;  %v26992_v0 = vrot.slane %v21898_v57, 6  ;;  %v26995_v54 = vld [vmem:[#allocation61_spill] sm:$0xff] }
 0x180   : > { %v16049_v60 = vcombine.low %v6286_v44, %v6289_v37  ;;  %v26990_v25 = vrot.slane %v26989_v5, 6  ;;  %v26993_v44 = vrot.slane %v21922_v45, 10  ;;  %v3863_v37 = vsel %vm20527_vm7, %v26995_v54, %v26994_v29  ;;  %18171 = vmatprep.subr.bf16.mxu0 %v20093_v33  ;;  %v26996_v49 = vld [vmem:[#allocation52_spill] sm:$0xff]  ;;  %v26998_v5 = vld [vmem:[#allocation53_spill] sm:$0xff]  ;;  %v27003_v54 = vld [vmem:[#allocation55_spill] sm:$0xff] }
 0x181   : > { %v3853_v41 = vsel %vm20527_vm7, %v26988_v14, %v26986_v4  ;;  %v22581_v39 = vrot.slane %v26703_v58, 4  ;;  %v26704_v4 = vrot.slane %v22548_v8, 7  ;;  %v26997_v14 = vrot.slane %v26996_v49, 7  ;;  %v27005_v57 = vld [vmem:[#allocation57_spill] sm:$0xff]  ;;  %v27007_v49 = vld [vmem:[#allocation59_spill] sm:$0xff] }
 0x182   : > { %v3856_v59 = vsel %vm20527_vm7, %v26991_v30, %v26990_v25  ;;  %v3860_v2 = vsel %vm20527_vm7, %v26993_v44, %v26992_v0  ;;  %18330 = vmatmul.mubr.msk.bf16.gmra.mrb[76].mxu1 %vm731_vm4, %v16048_v50  ;;  %v26999_v25 = vrot.slane %v26998_v5, 11  ;;  %v27000_v30 = vld [vmem:[#allocation54_spill] sm:$0xff]  ;;  %v27002_v44 = vld [vmem:[#allocation60_spill] sm:$0xff]  ;;  %v27004_v45 = vrot.slane %v27003_v54, 6  ;;  %v27091_v8 = vld [vmem:[#allocation97_spill] sm:$0xff] }
 0x183   : > { %v15582_v34 = vcombine.low %v3853_v41, %v3856_v59  ;;  %18333 = vmatprep.mubr.msk.bf16.mxu1 %vm731_vm4, %v16049_v60  ;;  %v27001_v0 = vrot.slane %v27000_v30, 7  ;;  %v27006_v41 = vrot.slane %v27005_v57, 10  ;;  %v15583_v59 = vcombine.low %v3860_v2, %v3863_v37  ;;  %18172 = vmatpush3.bf16.msra.mxu0 %v20093_v33  ;;  %v27022_v33 = vld [vmem:[#allocation66_spill] sm:$0xff] }
 0x184   : > { %v6293_v50 = vsel %vm21049_vm10, %v26999_v25, %v26997_v14  ;;  %v27008_v5 = vrot.slane %v27007_v49, 6  ;;  %v27010_v25 = vrot.slane %v21978_v55, 7  ;;  %v27011_v30 = vrot.slane %v21992_v6, 11  ;;  %v27018_v55 = vld [vmem:[#allocation70_spill] sm:$0xff]  ;;  %v27020_v49 = vld [vmem:[#allocation65_spill] sm:$0xff]  ;;  %18205 = vmatprep.subr.bf16.mxu0 %v20096_v61 }
 0x185   : > { %v6296_v29 = vsel %vm21049_vm10, %v27002_v44, %v27001_v0  ;;  %v22604_v60 = vsel %vm20527_vm7, %v27006_v41, %v27004_v45  ;;  %v27012_v57 = vrot.slane %v21996_v46, 7  ;;  %v27013_v44 = vld [vmem:[#allocation68_spill] sm:$0xff]  ;;  %v27014_v37 = vrot.slane %v21999_v47, 7  ;;  %v27015_v45 = vld [vmem:[#allocation63_spill] sm:$0xff] }
 0x186   : > { %v22611_v14 = vsel %vm20527_vm7, %v27009_v63, %v27008_v5  ;;  %v6300_v0 = vsel %vm21049_vm10, %v27011_v30, %v27010_v25  ;;  %v27016_v54 = vrot.slane %v27015_v45, 11  ;;  %v27017_v6 = vrot.slane %v22014_v32, 7  ;;  %v27024_v30 = vld [vmem:[#allocation71_spill] sm:$0xff]  ;;  %v22655_v32 = vld [vmem:[%s20305_s12 + $0x28c] sm:$0x7]  ;;  %18142 = vmatmul.mubr.msk.bf16.gmra.mrb[8].mxu0 %vm731_vm4, %v15582_v34 }
 0x187   : > { %v6303_v2 = vsel %vm21049_vm10, %v27013_v44, %v27012_v57  ;;  %v27019_v46 = vrot.slane %v22010_v53, 6  ;;  %v27021_v5 = vrot.slane %v27020_v49, 10  ;;  %v27023_v25 = vrot.slane %v27022_v33, 6  ;;  %27025 = vst [vmem:[#allocation33_spill] sm:$0xff] %v22655_v32  ;;  %v22658_v44 = vld [vmem:[%s20305_s12 + $0x2ac] sm:$0xf]  ;;  %18145 = vmatprep.mubr.msk.bf16.mxu0 %vm731_vm4, %v15583_v59 }
 0x188   : > { %v22630_v63 = vsel %vm21049_vm10, %v27016_v54, %v27014_v37  ;;  %v22637_v41 = vsel %vm21049_vm10, %v27018_v55, %v27017_v6  ;;  %27026 = vst [vmem:[#allocation35_spill] sm:$0xff] %v22658_v44  ;;  %v16050_v37 = vcombine.low %v6293_v50, %v6296_v29  ;;  %v22661_v53 = vld [vmem:[%s20305_s12 + $0x2c8] sm:$0xf]  ;;  %v16051_v45 = vcombine.low %v6300_v0, %v6303_v2  ;;  %v27033_v2 = vld [vmem:[#allocation23_spill] sm:$0xff] }
 0x189   : > { %v22645_v47 = vsel %vm20527_vm7, %v27021_v5, %v27019_v46  ;;  %v22652_v57 = vsel %vm20527_vm7, %v27024_v30, %v27023_v25  ;;  %v27027_v46 = vld [vmem:[#allocation64_spill] sm:$0xff]  ;;  %v27029_v50 = vld [vmem:[#allocation25_spill] sm:$0xff]  ;;  %v27031_v34 = vrot.slane %v22080_v48, 6  ;;  %v27032_v0 = vrot.slane %v22020_v15, 7  ;;  %v27036_v30 = vld [vmem:[#allocation74_spill] sm:$0xff] }
 0x18a   : > { %v27028_v61 = vrot.slane %v27027_v46, 6  ;;  %v27030_v29 = vrot.slane %v27029_v50, 10  ;;  %v27034_v5 = vrot.slane %v27033_v2, 11  ;;  %v27035_v25 = vrot.slane %v22092_v26, 7  ;;  %v27037_v48 = vld [vmem:[#allocation67_spill] sm:$0xff]  ;;  %v27039_v50 = vld [vmem:[#allocation72_spill] sm:$0xff]  ;;  %18334 = vmatmul.mubr.msk.bf16.gmra.mrb[80].mxu1 %vm731_vm4, %v16050_v37 }
 0x18b   : > { %v22684_v59 = vsel %vm20527_vm7, %v22110_v21, %v27031_v34  ;;  %v27040_v21 = vrot.slane %v27039_v50, 11  ;;  %18337 = vmatprep.mubr.msk.bf16.mxu1 %vm731_vm4, %v16051_v45  ;;  %v22742_v58 = vrot.slane %v26704_v4, 4  ;;  %v27061_v6 = vld [vmem:[#allocation81_spill] sm:$0xff]  ;;  %v27063_v55 = vld [vmem:[#allocation24_spill] sm:$0xff] }
 0x18c   : > { %v22677_v49 = vsel %vm20527_vm7, %v27030_v29, %v27028_v61  ;;  %v22692_v33 = vsel %vm21049_vm10, %v27034_v5, %v27032_v0  ;;  %v22699_v46 = vsel %vm21049_vm10, %v27036_v30, %v27035_v25  ;;  %v27038_v61 = vrot.slane %v27037_v48, 7  ;;  %v27041_v29 = vld [vmem:[#allocation73_spill] sm:$0xff]  ;;  %v27043_v0 = vld [vmem:[#allocation78_spill] sm:$0xff]  ;;  %v22722_v30 = vpop.f32.mrb[0].mxu1  ;;  %v27083_v32 = vld [vmem:[#allocation92_spill] sm:$0xff] }
 0x18d   : > { %v27042_v34 = vrot.slane %v27041_v29, 7  ;;  %v22719_v5 = vld [vmem:[%s20305_s12 + $0x2a8] sm:$0xe]  ;;  %v27049_v29 = vld [vmem:[#allocation76_spill] sm:$0xff]  ;;  %27052 = vst [vmem:[#allocation36_spill] sm:$0xff] %v22742_v58  ;;  %v27062_v25 = vrot.slane %v27061_v6, 7 }
 0x18e   : > { %v22707_v15 = vsel %vm21049_vm10, %v27040_v21, %v27038_v61  ;;  %27044 = vst [vmem:[#allocation20_spill] sm:$0xff] %v22719_v5  ;;  %v27045_v48 = vld [vmem:[#allocation69_spill] sm:$0xff]  ;;  %v27047_v61 = vld [vmem:[#allocation75_spill] sm:$0xff]  ;;  %v27064_v54 = vrot.slane %v27063_v55, 11 }
 0x18f   : > { %v22715_v26 = vsel %vm21049_vm10, %v27043_v0, %v27042_v34  ;;  %v27046_v37 = vrot.slane %v27045_v48, 6  ;;  %v27048_v50 = vrot.slane %v27047_v61, 10  ;;  %v27050_v34 = vrot.slane %v27049_v29, 6  ;;  %v27051_v0 = vld [vmem:[#allocation79_spill] sm:$0xff]  ;;  %v23063_v58 = vld [vmem:[%s20305_s12 + $0x2b0] sm:$0x1] }
 0x190   : > { %v27053_v48 = vmov 0.0   ;;  %27079 = vst [vmem:[#allocation38_spill] sm:$0xff] %v23063_v58 }
 0x191   : > { %v22731_v21 = vsel %vm20527_vm7, %v27048_v50, %v27046_v37  ;;  %v22738_v2 = vsel %vm20527_vm7, %v27051_v0, %v27050_v34  ;;  %327 = vst.msk [vmem:[#allocation2 + $0x10] sm:$0xff] %vm324_vm12, %v27053_v48  ;;  %325 = vst.msk [vmem:[#allocation2] sm:$0xff] %vm324_vm12, %v27053_v48  ;;  %v27054_v37 = vld [vmem:[#allocation77_spill] sm:$0xff]  ;;  %v27056_v50 = vld [vmem:[#allocation80_spill] sm:$0xff] }
 0x192   : > { %326 = vst.msk [vmem:[#allocation2 + $0x8] sm:$0xff] %vm324_vm12, %v27053_v48  ;;  %328 = vst.msk [vmem:[#allocation2 + $0x18] sm:$0xff] %vm324_vm12, %v27053_v48  ;;  %v27055_v61 = vrot.slane %v27054_v37, 6  ;;  %v27057_v29 = vrot.slane %v27056_v50, 10  ;;  %v27058_v0 = vld [vmem:[#allocation82_spill] sm:$0xff]  ;;  %v27065_v37 = vrot.slane %v22154_v7, 7 }
 0x193   : > { %329 = vst.msk [vmem:[#allocation2 + $0x20] sm:$0xff] %vm324_vm12, %v27053_v48  ;;  %330 = vst.msk [vmem:[#allocation2 + $0x28] sm:$0xff] %vm324_vm12, %v27053_v48  ;;  %v27059_v4 = vrot.slane %v27058_v0, 6 }
 0x194   : > { %331 = vst.msk [vmem:[#allocation2 + $0x30] sm:$0xff] %vm324_vm12, %v27053_v48  ;;  %332 = vst.msk [vmem:[#allocation2 + $0x38] sm:$0xff] %vm324_vm12, %v27053_v48  ;;  %v23007_v34 = vsel %vm20527_vm7, %v27057_v29, %v27055_v61  ;;  %v27066_v61 = vrot.slane %v22197_v43, 11  ;;  %v27067_v29 = vrot.slane %v22174_v22, 7  ;;  %v27071_v43 = vld [vmem:[#allocation29_spill] sm:$0xff] }
 0x195   : > { %333 = vst.msk [vmem:[#allocation2 + $0x40] sm:$0xff] %vm324_vm12, %v27053_v48  ;;  %334 = vst.msk [vmem:[#allocation2 + $0x48] sm:$0xff] %vm324_vm12, %v27053_v48  ;;  %v23014_v45 = vsel %vm20527_vm7, %v27060_v3, %v27059_v4  ;;  %v27068_v4 = vld [vmem:[#allocation83_spill] sm:$0xff]  ;;  %v27072_v55 = vrot.slane %v27071_v43, 6 }
 0x196   : > { %335 = vst.msk [vmem:[#allocation2 + $0x50] sm:$0xff] %vm324_vm12, %v27053_v48  ;;  %336 = vst.msk [vmem:[#allocation2 + $0x58] sm:$0xff] %vm324_vm12, %v27053_v48  ;;  %v23030_v50 = vsel %vm21049_vm10, %v27066_v61, %v27065_v37  ;;  %v23037_v3 = vsel %vm21049_vm10, %v22230_v62, %v27067_v29  ;;  %v27069_v6 = vrot.slane %v27068_v4, 7  ;;  %v27075_v37 = vld [vmem:[#allocation22_spill] sm:$0xff] }
 0x197   : > { %337 = vst.msk [vmem:[#allocation2 + $0x60] sm:$0xff] %vm324_vm12, %v27053_v48  ;;  %338 = vst.msk [vmem:[#allocation2 + $0x68] sm:$0xff] %vm324_vm12, %v27053_v48  ;;  %v27076_v61 = vrot.slane %v27075_v37, 6  ;;  %v27077_v62 = vld [vmem:[#allocation86_spill] sm:$0xff]  ;;  %v27086_v37 = vld [vmem:[#allocation93_spill] sm:$0xff] }
 0x198   : > { %339 = vst.msk [vmem:[#allocation2 + $0x70] sm:$0xff] %vm324_vm12, %v27053_v48  ;;  %340 = vst.msk [vmem:[#allocation2 + $0x78] sm:$0xff] %vm324_vm12, %v27053_v48  ;;  %v27078_v29 = vrot.slane %v27077_v62, 10 }
 0x199   : > { %341 = vst.msk [vmem:[#allocation2 + $0x80] sm:$0xff] %vm324_vm12, %v27053_v48  ;;  %342 = vst.msk [vmem:[#allocation2 + $0x88] sm:$0xff] %vm324_vm12, %v27053_v48 }
 0x19a   : > { %343 = vst.msk [vmem:[#allocation2 + $0x90] sm:$0xff] %vm324_vm12, %v27053_v48  ;;  %344 = vst.msk [vmem:[#allocation2 + $0x98] sm:$0xff] %vm324_vm12, %v27053_v48  ;;  %v23060_v4 = vsel %vm20527_vm7, %v27078_v29, %v27076_v61  ;;  %v27088_v61 = vrot.slane %v22236_v28, 7  ;;  %v27089_v29 = vrot.slane %v22277_v9, 11  ;;  %v15586_v28 = vcombine.low %v22677_v49, %v22684_v59  ;;  %v27103_v59 = vld [vmem:[#allocation30_spill] sm:$0xff] }
 0x19b   : > { %345 = vst.msk [vmem:[#allocation2 + $0xa0] sm:$0xff] %vm324_vm12, %v27053_v48  ;;  %346 = vst.msk [vmem:[#allocation2 + $0xa8] sm:$0xff] %vm324_vm12, %v27053_v48  ;;  %v16053_v9 = vcombine.low %v22692_v33, %v22699_v46  ;;  %v27094_v33 = vrot.slane %v22658_v44, 5  ;;  %v27107_v44 = vld [vmem:[#allocation27_spill] sm:$0xff] }
 0x19c   : > { %347 = vst.msk [vmem:[#allocation2 + $0xb0] sm:$0xff] %vm324_vm12, %v27053_v48  ;;  %348 = vst.msk [vmem:[#allocation2 + $0xb8] sm:$0xff] %vm324_vm12, %v27053_v48  ;;  %v23088_v11 = vsel %vm21049_vm10, %v27089_v29, %v27088_v61  ;;  %v23131_v61 = vld [vmem:[%s26589_s2] ss:$0 sm:$0xff] }
 0x19d   : > { %349 = vst.msk [vmem:[#allocation2 + $0xc0] sm:$0xff] %vm324_vm12, %v27053_v48  ;;  %350 = vst.msk [vmem:[#allocation2 + $0xc8] sm:$0xff] %vm324_vm12, %v27053_v48  ;;  %v23126_v46 = vrot.slane %v27094_v33, 4  ;;  %v27099_v33 = vld [vmem:[#allocation94_spill] sm:$0xff] }
 0x19e   : > { %351 = vst.msk [vmem:[#allocation2 + $0xd0] sm:$0xff] %vm324_vm12, %v27053_v48  ;;  %352 = vst.msk [vmem:[#allocation2 + $0xd8] sm:$0xff] %vm324_vm12, %v27053_v48 }
 0x19f   : > { %353 = vst.msk [vmem:[#allocation2 + $0xe0] sm:$0xff] %vm324_vm12, %v27053_v48  ;;  %354 = vst.msk [vmem:[#allocation2 + $0xe8] sm:$0xff] %vm324_vm12, %v27053_v48 }
 0x1a0   : > { %355 = vst.msk [vmem:[#allocation2 + $0xf0] sm:$0xff] %vm324_vm12, %v27053_v48  ;;  %356 = vst.msk [vmem:[#allocation2 + $0xf8] sm:$0xff] %vm324_vm12, %v27053_v48 }
 0x1a1   : > { %357 = vst.msk [vmem:[#allocation2 + $0x100] sm:$0xff] %vm324_vm12, %v27053_v48  ;;  %358 = vst.msk [vmem:[#allocation2 + $0x108] sm:$0xff] %vm324_vm12, %v27053_v48 }
 0x1a2   : > { %359 = vst.msk [vmem:[#allocation2 + $0x110] sm:$0xff] %vm324_vm12, %v27053_v48  ;;  %360 = vst.msk [vmem:[#allocation2 + $0x118] sm:$0xff] %vm324_vm12, %v27053_v48 }
 0x1a3   : > { %361 = vst.msk [vmem:[#allocation2 + $0x120] sm:$0xff] %vm324_vm12, %v27053_v48  ;;  %362 = vst.msk [vmem:[#allocation2 + $0x128] sm:$0xff] %vm324_vm12, %v27053_v48 }
 0x1a4   : > { %363 = vst.msk [vmem:[#allocation2 + $0x130] sm:$0xff] %vm324_vm12, %v27053_v48  ;;  %364 = vst.msk [vmem:[#allocation2 + $0x138] sm:$0xff] %vm324_vm12, %v27053_v48 }
 0x1a5   : > { %365 = vst.msk [vmem:[#allocation2 + $0x140] sm:$0xff] %vm324_vm12, %v27053_v48  ;;  %366 = vst.msk [vmem:[#allocation2 + $0x148] sm:$0xff] %vm324_vm12, %v27053_v48 }
 0x1a6   : > { %367 = vst.msk [vmem:[#allocation2 + $0x150] sm:$0xff] %vm324_vm12, %v27053_v48  ;;  %368 = vst.msk [vmem:[#allocation2 + $0x158] sm:$0xff] %vm324_vm12, %v27053_v48 }
 0x1a7   : > { %369 = vst.msk [vmem:[#allocation2 + $0x160] sm:$0xff] %vm324_vm12, %v27053_v48  ;;  %370 = vst.msk [vmem:[#allocation2 + $0x168] sm:$0xff] %vm324_vm12, %v27053_v48 }
 0x1a8   : > { %371 = vst.msk [vmem:[#allocation2 + $0x170] sm:$0xff] %vm324_vm12, %v27053_v48  ;;  %372 = vst.msk [vmem:[#allocation2 + $0x178] sm:$0xff] %vm324_vm12, %v27053_v48 }
 0x1a9   : > { %373 = vst.msk [vmem:[#allocation2 + $0x180] sm:$0xff] %vm324_vm12, %v27053_v48  ;;  %374 = vst.msk [vmem:[#allocation2 + $0x188] sm:$0xff] %vm324_vm12, %v27053_v48 }
 0x1aa   : > { %375 = vst.msk [vmem:[#allocation2 + $0x190] sm:$0xff] %vm324_vm12, %v27053_v48  ;;  %376 = vst.msk [vmem:[#allocation2 + $0x198] sm:$0xff] %vm324_vm12, %v27053_v48 }
 0x1ab   : > { %377 = vst.msk [vmem:[#allocation2 + $0x1a0] sm:$0xff] %vm324_vm12, %v27053_v48  ;;  %378 = vst.msk [vmem:[#allocation2 + $0x1a8] sm:$0xff] %vm324_vm12, %v27053_v48 }
 0x1ac   : > { %379 = vst.msk [vmem:[#allocation2 + $0x1b0] sm:$0xff] %vm324_vm12, %v27053_v48  ;;  %380 = vst.msk [vmem:[#allocation2 + $0x1b8] sm:$0xff] %vm324_vm12, %v27053_v48 }
 0x1ad   : > { %381 = vst.msk [vmem:[#allocation2 + $0x1c0] sm:$0xff] %vm324_vm12, %v27053_v48  ;;  %382 = vst.msk [vmem:[#allocation2 + $0x1c8] sm:$0xff] %vm324_vm12, %v27053_v48 }
 0x1ae   : > { %383 = vst.msk [vmem:[#allocation2 + $0x1d0] sm:$0xff] %vm324_vm12, %v27053_v48  ;;  %384 = vst.msk [vmem:[#allocation2 + $0x1d8] sm:$0xff] %vm324_vm12, %v27053_v48 }
 0x1af   : > { %385 = vst.msk [vmem:[#allocation2 + $0x1e0] sm:$0xff] %vm324_vm12, %v27053_v48  ;;  %386 = vst.msk [vmem:[#allocation2 + $0x1e8] sm:$0xff] %vm324_vm12, %v27053_v48 }
 0x1b0   : > { %387 = vst.msk [vmem:[#allocation2 + $0x1f0] sm:$0xff] %vm324_vm12, %v27053_v48  ;;  %388 = vst.msk [vmem:[#allocation2 + $0x1f8] sm:$0xff] %vm324_vm12, %v27053_v48 }
 0x1b1   : > { %389 = vst.msk [vmem:[#allocation2 + $0x200] sm:$0xff] %vm324_vm12, %v27053_v48  ;;  %390 = vst.msk [vmem:[#allocation2 + $0x208] sm:$0xff] %vm324_vm12, %v27053_v48 }
 0x1b2   : > { %391 = vst.msk [vmem:[#allocation2 + $0x210] sm:$0xff] %vm324_vm12, %v27053_v48  ;;  %392 = vst.msk [vmem:[#allocation2 + $0x218] sm:$0xff] %vm324_vm12, %v27053_v48 }
 0x1b3   : > { %393 = vst.msk [vmem:[#allocation2 + $0x220] sm:$0xff] %vm324_vm12, %v27053_v48  ;;  %394 = vst.msk [vmem:[#allocation2 + $0x228] sm:$0xff] %vm324_vm12, %v27053_v48 }
 0x1b4   : > { %395 = vst.msk [vmem:[#allocation2 + $0x230] sm:$0xff] %vm324_vm12, %v27053_v48  ;;  %396 = vst.msk [vmem:[#allocation2 + $0x238] sm:$0xff] %vm324_vm12, %v27053_v48 }
 0x1b5   : > { %397 = vst.msk [vmem:[#allocation2 + $0x240] sm:$0xff] %vm324_vm12, %v27053_v48  ;;  %398 = vst.msk [vmem:[#allocation2 + $0x248] sm:$0xff] %vm324_vm12, %v27053_v48 }
 0x1b6   : > { %399 = vst.msk [vmem:[#allocation2 + $0x250] sm:$0xff] %vm324_vm12, %v27053_v48  ;;  %400 = vst.msk [vmem:[#allocation2 + $0x258] sm:$0xff] %vm324_vm12, %v27053_v48 }
 0x1b7   : > { %401 = vst.msk [vmem:[#allocation2 + $0x260] sm:$0xff] %vm324_vm12, %v27053_v48  ;;  %402 = vst.msk [vmem:[#allocation2 + $0x268] sm:$0xff] %vm324_vm12, %v27053_v48 }
 0x1b8   : > { %403 = vst.msk [vmem:[#allocation2 + $0x270] sm:$0xff] %vm324_vm12, %v27053_v48  ;;  %404 = vst.msk [vmem:[#allocation2 + $0x278] sm:$0xff] %vm324_vm12, %v27053_v48 }
 0x1b9   : > { %405 = vst.msk [vmem:[#allocation2 + $0x280] sm:$0xff] %vm324_vm12, %v27053_v48  ;;  %406 = vst.msk [vmem:[#allocation2 + $0x288] sm:$0xff] %vm324_vm12, %v27053_v48 }
 0x1ba   : > { %407 = vst.msk [vmem:[#allocation2 + $0x290] sm:$0xff] %vm324_vm12, %v27053_v48  ;;  %408 = vst.msk [vmem:[#allocation2 + $0x298] sm:$0xff] %vm324_vm12, %v27053_v48 }
 0x1bb   : > { %409 = vst.msk [vmem:[#allocation2 + $0x2a0] sm:$0xff] %vm324_vm12, %v27053_v48  ;;  %410 = vst.msk [vmem:[#allocation2 + $0x2a8] sm:$0xff] %vm324_vm12, %v27053_v48 }
 0x1bc   : > { %411 = vst.msk [vmem:[#allocation2 + $0x2b0] sm:$0xff] %vm324_vm12, %v27053_v48  ;;  %412 = vst.msk [vmem:[#allocation2 + $0x2b8] sm:$0xff] %vm324_vm12, %v27053_v48 }
 0x1bd   : > { %413 = vst.msk [vmem:[#allocation2 + $0x2c0] sm:$0xff] %vm324_vm12, %v27053_v48  ;;  %414 = vst.msk [vmem:[#allocation2 + $0x2c8] sm:$0xff] %vm324_vm12, %v27053_v48 }
 0x1be   : > { %415 = vst.msk [vmem:[#allocation2 + $0x2d0] sm:$0xff] %vm324_vm12, %v27053_v48  ;;  %416 = vst.msk [vmem:[#allocation2 + $0x2d8] sm:$0xff] %vm324_vm12, %v27053_v48 }
 0x1bf   : > { %417 = vst.msk [vmem:[#allocation2 + $0x2e0] sm:$0xff] %vm324_vm12, %v27053_v48  ;;  %418 = vst.msk [vmem:[#allocation2 + $0x2e8] sm:$0xff] %vm324_vm12, %v27053_v48 }
 0x1c0   : > { %419 = vst.msk [vmem:[#allocation2 + $0x2f0] sm:$0xff] %vm324_vm12, %v27053_v48  ;;  %420 = vst.msk [vmem:[#allocation2 + $0x2f8] sm:$0xff] %vm324_vm12, %v27053_v48 }
 0x1c1   : > { %421 = vst.msk [vmem:[#allocation2 + $0x300] sm:$0xff] %vm324_vm12, %v27053_v48  ;;  %422 = vst.msk [vmem:[#allocation2 + $0x308] sm:$0xff] %vm324_vm12, %v27053_v48 }
 0x1c2   : > { %423 = vst.msk [vmem:[#allocation2 + $0x310] sm:$0xff] %vm324_vm12, %v27053_v48  ;;  %424 = vst.msk [vmem:[#allocation2 + $0x318] sm:$0xff] %vm324_vm12, %v27053_v48 }
 0x1c3   : > { %425 = vst.msk [vmem:[#allocation2 + $0x320] sm:$0xff] %vm324_vm12, %v27053_v48  ;;  %426 = vst.msk [vmem:[#allocation2 + $0x328] sm:$0xff] %vm324_vm12, %v27053_v48 }
 0x1c4   : > { %427 = vst.msk [vmem:[#allocation2 + $0x330] sm:$0xff] %vm324_vm12, %v27053_v48  ;;  %428 = vst.msk [vmem:[#allocation2 + $0x338] sm:$0xff] %vm324_vm12, %v27053_v48 }
 0x1c5   : > { %429 = vst.msk [vmem:[#allocation2 + $0x340] sm:$0xff] %vm324_vm12, %v27053_v48  ;;  %430 = vst.msk [vmem:[#allocation2 + $0x348] sm:$0xff] %vm324_vm12, %v27053_v48 }
 0x1c6   : > { %431 = vst.msk [vmem:[#allocation2 + $0x350] sm:$0xff] %vm324_vm12, %v27053_v48  ;;  %432 = vst.msk [vmem:[#allocation2 + $0x358] sm:$0xff] %vm324_vm12, %v27053_v48 }
 0x1c7   : > { %433 = vst.msk [vmem:[#allocation2 + $0x360] sm:$0xff] %vm324_vm12, %v27053_v48  ;;  %434 = vst.msk [vmem:[#allocation2 + $0x368] sm:$0xff] %vm324_vm12, %v27053_v48 }
 0x1c8   : > { %435 = vst.msk [vmem:[#allocation2 + $0x370] sm:$0xff] %vm324_vm12, %v27053_v48  ;;  %436 = vst.msk [vmem:[#allocation2 + $0x378] sm:$0xff] %vm324_vm12, %v27053_v48 }
 0x1c9   : > { %437 = vst.msk [vmem:[#allocation2 + $0x380] sm:$0xff] %vm324_vm12, %v27053_v48  ;;  %438 = vst.msk [vmem:[#allocation2 + $0x388] sm:$0xff] %vm324_vm12, %v27053_v48 }
 0x1ca   : > { %439 = vst.msk [vmem:[#allocation2 + $0x390] sm:$0xff] %vm324_vm12, %v27053_v48  ;;  %440 = vst.msk [vmem:[#allocation2 + $0x398] sm:$0xff] %vm324_vm12, %v27053_v48 }
 0x1cb   : > { %441 = vst.msk [vmem:[#allocation2 + $0x3a0] sm:$0xff] %vm324_vm12, %v27053_v48  ;;  %442 = vst.msk [vmem:[#allocation2 + $0x3a8] sm:$0xff] %vm324_vm12, %v27053_v48 }
 0x1cc   : > { %443 = vst.msk [vmem:[#allocation2 + $0x3b0] sm:$0xff] %vm324_vm12, %v27053_v48  ;;  %444 = vst.msk [vmem:[#allocation2 + $0x3b8] sm:$0xff] %vm324_vm12, %v27053_v48 }
 0x1cd   : > { %445 = vst.msk [vmem:[#allocation2 + $0x3c0] sm:$0xff] %vm324_vm12, %v27053_v48  ;;  %446 = vst.msk [vmem:[#allocation2 + $0x3c8] sm:$0xff] %vm324_vm12, %v27053_v48 }
 0x1ce   : > { %447 = vst.msk [vmem:[#allocation2 + $0x3d0] sm:$0xff] %vm324_vm12, %v27053_v48  ;;  %448 = vst.msk [vmem:[#allocation2 + $0x3d8] sm:$0xff] %vm324_vm12, %v27053_v48 }
 0x1cf   : > { %449 = vst.msk [vmem:[#allocation2 + $0x3e0] sm:$0xff] %vm324_vm12, %v27053_v48  ;;  %450 = vst.msk [vmem:[#allocation2 + $0x3e8] sm:$0xff] %vm324_vm12, %v27053_v48 }
 0x1d0   : > { %451 = vst.msk [vmem:[#allocation2 + $0x3f0] sm:$0xff] %vm324_vm12, %v27053_v48  ;;  %452 = vst.msk [vmem:[#allocation2 + $0x3f8] sm:$0xff] %vm324_vm12, %v27053_v48  ;;  %v23022_v48 = vsel %vm21049_vm10, %v27064_v54, %v27062_v25  ;;  %v27070_v54 = vld [vmem:[#allocation89_spill] sm:$0xff]  ;;  %v27073_v25 = vld [vmem:[#allocation84_spill] sm:$0xff] }
 0x1d1   : > { %v23044_v7 = vsel %vm21049_vm10, %v27070_v54, %v27069_v6  ;;  %v27074_v0 = vrot.slane %v27073_v25, 10  ;;  %v23066_v6 = vld [vmem:[%s20305_s12 + $0x2c4] sm:$0xe]  ;;  %v27081_v54 = vld [vmem:[#allocation85_spill] sm:$0xff]  ;;  %27095 = vst [vmem:[#allocation39_spill] sm:$0xff] %v23126_v46 }
 0x1d2   : > { %27080 = vst [vmem:[#allocation40_spill] sm:$0xff] %v23066_v6  ;;  %v27082_v43 = vrot.slane %v27081_v54, 6  ;;  %v27090_v54 = vrot.slane %v22280_v17, 7  ;;  %v27100_v17 = vrot.slane %v27099_v33, 11  ;;  %v867_v33 = vld [vmem:[#allocation2 + $0x18] sm:$0xff] }
 0x1d3   : > { %v23052_v22 = vsel %vm20527_vm7, %v27074_v0, %v27072_v55  ;;  %v27084_v55 = vld [vmem:[#allocation88_spill] sm:$0xff] }
 0x1d4   : > { %v23073_v25 = vsel %vm20527_vm7, %v27083_v32, %v27082_v43  ;;  %v27085_v0 = vrot.slane %v27084_v55, 6  ;;  %v23095_v32 = vsel %vm21049_vm10, %v27091_v8, %v27090_v54  ;;  %v27092_v43 = vcombine.low %v22604_v60, %v22611_v14  ;;  %v23112_v8 = vld [vmem:[%s20305_s12 + $0x2a0] sm:$0x8] }
 0x1d5   : > { %v27093_v60 = vcombine.low %v22645_v47, %v22652_v57  ;;  %v15587_v14 = vcombine.low %v22731_v21, %v22738_v2  ;;  %v27096_v54 = vcombine.low %v22630_v63, %v22637_v41  ;;  %v27101_v2 = vld [vmem:[#allocation91_spill] sm:$0xff]  ;;  %v27104_v21 = vrot.slane %v27103_v59, 10  ;;  %v870_v63 = vld [vmem:[#allocation2 + $0x30] sm:$0xff] }
 0x1d6   : > { %v23080_v62 = vsel %vm20527_vm7, %v27086_v37, %v27085_v0  ;;  %18146 = vmatmul.mubr.msk.bf16.gmra.mrb[12].mxu0 %vm731_vm4, %v27092_v43  ;;  %v23109_v0 = vld [vmem:[%s20305_s12 + $0x2cc] sm:$0x1]  ;;  %v1141_v37 = vpop.f32.mrb[1].mxu1  ;;  %v27097_v43 = vld [vmem:[#allocation90_spill] sm:$0xff]  ;;  %v27102_v49 = vrot.slane %v27101_v2, 6 }
 0x1d7   : > { %27087 = vst [vmem:[#allocation44_spill] sm:$0xff] %v23080_v62  ;;  %18149 = vmatprep.mubr.msk.bf16.mxu0 %vm731_vm4, %v27093_v60  ;;  %v17888_v47 = vpop.f32.mrb[2].mxu1  ;;  %18338 = vmatmul.mubr.msk.bf16.gmra.mrb[84].mxu1 %vm731_vm4, %v27096_v54  ;;  %v27098_v60 = vrot.slane %v27097_v43, 7  ;;  %v866_v54 = vld [vmem:[#allocation2 + $0x10] sm:$0xff]  ;;  %v864_v43 = vld [vmem:[#allocation2] sm:$0xff]  ;;  %v27108_v62 = vrot.slane %v27107_v44, 7 }
 0x1d8   : > { %v23159_v29 = vsel %vm20527_vm7, %v27104_v21, %v27102_v49  ;;  %v1144_v55 = vpop.f32.mrb[3].mxu1  ;;  %18341 = vmatprep.mubr.msk.bf16.mxu1 %vm731_vm4, %v16053_v9  ;;  %v1270_v59 = vadd.f32 %v22722_v30, %v866_v54  ;;  %v1268_v49 = vadd.f32 %v1141_v37, %v864_v43  ;;  %v1271_v21 = vadd.f32 %v17888_v47, %v867_v33  ;;  %v27109_v9 = vld [vmem:[#allocation98_spill] sm:$0xff]  ;;  %v23182_v30 = vld [vmem:[%s20305_s12 + $0x2a8] sm:$0x7] }
 0x1d9   : > { %v23151_v57 = vsel %vm21049_vm10, %v27100_v17, %v27098_v60  ;;  %v27105_v17 = vrot.slane %v22661_v53, 5  ;;  %v865_v60 = vld [vmem:[#allocation2 + $0x8] sm:$0xff]  ;;  %v17891_v46 = vpop.f32.mrb[4].mxu1  ;;  %v27110_v43 = vld [vmem:[#allocation34_spill] sm:$0xff] }
 0x1da   : > { %v1269_v58 = vadd.f32 %v1144_v55, %v865_v60  ;;  %v1274_v5 = vadd.f32 %v17891_v46, %v870_v63  ;;  %v13466_v37 = vadd.f32 %v23131_v61, %v1270_v59  ;;  %v13464_v47 = vadd.f32 %v23131_v61, %v1268_v49  ;;  %v27112_v46 = vld [vmem:[#allocation99_spill] sm:$0xff] }
 0x1db   : > { %v23166_v2 = vrot.slane %v27105_v17, 4  ;;  %v23176_v17 = vsel %vm21049_vm10, %v27109_v9, %v27108_v62  ;;  %v13467_v54 = vadd.f32 %v23131_v61, %v1271_v21  ;;  %v27111_v55 = vrot.slane %v27110_v43, 6  ;;  %v27114_v63 = vld [vmem:[#allocation95_spill] sm:$0xff] }
 0x1dc   : > { %v27113_v62 = vrot.slane %v22312_v36, 6  ;;  %v27115_v33 = vrot.slane %v27114_v63, 10  ;;  %v27116_v59 = vrot.slane %v22339_v13, 7  ;;  %v27117_v49 = vrot.slane %v22383_v40, 11  ;;  %v868_v63 = vld [vmem:[#allocation2 + $0x20] sm:$0xff] }
 0x1dd   : > { %27106 = vst [vmem:[#allocation41_spill] sm:$0xff] %v23166_v2  ;;  %v23179_v2 = vld [vmem:[%s20305_s12 + $0x2a4] sm:$0xf]  ;;  %v23192_v44 = vsel %vm20527_vm7, %v27112_v46, %v27111_v55  ;;  %v13465_v9 = vadd.f32 %v23131_v61, %v1269_v58  ;;  %v13498_v43 = vmax.f32 %v13466_v37, 0.0  ;;  %v13496_v36 = vmax.f32 %v13464_v47, 0.0 }
 0x1de   : > { %v23200_v60 = vsel %vm20527_vm7, %v27115_v33, %v27113_v62  ;;  %v23208_v21 = vsel %vm21049_vm10, %v27117_v49, %v27116_v59  ;;  %18150 = vmatmul.mubr.msk.bf16.gmra.mrb[16].mxu0 %vm731_vm4, %v15586_v28  ;;  %v13499_v55 = vmax.f32 %v13467_v54, 0.0  ;;  %v13470_v46 = vadd.f32 %v23131_v61, %v1274_v5  ;;  %v1157_v62 = vpop.f32.mrb[5].mxu1  ;;  %v871_v33 = vld [vmem:[#allocation2 + $0x38] sm:$0xff]  ;;  %v27118_v13 = vld [vmem:[#allocation96_spill] sm:$0xff] }
 0x1df   : > { %18153 = vmatprep.mubr.msk.bf16.mxu0 %vm731_vm4, %v15587_v14  ;;  %v27119_v40 = vrot.slane %v27118_v13, 6  ;;  %v27120_v58 = vrot.slane %v22390_v18, 7  ;;  %v23229_v5 = vld [vmem:[%s20305_s12 + $0x2c0] sm:$0xf]  ;;  %v13497_v37 = vmax.f32 %v13465_v9, 0.0  ;;  %v1272_v47 = vadd.f32 %v1157_v62, %v868_v63  ;;  %v17892_v54 = vpop.f32.mrb[6].mxu1 }
 0x1e0   : > { %v27121_v14 = vrot.slane %v22365_v52, 7  ;;  %v27122_v49 = vrot.slane %v22393_v16, 11  ;;  %v27123_v18 = vrot.slane %v22396_v27, 7  ;;  %v23246_v13 = vpack.c.bf16 %v13499_v55, %v13498_v43 }
 0x1e1   : > { %v23219_v59 = vsel %vm20527_vm7, %v22433_v20, %v27119_v40  ;;  %v23226_v28 = vsel %vm21049_vm10, %v22445_v35, %v27120_v58  ;;  %v1275_v9 = vadd.f32 %v17892_v54, %v871_v33  ;;  %v27125_v63 = vcombine.low %v22707_v15, %v22715_v26  ;;  %v1160_v40 = vpop.f32.mrb[7].mxu1  ;;  %v874_v58 = vld [vmem:[#allocation2 + $0x50] sm:$0xff] }
 0x1e2   : > { %v23237_v20 = vsel %vm21049_vm10, %v27122_v49, %v27121_v14  ;;  %v23244_v35 = vsel %vm21049_vm10, %v22453_v23, %v27123_v18  ;;  %27124 = vst [vmem:[#allocation42_spill] sm:$0xff] %v23246_v13  ;;  %v26715_v52 = vrot.slane %v23179_v2, 7  ;;  %v23254_v62 = vpack.c.bf16 %v13497_v37, %v13496_v36  ;;  %v869_v23 = vld [vmem:[#allocation2 + $0x28] sm:$0xff]  ;;  %v17895_v36 = vpop.f32.mrb[8].mxu1  ;;  %v23281_v18 = vld [vmem:[%s20305_s12 + $0x2e4] sm:$0xf] }
 0x1e3   : > { %18342 = vmatmul.mubr.msk.bf16.gmra.mrb[88].mxu1 %vm731_vm4, %v27125_v63  ;;  %v13468_v27 = vadd.f32 %v23131_v61, %v1272_v47  ;;  %v27127_v43 = vcombine.low %v23022_v48, %v23037_v3  ;;  %v26713_v15 = vrot.slane %v23229_v5, 7  ;;  %v13502_v26 = vmax.f32 %v13470_v46, 0.0  ;;  %v27130_v3 = vld [vmem:[#allocation28_spill] sm:$0xff]  ;;  %v16212_v13 = vld [vmem:[%s20305_s12 + $0x278] sm:$0xf] }
 0x1e4   : > { %27126 = vst [vmem:[#allocation45_spill] sm:$0xff] %v23254_v62  ;;  %v13471_v55 = vadd.f32 %v23131_v61, %v1275_v9  ;;  %v1273_v33 = vadd.f32 %v1160_v40, %v869_v23  ;;  %v27128_v47 = vrot.slane %v22368_v56, 6  ;;  %v27129_v54 = vrot.slane %v22421_v1, 10  ;;  %v27132_v46 = vld [vmem:[#allocation32_spill] sm:$0xff]  ;;  %v23286_v56 = vld [vmem:[%s20305_s12 + $0x2bc] sm:$0x8] }
 0x1e5   : > { %18345 = vmatprep.mubr.msk.bf16.mxu1 %vm731_vm4, %v27127_v43  ;;  %v27131_v14 = vrot.slane %v27130_v3, 6  ;;  %v1278_v9 = vadd.f32 %v17895_v36, %v874_v58  ;;  %v15591_v63 = vcombine.low %v23159_v29, %v23192_v44  ;;  %v13500_v1 = vmax.f32 %v13468_v27, 0.0  ;;  %v27134_v36 = vld [vmem:[#allocation31_spill] sm:$0xff]  ;;  %v1173_v43 = vpop.f32.mrb[9].mxu1  ;;  %v27165_v44 = vld [vmem:[#allocation40_spill] sm:$0xff]  ;;  %v27241_v62 = vld [vmem:[#allocation21_spill] sm:$0xff] }
 0x1e6   : > { %v23271_v48 = vsel %vm20527_vm7, %v27129_v54, %v27128_v47  ;;  %v13503_v23 = vmax.f32 %v13471_v55, 0.0  ;;  %v13469_v40 = vadd.f32 %v23131_v61, %v1273_v33  ;;  %v27133_v58 = vrot.slane %v22424_v19, 6  ;;  %v23304_v55 = vld [vmem:[%s20305_s12 + $0x2c4] sm:$0x7]  ;;  %v23403_v47 = vld [vmem:[%s20305_s12 + $0x2dc] sm:$0xf] }
 0x1e7   : > { %v23278_v49 = vsel %vm20527_vm7, %v27132_v46, %v27131_v14  ;;  %v27135_v3 = vrot.slane %v27134_v36, 10  ;;  %v27136_v33 = vcombine.low %v23007_v34, %v23014_v45  ;;  %v13474_v36 = vadd.f32 %v23131_v61, %v1278_v9  ;;  %v872_v54 = vld [vmem:[#allocation2 + $0x40] sm:$0xff] }
 0x1e8   : > { %v23312_v46 = vpack.c.bf16 %v13503_v23, %v13502_v26  ;;  %v13501_v19 = vmax.f32 %v13469_v40, 0.0  ;;  %v27139_v45 = vrot.slane %v22475_v42, 6  ;;  %v27140_v26 = vrot.slane %v22481_v38, 7  ;;  %v17896_v42 = vpop.f32.mrb[10].mxu1  ;;  %v27143_v38 = vld [vmem:[#allocation26_spill] sm:$0xff]  ;;  %v27151_v14 = vld [vmem:[#allocation36_spill] sm:$0xff] }
 0x1e9   : > { %v23301_v27 = vsel %vm20527_vm7, %v27135_v3, %v27133_v58  ;;  %18154 = vmatmul.mubr.msk.bf16.gmra.mrb[20].mxu0 %vm731_vm4, %v27136_v33  ;;  %v875_v58 = vld [vmem:[#allocation2 + $0x58] sm:$0xff]  ;;  %v27138_v3 = vcombine.low %v23052_v22, %v23073_v25  ;;  %v27141_v9 = vrot.slane %v22478_v12, 11  ;;  %v26714_v22 = vrot.slane %v23281_v18, 5  ;;  %v23336_v25 = vld [vmem:[%s20305_s12 + $0x300] sm:$0xf] }
 0x1ea   : > { %27137 = vst [vmem:[#allocation43_spill] sm:$0xff] %v23312_v46  ;;  %v23324_v34 = vsel %vm20527_vm7, %v22510_v10, %v27139_v45  ;;  %v1276_v40 = vadd.f32 %v1173_v43, %v872_v54  ;;  %v27142_v33 = vrot.slane %v22542_v31, 7  ;;  %v27144_v12 = vrot.slane %v27143_v38, 7  ;;  %v16204_v46 = vld [vmem:[%s20305_s12 + $0x228] sm:$0x7] }
 0x1eb   : > { %18157 = vmatprep.mubr.msk.bf16.mxu0 %vm731_vm4, %v27138_v3  ;;  %v23332_v23 = vsel %vm21049_vm10, %v27141_v9, %v27140_v26  ;;  %v27145_v3 = vld [vmem:[#allocation37_spill] sm:$0xff]  ;;  %v23354_v9 = vld [vmem:[%s20305_s12 + $0x2e0] sm:$0xe]  ;;  %v23356_v43 = vpack.c.bf16 %v13501_v19, %v13500_v1  ;;  %v1279_v54 = vadd.f32 %v17896_v42, %v875_v58  ;;  %v27148_v31 = vcombine.low %v23030_v50, %v23044_v7  ;;  %v23373_v1 = vld [vmem:[%s20305_s12 + $0x2e8] sm:$0x1]  ;;  %v1176_v50 = vpop.f32.mrb[11].mxu1 }
 0x1ec   : > { %v23343_v10 = vsel %vm21049_vm10, %v22581_v39, %v27142_v33  ;;  %v27146_v45 = vrot.slane %v27145_v3, 11  ;;  %v27149_v39 = vld [vmem:[#allocation33_spill] sm:$0xff]  ;;  %v13472_v19 = vadd.f32 %v23131_v61, %v1276_v40  ;;  %v27152_v7 = vcombine.low %v23088_v11, %v23095_v32  ;;  %v17899_v3 = vpop.f32.mrb[12].mxu1  ;;  %v23418_v42 = vld [vmem:[%s20305_s12 + $0x2f8] sm:$0xf] }
 0x1ed   : > { %27147 = vst [vmem:[#allocation46_spill] sm:$0xff] %v23356_v43  ;;  %18346 = vmatmul.mubr.msk.bf16.gmra.mrb[92].mxu1 %vm731_vm4, %v27148_v31  ;;  %v27150_v33 = vrot.slane %v27149_v39, 7  ;;  %v873_v58 = vld [vmem:[#allocation2 + $0x48] sm:$0xff]  ;;  %v13475_v31 = vadd.f32 %v23131_v61, %v1279_v54  ;;  %v23387_v40 = vrot.slane %v26713_v15, 4  ;;  %v1189_v6 = vpop.f32.mrb[13].mxu1  ;;  %v27164_v29 = vrot.slane %v22661_v53, 5 }
 0x1ee   : > { %v23351_v26 = vsel %vm21049_vm10, %v27146_v45, %v27144_v12  ;;  %v6787_v12 = vrot.slane %v26715_v52, 4  ;;  %18353 = vmatprep.mubr.msk.bf16.mxu1 %vm731_vm4, %v27152_v7  ;;  %v13506_v45 = vmax.f32 %v13474_v36, 0.0  ;;  %v1277_v39 = vadd.f32 %v1176_v50, %v873_v58  ;;  %v16205_v43 = vld [vmem:[%s20305_s12 + $0x23c] sm:$0x8] }
 0x1ef   : > { %v23367_v38 = vsel %vm21049_vm10, %v27151_v14, %v27150_v33  ;;  %v23382_v14 = vld [vmem:[%s20305_s12 + $0x2fc] sm:$0xe]  ;;  %v878_v33 = vld [vmem:[#allocation2 + $0x70] sm:$0xff]  ;;  %v23393_v36 = vrot.slane %v26714_v22, 4  ;;  %v13504_v54 = vmax.f32 %v13472_v19, 0.0  ;;  %v13507_v58 = vmax.f32 %v13475_v31, 0.0 }
 0x1f0   : > { %v1282_v7 = vadd.f32 %v17899_v3, %v878_v33  ;;  %v13473_v50 = vadd.f32 %v23131_v61, %v1277_v39  ;;  %v27153_v3 = vld [vmem:[#allocation44_spill] sm:$0xff]  ;;  %v23415_v39 = vld [vmem:[%s20305_s12 + $0x2d8] sm:$0x8]  ;;  %v27166_v32 = vrot.slane %v27165_v44, 9  ;;  %v26716_v53 = vrot.slane %v23403_v47, 7 }
 0x1f1   : > { %v27154_v33 = vcombine.low %v23060_v4, %v27153_v3  ;;  %v23412_v31 = vld [vmem:[%s20305_s12 + $0x304] sm:$0x1]  ;;  %v23420_v15 = vpack.c.bf16 %v13507_v58, %v13506_v45  ;;  %v879_v4 = vld [vmem:[#allocation2 + $0x78] sm:$0xff] }
 0x1f2   : > { %v13505_v16 = vmax.f32 %v13473_v50, 0.0  ;;  %v13478_v11 = vadd.f32 %v23131_v61, %v1282_v7  ;;  %v876_v22 = vld [vmem:[#allocation2 + $0x60] sm:$0xff]  ;;  %v27161_v58 = vld [vmem:[#allocation38_spill] sm:$0xff] }
 0x1f3   : > { %18158 = vmatmul.mubr.msk.bf16.gmra.mrb[24].mxu0 %vm731_vm4, %v27154_v33  ;;  %27155 = vst [vmem:[#allocation48_spill] sm:$0xff] %v23420_v15  ;;  %v27156_v3 = vld [vmem:[#allocation35_spill] sm:$0xff]  ;;  %v27158_v19 = vld [vmem:[#allocation20_spill] sm:$0xff]  ;;  %v27162_v50 = vrot.slane %v27161_v58, 5  ;;  %v27173_v15 = vrot.slane %v23112_v8, 11  ;;  %v27175_v8 = vrot.slane %v23182_v30, 7 }
 0x1f4   : > { %18161 = vmatprep.mubr.msk.bf16.mxu0 %vm731_vm4, %v15591_v63  ;;  %v27157_v33 = vrot.slane %v27156_v3, 5  ;;  %v27159_v52 = vrot.slane %v27158_v19, 9  ;;  %v27163_v7 = vld [vmem:[#allocation39_spill] sm:$0xff]  ;;  %v23448_v63 = vsel %vm20288_vm2, %v27166_v32, %v27164_v29  ;;  %v1280_v19 = vadd.f32 %v1189_v6, %v876_v22  ;;  %v17900_v3 = vpop.f32.mrb[14].mxu1  ;;  %v27171_v22 = vld [vmem:[#allocation41_spill] sm:$0xff] }
 0x1f5   : > { %v23440_v37 = vsel %vm20288_vm2, %v27163_v7, %v27162_v50  ;;  %v23458_v50 = vld [vmem:[%s20305_s12 + $0x2e0] sm:$0x7]  ;;  %v23461_v7 = vpack.c.bf16 %v13505_v16, %v13504_v54  ;;  %v1283_v32 = vadd.f32 %v17900_v3, %v879_v4  ;;  %v27169_v29 = vcombine.low %v23151_v57, %v23176_v17  ;;  %v23483_v54 = vld [vmem:[%s20305_s12 + $0x2f4] sm:$0x8]  ;;  %v1192_v4 = vpop.f32.mrb[15].mxu1 }
 0x1f6   : > { %v23433_v45 = vsel %vm20288_vm2, %v27159_v52, %v27157_v33  ;;  %v20099_v52 = vld [vmem:[%s26588_s1 + $0xe8] sm:$0xff]   ;;  %v27167_v33 = vrot.slane %v23336_v25, 5  ;;  %v27170_v6 = vrot.slane %v23109_v0, 5  ;;  %v13476_v17 = vadd.f32 %v23131_v61, %v1280_v19  ;;  %v882_v3 = vld [vmem:[#allocation2 + $0x90] sm:$0xff]  ;;  %v20195_v19 = vld [vmem:[%s26588_s1 + $0xe0] sm:$0xff]  }
 0x1f7   : > { %27168 = vst [vmem:[#allocation50_spill] sm:$0xff] %v23461_v7  ;;  %18354 = vmatmul.mubr.msk.bf16.vlgmr.msra.gmra.mrb[64].mxu1 %vm731_vm4, %v27169_v29  ;;  %v877_v0 = vld [vmem:[#allocation2 + $0x68] sm:$0xff]  ;;  %v27174_v29 = vcombine.low %v23208_v21, %v23226_v28  ;;  %v13479_v21 = vadd.f32 %v23131_v61, %v1283_v32  ;;  %v880_v7 = vld [vmem:[#allocation2 + $0x80] sm:$0xff] }
 0x1f8   : > { %v23455_v58 = vrot.slane %v27167_v33, 4  ;;  %v23472_v44 = vsel %vm20288_vm2, %v27171_v22, %v27170_v6  ;;  %v27172_v33 = vrot.slane %v23179_v2, 7  ;;  %v23495_v2 = vsel %vm21049_vm10, %v6787_v12, %v27175_v8  ;;  %v23501_v6 = vld [vmem:[%s20305_s12 + $0x31c] sm:$0xf]  ;;  %18386 = vmatpush3.bf16.msra.mxu1 %v20195_v19  ;;  %v23513_v8 = vld [vmem:[%s26588_s1 + $0xf0] sm:$0xff]  }
 0x1f9   : > { %18357 = vmatprep.mubr.msk.bf16.mxu1 %vm731_vm4, %v27174_v29  ;;  %v13510_v22 = vmax.f32 %v13478_v11, 0.0  ;;  %v1281_v28 = vadd.f32 %v1192_v4, %v877_v0  ;;  %18387 = vmatprep.subr.bf16.mxu1 %v20099_v52  ;;  %v23517_v19 = vld [vmem:[%s20305_s12 + $0x338] sm:$0xf]  ;;  %v13508_v32 = vmax.f32 %v13476_v17, 0.0  ;;  %v13511_v0 = vmax.f32 %v13479_v21, 0.0 }
 0x1fa   : > { %v23480_v16 = vsel %vm21049_vm10, %v27173_v15, %v27172_v33  ;;  %v23498_v15 = vld [vmem:[%s20305_s12 + $0x2fc] sm:$0x7]  ;;  %v17903_v33 = vpop.f32.mrb[16].mxu1  ;;  %v23522_v12 = vrot.slane %v26716_v53, 4  ;;  %v27176_v29 = vrot.slane %v23418_v42, 7  ;;  %v15681_v17 = vcombine.low %v23433_v45, %v23440_v37 }
 0x1fb   : > { %v1286_v57 = vadd.f32 %v17903_v33, %v882_v3  ;;  %v13477_v4 = vadd.f32 %v23131_v61, %v1281_v28  ;;  %v27177_v33 = vcombine.low %v23200_v60, %v23219_v59  ;;  %v23537_v21 = vld [vmem:[%s20305_s12 + $0x318] sm:$0xe]  ;;  %v23539_v28 = vpack.c.bf16 %v13511_v0, %v13510_v22  ;;  %v1205_v53 = vpop.f32.mrb[17].mxu1 }
 0x1fc   : > { %v23526_v30 = vrot.slane %v27176_v29, 4  ;;  %18388 = vmatpush3.bf16.msra.mxu1 %v20099_v52  ;;  %v883_v3 = vld [vmem:[#allocation2 + $0x98] sm:$0xff]  ;;  %v27179_v60 = vcombine.low %v23271_v48, %v23278_v49  ;;  %v15682_v59 = vcombine.low %v23448_v63, %v23472_v44  ;;  %v27180_v37 = vrot.slane %v23229_v5, 7  ;;  %v17904_v49 = vpop.f32.mrb[18].mxu1 }
 0x1fd   : > { %18162 = vmatmul.mubr.msk.bf16.gmra.mrb[28].mxu0 %vm731_vm4, %v27177_v33  ;;  %27178 = vst [vmem:[#allocation47_spill] sm:$0xff] %v23539_v28  ;;  %v13509_v29 = vmax.f32 %v13477_v4, 0.0  ;;  %v13482_v11 = vadd.f32 %v23131_v61, %v1286_v57  ;;  %v27181_v45 = vrot.slane %v23286_v56, 11  ;;  %v23557_v57 = vld [vmem:[%s20305_s12 + $0x320] sm:$0x1]  ;;  %v4380_v22 = vrot.slane %v23517_v19, 5  ;;  %18421 = vmatprep.subr.bf16.mxu1 %v23513_v8 }
 0x1fe   : > { %18165 = vmatprep.mubr.msk.bf16.mxu0 %vm731_vm4, %v27179_v60  ;;  %v1284_v48 = vadd.f32 %v1205_v53, %v880_v7  ;;  %v16149_v0 = vcombine.low %v23480_v16, %v23495_v2  ;;  %v27182_v5 = vrot.slane %v23304_v55, 7  ;;  %v23571_v4 = vld [vmem:[%s20305_s12 + $0x334] sm:$0xe]  ;;  %v1287_v60 = vadd.f32 %v17904_v49, %v883_v3  ;;  %v23724_v2 = vld [vmem:[%s20305_s12 + $0x350] sm:$0xe] }
 0x1ff   : > { %v23554_v52 = vsel %vm21049_vm10, %v27181_v45, %v27180_v37  ;;  %v23573_v33 = vpack.c.bf16 %v13509_v29, %v13508_v32  ;;  %v27184_v37 = vcombine.low %v23237_v20, %v23244_v35  ;;  %v27185_v53 = vrot.slane %v23281_v18, 5  ;;  %v23596_v20 = vld [vmem:[%s20305_s12 + $0x33c] sm:$0x1]  ;;  %v881_v18 = vld [vmem:[#allocation2 + $0x88] sm:$0xff]  ;;  %v886_v29 = vld [vmem:[#allocation2 + $0xb0] sm:$0xff] }
 0x200   : > { %v23568_v56 = vsel %vm21049_vm10, %v23387_v40, %v27182_v5  ;;  %v27186_v7 = vrot.slane %v23354_v9, 9  ;;  %v27187_v40 = vrot.slane %v23373_v1, 5  ;;  %v15665_v3 = vrot.slane %v23537_v21, 9  ;;  %v1208_v9 = vpop.f32.mrb[19].mxu1  ;;  %v15723_v28 = vld [vmem:[%s20305_s12 + $0x390] sm:$0xf] }
 0x201   : > { %27183 = vst [vmem:[#allocation49_spill] sm:$0xff] %v23573_v33  ;;  %18358 = vmatmul.mubr.msk.bf16.gmra.mrb[68].mxu1 %vm731_vm4, %v27184_v37  ;;  %v13480_v35 = vadd.f32 %v23131_v61, %v1284_v48  ;;  %v27188_v45 = vcombine.low %v23332_v23, %v23343_v10  ;;  %v27189_v1 = vrot.slane %v23501_v6, 5  ;;  %v13483_v5 = vadd.f32 %v23131_v61, %v1287_v60  ;;  %v17907_v37 = vpop.f32.mrb[20].mxu1  ;;  %v16206_v33 = vld [vmem:[%s20305_s12 + $0x240] sm:$0xf] }
 0x202   : > { %v23585_v55 = vsel %vm20288_vm2, %v27186_v7, %v27185_v53  ;;  %v23592_v32 = vsel %vm20288_vm2, %v23393_v36, %v27187_v40  ;;  %v13514_v36 = vmax.f32 %v13482_v11, 0.0  ;;  %v1285_v21 = vadd.f32 %v1208_v9, %v881_v18  ;;  %v23614_v40 = vld [vmem:[%s20305_s12 + $0x314] sm:$0xf] }
 0x203   : > { %18361 = vmatprep.mubr.msk.bf16.mxu1 %vm731_vm4, %v27188_v45  ;;  %v4375_v49 = vrot.slane %v27189_v1, 4  ;;  %v4376_v48 = vrot.slane %v23557_v57, 5  ;;  %v15666_v53 = vrot.slane %v23571_v4, 9  ;;  %v23610_v23 = vrot.slane %v4380_v22, 4  ;;  %v884_v57 = vld [vmem:[#allocation2 + $0xa0] sm:$0xff] }
 0x204   : > { %v1290_v10 = vadd.f32 %v17907_v37, %v886_v29  ;;  %v13512_v11 = vmax.f32 %v13480_v35, 0.0  ;;  %v13515_v60 = vmax.f32 %v13483_v5, 0.0  ;;  %v13481_v18 = vadd.f32 %v23131_v61, %v1285_v21  ;;  %v23637_v5 = vld [vmem:[%s20305_s12 + $0x310] sm:$0x8]  ;;  %v23640_v21 = vld [vmem:[%s20305_s12 + $0x318] sm:$0x7] }
 0x205   : > { %v27190_v45 = vrot.slane %v23336_v25, 5  ;;  %v27191_v1 = vrot.slane %v23382_v14, 9  ;;  %v27192_v37 = vrot.slane %v23412_v31, 5  ;;  %v27193_v7 = vcombine.low %v23301_v27, %v23324_v34  ;;  %v1221_v27 = vpop.f32.mrb[21].mxu1  ;;  %v887_v34 = vld [vmem:[#allocation2 + $0xb8] sm:$0xff] }
 0x206   : > { %v27194_v14 = vrot.slane %v23403_v47, 7  ;;  %v13486_v9 = vadd.f32 %v23131_v61, %v1290_v10  ;;  %v27197_v47 = vrot.slane %v23458_v50, 7  ;;  %v17908_v50 = vpop.f32.mrb[22].mxu1  ;;  %v27205_v4 = vcombine.low %v23585_v55, %v23592_v32 }
 0x207   : > { %v23627_v29 = vsel %vm20288_vm2, %v27191_v1, %v27190_v45  ;;  %v23634_v35 = vsel %vm20288_vm2, %v23455_v58, %v27192_v37  ;;  %18166 = vmatmul.mubr.msk.bf16.gmra.mrb[32].mxu0 %vm731_vm4, %v27193_v7  ;;  %v27195_v45 = vrot.slane %v23415_v39, 11  ;;  %v23655_v58 = vld [vmem:[%s20305_s12 + $0x32c] sm:$0x8]  ;;  %v23657_v1 = vpack.c.bf16 %v13515_v60, %v13514_v36 }
 0x208   : > { %v13513_v37 = vmax.f32 %v13481_v18, 0.0  ;;  %18173 = vmatprep.mubr.msk.bf16.mxu0 %vm731_vm4, %v15681_v17  ;;  %v23666_v39 = vsel %vm21049_vm10, %v23522_v12, %v27197_v47  ;;  %v27198_v7 = vrot.slane %v23418_v42, 7  ;;  %v27199_v36 = vrot.slane %v23483_v54, 11  ;;  %v23678_v18 = vld [vmem:[%s20305_s12 + $0x330] sm:$0xf] }
 0x209   : > { %v23652_v31 = vsel %vm21049_vm10, %v27195_v45, %v27194_v14  ;;  %27196 = vst [vmem:[#allocation51_spill] sm:$0xff] %v23657_v1  ;;  %v6813_v60 = vrot.slane %v23614_v40, 7  ;;  %v1288_v17 = vadd.f32 %v1221_v27, %v884_v57  ;;  %v27200_v14 = vrot.slane %v23498_v15, 7  ;;  %v23694_v45 = vld [vmem:[%s20305_s12 + $0x334] sm:$0x7]  ;;  %v20106_v1 = vld [vmem:[%s26588_s1 + $0x138] sm:$0xff]  }
 0x20a   : > { %v23674_v10 = vsel %vm21049_vm10, %v27199_v36, %v27198_v7  ;;  %v27201_v42 = vrot.slane %v23501_v6, 5  ;;  %v23696_v40 = vpack.c.bf16 %v13513_v37, %v13512_v11  ;;  %v1291_v47 = vadd.f32 %v17908_v50, %v887_v34  ;;  %v23709_v27 = vld [vmem:[%s20305_s12 + $0x354] sm:$0xf]  ;;  %v885_v37 = vld [vmem:[#allocation2 + $0xa8] sm:$0xff]  ;;  %v1224_v34 = vpop.f32.mrb[23].mxu1 }
 0x20b   : > { %v23685_v12 = vsel %vm21049_vm10, %v23526_v30, %v27200_v14  ;;  %v27203_v57 = vcombine.low %v23351_v26, %v23367_v38  ;;  %v23704_v15 = vsel %vm20288_vm2, %v4375_v49, %v4376_v48  ;;  %v16133_v30 = vrot.slane %v23637_v5, 11  ;;  %v890_v5 = vld [vmem:[#allocation2 + $0xd0] sm:$0xff] }
 0x20c   : > { %v23691_v54 = vsel %vm20288_vm2, %v15665_v3, %v27201_v42  ;;  %27202 = vst [vmem:[#allocation56_spill] sm:$0xff] %v23696_v40  ;;  %v6816_v3 = vrot.slane %v23640_v21, 7  ;;  %v13484_v11 = vadd.f32 %v23131_v61, %v1288_v17  ;;  %v6820_v26 = vrot.slane %v23678_v18, 7  ;;  %v17911_v21 = vpop.f32.mrb[24].mxu1  ;;  %v23721_v50 = vld [vmem:[%s20305_s12 + $0x370] sm:$0xf] }
 0x20d   : > { %18362 = vmatmul.mubr.msk.bf16.gmra.mrb[72].mxu1 %vm731_vm4, %v27203_v57  ;;  %v13518_v38 = vmax.f32 %v13486_v9, 0.0  ;;  %v13487_v49 = vadd.f32 %v23131_v61, %v1291_v47  ;;  %v1289_v48 = vadd.f32 %v1224_v34, %v885_v37  ;;  %v6815_v7 = vrot.slane %v6813_v60, 4  ;;  %v20097_v9 = vld [vmem:[%s26588_s1 + $0x98] sm:$0xff]   ;;  %v888_v34 = vld [vmem:[#allocation2 + $0xc0] sm:$0xff] }
 0x20e   : > { %18365 = vmatprep.mubr.msk.bf16.mxu1 %vm731_vm4, %v16149_v0  ;;  %v16134_v36 = vrot.slane %v23655_v58, 11  ;;  %v6823_v17 = vrot.slane %v23694_v45, 7  ;;  %v1294_v16 = vadd.f32 %v17911_v21, %v890_v5  ;;  %v4387_v0 = vrot.slane %v23709_v27, 5  ;;  %v27234_v40 = vld [vmem:[#allocation14_spill] sm:$0xff] }
 0x20f   : > { %v13516_v18 = vmax.f32 %v13484_v11, 0.0  ;;  %v13519_v14 = vmax.f32 %v13487_v49, 0.0  ;;  %v13485_v42 = vadd.f32 %v23131_v61, %v1289_v48  ;;  %v15684_v58 = vcombine.low %v23627_v29, %v23634_v35  ;;  %v15633_v11 = vld [vmem:[%s20305_s12 + $0x358] sm:$0x1]  ;;  %18174 = vmatmul.mubr.msk.bf16.vlgmr.msra.gmra.mrb[4].mxu0 %vm731_vm4, %v15682_v59 }
 0x210   : > { %v16151_v45 = vcombine.low %v23652_v31, %v23666_v39  ;;  %v16152_v47 = vcombine.low %v23674_v10, %v23685_v12  ;;  %v23743_v57 = vsel %vm20288_vm2, %v15666_v53, %v4380_v22  ;;  %v15685_v29 = vcombine.low %v23691_v54, %v23704_v15  ;;  %v23753_v31 = vld [vmem:[%s20305_s12 + $0x34c] sm:$0xf]  ;;  %v20196_v22 = vld [vmem:[%s26588_s1 + $0x90] sm:$0xff]   ;;  %18177 = vmatprep.mubr.msk.bf16.mxu0 %vm731_vm4, %v27205_v4  ;;  %v891_v49 = vld [vmem:[#allocation2 + $0xd8] sm:$0xff] }
 0x211   : > { %v6822_v35 = vrot.slane %v6820_v26, 4  ;;  %v23755_v39 = vpack.c.bf16 %v13519_v14, %v13518_v38  ;;  %v13517_v37 = vmax.f32 %v13485_v42, 0.0  ;;  %18206 = vmatpush3.bf16.msra.mxu0 %v20196_v22  ;;  %v23766_v63 = vsel %vm21049_vm10, %v16133_v30, %v6813_v60  ;;  %v1237_v38 = vpop.f32.mrb[25].mxu1  ;;  %v23780_v60 = vld [vmem:[%s26588_s1 + $0x130] sm:$0xff]   ;;  %v23855_v15 = vld [vmem:[%s20305_s12 + $0x384] sm:$0xf] }
 0x212   : > { %v23770_v44 = vsel %vm21049_vm10, %v6815_v7, %v6816_v3  ;;  %v4394_v59 = vrot.slane %v23721_v50, 5  ;;  %v13490_v53 = vadd.f32 %v23131_v61, %v1294_v16  ;;  %v15667_v55 = vrot.slane %v23724_v2, 9  ;;  %18207 = vmatprep.subr.bf16.mxu0 %v20097_v9  ;;  %v17912_v48 = vpop.f32.mrb[26].mxu1  ;;  %v894_v42 = vld [vmem:[#allocation2 + $0xf0] sm:$0xff]  ;;  %v16114_v12 = vld [vmem:[%s20305_s12 + $0x364] sm:$0x8] }
 0x213   : > { %27204 = vst [vmem:[#allocation61_spill] sm:$0xff] %v23755_v39  ;;  %v4389_v32 = vrot.slane %v4387_v0, 4  ;;  %v23782_v30 = vpack.c.bf16 %v13517_v37, %v13516_v18  ;;  %v1292_v3 = vadd.f32 %v1237_v38, %v888_v34  ;;  %v27207_v5 = vcombine.low %v23554_v52, %v23568_v56  ;;  %v23800_v18 = vld [vmem:[%s20305_s12 + $0x36c] sm:$0xe]  ;;  %v1240_v56 = vpop.f32.mrb[27].mxu1 }
 0x214   : > { %v27208_v21 = vrot.slane %v23596_v20, 5  ;;  %v23797_v16 = vsel %vm21049_vm10, %v16134_v36, %v6820_v26  ;;  %v4390_v2 = vrot.slane %v15633_v11, 5  ;;  %v1295_v14 = vadd.f32 %v17912_v48, %v891_v49  ;;  %v889_v52 = vld [vmem:[#allocation2 + $0xc8] sm:$0xff]  ;;  %v17915_v22 = vpop.f32.mrb[28].mxu1  ;;  %v23813_v4 = vld [vmem:[%s20305_s12 + $0x374] sm:$0x1] }
 0x215   : > { %27206 = vst [vmem:[#allocation52_spill] sm:$0xff] %v23782_v30  ;;  %18366 = vmatmul.mubr.msk.bf16.gmra.mrb[76].mxu1 %vm731_vm4, %v27207_v5  ;;  %v16153_v20 = vcombine.low %v23766_v63, %v23770_v44  ;;  %v6827_v37 = vrot.slane %v23753_v31, 7  ;;  %v13488_v26 = vadd.f32 %v23131_v61, %v1292_v3  ;;  %v1293_v36 = vadd.f32 %v1240_v56, %v889_v52  ;;  %v16113_v34 = vld [vmem:[%s20305_s12 + $0x350] sm:$0x7]  ;;  %v23821_v49 = vld [vmem:[%s20305_s12 + $0x38c] sm:$0xf] }
 0x216   : > { %v23793_v7 = vsel %vm20288_vm2, %v23610_v23, %v27208_v21  ;;  %18369 = vmatprep.mubr.msk.bf16.mxu1 %vm731_vm4, %v16151_v45  ;;  %v16111_v23 = vld [vmem:[%s20305_s12 + $0x348] sm:$0x8]  ;;  %v23810_v11 = vsel %vm21049_vm10, %v6822_v35, %v6823_v17  ;;  %18208 = vmatpush3.bf16.msra.mxu0 %v20097_v9  ;;  %v13522_v45 = vmax.f32 %v13490_v53, 0.0  ;;  %v13491_v38 = vadd.f32 %v23131_v61, %v1295_v14  ;;  %v895_v56 = vld [vmem:[#allocation2 + $0xf8] sm:$0xff]  ;;  %v15639_v54 = vld [vmem:[%s20305_s12 + $0x390] sm:$0x1] }
 0x217   : > { %v1298_v63 = vadd.f32 %v17915_v22, %v894_v42  ;;  %v15668_v44 = vrot.slane %v23800_v18, 9  ;;  %v4396_v31 = vrot.slane %v4394_v59, 4  ;;  %18565 = vmatprep.subr.bf16.mxu0 %v23780_v60  ;;  %v13520_v17 = vmax.f32 %v13488_v26, 0.0  ;;  %v23836_v48 = vld [vmem:[%s20305_s12 + $0x368] sm:$0xf]  ;;  %18178 = vmatmul.mubr.msk.bf16.gmra.mrb[8].mxu0 %vm731_vm4, %v15684_v58 }
 0x218   : > { %v13489_v35 = vadd.f32 %v23131_v61, %v1293_v36  ;;  %v23829_v9 = vsel %vm20288_vm2, %v15667_v55, %v4387_v0  ;;  %v23833_v53 = vsel %vm20288_vm2, %v4389_v32, %v4390_v2  ;;  %v16135_v3 = vrot.slane %v16111_v23, 11  ;;  %v892_v0 = vld [vmem:[#allocation2 + $0xe0] sm:$0xff]  ;;  %v1253_v55 = vpop.f32.mrb[29].mxu1  ;;  %18181 = vmatprep.mubr.msk.bf16.mxu0 %vm731_vm4, %v15685_v29  ;;  %v15637_v22 = vld [vmem:[%s20305_s12 + $0x388] sm:$0xe] }
 0x219   : > { %v13523_v5 = vmax.f32 %v13491_v38, 0.0  ;;  %v6829_v21 = vrot.slane %v6827_v37, 4  ;;  %v6830_v18 = vrot.slane %v16113_v34, 7  ;;  %v13494_v52 = vadd.f32 %v23131_v61, %v1298_v63  ;;  %v17916_v23 = vpop.f32.mrb[30].mxu1  ;;  %v893_v34 = vld [vmem:[#allocation2 + $0xe8] sm:$0xff] }
 0x21a   : > { %v13521_v14 = vmax.f32 %v13489_v35, 0.0  ;;  %v4397_v32 = vrot.slane %v23813_v4, 5  ;;  %v4401_v58 = vrot.slane %v23821_v49, 5  ;;  %v1296_v42 = vadd.f32 %v1253_v55, %v892_v0  ;;  %v20198_v39 = vld [vmem:[%s20305_s12 + $0x2c8] sm:$0xf] }
 0x21b   : > { %v23846_v2 = vpack.c.bf16 %v13523_v5, %v13522_v45  ;;  %v15686_v26 = vcombine.low %v23743_v57, %v23793_v7  ;;  %v16154_v36 = vcombine.low %v23797_v16, %v23810_v11  ;;  %v1299_v4 = vadd.f32 %v17916_v23, %v895_v56  ;;  %v1256_v45 = vpop.f32.mrb[31].mxu1  ;;  %v16117_v5 = vld [vmem:[%s20305_s12 + $0x380] sm:$0x8]  ;;  %v23891_v23 = vld [vmem:[%s20305_s12 + $0x3c4] sm:$0xf] }
 0x21c   : > { %v23857_v29 = vpack.c.bf16 %v13521_v14, %v13520_v17  ;;  %v15687_v57 = vcombine.low %v23829_v9, %v23833_v53  ;;  %v6828_v7 = vsel %vm21049_vm10, %v16135_v3, %v6827_v37  ;;  %v6834_v16 = vrot.slane %v23836_v48, 7  ;;  %v23875_v17 = vpop.f32.mrb[32].mxu1  ;;  %v23878_v3 = vld [vmem:[%s20305_s12 + $0x3a8] sm:$0xf] }
 0x21d   : > { %27209 = vst [vmem:[#allocation53_spill] sm:$0xff] %v23846_v2  ;;  %18370 = vmatmul.mubr.msk.bf16.gmra.mrb[80].mxu1 %vm731_vm4, %v16152_v47  ;;  %v13492_v11 = vadd.f32 %v23131_v61, %v1296_v42  ;;  %v6831_v10 = vsel %vm21049_vm10, %v6829_v21, %v6830_v18  ;;  %v16116_v47 = vld [vmem:[%s20305_s12 + $0x36c] sm:$0x7]  ;;  %v13526_v38 = vmax.f32 %v13494_v52, 0.0  ;;  %v13495_v63 = vadd.f32 %v23131_v61, %v1299_v4  ;;  %v16119_v21 = vld [vmem:[%s20305_s12 + $0x388] sm:$0x7] }
 0x21e   : > { %27210 = vst [vmem:[#allocation54_spill] sm:$0xff] %v23857_v29  ;;  %18373 = vmatprep.mubr.msk.bf16.mxu1 %vm731_vm4, %v16153_v20  ;;  %v1297_v37 = vadd.f32 %v1256_v45, %v893_v34  ;;  %v15669_v35 = vrot.slane %v15637_v22, 9  ;;  %v4403_v9 = vrot.slane %v4401_v58, 4  ;;  %v4404_v53 = vrot.slane %v15639_v54, 5  ;;  %v15642_v45 = vld [vmem:[%s20305_s12 + $0x3ac] sm:$0x1] }
 0x21f   : > { %v6841_v20 = vrot.slane %v23855_v15, 7  ;;  %v4395_v48 = vsel %vm20288_vm2, %v15668_v44, %v4394_v59  ;;  %v13524_v18 = vmax.f32 %v13492_v11, 0.0  ;;  %v13527_v14 = vmax.f32 %v13495_v63, 0.0  ;;  %18182 = vmatmul.mubr.msk.bf16.gmra.mrb[12].mxu0 %vm731_vm4, %v15686_v26  ;;  %v15640_v59 = vld [vmem:[%s20305_s12 + $0x3a4] sm:$0xe] }
 0x220   : > { %v13493_v52 = vadd.f32 %v23131_v61, %v1297_v37  ;;  %v4398_v0 = vsel %vm20288_vm2, %v4396_v31, %v4397_v32  ;;  %v16136_v55 = vrot.slane %v16114_v12, 11  ;;  %v6836_v56 = vrot.slane %v6834_v16, 4  ;;  %v23898_v61 = vpop.f32.mrb[33].mxu1  ;;  %18185 = vmatprep.mubr.msk.bf16.mxu0 %vm731_vm4, %v15687_v57  ;;  %v16121_v11 = vld [vmem:[%s20305_s12 + $0x3a0] sm:$0xf] }
 0x221   : > { %v6837_v42 = vrot.slane %v16116_v47, 7  ;;  %v16155_v22 = vcombine.low %v6828_v7, %v6831_v10  ;;  %v4408_v44 = vrot.slane %v23878_v3, 5  ;;  %v23896_v54 = vpack.c.bf16 %v13527_v14, %v13526_v38  ;;  %v23902_v34 = vpop.f32.mrb[34].mxu1  ;;  %v15643_v38 = vld [vmem:[%s20305_s12 + $0x3c0] sm:$0xe] }
 0x222   : > { %v13525_v15 = vmax.f32 %v13493_v52, 0.0  ;;  %v16137_v31 = vrot.slane %v16117_v5, 11  ;;  %v6843_v32 = vrot.slane %v6841_v20, 4  ;;  %v6844_v4 = vrot.slane %v16119_v21, 7  ;;  %v15645_v63 = vld [vmem:[%s20305_s12 + $0x3c8] sm:$0x1] }
 0x223   : > { %27211 = vst [vmem:[#allocation60_spill] sm:$0xff] %v23896_v54  ;;  %v4402_v26 = vsel %vm20288_vm2, %v15669_v35, %v4401_v58  ;;  %v4405_v7 = vsel %vm20288_vm2, %v4403_v9, %v4404_v53  ;;  %v4415_v10 = vrot.slane %v23891_v23, 5  ;;  %v15688_v57 = vcombine.low %v4395_v48, %v4398_v0  ;;  %v23917_v37 = vpop.f32.mrb[35].mxu1  ;;  %v16122_v14 = vld [vmem:[%s20305_s12 + $0x3a4] sm:$0x7] }
 0x224   : > { %v23910_v12 = vpack.c.bf16 %v13525_v15, %v13524_v18  ;;  %v6835_v47 = vsel %vm21049_vm10, %v16136_v55, %v6834_v16  ;;  %v6838_v58 = vsel %vm21049_vm10, %v6836_v56, %v6837_v42  ;;  %v15670_v35 = vrot.slane %v15640_v59, 9  ;;  %v23922_v53 = vpop.f32.mrb[36].mxu1  ;;  %v16120_v18 = vld [vmem:[%s20305_s12 + $0x39c] sm:$0x8]  ;;  %v23931_v56 = vld [vmem:[%s20305_s12 + $0x3e0] sm:$0xf] }
 0x225   : > { %18374 = vmatmul.mubr.msk.bf16.gmra.mrb[84].mxu1 %vm731_vm4, %v16154_v36  ;;  %v4410_v9 = vrot.slane %v4408_v44, 4  ;;  %v6848_v36 = vrot.slane %v16121_v11, 7  ;;  %v15689_v48 = vcombine.low %v4402_v26, %v4405_v7  ;;  %v4411_v5 = vrot.slane %v15642_v45, 5 }
 0x226   : > { %27212 = vst [vmem:[#allocation55_spill] sm:$0xff] %v23910_v12  ;;  %18377 = vmatprep.mubr.msk.bf16.mxu1 %vm731_vm4, %v16155_v22  ;;  %v6842_v16 = vsel %vm21049_vm10, %v16137_v31, %v6841_v20  ;;  %v6845_v21 = vsel %vm21049_vm10, %v6843_v32, %v6844_v4  ;;  %v15671_v52 = vrot.slane %v15643_v38, 9  ;;  %v4417_v0 = vrot.slane %v4415_v10, 4  ;;  %v23934_v22 = vld [vmem:[%s20305_s12 + $0x3fc] sm:$0xf]  ;;  %v23937_v32 = vpop.f32.mrb[37].mxu1 }
 0x227   : > { %v4418_v55 = vrot.slane %v15645_v63, 5  ;;  %v16156_v42 = vcombine.low %v6835_v47, %v6838_v58  ;;  %18186 = vmatmul.mubr.msk.bf16.gmra.mrb[16].mxu0 %vm731_vm4, %v15688_v57  ;;  %v16157_v59 = vcombine.low %v6842_v16, %v6845_v21  ;;  %v16138_v20 = vrot.slane %v16120_v18, 11  ;;  %v23945_v7 = vpop.f32.mrb[38].mxu1  ;;  %v15646_v47 = vld [vmem:[%s20305_s12 + $0x3dc] sm:$0xe] }
 0x228   : > { %v6850_v15 = vrot.slane %v6848_v36, 4  ;;  %v6851_v31 = vrot.slane %v16122_v14, 7  ;;  %18189 = vmatprep.mubr.msk.bf16.mxu0 %vm731_vm4, %v15689_v48  ;;  %v4409_v4 = vsel %vm20288_vm2, %v15670_v35, %v4408_v44  ;;  %v4412_v11 = vsel %vm20288_vm2, %v4410_v9, %v4411_v5  ;;  %v15648_v38 = vld [vmem:[%s20305_s12 + $0x3e4] sm:$0x1]  ;;  %v15649_v44 = vld [vmem:[%s20305_s12 + $0x3f8] sm:$0xe] }
 0x229   : > { %v4422_v26 = vrot.slane %v23931_v56, 5  ;;  %v4416_v45 = vsel %vm20288_vm2, %v15671_v52, %v4415_v10  ;;  %v4419_v57 = vsel %vm20288_vm2, %v4417_v0, %v4418_v55  ;;  %v4429_v63 = vrot.slane %v23934_v22, 5  ;;  %v15651_v58 = vld [vmem:[%s20305_s12 + $0x400] sm:$0x1]  ;;  %v23957_v35 = vpop.f32.mrb[39].mxu1 }
 0x22a   : > { %v15690_v9 = vcombine.low %v4409_v4, %v4412_v11  ;;  %v6849_v10 = vsel %vm21049_vm10, %v16138_v20, %v6848_v36  ;;  %v6852_v48 = vsel %vm21049_vm10, %v6850_v15, %v6851_v31  ;;  %v23964_v5 = vpop.f32.mrb[40].mxu1  ;;  %v15691_v16 = vcombine.low %v4416_v45, %v4419_v57  ;;  %v23970_v36 = vld [vmem:[%s20305_s12 + $0x434] sm:$0xf] }
 0x22b   : > { %v15672_v21 = vrot.slane %v15646_v47, 9  ;;  %v4424_v18 = vrot.slane %v4422_v26, 4  ;;  %v4425_v14 = vrot.slane %v15648_v38, 5  ;;  %v15673_v52 = vrot.slane %v15649_v44, 9  ;;  %v23973_v20 = vpop.f32.mrb[41].mxu1 }
 0x22c   : > { %v4431_v0 = vrot.slane %v4429_v63, 4  ;;  %v4432_v55 = vrot.slane %v15651_v58, 5  ;;  %v23981_v11 = vpop.f32.mrb[42].mxu1  ;;  %v15652_v47 = vld [vmem:[%s20305_s12 + $0x414] sm:$0xe]  ;;  %v4443_v44 = vrot.slane %v23970_v36, 5 }
 0x22d   : > { %18378 = vmatmul.mubr.msk.bf16.gmra.mrb[88].mxu1 %vm731_vm4, %v16156_v42  ;;  %v23967_v42 = vld [vmem:[%s20305_s12 + $0x418] sm:$0xf]  ;;  %v4423_v15 = vsel %vm20288_vm2, %v15672_v21, %v4422_v26  ;;  %v4426_v31 = vsel %vm20288_vm2, %v4424_v18, %v4425_v14  ;;  %v4430_v45 = vsel %vm20288_vm2, %v15673_v52, %v4429_v63  ;;  %v15654_v38 = vld [vmem:[%s20305_s12 + $0x41c] sm:$0x1]  ;;  %v15655_v26 = vld [vmem:[%s20305_s12 + $0x430] sm:$0xe] }
 0x22e   : > { %18381 = vmatprep.mubr.msk.bf16.mxu1 %vm731_vm4, %v16157_v59  ;;  %v16158_v59 = vcombine.low %v6849_v10, %v6852_v48  ;;  %v4436_v4 = vrot.slane %v23967_v42, 5  ;;  %v4433_v57 = vsel %vm20288_vm2, %v4431_v0, %v4432_v55  ;;  %v15657_v58 = vld [vmem:[%s20305_s12 + $0x438] sm:$0x1]  ;;  %v15692_v10 = vcombine.low %v4423_v15, %v4426_v31  ;;  %v27213_v48 = vld [vmem:[#allocation5_spill] sm:$0xff] }
 0x22f   : > { %18190 = vmatmul.mubr.msk.bf16.gmra.mrb[20].mxu0 %vm731_vm4, %v15690_v9  ;;  %v23993_v9 = vpop.f32.mrb[43].mxu1  ;;  %v15693_v63 = vcombine.low %v4430_v45, %v4433_v57  ;;  %v15674_v21 = vrot.slane %v15652_v47, 9  ;;  %v4439_v14 = vrot.slane %v15654_v38, 5  ;;  %v15675_v52 = vrot.slane %v15655_v26, 9  ;;  %v20108_v57 = vld [vmem:[%s26588_s1 + $0xf8] sm:$0xff]  }
 0x230   : > { %18193 = vmatprep.mubr.msk.bf16.mxu0 %vm731_vm4, %v15691_v16  ;;  %v23997_v16 = vpop.f32.mrb[44].mxu1  ;;  %v4438_v18 = vrot.slane %v4436_v4, 4  ;;  %v4445_v0 = vrot.slane %v4443_v44, 4  ;;  %v4446_v55 = vrot.slane %v15657_v58, 5  ;;  %v15658_v58 = vld [vmem:[%s20305_s12 + $0x44c] sm:$0xe] }
 0x231   : > { %v24003_v54 = vpop.f32.mrb[45].mxu1  ;;  %v4437_v15 = vsel %vm20288_vm2, %v15674_v21, %v4436_v4  ;;  %v4444_v38 = vsel %vm20288_vm2, %v15675_v52, %v4443_v44  ;;  %v27214_v4 = vld [vmem:[#allocation6_spill] sm:$0xff]  ;;  %v15676_v52 = vrot.slane %v15658_v58, 9  ;;  %v27216_v58 = vld [vmem:[#allocation8_spill] sm:$0xff] }
 0x232   : > { %v4440_v31 = vsel %vm20288_vm2, %v4438_v18, %v4439_v14  ;;  %v24014_v47 = vpop.f32.mrb[46].mxu1  ;;  %v4447_v26 = vsel %vm20288_vm2, %v4445_v0, %v4446_v55  ;;  %v27215_v18 = vld [vmem:[#allocation7_spill] sm:$0xff] }
 0x233   : > { %v15694_v21 = vcombine.low %v4437_v15, %v4440_v31  ;;  %v15695_v44 = vcombine.low %v4444_v38, %v4447_v26  ;;  %v24034_v55 = vld [vmem:[%s26588_s1 + $0x100] sm:$0xff]   ;;  %v15715_v26 = vld [vmem:[%s20305_s12 + $0x2b0] sm:$0xf] }
 0x235   : > { %18382 = vmatmul.mubr.msk.bf16.gmra.mrb[92].mxu1 %vm731_vm4, %v16158_v59  ;;  %v24000_v59 = vld [vmem:[%s20305_s12 + $0x450] sm:$0xf] }
 0x236   : > { %18389 = vmatprep.mubr.msk.bf16.mxu1 %vm731_vm4, %v27213_v48  ;;  %v4450_v45 = vrot.slane %v24000_v59, 5  ;;  %v16202_v48 = vld [vmem:[%s20305_s12 + $0x220] sm:$0x8] }
 0x237   : > { %18194 = vmatmul.mubr.msk.bf16.gmra.mrb[24].mxu0 %vm731_vm4, %v15692_v10  ;;  %v15660_v10 = vld [vmem:[%s20305_s12 + $0x454] sm:$0x1] }
 0x238   : > { %18197 = vmatprep.mubr.msk.bf16.mxu0 %vm731_vm4, %v15693_v63  ;;  %v24024_v63 = vpop.f32.mrb[47].mxu1  ;;  %v4452_v12 = vrot.slane %v4450_v45, 4  ;;  %v4453_v0 = vrot.slane %v15660_v10, 5 }
 0x239   : > { %v24029_v14 = vpop.f32.mrb[48].mxu1 }
 0x23a   : > { %v24037_v15 = vpop.f32.mrb[49].mxu1  ;;  %v4454_v31 = vsel %vm20288_vm2, %v4452_v12, %v4453_v0  ;;  %v20197_v12 = vld [vmem:[%s20305_s12 + $0x2ac] sm:$0xf] }
 0x23b   : > { %v24045_v38 = vpop.f32.mrb[50].mxu1  ;;  %v15716_v0 = vld [vmem:[%s20305_s12 + $0x2cc] sm:$0xf] }
 0x23c   : > { %v15736_v30 = vcombine.low %v20198_v39, %v15716_v0  ;;  %v15719_v39 = vld [vmem:[%s20305_s12 + $0x320] sm:$0xf] }
 0x23d   : > { %18390 = vmatmul.mubr.msk.bf16.vlgmr.msra.gmra.mrb[64].mxu1 %vm731_vm4, %v27214_v4  ;;  %v24088_v0 = vld [vmem:[%s26588_s1 + $0x140] sm:$0xff]  }
 0x23e   : > { %18393 = vmatprep.mubr.msk.bf16.mxu1 %vm731_vm4, %v27215_v18  ;;  %18422 = vmatpush3.bf16.msra.mxu1 %v23513_v8  ;;  %v4451_v8 = vsel %vm20288_vm2, %v15676_v52, %v4450_v45  ;;  %v27237_v18 = vld [vmem:[#allocation16_spill] sm:$0xff] }
 0x23f   : > { %18423 = vmatprep.subr.bf16.mxu1 %v20108_v57  ;;  %18198 = vmatmul.mubr.msk.bf16.gmra.mrb[28].mxu0 %vm731_vm4, %v15694_v21  ;;  %v15696_v10 = vcombine.low %v4451_v8, %v4454_v31  ;;  %v27218_v21 = vld [vmem:[#allocation9_spill] sm:$0xff]  ;;  %v27222_v31 = vld [vmem:[#allocation10_spill] sm:$0xff] }
 0x240   : > { %18201 = vmatprep.mubr.msk.bf16.mxu0 %vm731_vm4, %v15695_v44  ;;  %v15735_v44 = vcombine.low %v20197_v12, %v15715_v26  ;;  %v15717_v8 = vld [vmem:[%s20305_s12 + $0x2e8] sm:$0xf]  ;;  %v27224_v26 = vld [vmem:[#allocation11_spill] sm:$0xff]  ;;  %v20199_v12 = vld [vmem:[%s20305_s12 + $0x2e4] sm:$0xf] }
 0x242   : > { %18424 = vmatpush3.bf16.msra.mxu1 %v20108_v57  ;;  %v24050_v57 = vpop.f32.mrb[51].mxu1 }
 0x243   : > { %18457 = vmatprep.subr.bf16.mxu1 %v24034_v55  ;;  %27217 = vst [vmem:[#allocation57_spill] sm:$0xff] %v24050_v57  ;;  %v24054_v45 = vpop.f32.mrb[52].mxu1 }
 0x244   : > { %27219 = vst [vmem:[#allocation59_spill] sm:$0xff] %v24054_v45  ;;  %v24058_v52 = vpop.f32.mrb[53].mxu1 }
 0x245   : > { %18394 = vmatmul.mubr.msk.bf16.gmra.mrb[68].mxu1 %vm731_vm4, %v27216_v58  ;;  %27220 = vst [vmem:[#allocation62_spill] sm:$0xff] %v24058_v52  ;;  %v24062_v2 = vpop.f32.mrb[54].mxu1  ;;  %v15739_v58 = vcombine.low %v23501_v6, %v15719_v39  ;;  %v27236_v39 = vld [vmem:[#allocation15_spill] sm:$0xff] }
 0x246   : > { %18397 = vmatprep.mubr.msk.bf16.mxu1 %vm731_vm4, %v27218_v21  ;;  %27221 = vst [vmem:[#allocation68_spill] sm:$0xff] %v24062_v2  ;;  %v24067_v29 = vpop.f32.mrb[55].mxu1 }
 0x247   : > { %18202 = vmatmul.mubr.msk.bf16.gmra.mrb[32].mxu0 %vm731_vm4, %v15696_v10  ;;  %27223 = vst [vmem:[#allocation63_spill] sm:$0xff] %v24067_v29  ;;  %v24072_v10 = vpop.f32.mrb[56].mxu1  ;;  %v9808_v29 = vld [vmem:[%s20305_s12 + $0x78] sm:$0xe] }
 0x248   : > { %18209 = vmatprep.mubr.msk.bf16.mxu0 %vm731_vm4, %v15735_v44  ;;  %27225 = vst [vmem:[#allocation70_spill] sm:$0xff] %v24072_v10  ;;  %v15737_v44 = vcombine.low %v20199_v12, %v15717_v8  ;;  %v24082_v21 = vpop.f32.mrb[57].mxu1  ;;  %v27228_v12 = vld [vmem:[#allocation12_spill] sm:$0xff] }
 0x249   : > { %27226 = vst [vmem:[#allocation65_spill] sm:$0xff] %v24082_v21  ;;  %v24090_v8 = vpop.f32.mrb[58].mxu1  ;;  %v9805_v21 = vld [vmem:[%s20305_s12 + $0x5c] sm:$0xe]  ;;  %v16329_v10 = vld [vmem:[%s20305_s12 + $0x448] sm:$0xf] }
 0x24a   : > { %27227 = vst [vmem:[#allocation66_spill] sm:$0xff] %v24090_v8 }
 0x24d   : > { %18398 = vmatmul.mubr.msk.bf16.gmra.mrb[72].mxu1 %vm731_vm4, %v27222_v31  ;;  %v15718_v31 = vld [vmem:[%s20305_s12 + $0x304] sm:$0xf] }
 0x24e   : > { %18401 = vmatprep.mubr.msk.bf16.mxu1 %vm731_vm4, %v27224_v26 }
 0x24f   : > { %18210 = vmatmul.mubr.msk.bf16.vlgmr.msra.gmra.mrb[4].mxu0 %vm731_vm4, %v15736_v30  ;;  %v15738_v30 = vcombine.low %v23336_v25, %v15718_v31  ;;  %v15720_v25 = vld [vmem:[%s20305_s12 + $0x33c] sm:$0xf] }
 0x250   : > { %18566 = vmatpush3.bf16.msra.mxu0 %v23780_v60  ;;  %18213 = vmatprep.mubr.msk.bf16.mxu0 %vm731_vm4, %v15737_v44  ;;  %v24094_v60 = vpop.f32.mrb[59].mxu1  ;;  %v27230_v44 = vld [vmem:[#allocation13_spill] sm:$0xff] }
 0x251   : > { %18567 = vmatprep.subr.bf16.mxu0 %v20106_v1  ;;  %27229 = vst [vmem:[#allocation71_spill] sm:$0xff] %v24094_v60  ;;  %v24099_v26 = vpop.f32.mrb[60].mxu1  ;;  %v16327_v60 = vld [vmem:[%s20305_s12 + $0x430] sm:$0x7] }
 0x252   : > { %27231 = vst [vmem:[#allocation64_spill] sm:$0xff] %v24099_v26  ;;  %v24426_v26 = vld [vmem:[%s20305_s12 + $0x60] sm:$0xf] }
 0x254   : > { %18568 = vmatpush3.bf16.msra.mxu0 %v20106_v1  ;;  %v15740_v1 = vcombine.low %v23517_v19, %v15720_v25  ;;  %v27238_v25 = vld [vmem:[#allocation17_spill] sm:$0xff] }
 0x255   : > { %18402 = vmatmul.mubr.msk.bf16.gmra.mrb[76].mxu1 %vm731_vm4, %v27228_v12  ;;  %18601 = vmatprep.subr.bf16.mxu0 %v24088_v0  ;;  %v24104_v12 = vpop.f32.mrb[61].mxu1 }
 0x256   : > { %18405 = vmatprep.mubr.msk.bf16.mxu1 %vm731_vm4, %v27230_v44  ;;  %27232 = vst [vmem:[#allocation25_spill] sm:$0xff] %v24104_v12  ;;  %v24108_v31 = vpop.f32.mrb[62].mxu1  ;;  %v15721_v44 = vld [vmem:[%s20305_s12 + $0x358] sm:$0xf] }
 0x257   : > { %18214 = vmatmul.mubr.msk.bf16.gmra.mrb[8].mxu0 %vm731_vm4, %v15738_v30  ;;  %27233 = vst [vmem:[#allocation23_spill] sm:$0xff] %v24108_v31  ;;  %v24113_v6 = vpop.f32.mrb[63].mxu1  ;;  %v15741_v30 = vcombine.low %v23709_v27, %v15721_v44  ;;  %v15743_v27 = vcombine.low %v23821_v49, %v15723_v28  ;;  %v27239_v28 = vld [vmem:[#allocation18_spill] sm:$0xff]  ;;  %v27240_v49 = vld [vmem:[#allocation19_spill] sm:$0xff] }
 0x258   : > { %18217 = vmatprep.mubr.msk.bf16.mxu0 %vm731_vm4, %v15739_v58  ;;  %27235 = vst [vmem:[#allocation74_spill] sm:$0xff] %v24113_v6  ;;  %v15722_v58 = vld [vmem:[%s20305_s12 + $0x374] sm:$0xf] }
 0x259   : > { %v15742_v19 = vcombine.low %v23721_v50, %v15722_v58  ;;  %v16203_v58 = vld [vmem:[%s20305_s12 + $0x224] sm:$0xf] }
 0x25d   : > { %18406 = vmatmul.mubr.msk.bf16.gmra.mrb[80].mxu1 %vm731_vm4, %v27234_v40  ;;  %v16200_v40 = vld [vmem:[%s20305_s12 + $0x208] sm:$0xf] }
 0x25e   : > { %18409 = vmatprep.mubr.msk.bf16.mxu1 %vm731_vm4, %v27236_v39  ;;  %v7467_v44 = vrot.slane %v16200_v40, 7  ;;  %v16201_v39 = vld [vmem:[%s20305_s12 + $0x20c] sm:$0x7] }
 0x25f   : > { %18218 = vmatmul.mubr.msk.bf16.gmra.mrb[12].mxu0 %vm731_vm4, %v15740_v1  ;;  %v16199_v1 = vld [vmem:[%s20305_s12 + $0x204] sm:$0x8]  ;;  %v7470_v50 = vrot.slane %v16201_v39, 7 }
 0x260   : > { %18221 = vmatprep.mubr.msk.bf16.mxu0 %vm731_vm4, %v15741_v30  ;;  %v15724_v30 = vld [vmem:[%s20305_s12 + $0x3ac] sm:$0xf]  ;;  %v16247_v4 = vrot.slane %v16199_v1, 11 }
 0x261   : > { %v15744_v40 = vcombine.low %v23878_v3, %v15724_v30  ;;  %v16207_v3 = vld [vmem:[%s20305_s12 + $0x244] sm:$0x7] }
 0x262   : > { %v7468_v1 = vsel %vm21049_vm10, %v16247_v4, %v7467_v44  ;;  %v15726_v30 = vld [vmem:[%s20305_s12 + $0x3e4] sm:$0xf]  ;;  %v16249_v4 = vrot.slane %v16205_v43, 11 }
 0x265   : > { %18410 = vmatmul.mubr.msk.bf16.gmra.mrb[84].mxu1 %vm731_vm4, %v27237_v18  ;;  %v7469_v18 = vrot.slane %v7467_v44, 4  ;;  %v7484_v44 = vrot.slane %v16207_v3, 7  ;;  %v16208_v3 = vld [vmem:[%s20305_s12 + $0x258] sm:$0x8] }
 0x266   : > { %18413 = vmatprep.mubr.msk.bf16.mxu1 %vm731_vm4, %v27238_v25  ;;  %v15725_v25 = vld [vmem:[%s20305_s12 + $0x3c8] sm:$0xf] }
 0x267   : > { %18222 = vmatmul.mubr.msk.bf16.gmra.mrb[16].mxu0 %vm731_vm4, %v15742_v19  ;;  %v7474_v19 = vrot.slane %v16203_v58, 7  ;;  %v7471_v39 = vsel %vm21049_vm10, %v7469_v18, %v7470_v50  ;;  %v16209_v50 = vld [vmem:[%s20305_s12 + $0x25c] sm:$0xf] }
 0x268   : > { %18225 = vmatprep.mubr.msk.bf16.mxu0 %vm731_vm4, %v15743_v27  ;;  %v15745_v27 = vcombine.low %v23891_v23, %v15725_v25  ;;  %v16267_v58 = vcombine.low %v7468_v1, %v7471_v39  ;;  %v7477_v25 = vrot.slane %v16204_v46, 7 }
 0x269   : > { %v7476_v23 = vrot.slane %v7474_v19, 4 }
 0x26b   : > { %v7478_v43 = vsel %vm21049_vm10, %v7476_v23, %v7477_v25  ;;  %v15728_v23 = vld [vmem:[%s20305_s12 + $0x41c] sm:$0xf] }
 0x26d   : > { %18414 = vmatmul.mubr.msk.bf16.gmra.mrb[88].mxu1 %vm731_vm4, %v27239_v28  ;;  %v7481_v28 = vrot.slane %v16206_v33, 7  ;;  %v15727_v33 = vld [vmem:[%s20305_s12 + $0x400] sm:$0xf] }
 0x26e   : > { %18417 = vmatprep.mubr.msk.bf16.mxu1 %vm731_vm4, %v27240_v49  ;;  %v16248_v49 = vrot.slane %v16202_v48, 11  ;;  %v15746_v48 = vcombine.low %v23931_v56, %v15726_v30  ;;  %v16210_v56 = vld [vmem:[%s20305_s12 + $0x260] sm:$0x7]  ;;  %v7495_v30 = vrot.slane %v16212_v13, 7  ;;  %v16215_v13 = vld [vmem:[%s20305_s12 + $0x294] sm:$0xf] }
 0x26f   : > { %18226 = vmatmul.mubr.msk.bf16.gmra.mrb[20].mxu0 %vm731_vm4, %v15744_v40  ;;  %v7483_v18 = vrot.slane %v7481_v28, 4  ;;  %v7488_v40 = vrot.slane %v16209_v50, 7  ;;  %v7482_v1 = vsel %vm21049_vm10, %v16249_v4, %v7481_v28 }
 0x270   : > { %18229 = vmatprep.mubr.msk.bf16.mxu0 %vm731_vm4, %v15745_v27  ;;  %v7475_v46 = vsel %vm21049_vm10, %v16248_v49, %v7474_v19  ;;  %v15747_v27 = vcombine.low %v23934_v22, %v15727_v33  ;;  %v16213_v49 = vld [vmem:[%s20305_s12 + $0x27c] sm:$0x7]  ;;  %v16250_v22 = vrot.slane %v16208_v3, 11  ;;  %v7491_v33 = vrot.slane %v16210_v56, 7 }
 0x271   : > { %v7485_v39 = vsel %vm21049_vm10, %v7483_v18, %v7484_v44  ;;  %v16268_v19 = vcombine.low %v7475_v46, %v7478_v43  ;;  %v7490_v50 = vrot.slane %v7488_v40, 4  ;;  %v7497_v4 = vrot.slane %v7495_v30, 4  ;;  %v20122_v44 = vld [vmem:[%s26588_s1 + $0x108] sm:$0xff]   ;;  %v15729_v46 = vld [vmem:[%s20305_s12 + $0x438] sm:$0xf] }
 0x272   : > { %v16269_v25 = vcombine.low %v7482_v1, %v7485_v39  ;;  %v7498_v18 = vrot.slane %v16213_v49, 7  ;;  %v16218_v43 = vld [vmem:[%s20305_s12 + $0x2b0] sm:$0xf]  ;;  %v7502_v39 = vrot.slane %v16215_v13, 7  ;;  %v15749_v3 = vcombine.low %v23970_v36, %v15729_v46  ;;  %v16216_v49 = vld [vmem:[%s20305_s12 + $0x298] sm:$0x7] }
 0x273   : > { %v7492_v1 = vsel %vm21049_vm10, %v7490_v50, %v7491_v33  ;;  %v7505_v33 = vrot.slane %v16216_v49, 7  ;;  %v16221_v13 = vld [vmem:[%s20305_s12 + $0x2cc] sm:$0xf]  ;;  %v16224_v46 = vld [vmem:[%s20305_s12 + $0x2e8] sm:$0xf] }
 0x274   : > { %v7504_v50 = vrot.slane %v7502_v39, 4  ;;  %v16223_v49 = vld [vmem:[%s20305_s12 + $0x2e4] sm:$0x8] }
 0x275   : > { %18418 = vmatmul.mubr.msk.bf16.gmra.mrb[92].mxu1 %vm731_vm4, %v27241_v62  ;;  %v24398_v62 = vld [vmem:[%s20305_s12 + $0x410] sm:$0xf] }
 0x276   : > { %18425 = vmatprep.mubr.msk.bf16.mxu1 %vm731_vm4, %v16267_v58  ;;  %v16211_v58 = vld [vmem:[%s20305_s12 + $0x274] sm:$0x8] }
 0x277   : > { %18230 = vmatmul.mubr.msk.bf16.gmra.mrb[24].mxu0 %vm731_vm4, %v15746_v48  ;;  %v16251_v28 = vrot.slane %v16211_v58, 11  ;;  %v15748_v48 = vcombine.low %v23967_v42, %v15728_v23  ;;  %v7499_v42 = vsel %vm21049_vm10, %v7497_v4, %v7498_v18  ;;  %v16214_v58 = vld [vmem:[%s20305_s12 + $0x290] sm:$0x8]  ;;  %v16217_v23 = vld [vmem:[%s20305_s12 + $0x2ac] sm:$0x8] }
 0x278   : > { %18233 = vmatprep.mubr.msk.bf16.mxu0 %vm731_vm4, %v15747_v27  ;;  %v7489_v27 = vsel %vm21049_vm10, %v16250_v22, %v7488_v40  ;;  %v24202_v40 = vld [vmem:[%s26588_s1 + $0x110] sm:$0xff]   ;;  %v16252_v22 = vrot.slane %v16214_v58, 11  ;;  %v7523_v58 = vrot.slane %v16224_v46, 7 }
 0x279   : > { %v7496_v56 = vsel %vm21049_vm10, %v16251_v28, %v7495_v30  ;;  %v16270_v36 = vcombine.low %v7489_v27, %v7492_v1  ;;  %v15730_v30 = vld [vmem:[%s20305_s12 + $0x454] sm:$0xf]  ;;  %v16253_v28 = vrot.slane %v16217_v23, 11  ;;  %v7516_v27 = vrot.slane %v16221_v13, 7  ;;  %v20109_v1 = vld [vmem:[%s20305_s12] sm:$0xff]  }
 0x27a   : > { %v16225_v23 = vld [vmem:[%s20305_s12 + $0x2ec] sm:$0x7] }
 0x27d   : > { %18426 = vmatmul.mubr.msk.bf16.vlgmr.msra.gmra.mrb[64].mxu1 %vm731_vm4, %v16268_v19  ;;  %v7509_v19 = vrot.slane %v16218_v43, 7  ;;  %v15750_v43 = vcombine.low %v24000_v59, %v15730_v30  ;;  %v16222_v59 = vld [vmem:[%s20305_s12 + $0x2d0] sm:$0x7]  ;;  %v7518_v30 = vrot.slane %v7516_v27, 4 }
 0x27e   : > { %18429 = vmatprep.mubr.msk.bf16.mxu1 %vm731_vm4, %v16269_v25  ;;  %18458 = vmatpush3.bf16.msra.mxu1 %v24034_v55  ;;  %v16219_v55 = vld [vmem:[%s20305_s12 + $0x2b4] sm:$0x7]  ;;  %v16271_v25 = vcombine.low %v7496_v56, %v7499_v42  ;;  %v16220_v42 = vld [vmem:[%s20305_s12 + $0x2c8] sm:$0x8] }
 0x27f   : > { %18459 = vmatprep.subr.bf16.mxu1 %v20122_v44  ;;  %18234 = vmatmul.mubr.msk.bf16.gmra.mrb[28].mxu0 %vm731_vm4, %v15748_v48  ;;  %v7511_v4 = vrot.slane %v7509_v19, 4  ;;  %v7512_v18 = vrot.slane %v16219_v55, 7  ;;  %v7506_v48 = vsel %vm21049_vm10, %v7504_v50, %v7505_v33  ;;  %v7526_v50 = vrot.slane %v16225_v23, 7  ;;  %v16227_v33 = vld [vmem:[%s20305_s12 + $0x304] sm:$0xf] }
 0x280   : > { %18237 = vmatprep.mubr.msk.bf16.mxu0 %vm731_vm4, %v15749_v3  ;;  %v7510_v3 = vsel %vm21049_vm10, %v16253_v28, %v7509_v19  ;;  %v16255_v19 = vrot.slane %v16223_v49, 11  ;;  %v16230_v28 = vld [vmem:[%s20305_s12 + $0x320] sm:$0xf]  ;;  %v7530_v46 = vrot.slane %v16227_v33, 7 }
 0x281   : > { %v7513_v56 = vsel %vm21049_vm10, %v7511_v4, %v7512_v18  ;;  %v20111_v4 = vld [vmem:[%s20305_s12 + $0x1c] sm:$0xff]  }
 0x282   : > { %18460 = vmatpush3.bf16.msra.mxu1 %v20122_v44  ;;  %v7503_v44 = vsel %vm21049_vm10, %v16252_v22, %v7502_v39  ;;  %v16273_v55 = vcombine.low %v7510_v3, %v7513_v56  ;;  %v7525_v22 = vrot.slane %v7523_v58, 4  ;;  %v16228_v3 = vld [vmem:[%s20305_s12 + $0x308] sm:$0x7]  ;;  %v7537_v56 = vrot.slane %v16230_v28, 7 }
 0x283   : > { %18493 = vmatprep.subr.bf16.mxu1 %v24202_v40  ;;  %v16272_v39 = vcombine.low %v7503_v44, %v7506_v48  ;;  %v7524_v44 = vsel %vm21049_vm10, %v16255_v19, %v7523_v58  ;;  %v16233_v19 = vld [vmem:[%s20305_s12 + $0x33c] sm:$0xf] }
 0x284   : > { %v7527_v48 = vsel %vm21049_vm10, %v7525_v22, %v7526_v50  ;;  %v16236_v22 = vld [vmem:[%s20305_s12 + $0x358] sm:$0xf]  ;;  %v24259_v50 = vld [vmem:[%s26588_s1 + $0x150] sm:$0xff]  }
 0x285   : > { %18430 = vmatmul.mubr.msk.bf16.gmra.mrb[68].mxu1 %vm731_vm4, %v16270_v36  ;;  %v16254_v36 = vrot.slane %v16220_v42, 11  ;;  %v16229_v42 = vld [vmem:[%s20305_s12 + $0x31c] sm:$0x8]  ;;  %v16275_v23 = vcombine.low %v7524_v44, %v7527_v48  ;;  %v16232_v44 = vld [vmem:[%s20305_s12 + $0x338] sm:$0x8] }
 0x286   : > { %18433 = vmatprep.mubr.msk.bf16.mxu1 %vm731_vm4, %v16271_v25  ;;  %v7519_v25 = vrot.slane %v16222_v59, 7  ;;  %v16231_v59 = vld [vmem:[%s20305_s12 + $0x324] sm:$0x7]  ;;  %v16234_v48 = vld [vmem:[%s20305_s12 + $0x340] sm:$0x7] }
 0x287   : > { %18238 = vmatmul.mubr.msk.bf16.gmra.mrb[32].mxu0 %vm731_vm4, %v15750_v43  ;;  %v7517_v18 = vsel %vm21049_vm10, %v16254_v36, %v7516_v27  ;;  %v20112_v43 = vld [vmem:[%s20305_s12 + $0x38] sm:$0xff]   ;;  %v20119_v27 = vld [vmem:[%s26588_s1 + $0x148] sm:$0xff]   ;;  %v16257_v36 = vrot.slane %v16229_v42, 11 }
 0x288   : > { %18569 = vmatprep.mubr.msk.bf16.mxu0 %vm731_vm4, %v20109_v1  ;;  %v7520_v13 = vsel %vm21049_vm10, %v7518_v30, %v7519_v25  ;;  %v16226_v1 = vld [vmem:[%s20305_s12 + $0x300] sm:$0x8]  ;;  %v7539_v30 = vrot.slane %v7537_v56, 4  ;;  %v7540_v25 = vrot.slane %v16231_v59, 7 }
 0x289   : > { %v16274_v49 = vcombine.low %v7517_v18, %v7520_v13  ;;  %v16256_v58 = vrot.slane %v16226_v1, 11  ;;  %v20114_v18 = vld [vmem:[%s20305_s12 + $0x70] sm:$0xff]   ;;  %v7538_v13 = vsel %vm21049_vm10, %v16257_v36, %v7537_v56  ;;  %v7551_v1 = vrot.slane %v16236_v22, 7 }
 0x28a   : > { %v16258_v56 = vrot.slane %v16232_v44, 11  ;;  %v16242_v36 = vld [vmem:[%s20305_s12 + $0x390] sm:$0xf]  ;;  %v16241_v44 = vld [vmem:[%s20305_s12 + $0x38c] sm:$0x8] }
 0x28b   : > { %v7531_v33 = vsel %vm21049_vm10, %v16256_v58, %v7530_v46 }
 0x28d   : > { %18434 = vmatmul.mubr.msk.bf16.gmra.mrb[72].mxu1 %vm731_vm4, %v16272_v39  ;;  %v7532_v39 = vrot.slane %v7530_v46, 4  ;;  %v16237_v46 = vld [vmem:[%s20305_s12 + $0x35c] sm:$0x7] }
 0x28e   : > { %18437 = vmatprep.mubr.msk.bf16.mxu1 %vm731_vm4, %v16273_v55  ;;  %v7533_v55 = vrot.slane %v16228_v3, 7  ;;  %v16235_v3 = vld [vmem:[%s20305_s12 + $0x354] sm:$0x8] }
 0x28f   : > { %18570 = vmatmul.mubr.msk.bf16.vlgmr.msra.gmra.mrb[36].mxu0 %vm731_vm4, %v20111_v4  ;;  %v7544_v4 = vrot.slane %v16233_v19, 7  ;;  %v16259_v58 = vrot.slane %v16235_v3, 11 }
 0x290   : > { %18602 = vmatpush3.bf16.msra.mxu0 %v24088_v0  ;;  %18573 = vmatprep.mubr.msk.bf16.mxu0 %vm731_vm4, %v20112_v43  ;;  %v20113_v0 = vld [vmem:[%s20305_s12 + $0x54] sm:$0xff]   ;;  %v7534_v28 = vsel %vm21049_vm10, %v7532_v39, %v7533_v55  ;;  %v7541_v43 = vsel %vm21049_vm10, %v7539_v30, %v7540_v25  ;;  %v7553_v39 = vrot.slane %v7551_v1, 4  ;;  %v20115_v30 = vld [vmem:[%s20305_s12 + $0x8c] sm:$0xff]  }
 0x291   : > { %18603 = vmatprep.subr.bf16.mxu0 %v20119_v27  ;;  %v16276_v42 = vcombine.low %v7531_v33, %v7534_v28  ;;  %v16277_v59 = vcombine.low %v7538_v13, %v7541_v43  ;;  %v16239_v55 = vld [vmem:[%s20305_s12 + $0x374] sm:$0xf]  ;;  %v7545_v25 = vsel %vm21049_vm10, %v16258_v56, %v7544_v4  ;;  %v7552_v33 = vsel %vm21049_vm10, %v16259_v58, %v7551_v1  ;;  %v16240_v13 = vld [vmem:[%s20305_s12 + $0x378] sm:$0x7]  ;;  %v16302_v58 = vld [vmem:[%s20305_s12 + $0x34c] sm:$0xf] }
 0x292   : > { %v7558_v22 = vrot.slane %v16239_v55, 7  ;;  %v7565_v43 = vrot.slane %v16242_v36, 7  ;;  %v16261_v1 = vrot.slane %v16241_v44, 11 }
 0x294   : > { %18604 = vmatpush3.bf16.msra.mxu0 %v20119_v27  ;;  %v7554_v27 = vrot.slane %v16237_v46, 7  ;;  %v7567_v56 = vrot.slane %v7565_v43, 4 }
 0x295   : > { %18438 = vmatmul.mubr.msk.bf16.gmra.mrb[76].mxu1 %vm731_vm4, %v16274_v49  ;;  %18637 = vmatprep.subr.bf16.mxu0 %v24259_v50  ;;  %v7546_v49 = vrot.slane %v7544_v4, 4 }
 0x296   : > { %18441 = vmatprep.mubr.msk.bf16.mxu1 %vm731_vm4, %v16275_v23  ;;  %v7547_v23 = vrot.slane %v16234_v48, 7  ;;  %v7555_v28 = vsel %vm21049_vm10, %v7553_v39, %v7554_v27  ;;  %v16243_v48 = vld [vmem:[%s20305_s12 + $0x394] sm:$0x7]  ;;  %v20117_v39 = vld [vmem:[%s20305_s12 + $0xc4] sm:$0xff]  }
 0x297   : > { %18574 = vmatmul.mubr.msk.bf16.gmra.mrb[40].mxu0 %vm731_vm4, %v20113_v0  ;;  %v20116_v0 = vld [vmem:[%s20305_s12 + $0xa8] sm:$0xff]   ;;  %v16279_v3 = vcombine.low %v7552_v33, %v7555_v28  ;;  %v16246_v33 = vld [vmem:[%s20305_s12 + $0x3b0] sm:$0x7]  ;;  %v7982_v28 = vrot.slane %v16302_v58, 7 }
 0x298   : > { %18577 = vmatprep.mubr.msk.bf16.mxu0 %vm731_vm4, %v20114_v18  ;;  %v7548_v19 = vsel %vm21049_vm10, %v7546_v49, %v7547_v23  ;;  %v16238_v18 = vld [vmem:[%s20305_s12 + $0x370] sm:$0x8]  ;;  %v7568_v49 = vrot.slane %v16243_v48, 7  ;;  %v16245_v23 = vld [vmem:[%s20305_s12 + $0x3ac] sm:$0xf] }
 0x299   : > { %v16278_v4 = vcombine.low %v7545_v25, %v7548_v19  ;;  %v16260_v46 = vrot.slane %v16238_v18, 11  ;;  %v7572_v36 = vrot.slane %v16245_v23, 7  ;;  %v7566_v25 = vsel %vm21049_vm10, %v16261_v1, %v7565_v43  ;;  %v16301_v18 = vld [vmem:[%s20305_s12 + $0x348] sm:$0x8]  ;;  %v16308_v1 = vld [vmem:[%s20305_s12 + $0x384] sm:$0xf] }
 0x29a   : > { %v7569_v19 = vsel %vm21049_vm10, %v7567_v56, %v7568_v49  ;;  %v16349_v43 = vrot.slane %v16301_v18, 11  ;;  %v20120_v56 = vld [vmem:[%s20305_s12 + $0xfc] sm:$0xff]  }
 0x29b   : > { %v7559_v27 = vsel %vm21049_vm10, %v16260_v46, %v7558_v22  ;;  %v16281_v44 = vcombine.low %v7566_v25, %v7569_v19  ;;  %v7984_v46 = vrot.slane %v7982_v28, 4  ;;  %v16306_v25 = vld [vmem:[%s20305_s12 + $0x36c] sm:$0x7]  ;;  %v7996_v19 = vrot.slane %v16308_v1, 7 }
 0x29d   : > { %18442 = vmatmul.mubr.msk.bf16.gmra.mrb[80].mxu1 %vm731_vm4, %v16276_v42  ;;  %v7560_v42 = vrot.slane %v7558_v22, 4 }
 0x29e   : > { %18445 = vmatprep.mubr.msk.bf16.mxu1 %vm731_vm4, %v16277_v59  ;;  %v7561_v59 = vrot.slane %v16240_v13, 7  ;;  %v16303_v13 = vld [vmem:[%s20305_s12 + $0x350] sm:$0x7] }
 0x29f   : > { %18578 = vmatmul.mubr.msk.bf16.gmra.mrb[44].mxu0 %vm731_vm4, %v20115_v30  ;;  %v20118_v30 = vld [vmem:[%s20305_s12 + $0xe0] sm:$0xff]  }
 0x2a0   : > { %18581 = vmatprep.mubr.msk.bf16.mxu0 %vm731_vm4, %v20116_v0  ;;  %v7562_v55 = vsel %vm21049_vm10, %v7560_v42, %v7561_v59  ;;  %v16244_v0 = vld [vmem:[%s20305_s12 + $0x3a8] sm:$0x8]  ;;  %v7985_v42 = vrot.slane %v16303_v13, 7 }
 0x2a1   : > { %v16280_v22 = vcombine.low %v7559_v27, %v7562_v55  ;;  %v16262_v48 = vrot.slane %v16244_v0, 11  ;;  %v16305_v59 = vld [vmem:[%s20305_s12 + $0x368] sm:$0xf]  ;;  %v7983_v27 = vsel %vm21049_vm10, %v16349_v43, %v7982_v28  ;;  %v16307_v0 = vld [vmem:[%s20305_s12 + $0x380] sm:$0x8] }
 0x2a2   : > { %v7989_v58 = vrot.slane %v16305_v59, 7  ;;  %v7986_v55 = vsel %vm21049_vm10, %v7984_v46, %v7985_v42  ;;  %v16311_v28 = vld [vmem:[%s20305_s12 + $0x3a0] sm:$0xf]  ;;  %v16314_v43 = vld [vmem:[%s20305_s12 + $0x3bc] sm:$0xf]  ;;  %v20124_v42 = vld [vmem:[%s20305_s12 + $0x134] sm:$0xff]  }
 0x2a3   : > { %v7573_v49 = vsel %vm21049_vm10, %v16262_v48, %v7572_v36  ;;  %v16369_v18 = vcombine.low %v7983_v27, %v7986_v55  ;;  %v16351_v48 = vrot.slane %v16307_v0, 11  ;;  %v8003_v46 = vrot.slane %v16311_v28, 7  ;;  %v16315_v0 = vld [vmem:[%s20305_s12 + $0x3c0] sm:$0x7] }
 0x2a5   : > { %18446 = vmatmul.mubr.msk.bf16.gmra.mrb[84].mxu1 %vm731_vm4, %v16278_v4  ;;  %v7574_v4 = vrot.slane %v7572_v36, 4  ;;  %v7997_v27 = vsel %vm21049_vm10, %v16351_v48, %v7996_v19  ;;  %v8013_v48 = vrot.slane %v16315_v0, 7 }
 0x2a6   : > { %18449 = vmatprep.mubr.msk.bf16.mxu1 %vm731_vm4, %v16279_v3  ;;  %v7575_v3 = vrot.slane %v16246_v33, 7  ;;  %v16309_v33 = vld [vmem:[%s20305_s12 + $0x388] sm:$0x7] }
 0x2a7   : > { %18582 = vmatmul.mubr.msk.bf16.gmra.mrb[48].mxu0 %vm731_vm4, %v20117_v39  ;;  %v20123_v39 = vld [vmem:[%s20305_s12 + $0x118] sm:$0xff]  }
 0x2a8   : > { %18585 = vmatprep.mubr.msk.bf16.mxu0 %vm731_vm4, %v20118_v30  ;;  %v7576_v23 = vsel %vm21049_vm10, %v7574_v4, %v7575_v3  ;;  %v16304_v30 = vld [vmem:[%s20305_s12 + $0x364] sm:$0x8]  ;;  %v7998_v4 = vrot.slane %v7996_v19, 4  ;;  %v7999_v3 = vrot.slane %v16309_v33, 7 }
 0x2a9   : > { %v16282_v36 = vcombine.low %v7573_v49, %v7576_v23  ;;  %v16350_v13 = vrot.slane %v16304_v30, 11  ;;  %v16312_v49 = vld [vmem:[%s20305_s12 + $0x3a4] sm:$0x7]  ;;  %v8010_v23 = vrot.slane %v16314_v43, 7  ;;  %v16313_v30 = vld [vmem:[%s20305_s12 + $0x3b8] sm:$0x8] }
 0x2aa   : > { %v8000_v55 = vsel %vm21049_vm10, %v7998_v4, %v7999_v3  ;;  %v16353_v19 = vrot.slane %v16313_v30, 11  ;;  %v9796_v4 = vld [vmem:[%s20305_s12 + $0x8] sm:$0xe]  ;;  %v9798_v3 = vld [vmem:[%s20305_s12 + $0x10] sm:$0x1]  ;;  %v20132_v43 = vld [vmem:[%s26588_s1 + $0x118] sm:$0xff]  }
 0x2ab   : > { %v7990_v59 = vsel %vm21049_vm10, %v16350_v13, %v7989_v58  ;;  %v16371_v13 = vcombine.low %v7997_v27, %v8000_v55  ;;  %v20126_v27 = vld [vmem:[%s20305_s12 + $0x16c] sm:$0xff]  }
 0x2ac   : > { %v20127_v55 = vld [vmem:[%s20305_s12 + $0x188] sm:$0xff]  }
 0x2ad   : > { %18450 = vmatmul.mubr.msk.bf16.gmra.mrb[88].mxu1 %vm731_vm4, %v16280_v22  ;;  %v7991_v22 = vrot.slane %v7989_v58, 4 }
 0x2ae   : > { %18453 = vmatprep.mubr.msk.bf16.mxu1 %vm731_vm4, %v16281_v44  ;;  %v7992_v44 = vrot.slane %v16306_v25, 7  ;;  %v9797_v25 = vld [vmem:[%s20305_s12 + $0xc] sm:$0xf] }
 0x2af   : > { %18586 = vmatmul.mubr.msk.bf16.gmra.mrb[52].mxu0 %vm731_vm4, %v20120_v56  ;;  %v16310_v56 = vld [vmem:[%s20305_s12 + $0x39c] sm:$0x8]  ;;  %v9894_v28 = vrot.slane %v9797_v25, 5  ;;  %v16645_v25 = vrot.slane %v9796_v4, 9 }
 0x2b0   : > { %18589 = vmatprep.mubr.msk.bf16.mxu0 %vm731_vm4, %v20123_v39  ;;  %v7993_v1 = vsel %vm21049_vm10, %v7991_v22, %v7992_v44  ;;  %v20125_v39 = vld [vmem:[%s20305_s12 + $0x150] sm:$0xff]   ;;  %v16352_v33 = vrot.slane %v16310_v56, 11  ;;  %v8012_v22 = vrot.slane %v8010_v23, 4  ;;  %v16317_v44 = vld [vmem:[%s20305_s12 + $0x3d8] sm:$0xf] }
 0x2b1   : > { %v16370_v58 = vcombine.low %v7990_v59, %v7993_v1  ;;  %v24368_v59 = vld [vmem:[%s20305_s12 + $0x3f4] sm:$0xf]  ;;  %v8017_v30 = vrot.slane %v16317_v44, 7  ;;  %v9896_v0 = vrot.slane %v9894_v28, 4  ;;  %v24394_v44 = vld [vmem:[%s26588_s1 + $0x120] sm:$0xff]  }
 0x2b2   : > { %v16316_v56 = vld [vmem:[%s20305_s12 + $0x3d4] sm:$0x8] }
 0x2b3   : > { %v16354_v4 = vrot.slane %v16316_v56, 11  ;;  %v8019_v6 = vrot.slane %v8017_v30, 4  ;;  %v16322_v56 = vld [vmem:[%s20305_s12 + $0x40c] sm:$0x8] }
 0x2b5   : > { %18454 = vmatmul.mubr.msk.bf16.gmra.mrb[92].mxu1 %vm731_vm4, %v16282_v36  ;;  %v8005_v36 = vrot.slane %v8003_v46, 4 }
 0x2b6   : > { %18461 = vmatprep.mubr.msk.bf16.mxu1 %vm731_vm4, %v16369_v18  ;;  %v8006_v18 = vrot.slane %v16312_v49, 7  ;;  %v16318_v49 = vld [vmem:[%s20305_s12 + $0x3dc] sm:$0x7] }
 0x2b7   : > { %18590 = vmatmul.mubr.msk.bf16.gmra.mrb[56].mxu0 %vm731_vm4, %v20124_v42  ;;  %v8004_v42 = vsel %vm21049_vm10, %v16352_v33, %v8003_v46  ;;  %v8011_v46 = vsel %vm21049_vm10, %v16353_v19, %v8010_v23  ;;  %v8014_v33 = vsel %vm21049_vm10, %v8012_v22, %v8013_v48  ;;  %v9799_v19 = vld [vmem:[%s20305_s12 + $0x24] sm:$0xe]  ;;  %v9801_v22 = vld [vmem:[%s20305_s12 + $0x2c] sm:$0x1] }
 0x2b8   : > { %18593 = vmatprep.mubr.msk.bf16.mxu0 %vm731_vm4, %v20125_v39  ;;  %v8007_v1 = vsel %vm21049_vm10, %v8005_v36, %v8006_v18  ;;  %v24378_v39 = vld [vmem:[%s20305_s12 + $0x28] sm:$0xf]  ;;  %v16319_v36 = vld [vmem:[%s20305_s12 + $0x3f0] sm:$0x8]  ;;  %v16321_v18 = vld [vmem:[%s20305_s12 + $0x3f8] sm:$0x7] }
 0x2b9   : > { %v16372_v23 = vcombine.low %v8004_v42, %v8007_v1  ;;  %v24403_v48 = vld [vmem:[%s20305_s12 + $0x44] sm:$0xf]  ;;  %v16355_v31 = vrot.slane %v16319_v36, 11  ;;  %v8027_v12 = vrot.slane %v16321_v18, 7  ;;  %v9895_v42 = vsel %vm20288_vm2, %v16645_v25, %v9894_v28  ;;  %v9802_v36 = vld [vmem:[%s20305_s12 + $0x40] sm:$0xe] }
 0x2ba   : > { %v9908_v28 = vrot.slane %v24403_v48, 5  ;;  %v899_v25 = vld [vmem:[#allocation2 + $0x110] sm:$0xff]  ;;  %v9804_v18 = vld [vmem:[%s20305_s12 + $0x48] sm:$0x1] }
 0x2bd   : > { %18462 = vmatmul.mubr.msk.bf16.vlgmr.msra.gmra.mrb[64].mxu1 %vm731_vm4, %v16370_v58  ;;  %v9897_v58 = vrot.slane %v9798_v3, 5  ;;  %v8020_v3 = vrot.slane %v16318_v49, 7 }
 0x2be   : > { %18465 = vmatprep.mubr.msk.bf16.mxu1 %vm731_vm4, %v16371_v13  ;;  %18494 = vmatpush3.bf16.msra.mxu1 %v24202_v40  ;;  %v8024_v13 = vrot.slane %v24368_v59, 7  ;;  %v9901_v40 = vrot.slane %v24378_v39, 5  ;;  %v16373_v59 = vcombine.low %v8011_v46, %v8014_v33  ;;  %v16324_v39 = vld [vmem:[%s20305_s12 + $0x414] sm:$0x7]  ;;  %v24415_v46 = vld [vmem:[%s20305_s12 + $0x42c] sm:$0xf] }
 0x2bf   : > { %18495 = vmatprep.subr.bf16.mxu1 %v20132_v43  ;;  %18594 = vmatmul.mubr.msk.bf16.gmra.mrb[60].mxu0 %vm731_vm4, %v20126_v27  ;;  %v9898_v1 = vsel %vm20288_vm2, %v9896_v0, %v9897_v58  ;;  %v8031_v27 = vrot.slane %v24398_v62, 7  ;;  %v20128_v0 = vld [vmem:[%s20305_s12 + $0x1a4] sm:$0xff]   ;;  %v8018_v62 = vsel %vm21049_vm10, %v16354_v4, %v8017_v30  ;;  %v16356_v58 = vrot.slane %v16322_v56, 11 }
 0x2c0   : > { %18597 = vmatprep.mubr.msk.bf16.mxu0 %vm731_vm4, %v20127_v55  ;;  %v8026_v49 = vrot.slane %v8024_v13, 4  ;;  %v9903_v33 = vrot.slane %v9901_v40, 4  ;;  %v9904_v55 = vrot.slane %v9801_v22, 5  ;;  %v16665_v22 = vcombine.low %v9895_v42, %v9898_v1  ;;  %v24450_v1 = vld [vmem:[%s20305_s12 + $0x7c] sm:$0xf] }
 0x2c1   : > { %v8034_v48 = vrot.slane %v16324_v39, 7  ;;  %v8038_v8 = vrot.slane %v24415_v46, 7  ;;  %v8025_v30 = vsel %vm21049_vm10, %v16355_v31, %v8024_v13  ;;  %v8033_v56 = vrot.slane %v8031_v27, 4  ;;  %v9807_v13 = vld [vmem:[%s20305_s12 + $0x64] sm:$0x1] }
 0x2c2   : > { %18496 = vmatpush3.bf16.msra.mxu1 %v20132_v43  ;;  %v16646_v43 = vrot.slane %v9799_v19, 9  ;;  %v8021_v19 = vsel %vm21049_vm10, %v8019_v6, %v8020_v3  ;;  %v8028_v4 = vsel %vm21049_vm10, %v8026_v49, %v8027_v12  ;;  %v24446_v3 = vsel %vm20288_vm2, %v9903_v33, %v9904_v55  ;;  %v16330_v55 = vld [vmem:[%s20305_s12 + $0x44c] sm:$0x7] }
 0x2c3   : > { %18529 = vmatprep.subr.bf16.mxu1 %v24394_v44  ;;  %v9910_v42 = vrot.slane %v9908_v28, 4  ;;  %v9911_v31 = vrot.slane %v9804_v18, 5  ;;  %v16374_v12 = vcombine.low %v8018_v62, %v8021_v19  ;;  %v9915_v49 = vrot.slane %v24426_v26, 5 }
 0x2c4   : > { %v24442_v6 = vsel %vm20288_vm2, %v16646_v43, %v9901_v40  ;;  %v8041_v46 = vrot.slane %v16327_v60, 7  ;;  %v24455_v40 = vadd.f32 %v23875_v17, %v899_v25  ;;  %v16375_v43 = vcombine.low %v8025_v30, %v8028_v4  ;;  %v9810_v60 = vld [vmem:[%s20305_s12 + $0x80] sm:$0x1] }
 0x2c5   : > { %18466 = vmatmul.mubr.msk.bf16.gmra.mrb[68].mxu1 %vm731_vm4, %v16372_v23  ;;  %v16325_v23 = vld [vmem:[%s20305_s12 + $0x428] sm:$0x8]  ;;  %v8040_v33 = vrot.slane %v8038_v8, 4  ;;  %v8045_v18 = vrot.slane %v16329_v10, 7  ;;  %v16666_v62 = vcombine.low %v24442_v6, %v24446_v3  ;;  %v24465_v26 = vsel %vm21049_vm10, %v16356_v58, %v8031_v27  ;;  %v900_v10 = vld [vmem:[#allocation2 + $0x118] sm:$0xff] }
 0x2c6   : > { %18469 = vmatprep.mubr.msk.bf16.mxu1 %vm731_vm4, %v16373_v59  ;;  %v16647_v59 = vrot.slane %v9802_v36, 9  ;;  %v16357_v39 = vrot.slane %v16325_v23, 11  ;;  %v16328_v36 = vld [vmem:[%s20305_s12 + $0x444] sm:$0x8]  ;;  %v24469_v17 = vsel %vm21049_vm10, %v8033_v56, %v8034_v48  ;;  %v9922_v25 = vrot.slane %v24450_v1, 5 }
 0x2c7   : > { %18598 = vmatmul.mubr.msk.bf16.gmra.mrb[64].mxu0 %vm731_vm4, %v20128_v0  ;;  %v897_v0 = vld [vmem:[#allocation2 + $0x100] sm:$0xff]  ;;  %v16648_v27 = vrot.slane %v9805_v21, 9  ;;  %v9918_v58 = vrot.slane %v9807_v13, 5  ;;  %v9917_v48 = vrot.slane %v9915_v49, 4  ;;  %v16358_v30 = vrot.slane %v16328_v36, 11 }
 0x2c8   : > { %18605 = vmatprep.mubr.msk.bf16.mxu0 %vm731_vm4, %v16665_v22  ;;  %v9909_v19 = vsel %vm20288_vm2, %v16647_v59, %v9908_v28  ;;  %v9912_v22 = vsel %vm20288_vm2, %v9910_v42, %v9911_v31  ;;  %v24478_v23 = vld [vmem:[%s20305_s12 + $0x464] sm:$0xf]  ;;  %v8048_v4 = vrot.slane %v16330_v55, 7  ;;  %v16649_v56 = vrot.slane %v9808_v29, 9  ;;  %v24482_v6 = vld [vmem:[%s20305_s12 + $0x98] sm:$0xf] }
 0x2c9   : > { %v8039_v28 = vsel %vm21049_vm10, %v16357_v39, %v8038_v8  ;;  %v8042_v21 = vsel %vm21049_vm10, %v8040_v33, %v8041_v46  ;;  %v8047_v59 = vrot.slane %v8045_v18, 4  ;;  %v9925_v3 = vrot.slane %v9810_v60, 5  ;;  %v24490_v42 = vld [vmem:[%s20305_s12 + $0x94] sm:$0xe]  ;;  %v24493_v31 = vld [vmem:[%s20305_s12 + $0x9c] sm:$0x1] }
 0x2ca   : > { %v24496_v13 = vadd.f32 %v23898_v61, %v897_v0  ;;  %v16667_v29 = vcombine.low %v9909_v19, %v9912_v22  ;;  %v9924_v1 = vrot.slane %v9922_v25, 4  ;;  %v8052_v8 = vrot.slane %v24478_v23, 7  ;;  %v24501_v39 = vld [vmem:[%s20305_s12 + $0x480] sm:$0xf]  ;;  %v16333_v33 = vld [vmem:[%s20305_s12 + $0x468] sm:$0x7] }
 0x2cb   : > { %v24504_v46 = vadd.f32 %v23902_v34, %v900_v10  ;;  %v16376_v36 = vcombine.low %v24465_v26, %v24469_v17  ;;  %v9929_v61 = vrot.slane %v24482_v6, 5  ;;  %v20130_v55 = vld [vmem:[%s26588_s1 + $0x158] sm:$0xff]   ;;  %v898_v60 = vld [vmem:[#allocation2 + $0x108] sm:$0xff]  ;;  %v24519_v0 = vsel %vm20288_vm2, %v9917_v48, %v9918_v58  ;;  %v24530_v10 = vld [vmem:[%s20305_s12 + $0xb4] sm:$0xf] }
 0x2cc   : > { %v16377_v34 = vcombine.low %v8039_v28, %v8042_v21  ;;  %v24523_v26 = vsel %vm21049_vm10, %v16358_v30, %v8045_v18  ;;  %v24527_v17 = vld [vmem:[%s20305_s12 + $0x47c] sm:$0x8]  ;;  %v903_v19 = vld [vmem:[#allocation2 + $0x130] sm:$0xff]  ;;  %v901_v22 = vld [vmem:[#allocation2 + $0x120] sm:$0xff]  ;;  %v24535_v58 = vsel %vm21049_vm10, %v8047_v59, %v8048_v4  ;;  %v9932_v18 = vrot.slane %v24493_v31, 5 }
 0x2cd   : > { %18470 = vmatmul.mubr.msk.bf16.gmra.mrb[72].mxu1 %vm731_vm4, %v16374_v12  ;;  %v16331_v12 = vld [vmem:[%s20305_s12 + $0x460] sm:$0x8]  ;;  %v8059_v48 = vrot.slane %v24501_v39, 7  ;;  %v9923_v30 = vsel %vm20288_vm2, %v16649_v56, %v9922_v25  ;;  %v8054_v6 = vrot.slane %v8052_v8, 4  ;;  %v8055_v28 = vrot.slane %v16333_v33, 7 }
 0x2ce   : > { %18473 = vmatprep.mubr.msk.bf16.mxu1 %vm731_vm4, %v16375_v43  ;;  %v24510_v43 = vsel %vm20288_vm2, %v16648_v27, %v9915_v49  ;;  %v16650_v49 = vrot.slane %v24490_v42, 9  ;;  %v904_v27 = vld [vmem:[#allocation2 + $0x138] sm:$0xff]  ;;  %v16359_v23 = vrot.slane %v16331_v12, 11  ;;  %v16336_v4 = vld [vmem:[%s20305_s12 + $0x484] sm:$0x7]  ;;  %v24550_v59 = vadd.f32 %v23917_v37, %v898_v60 }
 0x2cf   : > { %18606 = vmatmul.mubr.msk.bf16.vlgmr.msra.gmra.mrb[36].mxu0 %vm731_vm4, %v16666_v62  ;;  %v9926_v62 = vsel %vm20288_vm2, %v9924_v1, %v9925_v3  ;;  %v24547_v21 = vld [vmem:[%s20305_s12 + $0x49c] sm:$0xf]  ;;  %v16360_v42 = vrot.slane %v24527_v17, 11  ;;  %v9814_v31 = vld [vmem:[%s20305_s12 + $0xb0] sm:$0xe]  ;;  %v9936_v25 = vrot.slane %v24530_v10, 5  ;;  %v24561_v3 = vadd.f32 %v23922_v53, %v903_v19 }
 0x2d0   : > { %18638 = vmatpush3.bf16.msra.mxu0 %v24259_v50  ;;  %18609 = vmatprep.mubr.msk.bf16.mxu0 %vm731_vm4, %v16667_v29  ;;  %v9931_v50 = vrot.slane %v9929_v61, 4  ;;  %v24558_v56 = vld [vmem:[%s26588_s1 + $0x160] sm:$0xff]   ;;  %v24564_v37 = vadd.f32 %v23937_v32, %v901_v22  ;;  %v24567_v29 = vadd.f32 %v23945_v7, %v904_v27  ;;  %v16668_v1 = vcombine.low %v24510_v43, %v24519_v0  ;;  %v9816_v12 = vld [vmem:[%s20305_s12 + $0xb8] sm:$0x1]  ;;  %v24574_v39 = vld [vmem:[%s20305_s12 + $0xd0] sm:$0xf] }
 0x2d1   : > { %18639 = vmatprep.subr.bf16.mxu0 %v20130_v55  ;;  %v24577_v33 = vld [vmem:[%s20305_s12 + $0x4b8] sm:$0xf]  ;;  %v16378_v53 = vcombine.low %v24523_v26, %v24535_v58  ;;  %v16669_v32 = vcombine.low %v9923_v30, %v9926_v62  ;;  %v8061_v7 = vrot.slane %v8059_v48, 4  ;;  %v24583_v60 = vld [vmem:[%s20305_s12 + $0xcc] sm:$0xe]  ;;  %v8066_v17 = vrot.slane %v24547_v21, 7 }
 0x2d2   : > { %v8053_v43 = vsel %vm21049_vm10, %v16359_v23, %v8052_v8  ;;  %v8056_v0 = vsel %vm21049_vm10, %v8054_v6, %v8055_v28  ;;  %v8062_v10 = vrot.slane %v16336_v4, 7  ;;  %v9819_v19 = vld [vmem:[%s20305_s12 + $0xd4] sm:$0x1]  ;;  %v16339_v26 = vld [vmem:[%s20305_s12 + $0x4a0] sm:$0x7]  ;;  %v9938_v22 = vrot.slane %v9936_v25, 4 }
 0x2d3   : > { %v9939_v27 = vrot.slane %v9816_v12, 5  ;;  %v9943_v58 = vrot.slane %v24574_v39, 5  ;;  %v8073_v30 = vrot.slane %v24577_v33, 7  ;;  %v9821_v62 = vld [vmem:[%s20305_s12 + $0xec] sm:$0xf]  ;;  %v9930_v8 = vsel %vm20288_vm2, %v16650_v49, %v9929_v61 }
 0x2d4   : > { %18640 = vmatpush3.bf16.msra.mxu0 %v20130_v55  ;;  %v9933_v23 = vsel %vm20288_vm2, %v9931_v50, %v9932_v18  ;;  %v16652_v6 = vrot.slane %v24583_v60, 9  ;;  %v16340_v28 = vld [vmem:[%s20305_s12 + $0x4b4] sm:$0x8]  ;;  %v16342_v4 = vld [vmem:[%s20305_s12 + $0x4bc] sm:$0x7]  ;;  %v16379_v21 = vcombine.low %v8053_v43, %v8056_v0  ;;  %v8068_v12 = vrot.slane %v8066_v17, 4 }
 0x2d5   : > { %18474 = vmatmul.mubr.msk.bf16.gmra.mrb[76].mxu1 %vm731_vm4, %v16376_v36  ;;  %v16337_v36 = vld [vmem:[%s20305_s12 + $0x498] sm:$0x8]  ;;  %18673 = vmatprep.subr.bf16.mxu0 %v24558_v56  ;;  %v8069_v61 = vrot.slane %v16339_v26, 7  ;;  %v9820_v49 = vld [vmem:[%s20305_s12 + $0xe8] sm:$0xe]  ;;  %v24614_v18 = vsel %vm21049_vm10, %v8061_v7, %v8062_v10  ;;  %v9950_v33 = vrot.slane %v9821_v62, 5  ;;  %v9940_v60 = vsel %vm20288_vm2, %v9938_v22, %v9939_v27 }
 0x2d6   : > { %18477 = vmatprep.mubr.msk.bf16.mxu1 %vm731_vm4, %v16377_v34  ;;  %v16651_v34 = vrot.slane %v9814_v31, 9  ;;  %v16361_v55 = vrot.slane %v16337_v36, 11  ;;  %v24607_v31 = vsel %vm21049_vm10, %v16360_v42, %v8059_v48  ;;  %v9822_v39 = vld [vmem:[%s20305_s12 + $0xf0] sm:$0x1]  ;;  %v24619_v48 = vld [vmem:[%s20305_s12 + $0x104] sm:$0xe]  ;;  %v16670_v0 = vcombine.low %v9930_v8, %v9933_v23 }
 0x2d7   : > { %18610 = vmatmul.mubr.msk.bf16.gmra.mrb[40].mxu0 %vm731_vm4, %v16668_v1  ;;  %v9946_v1 = vrot.slane %v9819_v19, 5  ;;  %v24622_v42 = vld [vmem:[%s20305_s12 + $0x4d4] sm:$0xf]  ;;  %v16362_v36 = vrot.slane %v16340_v28, 11  ;;  %v8075_v43 = vrot.slane %v8073_v30, 4  ;;  %v8076_v10 = vrot.slane %v16342_v4, 7 }
 0x2d8   : > { %18613 = vmatprep.mubr.msk.bf16.mxu0 %vm731_vm4, %v16669_v32  ;;  %v9937_v50 = vsel %vm20288_vm2, %v16651_v34, %v9936_v25  ;;  %v9945_v32 = vrot.slane %v9943_v58, 4  ;;  %v24627_v7 = vld [vmem:[%s20305_s12 + $0x108] sm:$0xf]  ;;  %v8067_v25 = vsel %vm21049_vm10, %v16361_v55, %v8066_v17  ;;  %v16653_v34 = vrot.slane %v9820_v49, 9  ;;  %v24633_v19 = vld [vmem:[%s20305_s12 + $0x10c] sm:$0x1] }
 0x2d9   : > { %v24636_v26 = vld [vmem:[%s20305_s12 + $0x4f0] sm:$0xf]  ;;  %v8070_v22 = vsel %vm21049_vm10, %v8068_v12, %v8069_v61  ;;  %v16654_v27 = vrot.slane %v24619_v48, 9  ;;  %v8080_v17 = vrot.slane %v24622_v42, 7  ;;  %v16380_v8 = vcombine.low %v24607_v31, %v24614_v18  ;;  %v16345_v4 = vld [vmem:[%s20305_s12 + $0x4d8] sm:$0x7] }
 0x2da   : > { %v16343_v62 = vld [vmem:[%s20305_s12 + $0x4d0] sm:$0x8]  ;;  %v16671_v23 = vcombine.low %v9937_v50, %v9940_v60  ;;  %v9952_v55 = vrot.slane %v9950_v33, 4  ;;  %v9957_v28 = vrot.slane %v24627_v7, 5  ;;  %v902_v12 = vld [vmem:[#allocation2 + $0x128] sm:$0xff]  ;;  %v24653_v61 = vsel %vm20288_vm2, %v16652_v6, %v9943_v58 }
 0x2db   : > { %v9947_v49 = vsel %vm20288_vm2, %v9945_v32, %v9946_v1  ;;  %v9960_v31 = vrot.slane %v24633_v19, 5  ;;  %v16348_v18 = vld [vmem:[%s20305_s12 + $0x4f4] sm:$0x7]  ;;  %v8087_v50 = vrot.slane %v24636_v26, 7  ;;  %v16381_v48 = vcombine.low %v8067_v25, %v8070_v22  ;;  %v9826_v6 = vld [vmem:[%s20305_s12 + $0x120] sm:$0xe] }
 0x2dc   : > { %v24663_v42 = vsel %vm21049_vm10, %v16362_v36, %v8073_v30  ;;  %v24667_v60 = vsel %vm21049_vm10, %v8075_v43, %v8076_v10  ;;  %v9951_v58 = vsel %vm20288_vm2, %v16653_v34, %v9950_v33  ;;  %v24673_v1 = vld [vmem:[%s20305_s12 + $0x140] sm:$0xf]  ;;  %v24676_v32 = vld [vmem:[%s20305_s12 + $0x354] sm:$0xf]  ;;  %v16363_v25 = vrot.slane %v16343_v62, 11 }
 0x2dd   : > { %18478 = vmatmul.mubr.msk.bf16.gmra.mrb[80].mxu1 %vm731_vm4, %v16378_v53  ;;  %v9953_v53 = vrot.slane %v9822_v39, 5  ;;  %v16346_v39 = vld [vmem:[%s20305_s12 + $0x4ec] sm:$0x8]  ;;  %v907_v7 = vld [vmem:[#allocation2 + $0x150] sm:$0xff]  ;;  %v905_v19 = vld [vmem:[#allocation2 + $0x140] sm:$0xff]  ;;  %v8082_v30 = vrot.slane %v8080_v17, 4 }
 0x2de   : > { %18481 = vmatprep.mubr.msk.bf16.mxu1 %vm731_vm4, %v16379_v21  ;;  %v24649_v21 = vld [vmem:[%s20305_s12 + $0x124] sm:$0xf]  ;;  %v8083_v36 = vrot.slane %v16345_v4, 7  ;;  %v9959_v43 = vrot.slane %v9957_v28, 4  ;;  %v16364_v10 = vrot.slane %v16346_v39, 11  ;;  %v8090_v34 = vrot.slane %v16348_v18, 7 }
 0x2df   : > { %18614 = vmatmul.mubr.msk.bf16.gmra.mrb[44].mxu0 %vm731_vm4, %v16670_v0  ;;  %v9964_v26 = vrot.slane %v24649_v21, 5  ;;  %v9954_v33 = vsel %vm20288_vm2, %v9952_v55, %v9953_v53  ;;  %v9828_v22 = vld [vmem:[%s20305_s12 + $0x128] sm:$0x1]  ;;  %v8089_v2 = vrot.slane %v8087_v50, 4  ;;  %v16655_v52 = vrot.slane %v9826_v6, 9 }
 0x2e0   : > { %18617 = vmatprep.mubr.msk.bf16.mxu0 %vm731_vm4, %v16671_v23  ;;  %v9971_v0 = vrot.slane %v24673_v1, 5  ;;  %v8496_v62 = vrot.slane %v24676_v32, 5  ;;  %v24687_v4 = vadd.f32 %v23957_v35, %v902_v12  ;;  %v24690_v23 = vadd.f32 %v23964_v5, %v907_v7  ;;  %v16403_v21 = vld [vmem:[%s20305_s12 + $0x350] sm:$0xe]  ;;  %v16405_v39 = vld [vmem:[%s20305_s12 + $0x358] sm:$0x1] }
 0x2e1   : > { %v24693_v53 = vadd.f32 %v23973_v20, %v905_v19  ;;  %v16672_v55 = vcombine.low %v24653_v61, %v9947_v49  ;;  %v24700_v18 = vld [vmem:[%s20305_s12 + $0x15c] sm:$0xf]  ;;  %v8081_v35 = vsel %vm21049_vm10, %v16363_v25, %v8080_v17  ;;  %v8084_v5 = vsel %vm21049_vm10, %v8082_v30, %v8083_v36  ;;  %v9831_v6 = vld [vmem:[%s20305_s12 + $0x144] sm:$0x1]  ;;  %v24723_v7 = vld [vmem:[%s20305_s12 + $0x370] sm:$0xf] }
 0x2e2   : > { %v9966_v20 = vrot.slane %v9964_v26, 4  ;;  %v9829_v12 = vld [vmem:[%s20305_s12 + $0x13c] sm:$0xe]  ;;  %v16382_v61 = vcombine.low %v24663_v42, %v24667_v60  ;;  %v16673_v49 = vcombine.low %v9951_v58, %v9954_v33  ;;  %v24713_v32 = vsel %vm20288_vm2, %v16654_v27, %v9957_v28  ;;  %v24726_v19 = vld [vmem:[%s20305_s12 + $0x178] sm:$0xf]  ;;  %v911_v1 = vld [vmem:[#allocation2 + $0x170] sm:$0xff] }
 0x2e3   : > { %v24717_v17 = vsel %vm20288_vm2, %v9959_v43, %v9960_v31  ;;  %v16451_v25 = vrot.slane %v16403_v21, 9  ;;  %v8498_v42 = vrot.slane %v8496_v62, 4  ;;  %v8499_v60 = vrot.slane %v16405_v39, 5  ;;  %v24729_v58 = vld [vmem:[%s20305_s12 + $0x374] sm:$0x1] }
 0x2e4   : > { %v9978_v27 = vrot.slane %v24700_v18, 5  ;;  %v16383_v28 = vcombine.low %v8081_v35, %v8084_v5  ;;  %v16656_v30 = vrot.slane %v9829_v12, 9  ;;  %v9973_v31 = vrot.slane %v9971_v0, 4  ;;  %v9832_v33 = vld [vmem:[%s20305_s12 + $0x158] sm:$0xe] }
 0x2e5   : > { %18482 = vmatmul.mubr.msk.bf16.gmra.mrb[84].mxu1 %vm731_vm4, %v16380_v8  ;;  %v9967_v8 = vrot.slane %v9828_v22, 5  ;;  %v9974_v36 = vrot.slane %v9831_v6, 5  ;;  %v24738_v43 = vsel %vm21049_vm10, %v16364_v10, %v8087_v50  ;;  %v24742_v22 = vsel %vm21049_vm10, %v8089_v2, %v8090_v34  ;;  %v9834_v39 = vld [vmem:[%s20305_s12 + $0x160] sm:$0x1]  ;;  %v24748_v35 = vld [vmem:[%s20305_s12 + $0x38c] sm:$0xf] }
 0x2e6   : > { %18485 = vmatprep.mubr.msk.bf16.mxu1 %vm731_vm4, %v16381_v48  ;;  %v24720_v48 = vld [vmem:[%s20305_s12 + $0x36c] sm:$0xe]  ;;  %v26718_v21 = vrot.slane %v24723_v7, 5  ;;  %v26717_v18 = vrot.slane %v24726_v19, 5  ;;  %v24758_v34 = vld [vmem:[%s20305_s12 + $0x174] sm:$0xe]  ;;  %v24765_v12 = vsel %vm20288_vm2, %v16451_v25, %v8496_v62  ;;  %v16384_v62 = vcombine.low %v24738_v43, %v24742_v22 }
 0x2e7   : > { %18618 = vmatmul.mubr.msk.bf16.gmra.mrb[48].mxu0 %vm731_vm4, %v16672_v55  ;;  %v9965_v55 = vsel %vm20288_vm2, %v16655_v52, %v9964_v26  ;;  %v9968_v50 = vsel %vm20288_vm2, %v9966_v20, %v9967_v8  ;;  %v16452_v2 = vrot.slane %v24720_v48, 9  ;;  %v24761_v5 = vld [vmem:[%s20305_s12 + $0x3a8] sm:$0xf]  ;;  %v24769_v52 = vsel %vm20288_vm2, %v8498_v42, %v8499_v60  ;;  %v24772_v20 = vld [vmem:[%s20305_s12 + $0x17c] sm:$0x1] }
 0x2e8   : > { %18621 = vmatprep.mubr.msk.bf16.mxu0 %vm731_vm4, %v16673_v49  ;;  %v16657_v26 = vrot.slane %v9832_v33, 9  ;;  %v9980_v6 = vrot.slane %v9978_v27, 4  ;;  %v24775_v8 = vld [vmem:[%s20305_s12 + $0x388] sm:$0xe]  ;;  %v16674_v49 = vcombine.low %v24713_v32, %v24717_v17  ;;  %v9981_v48 = vrot.slane %v9834_v39, 5  ;;  %v908_v33 = vld [vmem:[#allocation2 + $0x158] sm:$0xff] }
 0x2e9   : > { %v16411_v25 = vld [vmem:[%s20305_s12 + $0x390] sm:$0x1]  ;;  %v8510_v42 = vrot.slane %v24748_v35, 5  ;;  %v24785_v60 = vld [vmem:[%s20305_s12 + $0x3a4] sm:$0xe]  ;;  %v906_v10 = vld [vmem:[#allocation2 + $0x148] sm:$0xff]  ;;  %v16675_v39 = vcombine.low %v9965_v55, %v9968_v50  ;;  %v24803_v35 = vsel %vm20288_vm2, %v16656_v30, %v9971_v0  ;;  %v16471_v32 = vcombine.low %v24765_v12, %v24769_v52 }
 0x2ea   : > { %v24793_v17 = vrot.slane %v26717_v18, 4  ;;  %v24797_v22 = vld [vmem:[%s20305_s12 + $0x194] sm:$0xf]  ;;  %v24812_v18 = vld [vmem:[%s20305_s12 + $0x3ac] sm:$0x1]  ;;  %v909_v50 = vld [vmem:[#allocation2 + $0x160] sm:$0xff]  ;;  %v24829_v12 = vsel %vm20288_vm2, %v9980_v6, %v9981_v48  ;;  %v24846_v45 = vadd.f32 %v23981_v11, %v908_v33  ;;  %v24849_v57 = vadd.f32 %v23993_v9, %v906_v10 }
 0x2eb   : > { %v24818_v55 = vld [vmem:[%s20305_s12 + $0x1b0] sm:$0xf]  ;;  %v9988_v0 = vrot.slane %v24772_v20, 5  ;;  %v16453_v30 = vrot.slane %v24775_v8, 9  ;;  %v8513_v43 = vrot.slane %v16411_v25, 5  ;;  %v8512_v52 = vrot.slane %v8510_v42, 4 }
 0x2ec   : > { %v24833_v20 = vld [vmem:[%s20305_s12 + $0x3c4] sm:$0xf]  ;;  %v24836_v8 = vld [vmem:[%s20305_s12 + $0x3e0] sm:$0xf]  ;;  %v27242_v25 = vrot.slane %v24761_v5, 5  ;;  %27243 = vst [vmem:[#allocation67_spill] sm:$0xff] %v24849_v57 }
 0x2ed   : > { %18486 = vmatmul.mubr.msk.bf16.gmra.mrb[88].mxu1 %vm731_vm4, %v16382_v61  ;;  %v8505_v61 = vrot.slane %v26718_v21, 4  ;;  %v24815_v21 = vld [vmem:[%s20305_s12 + $0x190] sm:$0xe]  ;;  %v9840_v6 = vld [vmem:[%s20305_s12 + $0x198] sm:$0x1]  ;;  %v27246_v10 = vrot.slane %v24723_v7, 5 }
 0x2ee   : > { %18489 = vmatprep.mubr.msk.bf16.mxu1 %vm731_vm4, %v16383_v28  ;;  %v24807_v28 = vsel %vm20288_vm2, %v9973_v31, %v9974_v36  ;;  %v16454_v31 = vrot.slane %v24785_v60, 9  ;;  %v24825_v36 = vsel %vm20288_vm2, %v16657_v26, %v9978_v27  ;;  %v8519_v27 = vrot.slane %v27242_v25, 4  ;;  %v16415_v60 = vld [vmem:[%s20305_s12 + $0x3c0] sm:$0xe]  ;;  %v912_v11 = vld [vmem:[#allocation2 + $0x178] sm:$0xff] }
 0x2ef   : > { %18622 = vmatmul.mubr.msk.bf16.gmra.mrb[52].mxu0 %vm731_vm4, %v16674_v49  ;;  %v8520_v26 = vrot.slane %v24812_v18, 5  ;;  %v16659_v48 = vrot.slane %v24815_v21, 9  ;;  %v24852_v49 = vadd.f32 %v23997_v16, %v911_v1  ;;  %v24855_v25 = vadd.f32 %v24003_v54, %v909_v50  ;;  %v24859_v18 = vld [vmem:[%s20305_s12 + $0x1ac] sm:$0xe]  ;;  %v24862_v21 = vld [vmem:[%s20305_s12 + $0x1b4] sm:$0x1] }
 0x2f0   : > { %18625 = vmatprep.mubr.msk.bf16.mxu0 %vm731_vm4, %v16675_v39  ;;  %v16676_v9 = vcombine.low %v24803_v35, %v24807_v28  ;;  %v8504_v16 = vsel %vm20288_vm2, %v16452_v2, %v27246_v10  ;;  %v16417_v54 = vld [vmem:[%s20305_s12 + $0x3c8] sm:$0x1]  ;;  %v8524_v33 = vrot.slane %v24833_v20, 5  ;;  %v24875_v1 = vld [vmem:[%s20305_s12 + $0x14] sm:$0xf]  ;;  %v27247_v50 = vrot.slane %v24729_v58, 5 }
 0x2f1   : > { %27244 = vst [vmem:[#allocation72_spill] sm:$0xff] %v24852_v49  ;;  %27245 = vst [vmem:[#allocation73_spill] sm:$0xff] %v24855_v25  ;;  %v16677_v7 = vcombine.low %v24825_v36, %v24829_v12  ;;  %v27248_v2 = vrot.slane %v24797_v22, 5  ;;  %v9995_v10 = vrot.slane %v9840_v6, 5  ;;  %v24887_v20 = vld [vmem:[%s20305_s12 + $0x3dc] sm:$0xe]  ;;  %v8514_v58 = vsel %vm20288_vm2, %v8512_v52, %v8513_v43 }
 0x2f2   : > { %v8507_v35 = vsel %vm20288_vm2, %v8505_v61, %v27247_v50  ;;  %v24890_v25 = vld [vmem:[%s20305_s12 + $0x3e4] sm:$0x1]  ;;  %v16660_v61 = vrot.slane %v24859_v18, 9  ;;  %v27249_v36 = vrot.slane %v24818_v55, 5  ;;  %v24901_v6 = vld [vmem:[%s20305_s12 + $0x10] sm:$0xc]  ;;  %v24913_v49 = vadd.f32 %v24014_v47, %v912_v11 }
 0x2f3   : > { %v9994_v28 = vrot.slane %v27248_v2, 4  ;;  %v24904_v50 = vld [vmem:[%s20305_s12 + $0x30] sm:$0xf]  ;;  %v10002_v2 = vrot.slane %v24862_v21, 5  ;;  %v8527_v39 = vrot.slane %v16417_v54, 5  ;;  %v16456_v43 = vrot.slane %v24887_v20, 9 }
 0x2f4   : > { %v10001_v12 = vrot.slane %v27249_v36, 4  ;;  %v27250_v52 = vrot.slane %v24836_v8, 5  ;;  %v8534_v36 = vrot.slane %v24890_v25, 5  ;;  %v16472_v57 = vcombine.low %v8504_v16, %v8507_v35  ;;  %v10312_v21 = vld [vmem:[%s20305_s12 + $0x18] sm:$0x3] }
 0x2f5   : > { %18490 = vmatmul.mubr.msk.bf16.gmra.mrb[92].mxu1 %vm731_vm4, %v16384_v62  ;;  %v8511_v62 = vsel %vm20288_vm2, %v16453_v30, %v8510_v42  ;;  %v8526_v30 = vrot.slane %v8524_v33, 4  ;;  %v24918_v54 = vld [vmem:[%s20305_s12 + $0x2c] sm:$0xc]  ;;  %v10415_v42 = vrot.slane %v24904_v50, 6  ;;  %v27251_v20 = vrot.slane %v24726_v19, 5 }
 0x2f6   : > { %18497 = vmatprep.mubr.msk.bf16.mxu1 %vm731_vm4, %v16471_v32  ;;  %v16455_v32 = vrot.slane %v16415_v60, 9  ;;  %v8533_v18 = vrot.slane %v27250_v52, 4  ;;  %v16699_v60 = vrot.slane %v24901_v6, 10  ;;  %v27252_v52 = vrot.slane %v24758_v34, 9  ;;  %v24941_v19 = vld [vmem:[%s20305_s12 + $0x3fc] sm:$0xf] }
 0x2f7   : > { %18626 = vmatmul.mubr.msk.bf16.gmra.mrb[56].mxu0 %vm731_vm4, %v16676_v9  ;;  %v9989_v25 = vsel %vm20288_vm2, %v24793_v17, %v9988_v0  ;;  %v16473_v11 = vcombine.low %v8511_v62, %v8514_v58  ;;  %v27253_v16 = vrot.slane %v24761_v5, 5  ;;  %v24938_v9 = vld [vmem:[%s20305_s12 + $0x34] sm:$0x3]  ;;  %v24944_v34 = vld [vmem:[%s20305_s12 + $0x418] sm:$0xf]  ;;  %v24949_v17 = vsel %vm20288_vm2, %v8519_v27, %v8520_v26  ;;  %v20136_v27 = vld [vmem:[%s26588_s1 + $0x128] sm:$0xff]  }
 0x2f8   : > { %v9986_v47 = vsel %vm20288_vm2, %v27252_v52, %v27251_v20  ;;  %18629 = vmatprep.mubr.msk.bf16.mxu0 %vm731_vm4, %v16677_v7  ;;  %v27254_v5 = vrot.slane %v24797_v22, 5  ;;  %v27255_v62 = vrot.slane %v24875_v1, 6  ;;  %v24960_v6 = vld [vmem:[%s20305_s12 + $0x3f8] sm:$0xe]  ;;  %v24963_v20 = vld [vmem:[%s20305_s12 + $0x4c] sm:$0xf]  ;;  %v24970_v22 = vsel %vm20288_vm2, %v16455_v32, %v8524_v33 }
 0x2f9   : > { %v24935_v35 = vsel %vm20288_vm2, %v16454_v31, %v27253_v16  ;;  %v9996_v31 = vsel %vm20288_vm2, %v9994_v28, %v9995_v10  ;;  %v24974_v26 = vsel %vm20288_vm2, %v8526_v30, %v8527_v39  ;;  %v16700_v7 = vrot.slane %v24918_v54, 10  ;;  %v24978_v28 = vld [vmem:[%s20305_s12 + $0x400] sm:$0x1]  ;;  %v24981_v10 = vld [vmem:[%s20305_s12 + $0x68] sm:$0xf] }
 0x2fa   : > { %v9993_v0 = vsel %vm20288_vm2, %v16659_v48, %v27254_v5  ;;  %v10410_v58 = vrot.slane %v27255_v62, 4  ;;  %v10411_v48 = vrot.slane %v10312_v21, 6  ;;  %v10417_v52 = vrot.slane %v10415_v42, 4  ;;  %v16426_v16 = vld [vmem:[%s20305_s12 + $0x41c] sm:$0x1] }
 0x2fb   : > { %v10418_v33 = vrot.slane %v24938_v9, 6  ;;  %v8538_v32 = vrot.slane %v24941_v19, 5  ;;  %v8545_v39 = vrot.slane %v24944_v34, 5  ;;  %v16678_v30 = vcombine.low %v9986_v47, %v9989_v25  ;;  %v25025_v62 = vld [vmem:[%s20305_s12 + $0x434] sm:$0xf] }
 0x2fc   : > { %v16474_v21 = vcombine.low %v24935_v35, %v24949_v17  ;;  %v16457_v54 = vrot.slane %v24960_v6, 9  ;;  %v10422_v5 = vrot.slane %v24963_v20, 6  ;;  %v16679_v9 = vcombine.low %v9993_v0, %v9996_v31  ;;  %v10318_v35 = vld [vmem:[%s20305_s12 + $0x50] sm:$0x3]  ;;  %v10319_v31 = vld [vmem:[%s20305_s12 + $0x64] sm:$0xc] }
 0x2fd   : > { %18498 = vmatmul.mubr.msk.bf16.vlgmr.msra.gmra.mrb[64].mxu1 %vm731_vm4, %v16472_v57  ;;  %v16424_v57 = vld [vmem:[%s20305_s12 + $0x414] sm:$0xe]  ;;  %v27256_v19 = vrot.slane %v24818_v55, 5  ;;  %v8541_v25 = vrot.slane %v24978_v28, 5  ;;  %v10429_v34 = vrot.slane %v24981_v10, 6  ;;  %v25009_v17 = vsel %vm20288_vm2, %v10001_v12, %v10002_v2  ;;  %v910_v2 = vld [vmem:[#allocation2 + $0x168] sm:$0xff] }
 0x2fe   : > { %18501 = vmatprep.mubr.msk.bf16.mxu1 %vm731_vm4, %v16473_v11  ;;  %18530 = vmatpush3.bf16.msra.mxu1 %v24394_v44  ;;  %v10316_v11 = vld [vmem:[%s20305_s12 + $0x48] sm:$0xc]  ;;  %v16475_v44 = vcombine.low %v24970_v22, %v24974_v26  ;;  %v27257_v55 = vrot.slane %v24836_v8, 5  ;;  %v25021_v0 = vsel %vm20288_vm2, %v8533_v18, %v8534_v36  ;;  %v25030_v12 = vld [vmem:[%s26590_s3] sm:$0x3]  ;;  %v8540_v8 = vrot.slane %v8538_v32, 4 }
 0x2ff   : > { %v25001_v47 = vsel %vm20288_vm2, %v16660_v61, %v27256_v19  ;;  %18531 = vmatprep.subr.bf16.mxu1 %v20136_v27  ;;  %v16458_v6 = vrot.slane %v16424_v57, 9  ;;  %v8547_v22 = vrot.slane %v8545_v39, 4  ;;  %v8548_v26 = vrot.slane %v16426_v16, 5  ;;  %18630 = vmatmul.mubr.msk.bf16.gmra.mrb[60].mxu0 %vm731_vm4, %v16678_v30  ;;  %v10321_v57 = vld [vmem:[%s20305_s12 + $0x6c] sm:$0x3] }
 0x300   : > { %v25017_v61 = vsel %vm20288_vm2, %v16456_v43, %v27257_v55  ;;  %v27258_v43 = vrot.slane %v24875_v1, 6  ;;  %v10412_v36 = vsel %vm20527_vm7, %v10410_v58, %v10411_v48  ;;  %v16701_v28 = vrot.slane %v10316_v11, 10  ;;  %v25043_v19 = vld [vmem:[%s20305_s12 + $0x450] sm:$0xf]  ;;  %18633 = vmatprep.mubr.msk.bf16.mxu0 %vm731_vm4, %v16679_v9  ;;  %v25065_v55 = vld [vmem:[%s20305_s12 + $0x44c] sm:$0xe] }
 0x301   : > { %v10424_v10 = vrot.slane %v10422_v5, 4  ;;  %v10425_v1 = vrot.slane %v10318_v35, 6  ;;  %v16702_v30 = vrot.slane %v10319_v31, 10  ;;  %v8552_v58 = vrot.slane %v25025_v62, 5  ;;  %v16427_v11 = vld [vmem:[%s20305_s12 + $0x430] sm:$0xe] }
 0x302   : > { %v10409_v18 = vsel %vm20527_vm7, %v16699_v60, %v27258_v43  ;;  %18532 = vmatpush3.bf16.msra.mxu1 %v20136_v27  ;;  %v10431_v60 = vrot.slane %v10429_v34, 4  ;;  %v25050_v48 = vadd.f32 %v24024_v63, %v910_v2  ;;  %v16680_v16 = vcombine.low %v25001_v47, %v25009_v17  ;;  %v16429_v35 = vld [vmem:[%s20305_s12 + $0x438] sm:$0x1]  ;;  %v25093_v31 = vld [vmem:[%s20305_s12 + $0xa0] sm:$0xf] }
 0x303   : > { %20017 = vmatprep.subr.msk.bf16.mxu1 %vm1397_vm5, %v25030_v12  ;;  %v16476_v27 = vcombine.low %v25017_v61, %v25021_v0  ;;  %v25060_v9 = vsel %vm20527_vm7, %v16700_v7, %v10415_v42  ;;  %v16719_v63 = vcombine.low %v10409_v18, %v10412_v36  ;;  %v25070_v47 = vsel %vm20527_vm7, %v10417_v52, %v10418_v33  ;;  %v25073_v61 = vld [vmem:[%s20305_s12 + $0x454] sm:$0x1]  ;;  %v25077_v0 = vld [vmem:[%s20305_s12 + $0x84] sm:$0xf]  ;;  %v25112_v18 = vld [vmem:[%s20305_s12 + $0x46c] sm:$0xf] }
 0x304   : > { %v10432_v17 = vrot.slane %v10321_v57, 6  ;;  %v8559_v50 = vrot.slane %v25043_v19, 5  ;;  %v915_v42 = vld [vmem:[#allocation2 + $0x190] sm:$0xff]  ;;  %v8539_v7 = vsel %vm20288_vm2, %v16457_v54, %v8538_v32  ;;  %v25086_v52 = vsel %vm20288_vm2, %v16458_v6, %v8545_v39  ;;  %v913_v2 = vld [vmem:[#allocation2 + $0x180] sm:$0xff]  ;;  %v25127_v57 = vld [vmem:[%s20305_s12 + $0x488] sm:$0xf] }
 0x305   : > { %18502 = vmatmul.mubr.msk.bf16.gmra.mrb[68].mxu1 %vm731_vm4, %v16474_v21  ;;  %v8542_v21 = vsel %vm20288_vm2, %v8540_v8, %v8541_v25  ;;  %v25090_v33 = vsel %vm20288_vm2, %v8547_v22, %v8548_v26  ;;  %v16459_v43 = vrot.slane %v16427_v11, 9  ;;  %v8554_v32 = vrot.slane %v8552_v58, 4  ;;  %v10322_v22 = vld [vmem:[%s20305_s12 + $0x80] sm:$0xc]  ;;  %v10325_v11 = vld [vmem:[%s20305_s12 + $0x9c] sm:$0xc] }
 0x306   : > { %18505 = vmatprep.mubr.msk.bf16.mxu1 %vm731_vm4, %v16475_v44  ;;  %v916_v44 = vld [vmem:[#allocation2 + $0x198] sm:$0xff]  ;;  %v8555_v54 = vrot.slane %v16429_v35, 5  ;;  %v16460_v25 = vrot.slane %v25065_v55, 9  ;;  %v25102_v39 = vsel %vm20527_vm7, %v16701_v28, %v10422_v5  ;;  %v25106_v8 = vsel %vm20527_vm7, %v10424_v10, %v10425_v1  ;;  %v10324_v28 = vld [vmem:[%s20305_s12 + $0x88] sm:$0x3] }
 0x307   : > { %v8562_v6 = vrot.slane %v25073_v61, 5  ;;  %v10436_v26 = vrot.slane %v25077_v0, 6  ;;  %v25116_v20 = vsel %vm20527_vm7, %v16702_v30, %v10429_v34  ;;  %v25120_v5 = vsel %vm20527_vm7, %v10431_v60, %v10432_v17  ;;  %18634 = vmatmul.mubr.msk.bf16.gmra.mrb[64].mxu0 %vm731_vm4, %v16680_v16  ;;  %v10327_v35 = vld [vmem:[%s20305_s12 + $0xa4] sm:$0x3]  ;;  %v25142_v55 = vld [vmem:[%s20305_s12 + $0xbc] sm:$0xf] }
 0x308   : > { %v8561_v36 = vrot.slane %v8559_v50, 4  ;;  %v10443_v10 = vrot.slane %v25093_v31, 6  ;;  %v25130_v1 = vadd.f32 %v24029_v14, %v915_v42  ;;  %v25133_v34 = vadd.f32 %v24037_v15, %v913_v2  ;;  %18641 = vmatprep.mubr.msk.bf16.mxu0 %vm731_vm4, %v16719_v63  ;;  %v16433_v17 = vld [vmem:[%s20305_s12 + $0x468] sm:$0xe]  ;;  %v16435_v61 = vld [vmem:[%s20305_s12 + $0x470] sm:$0x1] }
 0x309   : > { %v25136_v30 = vadd.f32 %v24045_v38, %v916_v44  ;;  %v16477_v60 = vcombine.low %v8539_v7, %v8542_v21  ;;  %v16720_v14 = vcombine.low %v25060_v9, %v25070_v47  ;;  %v16478_v15 = vcombine.low %v25086_v52, %v25090_v33  ;;  %v16436_v7 = vld [vmem:[%s20305_s12 + $0x484] sm:$0xe]  ;;  %v16438_v9 = vld [vmem:[%s20305_s12 + $0x48c] sm:$0x1]  ;;  %v10328_v31 = vld [vmem:[%s20305_s12 + $0xb8] sm:$0xc] }
 0x30a   : > { %v16703_v38 = vrot.slane %v10322_v22, 10  ;;  %v8566_v16 = vrot.slane %v25112_v18, 5  ;;  %v16721_v0 = vcombine.low %v25102_v39, %v25106_v8  ;;  %v16722_v42 = vcombine.low %v25116_v20, %v25120_v5  ;;  %v25169_v44 = vld [vmem:[%s20305_s12 + $0xd8] sm:$0xf]  ;;  %v10330_v62 = vld [vmem:[%s20305_s12 + $0xc0] sm:$0x3] }
 0x30b   : > { %v10438_v63 = vrot.slane %v10436_v26, 4  ;;  %v8573_v47 = vrot.slane %v25127_v57, 5  ;;  %v8553_v21 = vsel %vm20288_vm2, %v16459_v43, %v8552_v58  ;;  %v8556_v52 = vsel %vm20288_vm2, %v8554_v32, %v8555_v54 }
 0x30c   : > { %v10439_v33 = vrot.slane %v10324_v28, 6  ;;  %v10450_v2 = vrot.slane %v25142_v55, 6  ;;  %v16704_v39 = vrot.slane %v10325_v11, 10  ;;  %v10445_v8 = vrot.slane %v10443_v10, 4 }
 0x30d   : > { %18506 = vmatmul.mubr.msk.bf16.gmra.mrb[72].mxu1 %vm731_vm4, %v16476_v27  ;;  %v10446_v27 = vrot.slane %v10327_v35, 6  ;;  %v16461_v22 = vrot.slane %v16433_v17, 9  ;;  %v8568_v58 = vrot.slane %v8566_v16, 4  ;;  %v8569_v43 = vrot.slane %v16435_v61, 5  ;;  %v20134_v35 = vld [vmem:[%s26588_s1 + $0x168] sm:$0xff]  }
 0x30e   : > { %18509 = vmatprep.mubr.msk.bf16.mxu1 %vm731_vm4, %v16477_v60  ;;  %v16462_v18 = vrot.slane %v16436_v7, 9  ;;  %v8576_v32 = vrot.slane %v16438_v9, 5  ;;  %v25177_v54 = vsel %vm20288_vm2, %v16460_v25, %v8559_v50  ;;  %v8575_v28 = vrot.slane %v8573_v47, 4  ;;  %v10331_v60 = vld [vmem:[%s20305_s12 + $0xd4] sm:$0xc] }
 0x30f   : > { %v16705_v57 = vrot.slane %v10328_v31, 10  ;;  %v10457_v11 = vrot.slane %v25169_v44, 6  ;;  %v16479_v55 = vcombine.low %v8553_v21, %v8556_v52  ;;  %v25186_v17 = vsel %vm20288_vm2, %v8561_v36, %v8562_v6  ;;  %v10333_v25 = vld [vmem:[%s20305_s12 + $0xdc] sm:$0x3]  ;;  %v25190_v61 = vld [vmem:[%s20305_s12 + $0x4a4] sm:$0xf]  ;;  %18642 = vmatmul.mubr.msk.bf16.vlgmr.msra.gmra.mrb[36].mxu0 %vm731_vm4, %v16720_v14 }
 0x310   : > { %v10452_v19 = vrot.slane %v10450_v2, 4  ;;  %v10453_v50 = vrot.slane %v10330_v62, 6  ;;  %v10437_v7 = vsel %vm20527_vm7, %v16703_v38, %v10436_v26  ;;  %v10440_v9 = vsel %vm20527_vm7, %v10438_v63, %v10439_v33  ;;  %v16439_v21 = vld [vmem:[%s20305_s12 + $0x4a0] sm:$0xe]  ;;  %v25207_v52 = vld [vmem:[%s20305_s12 + $0x4a8] sm:$0x1]  ;;  %18674 = vmatpush3.bf16.msra.mxu0 %v24558_v56  ;;  %18645 = vmatprep.mubr.msk.bf16.mxu0 %vm731_vm4, %v16721_v0 }
 0x311   : > { %v25199_v6 = vsel %vm20527_vm7, %v16704_v39, %v10443_v10  ;;  %v25203_v36 = vsel %vm20527_vm7, %v10445_v8, %v10446_v27  ;;  %v25213_v26 = vsel %vm20288_vm2, %v16461_v22, %v8566_v16  ;;  %v25217_v14 = vsel %vm20288_vm2, %v8568_v58, %v8569_v43  ;;  %v25224_v38 = vld [vmem:[%s20305_s12 + $0x4bc] sm:$0xe]  ;;  %v25227_v63 = vld [vmem:[%s20305_s12 + $0x4c0] sm:$0xf]  ;;  %v25230_v56 = vld [vmem:[%s20305_s12 + $0xf4] sm:$0xf]  ;;  %18675 = vmatprep.subr.bf16.mxu0 %v20134_v35 }
 0x312   : > { %v25221_v10 = vsel %vm20288_vm2, %v16462_v18, %v8573_v47  ;;  %v16706_v0 = vrot.slane %v10331_v60, 10  ;;  %v10459_v33 = vrot.slane %v10457_v11, 4  ;;  %v10460_v16 = vrot.slane %v10333_v25, 6  ;;  %v25236_v44 = vld [vmem:[%s26588_s1 + $0x170] sm:$0xff]   ;;  %v16444_v22 = vld [vmem:[%s20305_s12 + $0x4c4] sm:$0x1] }
 0x313   : > { %v8580_v31 = vrot.slane %v25190_v61, 5  ;;  %v25241_v47 = vsel %vm20288_vm2, %v8575_v28, %v8576_v32  ;;  %v25245_v39 = vsel %vm20527_vm7, %v16705_v57, %v10450_v2  ;;  %v25249_v8 = vsel %vm20527_vm7, %v10452_v19, %v10453_v50  ;;  %v25253_v62 = vld [vmem:[%s20305_s12 + $0x110] sm:$0xf]  ;;  %v25261_v18 = vld [vmem:[%s20305_s12 + $0x4dc] sm:$0xf] }
 0x314   : > { %v16463_v27 = vrot.slane %v16439_v21, 9  ;;  %v16464_v58 = vrot.slane %v25224_v38, 9  ;;  %v8587_v2 = vrot.slane %v25227_v63, 5  ;;  %v10464_v43 = vrot.slane %v25230_v56, 6  ;;  %v10336_v19 = vld [vmem:[%s20305_s12 + $0xf8] sm:$0x3]  ;;  %18676 = vmatpush3.bf16.msra.mxu0 %v20134_v35 }
 0x315   : > { %18510 = vmatmul.mubr.msk.bf16.gmra.mrb[76].mxu1 %vm731_vm4, %v16478_v15  ;;  %v8583_v15 = vrot.slane %v25207_v52, 5  ;;  %v16480_v32 = vcombine.low %v25177_v54, %v25186_v17  ;;  %v16723_v28 = vcombine.low %v10437_v7, %v10440_v9  ;;  %v16724_v57 = vcombine.low %v25199_v6, %v25203_v36  ;;  %v25272_v50 = vld [vmem:[%s20305_s12 + $0x4f8] sm:$0xf]  ;;  %v10337_v61 = vld [vmem:[%s20305_s12 + $0x10c] sm:$0xc]  ;;  %18709 = vmatprep.subr.bf16.mxu0 %v25236_v44 }
 0x316   : > { %18513 = vmatprep.mubr.msk.bf16.mxu1 %vm731_vm4, %v16479_v55  ;;  %v16481_v60 = vcombine.low %v25213_v26, %v25217_v14  ;;  %v10334_v55 = vld [vmem:[%s20305_s12 + $0xf0] sm:$0xc]  ;;  %v25276_v25 = vsel %vm20527_vm7, %v16706_v0, %v10457_v11  ;;  %v25280_v54 = vsel %vm20527_vm7, %v10459_v33, %v10460_v16  ;;  %v8582_v17 = vrot.slane %v8580_v31, 4  ;;  %v10339_v7 = vld [vmem:[%s20305_s12 + $0x114] sm:$0x3] }
 0x317   : > { %v10471_v9 = vrot.slane %v25253_v62, 6  ;;  %v16482_v35 = vcombine.low %v25221_v10, %v25241_v47  ;;  %v16725_v21 = vcombine.low %v25245_v39, %v25249_v8  ;;  %v8590_v11 = vrot.slane %v16444_v22, 5  ;;  %v16445_v52 = vld [vmem:[%s20305_s12 + $0x4d8] sm:$0xe]  ;;  %v25293_v14 = vld [vmem:[%s20305_s12 + $0x12c] sm:$0xf]  ;;  %18646 = vmatmul.mubr.msk.bf16.gmra.mrb[40].mxu0 %vm731_vm4, %v16722_v42 }
 0x318   : > { %v8594_v26 = vrot.slane %v25261_v18, 5  ;;  %v8589_v38 = vrot.slane %v8587_v2, 4  ;;  %v16707_v63 = vrot.slane %v10334_v55, 10  ;;  %v10466_v56 = vrot.slane %v10464_v43, 4  ;;  %v16447_v0 = vld [vmem:[%s20305_s12 + $0x4e0] sm:$0x1]  ;;  %18649 = vmatprep.mubr.msk.bf16.mxu0 %vm731_vm4, %v16723_v28 }
 0x319   : > { %v8601_v33 = vrot.slane %v25272_v50, 5  ;;  %v25306_v39 = vsel %vm20288_vm2, %v16463_v27, %v8580_v31  ;;  %v10467_v20 = vrot.slane %v10336_v19, 6  ;;  %v16708_v5 = vrot.slane %v10337_v61, 10  ;;  %v16448_v42 = vld [vmem:[%s20305_s12 + $0x4f4] sm:$0xe] }
 0x31a   : > { %v16450_v8 = vld [vmem:[%s20305_s12 + $0x4fc] sm:$0x1]  ;;  %v10473_v22 = vrot.slane %v10471_v9, 4  ;;  %v10474_v62 = vrot.slane %v10339_v7, 6  ;;  %v16465_v18 = vrot.slane %v16445_v52, 9  ;;  %v10478_v55 = vrot.slane %v25293_v14, 6 }
 0x31b   : > { %v10344_v28 = vld [vmem:[%s20305_s12 + $0x148] sm:$0xf]  ;;  %v8584_v50 = vsel %vm20288_vm2, %v8582_v17, %v8583_v15  ;;  %v25317_v31 = vsel %vm20288_vm2, %v16464_v58, %v8587_v2  ;;  %v8596_v27 = vrot.slane %v8594_v26, 4  ;;  %v8597_v19 = vrot.slane %v16447_v0, 5  ;;  %v10342_v16 = vld [vmem:[%s20305_s12 + $0x130] sm:$0x3] }
 0x31c   : > { %v10340_v61 = vld [vmem:[%s20305_s12 + $0x128] sm:$0xc]  ;;  %v25324_v7 = vsel %vm20288_vm2, %v8589_v38, %v8590_v11  ;;  %v8603_v52 = vrot.slane %v8601_v33, 4  ;;  %v8604_v14 = vrot.slane %v16450_v8, 5  ;;  %v10343_v15 = vld [vmem:[%s20305_s12 + $0x144] sm:$0xc]  ;;  %v25329_v58 = vsel %vm20527_vm7, %v16707_v63, %v10464_v43 }
 0x31d   : > { %18514 = vmatmul.mubr.msk.bf16.gmra.mrb[80].mxu1 %vm731_vm4, %v16480_v32  ;;  %v16466_v32 = vrot.slane %v16448_v42, 9  ;;  %v25333_v2 = vsel %vm20527_vm7, %v10466_v56, %v10467_v20  ;;  %v10485_v17 = vrot.slane %v10344_v28, 6  ;;  %v16506_v11 = vld [vmem:[%s20305_s12 + $0x358] sm:$0xf]  ;;  %v25342_v38 = vsel %vm20527_vm7, %v10473_v22, %v10474_v62  ;;  %v10345_v63 = vld [vmem:[%s20305_s12 + $0x14c] sm:$0x3] }
 0x31e   : > { %18517 = vmatprep.mubr.msk.bf16.mxu1 %vm731_vm4, %v16481_v60  ;;  %v25337_v60 = vsel %vm20527_vm7, %v16708_v5, %v10471_v9  ;;  %v16709_v0 = vrot.slane %v10340_v61, 10  ;;  %v10480_v42 = vrot.slane %v10478_v55, 4  ;;  %v10481_v43 = vrot.slane %v10342_v16, 6  ;;  %v16505_v5 = vld [vmem:[%s20305_s12 + $0x354] sm:$0x8] }
 0x31f   : > { %v16483_v8 = vcombine.low %v25306_v39, %v8584_v50  ;;  %v25348_v56 = vsel %vm20288_vm2, %v16465_v18, %v8594_v26  ;;  %v25352_v9 = vsel %vm20288_vm2, %v8596_v27, %v8597_v19  ;;  %v16710_v20 = vrot.slane %v10343_v15, 10  ;;  %18650 = vmatmul.mubr.msk.bf16.gmra.mrb[44].mxu0 %vm731_vm4, %v16724_v57  ;;  %v16507_v22 = vld [vmem:[%s20305_s12 + $0x35c] sm:$0x7]  ;;  %v16509_v18 = vld [vmem:[%s20305_s12 + $0x374] sm:$0xf] }
 0x320   : > { %v16484_v16 = vcombine.low %v25317_v31, %v25324_v7  ;;  %v25363_v26 = vsel %vm20288_vm2, %v16466_v32, %v8601_v33  ;;  %v25367_v39 = vsel %vm20288_vm2, %v8603_v52, %v8604_v14  ;;  %v9010_v62 = vrot.slane %v16506_v11, 7  ;;  %18653 = vmatprep.mubr.msk.bf16.mxu0 %vm731_vm4, %v16725_v21  ;;  %v16508_v28 = vld [vmem:[%s20305_s12 + $0x370] sm:$0x8]  ;;  %v10347_v50 = vld [vmem:[%s20305_s12 + $0x164] sm:$0xf] }
 0x321   : > { %v16727_v6 = vcombine.low %v25329_v58, %v25333_v2  ;;  %v16728_v36 = vcombine.low %v25337_v60, %v25342_v38  ;;  %v10487_v57 = vrot.slane %v10485_v17, 4  ;;  %v10488_v33 = vrot.slane %v10345_v63, 6  ;;  %v25381_v27 = vld [vmem:[%s26589_s2 + $0x1] ss:$0 sm:$0xff]  ;;  %v16510_v2 = vld [vmem:[%s20305_s12 + $0x378] sm:$0x7] }
 0x322   : > { %v16485_v19 = vcombine.low %v25348_v56, %v25352_v9  ;;  %v25387_v21 = vsel %vm20527_vm7, %v16709_v0, %v10478_v55  ;;  %v25391_v61 = vsel %vm20527_vm7, %v10480_v42, %v10481_v43  ;;  %v16553_v32 = vrot.slane %v16505_v5, 11  ;;  %v10350_v52 = vld [vmem:[%s20305_s12 + $0x180] sm:$0xf]  ;;  %v18211_v14 = vpop.f32.mrb[4].mxu0  ;;  %v25427_v15 = vld [vmem:[%s20305_s12 + $0x390] sm:$0xf] }
 0x323   : > { %v25402_v55 = vsel %vm20527_vm7, %v16710_v20, %v10485_v17  ;;  %v9013_v58 = vrot.slane %v16507_v22, 7  ;;  %v9017_v11 = vrot.slane %v16509_v18, 7  ;;  %v19026_v0 = vadd.f32 %v24455_v40, %v18211_v14  ;;  %v4940_v42 = vpop.f32.mrb[5].mxu0  ;;  %v10348_v40 = vld [vmem:[%s20305_s12 + $0x168] sm:$0x3] }
 0x324   : > { %v9012_v10 = vrot.slane %v9010_v62, 4  ;;  %v16554_v47 = vrot.slane %v16508_v28, 11  ;;  %v10492_v43 = vrot.slane %v10347_v50, 6  ;;  %v19028_v63 = vadd.f32 %v24496_v13, %v4940_v42  ;;  %v18212_v56 = vpop.f32.mrb[6].mxu0  ;;  %v10349_v20 = vld [vmem:[%s20305_s12 + $0x17c] sm:$0xc] }
 0x325   : > { %18518 = vmatmul.mubr.msk.bf16.gmra.mrb[84].mxu1 %vm731_vm4, %v16482_v35  ;;  %v10346_v35 = vld [vmem:[%s20305_s12 + $0x160] sm:$0xc]  ;;  %v16729_v17 = vcombine.low %v25387_v21, %v25391_v61  ;;  %v25413_v9 = vsel %vm20527_vm7, %v10487_v57, %v10488_v33  ;;  %v10499_v5 = vrot.slane %v10350_v52, 6  ;;  %v19030_v22 = vadd.f32 %v24504_v46, %v18212_v56  ;;  %v4943_v18 = vpop.f32.mrb[7].mxu0  ;;  %v10351_v50 = vld [vmem:[%s20305_s12 + $0x184] sm:$0x3] }
 0x326   : > { %18521 = vmatprep.mubr.msk.bf16.mxu1 %vm731_vm4, %v16483_v8  ;;  %v13807_v8 = vadd.f32 %v19026_v0, %v25381_v27  ;;  %v25421_v13 = vsel %vm21049_vm10, %v16553_v32, %v9010_v62  ;;  %v9020_v28 = vrot.slane %v16510_v2, 7  ;;  %v13805_v14 = vadd.f32 %v19028_v63, %v25381_v27  ;;  %v16516_v21 = vld [vmem:[%s20305_s12 + $0x3b0] sm:$0x7]  ;;  %v16518_v61 = vld [vmem:[%s20305_s12 + $0x3c8] sm:$0xf] }
 0x327   : > { %v19032_v42 = vadd.f32 %v24550_v59, %v4943_v18  ;;  %v9019_v57 = vrot.slane %v9017_v11, 4  ;;  %v16711_v33 = vrot.slane %v10346_v35, 10  ;;  %v13808_v52 = vadd.f32 %v19030_v22, %v25381_v27 }
 0x328   : > { %v27259_v46 = vcombine.low %v25276_v25, %v25280_v54  ;;  %v10494_v62 = vrot.slane %v10492_v43, 4  ;;  %v10495_v32 = vrot.slane %v10348_v40, 6  ;;  %v16712_v2 = vrot.slane %v10349_v20, 10  ;;  %v16511_v54 = vld [vmem:[%s20305_s12 + $0x38c] sm:$0x8] }
 0x329   : > { %v13806_v0 = vadd.f32 %v19032_v42, %v25381_v27  ;;  %v25438_v59 = vsel %vm21049_vm10, %v9012_v10, %v9013_v58  ;;  %v10501_v35 = vrot.slane %v10499_v5, 4  ;;  %v10502_v63 = vrot.slane %v10351_v50, 6  ;;  %v16513_v10 = vld [vmem:[%s20305_s12 + $0x394] sm:$0x7] }
 0x32a   : > { %18654 = vmatmul.mubr.msk.bf16.gmra.mrb[48].mxu0 %vm731_vm4, %v27259_v46  ;;  %v13839_v56 = vmax.f32 %v13807_v8, 0.0  ;;  %v13840_v22 = vmax.f32 %v13808_v52, 0.0  ;;  %v25442_v25 = vsel %vm21049_vm10, %v16554_v47, %v9017_v11  ;;  %v9024_v40 = vrot.slane %v25427_v15, 7 }
 0x32b   : > { %18657 = vmatprep.mubr.msk.bf16.mxu0 %vm731_vm4, %v16727_v6  ;;  %v13837_v20 = vmax.f32 %v13805_v14, 0.0  ;;  %v13838_v18 = vmax.f32 %v13806_v0, 0.0  ;;  %v18215_v6 = vpop.f32.mrb[8].mxu0  ;;  %v25452_v58 = vsel %vm21049_vm10, %v9019_v57, %v9020_v28  ;;  %v25456_v11 = vsel %vm20527_vm7, %v16711_v33, %v10492_v43  ;;  %v25479_v14 = vld [vmem:[%s20305_s12 + $0x3a8] sm:$0x8] }
 0x32c   : > { %v25459_v15 = vpack.c.bf16 %v13840_v22, %v13839_v56  ;;  %v19034_v47 = vadd.f32 %v24561_v3, %v18215_v6  ;;  %v4956_v8 = vpop.f32.mrb[9].mxu0  ;;  %v25465_v31 = vsel %vm20527_vm7, %v10494_v62, %v10495_v32  ;;  %v25469_v7 = vsel %vm20527_vm7, %v16712_v2, %v10499_v5 }
 0x32d   : > { %18522 = vmatmul.mubr.msk.bf16.gmra.mrb[88].mxu1 %vm731_vm4, %v16484_v16  ;;  %v25471_v16 = vpack.c.bf16 %v13838_v18, %v13837_v20  ;;  %v19036_v43 = vadd.f32 %v24564_v37, %v4956_v8  ;;  %v18216_v28 = vpop.f32.mrb[10].mxu0  ;;  %v25476_v3 = vsel %vm20527_vm7, %v10501_v35, %v10502_v63  ;;  %v16555_v50 = vrot.slane %v16511_v54, 11  ;;  %v25487_v37 = vld [vmem:[%s20305_s12 + $0x3ac] sm:$0xf]  ;;  %v10352_v35 = vld [vmem:[%s20305_s12 + $0x198] sm:$0xc] }
 0x32e   : > { %18525 = vmatprep.mubr.msk.bf16.mxu1 %vm731_vm4, %v16485_v19  ;;  %v25482_v19 = vld [vmem:[%s20305_s12 + $0x19c] sm:$0xf]  ;;  %v13811_v42 = vadd.f32 %v19034_v47, %v25381_v27  ;;  %v19038_v5 = vadd.f32 %v24567_v29, %v18216_v28  ;;  %v4959_v57 = vpop.f32.mrb[11].mxu0  ;;  %v9026_v33 = vrot.slane %v9024_v40, 4  ;;  %v9027_v52 = vrot.slane %v16513_v10, 7 }
 0x32f   : > { %v13809_v46 = vadd.f32 %v19036_v43, %v25381_v27  ;;  %v19040_v62 = vadd.f32 %v24687_v4, %v4959_v57  ;;  %v16730_v32 = vcombine.low %v25402_v55, %v25413_v9  ;;  %v16573_v2 = vcombine.low %v25421_v13, %v25438_v59  ;;  %v25507_v9 = vld [vmem:[%s20305_s12 + $0x1b8] sm:$0xf]  ;;  %v10354_v59 = vld [vmem:[%s20305_s12 + $0x1a0] sm:$0x3]  ;;  %v25535_v28 = vld [vmem:[%s20305_s12 + $0x1b4] sm:$0xc] }
 0x330   : > { %v13812_v0 = vadd.f32 %v19038_v5, %v25381_v27  ;;  %v16574_v29 = vcombine.low %v25442_v25, %v25452_v58  ;;  %v16731_v4 = vcombine.low %v25456_v11, %v25465_v31  ;;  %v10506_v55 = vrot.slane %v25482_v19, 6  ;;  %v16517_v19 = vld [vmem:[%s20305_s12 + $0x3c4] sm:$0x8]  ;;  %v16522_v25 = vld [vmem:[%s20305_s12 + $0x3e8] sm:$0x7] }
 0x331   : > { %v13810_v13 = vadd.f32 %v19040_v62, %v25381_v27  ;;  %v16732_v60 = vcombine.low %v25469_v7, %v25476_v3  ;;  %v16556_v38 = vrot.slane %v25479_v14, 11  ;;  %v13843_v63 = vmax.f32 %v13811_v42, 0.0  ;;  %v27261_v62 = vld [vmem:[#allocation67_spill] sm:$0xff]  ;;  %v27264_v3 = vld [vmem:[#allocation57_spill] sm:$0xff] }
 0x332   : > { %18658 = vmatmul.mubr.msk.bf16.gmra.mrb[52].mxu0 %vm731_vm4, %v16728_v36  ;;  %v9031_v36 = vrot.slane %v25487_v37, 7  ;;  %v13844_v56 = vmax.f32 %v13812_v0, 0.0  ;;  %v9025_v22 = vsel %vm21049_vm10, %v16555_v50, %v9024_v40  ;;  %v9028_v54 = vsel %vm21049_vm10, %v9026_v33, %v9027_v52  ;;  %v18219_v6 = vpop.f32.mrb[12].mxu0  ;;  %v16519_v37 = vld [vmem:[%s20305_s12 + $0x3cc] sm:$0x7] }
 0x333   : > { %18661 = vmatprep.mubr.msk.bf16.mxu0 %vm731_vm4, %v16729_v17  ;;  %v13841_v17 = vmax.f32 %v13809_v46, 0.0  ;;  %v13842_v20 = vmax.f32 %v13810_v13, 0.0  ;;  %v27260_v18 = vcombine.low %v25363_v26, %v25367_v39  ;;  %v16713_v11 = vrot.slane %v10352_v35, 10  ;;  %v4972_v8 = vpop.f32.mrb[13].mxu0 }
 0x334   : > { %v10513_v10 = vrot.slane %v25507_v9, 6  ;;  %v25530_v47 = vpack.c.bf16 %v13844_v56, %v13843_v63  ;;  %v19042_v40 = vadd.f32 %v24690_v23, %v18219_v6  ;;  %v10508_v31 = vrot.slane %v10506_v55, 4  ;;  %v18220_v50 = vpop.f32.mrb[14].mxu0  ;;  %v16521_v63 = vld [vmem:[%s20305_s12 + $0x3e4] sm:$0xf] }
 0x335   : > { %18526 = vmatmul.mubr.msk.bf16.gmra.mrb[92].mxu1 %vm731_vm4, %v27260_v18  ;;  %v10509_v43 = vrot.slane %v10354_v59, 6  ;;  %v25537_v26 = vpack.c.bf16 %v13842_v20, %v13841_v17  ;;  %v19044_v39 = vadd.f32 %v24693_v53, %v4972_v8  ;;  %v9034_v14 = vrot.slane %v16516_v21, 7  ;;  %v4975_v57 = vpop.f32.mrb[15].mxu0  ;;  %v25566_v18 = vld [vmem:[%s20305_s12 + $0x400] sm:$0xf] }
 0x336   : > { %18533 = vmatprep.mubr.msk.bf16.mxu1 %vm731_vm4, %v16573_v2  ;;  %v9038_v42 = vrot.slane %v16518_v61, 7  ;;  %v13815_v5 = vadd.f32 %v19042_v40, %v25381_v27  ;;  %v19046_v23 = vadd.f32 %v24846_v45, %v18220_v50  ;;  %v16575_v33 = vcombine.low %v9025_v22, %v9028_v54  ;;  %v10357_v22 = vld [vmem:[%s20305_s12 + $0x1bc] sm:$0x3] }
 0x337   : > { %v9033_v52 = vrot.slane %v9031_v36, 4  ;;  %v13813_v46 = vadd.f32 %v19044_v39, %v25381_v27  ;;  %v19048_v2 = vadd.f32 %v27261_v62, %v4975_v57  ;;  %v16714_v53 = vrot.slane %v25535_v28, 10  ;;  %v16525_v62 = vld [vmem:[%s20305_s12 + $0x404] sm:$0x7] }
 0x338   : > { %v10515_v0 = vrot.slane %v10513_v10, 4  ;;  %v13816_v35 = vadd.f32 %v19046_v23, %v25381_v27  ;;  %v10507_v45 = vsel %vm20527_vm7, %v16713_v11, %v10506_v55  ;;  %v10510_v13 = vsel %vm20527_vm7, %v10508_v31, %v10509_v43  ;;  %v27262_v31 = vld [vmem:[#allocation72_spill] sm:$0xff]  ;;  %v16523_v23 = vld [vmem:[%s20305_s12 + $0x3fc] sm:$0x8] }
 0x339   : > { %v16557_v59 = vrot.slane %v16517_v19, 11  ;;  %v13814_v56 = vadd.f32 %v19048_v2, %v25381_v27  ;;  %v9040_v54 = vrot.slane %v9038_v42, 4  ;;  %v9041_v21 = vrot.slane %v16519_v37, 7  ;;  %v914_v2 = vld [vmem:[#allocation2 + $0x188] sm:$0xff] }
 0x33a   : > { %18662 = vmatmul.mubr.msk.bf16.gmra.mrb[56].mxu0 %vm731_vm4, %v16730_v32  ;;  %v13596_v61 = vsel %vm1397_vm5, %v25030_v12, 0  ;;  %v13847_v32 = vmax.f32 %v13815_v5, 0.0  ;;  %v13848_v17 = vmax.f32 %v13816_v35, 0.0  ;;  %v9032_v55 = vsel %vm21049_vm10, %v16556_v38, %v9031_v36  ;;  %v18223_v12 = vpop.f32.mrb[16].mxu0  ;;  %v16520_v36 = vld [vmem:[%s20305_s12 + $0x3e0] sm:$0x8] }
 0x33b   : > { %18665 = vmatprep.mubr.msk.bf16.mxu0 %vm731_vm4, %v16731_v4  ;;  %v9035_v20 = vsel %vm21049_vm10, %v9033_v52, %v9034_v14  ;;  %v25571_v4 = vld [vmem:[%s26590_s3 + $0x2] sm:$0x3]  ;;  %v13845_v6 = vmax.f32 %v13813_v46, 0.0  ;;  %v13846_v11 = vmax.f32 %v13814_v56, 0.0  ;;  %v16733_v38 = vcombine.low %v10507_v45, %v10510_v13  ;;  %v4988_v28 = vpop.f32.mrb[17].mxu0 }
 0x33c   : > { %v9045_v40 = vrot.slane %v16521_v63, 7  ;;  %v25578_v8 = vpack.c.bf16 %v13848_v17, %v13847_v32  ;;  %v19050_v43 = vadd.f32 %v27262_v31, %v18223_v12  ;;  %v10516_v39 = vrot.slane %v10357_v22, 6  ;;  %v18224_v19 = vpop.f32.mrb[18].mxu0  ;;  %v16528_v31 = vld [vmem:[%s20305_s12 + $0x420] sm:$0x7] }
 0x33d   : > { %18534 = vmatmul.mubr.msk.bf16.vlgmr.msra.gmra.mrb[64].mxu1 %vm731_vm4, %v16574_v29  ;;  %v9039_v50 = vsel %vm21049_vm10, %v16557_v59, %v9038_v42  ;;  %v25585_v58 = vpack.c.bf16 %v13846_v11, %v13845_v6  ;;  %v27263_v29 = vld [vmem:[#allocation73_spill] sm:$0xff]  ;;  %v9042_v5 = vsel %vm21049_vm10, %v9040_v54, %v9041_v21  ;;  %v9052_v57 = vrot.slane %v25566_v18, 7  ;;  %v4991_v52 = vpop.f32.mrb[19].mxu0  ;;  %v16527_v54 = vld [vmem:[%s20305_s12 + $0x41c] sm:$0xf] }
 0x33e   : > { %18537 = vmatprep.mubr.msk.bf16.mxu1 %vm731_vm4, %v16575_v33  ;;  %18890 = vmatpush3.bf16.msra.mxu1 %v13596_v61  ;;  %v19052_v14 = vadd.f32 %v27263_v29, %v4988_v28  ;;  %v13819_v33 = vadd.f32 %v19050_v43, %v25381_v27  ;;  %v19054_v42 = vadd.f32 %v24913_v49, %v18224_v19  ;;  %v16558_v46 = vrot.slane %v16520_v36, 11  ;;  %v16526_v18 = vld [vmem:[%s20305_s12 + $0x418] sm:$0x8]  ;;  %v919_v43 = vld [vmem:[#allocation2 + $0x1b0] sm:$0xff]  ;;  %v917_v19 = vld [vmem:[#allocation2 + $0x1a0] sm:$0xff] }
 0x33f   : > { %20018 = vmatprep.subr.msk.bf16.mxu1 %vm1397_vm5, %v25571_v4  ;;  %v16576_v37 = vcombine.low %v9032_v55, %v9035_v20  ;;  %v19056_v45 = vadd.f32 %v25050_v48, %v4991_v52  ;;  %v9047_v13 = vrot.slane %v9045_v40, 4  ;;  %v9048_v59 = vrot.slane %v16522_v25, 7  ;;  %v20137_v25 = vld [vmem:[%s20305_s12 + $0x1f8] sm:$0xff]  }
 0x340   : > { %v13817_v35 = vadd.f32 %v19052_v14, %v25381_v27  ;;  %v13820_v63 = vadd.f32 %v19054_v42, %v25381_v27  ;;  %v10514_v49 = vsel %vm20527_vm7, %v16714_v53, %v10513_v10  ;;  %v16577_v56 = vcombine.low %v9039_v50, %v9042_v5  ;;  %v25617_v53 = vld [vmem:[%s20305_s12 + $0x438] sm:$0xf]  ;;  %v16531_v52 = vld [vmem:[%s20305_s12 + $0x43c] sm:$0x7] }
 0x341   : > { %v16559_v22 = vrot.slane %v16523_v23, 11  ;;  %v13818_v48 = vadd.f32 %v19056_v45, %v25381_v27  ;;  %v10517_v21 = vsel %vm20527_vm7, %v10515_v0, %v10516_v39  ;;  %v9054_v61 = vrot.slane %v9052_v57, 4 }
 0x342   : > { %18666 = vmatmul.mubr.msk.bf16.gmra.mrb[60].mxu0 %vm731_vm4, %v16732_v60  ;;  %v9055_v7 = vrot.slane %v16525_v62, 7  ;;  %v19063_v60 = vadd.f32 %v27264_v3, %v914_v2  ;;  %v13851_v32 = vmax.f32 %v13819_v33, 0.0  ;;  %v13852_v9 = vmax.f32 %v13820_v63, 0.0  ;;  %v18227_v20 = vpop.f32.mrb[20].mxu0 }
 0x343   : > { %18669 = vmatprep.mubr.msk.bf16.mxu0 %vm731_vm4, %v16733_v38  ;;  %v9046_v10 = vsel %vm21049_vm10, %v16558_v46, %v9045_v40  ;;  %v13849_v17 = vmax.f32 %v13817_v35, 0.0  ;;  %v13850_v55 = vmax.f32 %v13818_v48, 0.0  ;;  %v9049_v0 = vsel %vm21049_vm10, %v9047_v13, %v9048_v59  ;;  %v5004_v38 = vpop.f32.mrb[21].mxu0  ;;  %v27265_v35 = vld [vmem:[#allocation59_spill] sm:$0xff] }
 0x344   : > { %v9059_v6 = vrot.slane %v16527_v54, 7  ;;  %v25623_v11 = vpack.c.bf16 %v13852_v9, %v13851_v32  ;;  %v19058_v12 = vadd.f32 %v25130_v1, %v18227_v20  ;;  %v16734_v36 = vcombine.low %v10514_v49, %v10517_v21  ;;  %v18228_v50 = vpop.f32.mrb[22].mxu0  ;;  %v16529_v1 = vld [vmem:[%s20305_s12 + $0x434] sm:$0x8]  ;;  %v25655_v9 = vld [vmem:[%s20305_s12 + $0x470] sm:$0xf] }
 0x345   : > { %18538 = vmatmul.mubr.msk.bf16.gmra.mrb[68].mxu1 %vm731_vm4, %v16576_v37  ;;  %v9053_v40 = vsel %vm21049_vm10, %v16559_v22, %v9052_v57  ;;  %v25630_v28 = vpack.c.bf16 %v13850_v55, %v13849_v17  ;;  %v19060_v39 = vadd.f32 %v25133_v34, %v5004_v38  ;;  %v9056_v29 = vsel %vm21049_vm10, %v9054_v61, %v9055_v7  ;;  %v5007_v57 = vpop.f32.mrb[23].mxu0  ;;  %v920_v37 = vld [vmem:[#allocation2 + $0x1b8] sm:$0xff]  ;;  %v918_v22 = vld [vmem:[#allocation2 + $0x1a8] sm:$0xff]  ;;  %v16532_v20 = vld [vmem:[%s20305_s12 + $0x450] sm:$0x8] }
 0x346   : > { %18541 = vmatprep.mubr.msk.bf16.mxu1 %vm731_vm4, %v16577_v56  ;;  %v9066_v14 = vrot.slane %v25617_v53, 7  ;;  %v13823_v5 = vadd.f32 %v19058_v12, %v25381_v27  ;;  %v19062_v23 = vadd.f32 %v25136_v30, %v18228_v50  ;;  %v16578_v33 = vcombine.low %v9046_v10, %v9049_v0  ;;  %v25646_v30 = vld [vmem:[%s20305_s12 + $0x454] sm:$0xf]  ;;  %v27267_v61 = vld [vmem:[#allocation68_spill] sm:$0xff] }
 0x347   : > { %v16560_v42 = vrot.slane %v16526_v18, 11  ;;  %v13821_v34 = vadd.f32 %v19060_v39, %v25381_v27  ;;  %v19064_v46 = vadd.f32 %v19063_v60, %v5007_v57  ;;  %v9061_v62 = vrot.slane %v9059_v6, 4  ;;  %v27266_v49 = vld [vmem:[#allocation62_spill] sm:$0xff]  ;;  %v27268_v18 = vld [vmem:[#allocation63_spill] sm:$0xff] }
 0x348   : > { %v9062_v2 = vrot.slane %v16528_v31, 7  ;;  %v19065_v45 = vadd.f32 %v27265_v35, %v919_v43  ;;  %v13824_v13 = vadd.f32 %v19062_v23, %v25381_v27  ;;  %v16579_v59 = vcombine.low %v9053_v40, %v9056_v29  ;;  %v20139_v40 = vld [vmem:[%s20305_s12 + $0x214] sm:$0xff]   ;;  %v921_v57 = vld [vmem:[#allocation2 + $0x1c0] sm:$0xff] }
 0x349   : > { %v16561_v63 = vrot.slane %v16529_v1, 11  ;;  %v19067_v56 = vadd.f32 %v27266_v49, %v917_v19  ;;  %v13822_v54 = vadd.f32 %v19064_v46, %v25381_v27  ;;  %v9068_v48 = vrot.slane %v9066_v14, 4  ;;  %v16534_v43 = vld [vmem:[%s20305_s12 + $0x458] sm:$0x7]  ;;  %v923_v39 = vld [vmem:[#allocation2 + $0x1d0] sm:$0xff] }
 0x34a   : > { %18670 = vmatmul.mubr.msk.bf16.gmra.mrb[64].mxu0 %vm731_vm4, %v16734_v36  ;;  %v9069_v21 = vrot.slane %v16531_v52, 7  ;;  %v19069_v7 = vadd.f32 %v27267_v61, %v920_v37  ;;  %v13855_v3 = vmax.f32 %v13823_v5, 0.0  ;;  %v13856_v60 = vmax.f32 %v13824_v13, 0.0  ;;  %v18231_v17 = vpop.f32.mrb[24].mxu0  ;;  %v20140_v1 = vld [vmem:[%s20305_s12 + $0x230] sm:$0xff]   ;;  %v20147_v46 = vld [vmem:[%s26588_s1 + $0x178] sm:$0xff]  }
 0x34b   : > { %18677 = vmatprep.mubr.msk.bf16.mxu0 %vm731_vm4, %v20137_v25  ;;  %v9060_v32 = vsel %vm21049_vm10, %v16560_v42, %v9059_v6  ;;  %v13853_v10 = vmax.f32 %v13821_v34, 0.0  ;;  %v13854_v53 = vmax.f32 %v13822_v54, 0.0  ;;  %v9063_v55 = vsel %vm21049_vm10, %v9061_v62, %v9062_v2  ;;  %v5020_v36 = vpop.f32.mrb[25].mxu0  ;;  %v16535_v5 = vld [vmem:[%s20305_s12 + $0x46c] sm:$0x8]  ;;  %v924_v62 = vld [vmem:[#allocation2 + $0x1d8] sm:$0xff] }
 0x34c   : > { %v9073_v0 = vrot.slane %v25646_v30, 7  ;;  %v19071_v12 = vadd.f32 %v27268_v18, %v918_v22  ;;  %v25663_v38 = vpack.c.bf16 %v13856_v60, %v13855_v3  ;;  %v19066_v6 = vadd.f32 %v19065_v45, %v18231_v17  ;;  %v18232_v29 = vpop.f32.mrb[26].mxu0  ;;  %v16537_v34 = vld [vmem:[%s20305_s12 + $0x474] sm:$0x7]  ;;  %v25687_v22 = vld [vmem:[%s20305_s12 + $0x48c] sm:$0xf] }
 0x34d   : > { %18542 = vmatmul.mubr.msk.bf16.gmra.mrb[72].mxu1 %vm731_vm4, %v16578_v33  ;;  %v9067_v31 = vsel %vm21049_vm10, %v16561_v63, %v9066_v14  ;;  %v25670_v50 = vpack.c.bf16 %v13854_v53, %v13853_v10  ;;  %v19068_v25 = vadd.f32 %v19067_v56, %v5020_v36  ;;  %v9070_v19 = vsel %vm21049_vm10, %v9068_v48, %v9069_v21  ;;  %v5023_v14 = vpop.f32.mrb[27].mxu0  ;;  %v27270_v54 = vld [vmem:[#allocation65_spill] sm:$0xff]  ;;  %v27271_v60 = vld [vmem:[#allocation66_spill] sm:$0xff]  ;;  %v27272_v36 = vld [vmem:[#allocation71_spill] sm:$0xff] }
 0x34e   : > { %18545 = vmatprep.mubr.msk.bf16.mxu1 %vm731_vm4, %v16579_v59  ;;  %v9080_v23 = vrot.slane %v25655_v9, 7  ;;  %v13827_v33 = vadd.f32 %v19066_v6, %v25381_v27  ;;  %v19070_v42 = vadd.f32 %v19069_v7, %v18232_v29  ;;  %v16580_v52 = vcombine.low %v9060_v32, %v9063_v55  ;;  %v27269_v59 = vld [vmem:[#allocation70_spill] sm:$0xff]  ;;  %v922_v21 = vld [vmem:[#allocation2 + $0x1c8] sm:$0xff] }
 0x34f   : > { %v16562_v37 = vrot.slane %v16532_v20, 11  ;;  %v13825_v2 = vadd.f32 %v19068_v25, %v25381_v27  ;;  %v19072_v35 = vadd.f32 %v19071_v12, %v5023_v14  ;;  %v9075_v45 = vrot.slane %v9073_v0, 4  ;;  %v25697_v17 = vld [vmem:[%s20305_s12 + $0x4a8] sm:$0xf]  ;;  %v927_v55 = vld [vmem:[#allocation2 + $0x1f0] sm:$0xff] }
 0x350   : > { %v9076_v13 = vrot.slane %v16534_v43, 7  ;;  %v19073_v63 = vadd.f32 %v27269_v59, %v923_v39  ;;  %v13828_v30 = vadd.f32 %v19070_v42, %v25381_v27  ;;  %v16581_v49 = vcombine.low %v9067_v31, %v9070_v19  ;;  %v20141_v25 = vld [vmem:[%s20305_s12 + $0x24c] sm:$0xff]   ;;  %v16538_v19 = vld [vmem:[%s20305_s12 + $0x488] sm:$0x8] }
 0x351   : > { %v16563_v56 = vrot.slane %v16535_v5, 11  ;;  %v19075_v48 = vadd.f32 %v27270_v54, %v921_v57  ;;  %v13826_v61 = vadd.f32 %v19072_v35, %v25381_v27  ;;  %v9082_v7 = vrot.slane %v9080_v23, 4  ;;  %v20142_v29 = vld [vmem:[%s20305_s12 + $0x268] sm:$0xff]   ;;  %v16540_v14 = vld [vmem:[%s20305_s12 + $0x490] sm:$0x7] }
 0x352   : > { %18678 = vmatmul.mubr.msk.bf16.vlgmr.msra.gmra.mrb[36].mxu0 %vm731_vm4, %v20139_v40  ;;  %v9083_v3 = vrot.slane %v16537_v34, 7  ;;  %v19077_v32 = vadd.f32 %v27271_v60, %v924_v62  ;;  %v13859_v9 = vmax.f32 %v13827_v33, 0.0  ;;  %v13860_v10 = vmax.f32 %v13828_v30, 0.0  ;;  %v18235_v12 = vpop.f32.mrb[28].mxu0  ;;  %v27273_v34 = vld [vmem:[#allocation64_spill] sm:$0xff] }
 0x353   : > { %18710 = vmatpush3.bf16.msra.mxu0 %v25236_v44  ;;  %18681 = vmatprep.mubr.msk.bf16.mxu0 %vm731_vm4, %v20140_v1  ;;  %v9074_v53 = vsel %vm21049_vm10, %v16562_v37, %v9073_v0  ;;  %v25702_v44 = vld [vmem:[%s26588_s1 + $0x180] sm:$0xff]   ;;  %v13857_v20 = vmax.f32 %v13825_v2, 0.0  ;;  %v13858_v18 = vmax.f32 %v13826_v61, 0.0  ;;  %v9077_v0 = vsel %vm21049_vm10, %v9075_v45, %v9076_v13  ;;  %v5036_v39 = vpop.f32.mrb[29].mxu0  ;;  %v16543_v59 = vld [vmem:[%s20305_s12 + $0x4ac] sm:$0x7] }
 0x354   : > { %18711 = vmatprep.subr.bf16.mxu0 %v20147_v46  ;;  %v9087_v6 = vrot.slane %v25687_v22, 7  ;;  %v19079_v40 = vadd.f32 %v27272_v36, %v922_v21  ;;  %v25709_v31 = vpack.c.bf16 %v13860_v10, %v13859_v9  ;;  %v19074_v43 = vadd.f32 %v19073_v63, %v18235_v12  ;;  %v18236_v33 = vpop.f32.mrb[30].mxu0  ;;  %v925_v2 = vld [vmem:[#allocation2 + $0x1e0] sm:$0xff]  ;;  %v928_v63 = vld [vmem:[#allocation2 + $0x1f8] sm:$0xff]  ;;  %v926_v30 = vld [vmem:[#allocation2 + $0x1e8] sm:$0xff] }
 0x355   : > { %18546 = vmatmul.mubr.msk.bf16.gmra.mrb[76].mxu1 %vm731_vm4, %v16580_v52  ;;  %v9081_v1 = vsel %vm21049_vm10, %v16563_v56, %v9080_v23  ;;  %v25717_v5 = vpack.c.bf16 %v13858_v18, %v13857_v20  ;;  %v19076_v57 = vadd.f32 %v19075_v48, %v5036_v39  ;;  %v9084_v42 = vsel %vm21049_vm10, %v9082_v7, %v9083_v3  ;;  %v16541_v52 = vld [vmem:[%s20305_s12 + $0x4a4] sm:$0x8]  ;;  %v5039_v45 = vpop.f32.mrb[31].mxu0  ;;  %v27274_v3 = vld [vmem:[#allocation25_spill] sm:$0xff] }
 0x356   : > { %18549 = vmatprep.mubr.msk.bf16.mxu1 %vm731_vm4, %v16581_v49  ;;  %v9094_v37 = vrot.slane %v25697_v17, 7  ;;  %v19081_v62 = vadd.f32 %v27273_v34, %v927_v55  ;;  %v13831_v35 = vadd.f32 %v19074_v43, %v25381_v27  ;;  %v19078_v23 = vadd.f32 %v19077_v32, %v18236_v33  ;;  %v16545_v7 = vld [vmem:[%s20305_s12 + $0x4c4] sm:$0xf]  ;;  %v27276_v55 = vld [vmem:[#allocation74_spill] sm:$0xff] }
 0x357   : > { %18712 = vmatpush3.bf16.msra.mxu0 %v20147_v46  ;;  %v16582_v13 = vcombine.low %v9074_v53, %v9077_v0  ;;  %v13829_v49 = vadd.f32 %v19076_v57, %v25381_v27  ;;  %v19080_v56 = vadd.f32 %v19079_v40, %v5039_v45  ;;  %v16564_v22 = vrot.slane %v16538_v19, 11  ;;  %v27275_v53 = vld [vmem:[#allocation23_spill] sm:$0xff]  ;;  %v20143_v57 = vld [vmem:[%s20305_s12 + $0x284] sm:$0xff]  }
 0x358   : > { %18745 = vmatprep.subr.bf16.mxu0 %v25702_v44  ;;  %v9089_v54 = vrot.slane %v9087_v6, 4  ;;  %v13832_v46 = vadd.f32 %v19078_v23, %v25381_v27  ;;  %v16583_v48 = vcombine.low %v9081_v1, %v9084_v42  ;;  %v9090_v21 = vrot.slane %v16540_v14, 7  ;;  %v16548_v0 = vld [vmem:[%s20305_s12 + $0x4e0] sm:$0xf] }
 0x359   : > { %v16565_v61 = vrot.slane %v16541_v52, 11  ;;  %v19083_v60 = vadd.f32 %v27274_v3, %v925_v2  ;;  %v13830_v32 = vadd.f32 %v19080_v56, %v25381_v27  ;;  %v9096_v9 = vrot.slane %v9094_v37, 4  ;;  %v20144_v42 = vld [vmem:[%s20305_s12 + $0x2a0] sm:$0xff]  }
 0x35a   : > { %18682 = vmatmul.mubr.msk.bf16.gmra.mrb[40].mxu0 %vm731_vm4, %v20141_v25  ;;  %v9097_v10 = vrot.slane %v16543_v59, 7  ;;  %v19085_v17 = vadd.f32 %v27275_v53, %v928_v63  ;;  %v19087_v20 = vadd.f32 %v27276_v55, %v926_v30  ;;  %v13863_v18 = vmax.f32 %v13831_v35, 0.0  ;;  %v18239_v43 = vpop.f32.mrb[32].mxu0  ;;  %v16544_v2 = vld [vmem:[%s20305_s12 + $0x4c0] sm:$0x8] }
 0x35b   : > { %18685 = vmatprep.mubr.msk.bf16.mxu0 %vm731_vm4, %v20142_v29  ;;  %v13864_v12 = vmax.f32 %v13832_v46, 0.0  ;;  %v13861_v36 = vmax.f32 %v13829_v49, 0.0  ;;  %v13862_v40 = vmax.f32 %v13830_v32, 0.0  ;;  %v9088_v39 = vsel %vm21049_vm10, %v16564_v22, %v9087_v6  ;;  %v5052_v19 = vpop.f32.mrb[33].mxu0  ;;  %v16546_v35 = vld [vmem:[%s20305_s12 + $0x4c8] sm:$0x7] }
 0x35c   : > { %v9101_v25 = vrot.slane %v16545_v7, 7  ;;  %v19082_v1 = vadd.f32 %v19081_v62, %v18239_v43  ;;  %v9091_v33 = vsel %vm21049_vm10, %v9089_v54, %v9090_v21  ;;  %v9095_v14 = vsel %vm21049_vm10, %v16565_v61, %v9094_v37  ;;  %v18240_v34 = vpop.f32.mrb[34].mxu0  ;;  %v16547_v63 = vld [vmem:[%s20305_s12 + $0x4dc] sm:$0x8]  ;;  %v16549_v30 = vld [vmem:[%s20305_s12 + $0x4e4] sm:$0x7] }
 0x35d   : > { %18550 = vmatmul.mubr.msk.bf16.gmra.mrb[80].mxu1 %vm731_vm4, %v16582_v13  ;;  %v25741_v29 = vpack.c.bf16 %v13864_v12, %v13863_v18  ;;  %v25750_v52 = vpack.c.bf16 %v13862_v40, %v13861_v36  ;;  %v19084_v6 = vadd.f32 %v19083_v60, %v5052_v19  ;;  %v9098_v62 = vsel %vm21049_vm10, %v9096_v9, %v9097_v10  ;;  %v5055_v59 = vpop.f32.mrb[35].mxu0  ;;  %v16551_v32 = vld [vmem:[%s20305_s12 + $0x4fc] sm:$0xf] }
 0x35e   : > { %18553 = vmatprep.mubr.msk.bf16.mxu1 %vm731_vm4, %v16583_v48  ;;  %v9108_v23 = vrot.slane %v16548_v0, 7  ;;  %v13835_v45 = vadd.f32 %v19082_v1, %v25381_v27  ;;  %v19086_v13 = vadd.f32 %v19085_v17, %v18240_v34  ;;  %v19088_v37 = vadd.f32 %v19087_v20, %v5055_v59  ;;  %v20145_v20 = vld [vmem:[%s20305_s12 + $0x2bc] sm:$0xff]   ;;  %v27279_v59 = vld [vmem:[#allocation46_spill] sm:$0xff] }
 0x35f   : > { %v13833_v49 = vadd.f32 %v19084_v6, %v25381_v27  ;;  %v16584_v56 = vcombine.low %v9088_v39, %v9091_v33  ;;  %v9103_v22 = vrot.slane %v9101_v25, 4  ;;  %v16585_v46 = vcombine.low %v9095_v14, %v9098_v62  ;;  %v20146_v36 = vld [vmem:[%s20305_s12 + $0x2d8] sm:$0xff]   ;;  %v16552_v1 = vld [vmem:[%s20305_s12 + $0x500] sm:$0x7]  ;;  %v20149_v62 = vld [vmem:[%s20305_s12 + $0x310] sm:$0xff]  }
 0x360   : > { %v13836_v54 = vadd.f32 %v19086_v13, %v25381_v27  ;;  %v16566_v48 = vrot.slane %v16544_v2, 11  ;;  %v9104_v21 = vrot.slane %v16546_v35, 7  ;;  %v13834_v61 = vadd.f32 %v19088_v37, %v25381_v27  ;;  %v16550_v39 = vld [vmem:[%s20305_s12 + $0x4f8] sm:$0x8]  ;;  %v27277_v35 = vld [vmem:[#allocation45_spill] sm:$0xff]  ;;  %v27278_v13 = vld [vmem:[#allocation42_spill] sm:$0xff] }
 0x361   : > { %v16567_v7 = vrot.slane %v16547_v63, 11  ;;  %v9110_v3 = vrot.slane %v9108_v23, 4  ;;  %v9111_v60 = vrot.slane %v16549_v30, 7  ;;  %v13867_v9 = vmax.f32 %v13835_v45, 0.0  ;;  %v20148_v14 = vld [vmem:[%s20305_s12 + $0x2f4] sm:$0xff]   ;;  %v20151_v45 = vld [vmem:[%s20305_s12 + $0x348] sm:$0xff]  }
 0x362   : > { %18686 = vmatmul.mubr.msk.bf16.gmra.mrb[44].mxu0 %vm731_vm4, %v20143_v57  ;;  %v13868_v10 = vmax.f32 %v13836_v54, 0.0  ;;  %v13865_v53 = vmax.f32 %v13833_v49, 0.0  ;;  %v13866_v17 = vmax.f32 %v13834_v61, 0.0  ;;  %v9102_v27 = vsel %vm21049_vm10, %v16566_v48, %v9101_v25  ;;  %v20152_v63 = vld [vmem:[%s20305_s12 + $0x364] sm:$0xff]   ;;  %v27280_v49 = vld [vmem:[#allocation43_spill] sm:$0xff]  ;;  %v27281_v37 = vld [vmem:[#allocation50_spill] sm:$0xff] }
 0x363   : > { %18689 = vmatprep.mubr.msk.bf16.mxu0 %vm731_vm4, %v20144_v42  ;;  %v9105_v18 = vsel %vm21049_vm10, %v9103_v22, %v9104_v21  ;;  %v9115_v12 = vrot.slane %v16551_v32, 7  ;;  %v9109_v40 = vsel %vm21049_vm10, %v16567_v7, %v9108_v23  ;;  %v9112_v43 = vsel %vm21049_vm10, %v9110_v3, %v9111_v60  ;;  %v20150_v23 = vld [vmem:[%s20305_s12 + $0x32c] sm:$0xff]   ;;  %v20153_v30 = vld [vmem:[%s20305_s12 + $0x380] sm:$0xff]  }
 0x364   : > { %v25766_v55 = vpack.c.bf16 %v13868_v10, %v13867_v9  ;;  %v25774_v0 = vpack.c.bf16 %v13866_v17, %v13865_v53  ;;  %v16586_v19 = vcombine.low %v9102_v27, %v9105_v18  ;;  %v16587_v25 = vcombine.low %v9109_v40, %v9112_v43  ;;  %v27283_v22 = vld [vmem:[#allocation48_spill] sm:$0xff]  ;;  %v27284_v54 = vld [vmem:[#allocation49_spill] sm:$0xff]  ;;  %v27285_v48 = vld [vmem:[#allocation6_spill] sm:$0xff] }
 0x365   : > { %18554 = vmatmul.mubr.msk.bf16.gmra.mrb[84].mxu1 %vm731_vm4, %v16584_v56  ;;  %v16568_v57 = vrot.slane %v16550_v39, 11  ;;  %v9117_v33 = vrot.slane %v9115_v12, 4  ;;  %v9118_v42 = vrot.slane %v16552_v1, 7  ;;  %v13936_v51 = vsel %vm1397_vm5, %v25571_v4, 0  ;;  %v20154_v4 = vld [vmem:[%s20305_s12 + $0x39c] sm:$0xff]   ;;  %v27282_v56 = vld [vmem:[#allocation5_spill] sm:$0xff] }
 0x366   : > { %18557 = vmatprep.mubr.msk.bf16.mxu1 %vm731_vm4, %v16585_v46  ;;  %v20156_v46 = vld [vmem:[%s26588_s1 + $0x188] sm:$0xff]   ;;  %v27286_v21 = vld [vmem:[#allocation7_spill] sm:$0xff]  ;;  %v25835_v61 = vld [vmem:[%s26588_s1 + $0x190] sm:$0xff]  }
 0x367   : > { %v9116_v6 = vsel %vm21049_vm10, %v16568_v57, %v9115_v12  ;;  %v9119_v34 = vsel %vm21049_vm10, %v9117_v33, %v9118_v42  ;;  %v27287_v7 = vld [vmem:[#allocation47_spill] sm:$0xff]  ;;  %v27288_v3 = vld [vmem:[#allocation56_spill] sm:$0xff]  ;;  %v27290_v32 = vld [vmem:[#allocation9_spill] sm:$0xff] }
 0x368   : > { %v16588_v2 = vcombine.low %v9116_v6, %v9119_v34  ;;  %v27289_v60 = vld [vmem:[#allocation8_spill] sm:$0xff]  ;;  %v27291_v9 = vld [vmem:[#allocation51_spill] sm:$0xff]  ;;  %v27293_v53 = vld [vmem:[#allocation10_spill] sm:$0xff] }
 0x369   : > { %v27292_v10 = vld [vmem:[#allocation52_spill] sm:$0xff]  ;;  %v27294_v17 = vld [vmem:[#allocation11_spill] sm:$0xff]  ;;  %v27296_v27 = vld [vmem:[#allocation54_spill] sm:$0xff] }
 0x36a   : > { %18690 = vmatmul.mubr.msk.bf16.gmra.mrb[48].mxu0 %vm731_vm4, %v20145_v20  ;;  %v27295_v20 = vld [vmem:[#allocation61_spill] sm:$0xff]  ;;  %v27297_v18 = vld [vmem:[#allocation12_spill] sm:$0xff]  ;;  %v27300_v40 = vld [vmem:[#allocation55_spill] sm:$0xff] }
 0x36b   : > { %18693 = vmatprep.mubr.msk.bf16.mxu0 %vm731_vm4, %v20146_v36  ;;  %v27298_v12 = vld [vmem:[#allocation13_spill] sm:$0xff]  ;;  %v27301_v43 = vld [vmem:[#allocation14_spill] sm:$0xff]  ;;  %v27302_v39 = vld [vmem:[#allocation15_spill] sm:$0xff] }
 0x36c   : > { %v27299_v36 = vld [vmem:[#allocation53_spill] sm:$0xff]  ;;  %v27303_v1 = vld [vmem:[#allocation60_spill] sm:$0xff] }
 0x36d   : > { %18558 = vmatmul.mubr.msk.bf16.gmra.mrb[88].mxu1 %vm731_vm4, %v16586_v19  ;;  %v16846_v19 = vld [vmem:[%s20305_s12 + $0x20c] sm:$0xf]  ;;  %v16847_v6 = vld [vmem:[%s20305_s12 + $0x210] sm:$0x3] }
 0x36e   : > { %18561 = vmatprep.mubr.msk.bf16.mxu1 %vm731_vm4, %v16587_v25  ;;  %v27304_v25 = vld [vmem:[#allocation16_spill] sm:$0xff]  ;;  %v27305_v57 = vld [vmem:[#allocation17_spill] sm:$0xff]  ;;  %v11502_v42 = vrot.slane %v16846_v19, 6  ;;  %v16861_v19 = vld [vmem:[%s20305_s12 + $0x298] sm:$0xf] }
 0x370   : > { %v11504_v34 = vrot.slane %v11502_v42, 4 }
 0x372   : > { %18694 = vmatmul.mubr.msk.bf16.gmra.mrb[52].mxu0 %vm731_vm4, %v20148_v14  ;;  %v16845_v14 = vld [vmem:[%s20305_s12 + $0x208] sm:$0xc] }
 0x373   : > { %18697 = vmatprep.mubr.msk.bf16.mxu0 %vm731_vm4, %v20149_v62  ;;  %v11505_v62 = vrot.slane %v16847_v6, 6  ;;  %v16860_v6 = vld [vmem:[%s20305_s12 + $0x294] sm:$0xc] }
 0x375   : > { %18562 = vmatmul.mubr.msk.bf16.gmra.mrb[92].mxu1 %vm731_vm4, %v16588_v2  ;;  %v16849_v2 = vld [vmem:[%s20305_s12 + $0x228] sm:$0xf] }
 0x376   : > { %18891 = vmatprep.mubr.msk.bf16.mxu1 %vm324_vm12, %v27277_v35  ;;  %v16852_v35 = vld [vmem:[%s20305_s12 + $0x244] sm:$0xf] }
 0x37a   : > { %18698 = vmatmul.mubr.msk.bf16.gmra.mrb[56].mxu0 %vm731_vm4, %v20150_v23  ;;  %v27306_v23 = vld [vmem:[#allocation18_spill] sm:$0xff] }
 0x37b   : > { %18701 = vmatprep.mubr.msk.bf16.mxu0 %vm731_vm4, %v20151_v45  ;;  %v27307_v45 = vld [vmem:[#allocation19_spill] sm:$0xff] }
 0x37d   : > { %18892 = vmatmul.mubr.msk.bf16.vlgmr.msra.gmra.mrb[96].mxu1 %vm324_vm12, %v27278_v13  ;;  %v16848_v13 = vld [vmem:[%s20305_s12 + $0x224] sm:$0xc] }
 0x37e   : > { %18895 = vmatprep.mubr.msk.bf16.mxu1 %vm324_vm12, %v27279_v59  ;;  %18924 = vmatpush3.bf16.msra.mxu1 %v13936_v51  ;;  %v16850_v59 = vld [vmem:[%s20305_s12 + $0x22c] sm:$0x3] }
 0x382   : > { %18702 = vmatmul.mubr.msk.bf16.gmra.mrb[60].mxu0 %vm731_vm4, %v20152_v63  ;;  %v11516_v63 = vrot.slane %v16852_v35, 6 }
 0x383   : > { %18705 = vmatprep.mubr.msk.bf16.mxu0 %vm731_vm4, %v20153_v30  ;;  %v16851_v30 = vld [vmem:[%s20305_s12 + $0x240] sm:$0xc] }
 0x385   : > { %18896 = vmatmul.mubr.msk.bf16.gmra.mrb[100].mxu1 %vm324_vm12, %v27280_v49  ;;  %v16853_v49 = vld [vmem:[%s20305_s12 + $0x248] sm:$0x3] }
 0x386   : > { %18899 = vmatprep.mubr.msk.bf16.mxu1 %vm324_vm12, %v27281_v37 }
 0x38a   : > { %18706 = vmatmul.mubr.msk.bf16.gmra.mrb[64].mxu0 %vm731_vm4, %v20154_v4  ;;  %v16894_v4 = vrot.slane %v16848_v13, 10 }
 0x38b   : > { %18713 = vmatprep.mubr.msk.bf16.mxu0 %vm731_vm4, %v27282_v56 }
 0x38d   : > { %18900 = vmatmul.mubr.msk.bf16.gmra.mrb[104].mxu1 %vm324_vm12, %v27283_v22  ;;  %v11512_v22 = vrot.slane %v16850_v59, 6 }
 0x38e   : > { %18903 = vmatprep.mubr.msk.bf16.mxu1 %vm324_vm12, %v27284_v54  ;;  %v16895_v54 = vrot.slane %v16851_v30, 10 }
 0x392   : > { %18714 = vmatmul.mubr.msk.bf16.vlgmr.msra.gmra.mrb[36].mxu0 %vm731_vm4, %v27285_v48  ;;  %v11519_v48 = vrot.slane %v16853_v49, 6 }
 0x393   : > { %18746 = vmatpush3.bf16.msra.mxu0 %v25702_v44  ;;  %18717 = vmatprep.mubr.msk.bf16.mxu0 %vm731_vm4, %v27286_v21  ;;  %v17259_v44 = vld [vmem:[%s26590_s3 + $0x4] sm:$0x3]  ;;  %v16855_v21 = vld [vmem:[%s20305_s12 + $0x260] sm:$0xf] }
 0x394   : > { %18747 = vmatprep.subr.bf16.mxu0 %v20156_v46  ;;  %20019 = vmatprep.subr.msk.bf16.mxu1 %vm1397_vm5, %v17259_v44  ;;  %v14270_v33 = vsel %vm1397_vm5, %v17259_v44, 0  ;;  %v11523_v44 = vrot.slane %v16855_v21, 6 }
 0x395   : > { %18904 = vmatmul.mubr.msk.bf16.gmra.mrb[108].mxu1 %vm324_vm12, %v27287_v7  ;;  %v16858_v7 = vld [vmem:[%s20305_s12 + $0x27c] sm:$0xf] }
 0x396   : > { %18907 = vmatprep.mubr.msk.bf16.mxu1 %vm324_vm12, %v27288_v3  ;;  %v27308_v3 = vld [vmem:[#allocation21_spill] sm:$0xff] }
 0x397   : > { %18748 = vmatpush3.bf16.msra.mxu0 %v20156_v46  ;;  %v11518_v46 = vrot.slane %v11516_v63, 4 }
 0x398   : > { %18781 = vmatprep.subr.bf16.mxu0 %v25835_v61 }
 0x39a   : > { %18718 = vmatmul.mubr.msk.bf16.gmra.mrb[40].mxu0 %vm731_vm4, %v27289_v60  ;;  %v11517_v60 = vsel %vm20527_vm7, %v16895_v54, %v11516_v63  ;;  %v16867_v63 = vld [vmem:[%s20305_s12 + $0x2d0] sm:$0xf] }
 0x39b   : > { %18721 = vmatprep.mubr.msk.bf16.mxu0 %vm731_vm4, %v27290_v32  ;;  %v11520_v32 = vsel %vm20527_vm7, %v11518_v46, %v11519_v48  ;;  %v11551_v49 = vrot.slane %v16867_v63, 6  ;;  %v16869_v46 = vld [vmem:[%s20305_s12 + $0x2e8] sm:$0xc]  ;;  %v16871_v48 = vld [vmem:[%s20305_s12 + $0x2f0] sm:$0x3] }
 0x39d   : > { %18908 = vmatmul.mubr.msk.bf16.gmra.mrb[112].mxu1 %vm324_vm12, %v27291_v9  ;;  %v16854_v9 = vld [vmem:[%s20305_s12 + $0x25c] sm:$0xc] }
 0x39e   : > { %18911 = vmatprep.mubr.msk.bf16.mxu1 %vm324_vm12, %v27292_v10  ;;  %v16856_v10 = vld [vmem:[%s20305_s12 + $0x264] sm:$0x3] }
 0x3a2   : > { %18722 = vmatmul.mubr.msk.bf16.gmra.mrb[44].mxu0 %vm731_vm4, %v27293_v53  ;;  %v11530_v53 = vrot.slane %v16858_v7, 6 }
 0x3a3   : > { %18725 = vmatprep.mubr.msk.bf16.mxu0 %vm731_vm4, %v27294_v17  ;;  %v16857_v17 = vld [vmem:[%s20305_s12 + $0x278] sm:$0xc] }
 0x3a5   : > { %18912 = vmatmul.mubr.msk.bf16.gmra.mrb[116].mxu1 %vm324_vm12, %v27295_v20  ;;  %v16859_v20 = vld [vmem:[%s20305_s12 + $0x280] sm:$0x3] }
 0x3a6   : > { %18915 = vmatprep.mubr.msk.bf16.mxu1 %vm324_vm12, %v27296_v27 }
 0x3aa   : > { %18726 = vmatmul.mubr.msk.bf16.gmra.mrb[48].mxu0 %vm731_vm4, %v27297_v18  ;;  %v16915_v18 = vcombine.low %v11517_v60, %v11520_v32  ;;  %v11561_v32 = vrot.slane %v16871_v48, 6  ;;  %v16889_v48 = vld [vmem:[%s20305_s12 + $0x398] sm:$0x3] }
 0x3ab   : > { %18729 = vmatprep.mubr.msk.bf16.mxu0 %vm731_vm4, %v27298_v12  ;;  %v16896_v12 = vrot.slane %v16854_v9, 10  ;;  %v16873_v9 = vld [vmem:[%s20305_s12 + $0x308] sm:$0xf] }
 0x3ad   : > { %18916 = vmatmul.mubr.msk.bf16.gmra.mrb[120].mxu1 %vm324_vm12, %v27299_v36  ;;  %v11525_v36 = vrot.slane %v11523_v44, 4 }
 0x3ae   : > { %18919 = vmatprep.mubr.msk.bf16.mxu1 %vm324_vm12, %v27300_v40  ;;  %v11526_v40 = vrot.slane %v16856_v10, 6  ;;  %v16876_v10 = vld [vmem:[%s20305_s12 + $0x324] sm:$0xf] }
 0x3b2   : > { %18730 = vmatmul.mubr.msk.bf16.gmra.mrb[52].mxu0 %vm731_vm4, %v27301_v43  ;;  %v16897_v43 = vrot.slane %v16857_v17, 10 }
 0x3b3   : > { %18733 = vmatprep.mubr.msk.bf16.mxu0 %vm731_vm4, %v27302_v39  ;;  %v11532_v39 = vrot.slane %v11530_v53, 4 }
 0x3b5   : > { %18920 = vmatmul.mubr.msk.bf16.gmra.mrb[124].mxu1 %vm324_vm12, %v27303_v1  ;;  %v11533_v1 = vrot.slane %v16859_v20, 6 }
 0x3b6   : > { %18925 = vmatprep.mubr.msk.bf16.mxu1 %vm324_vm12, %v25471_v16  ;;  %v16893_v16 = vrot.slane %v16845_v14, 10 }
 0x3b7   : > { %v11534_v14 = vsel %vm20527_vm7, %v11532_v39, %v11533_v1 }
 0x3b8   : > { %v11503_v51 = vsel %vm20527_vm7, %v16893_v16, %v11502_v42  ;;  %v11531_v42 = vsel %vm20527_vm7, %v16897_v43, %v11530_v53  ;;  %v16862_v16 = vld [vmem:[%s20305_s12 + $0x29c] sm:$0x3]  ;;  %v11565_v53 = vrot.slane %v16873_v9, 6  ;;  %v16891_v9 = vld [vmem:[%s20305_s12 + $0x3b0] sm:$0xf] }
 0x3ba   : > { %18734 = vmatmul.mubr.msk.bf16.gmra.mrb[56].mxu0 %vm731_vm4, %v27304_v25  ;;  %v16864_v25 = vld [vmem:[%s20305_s12 + $0x2b4] sm:$0xf] }
 0x3bb   : > { %18737 = vmatprep.mubr.msk.bf16.mxu0 %vm731_vm4, %v27305_v57  ;;  %v11527_v57 = vsel %vm20527_vm7, %v11525_v36, %v11526_v40  ;;  %v16875_v36 = vld [vmem:[%s20305_s12 + $0x320] sm:$0xc]  ;;  %v16877_v40 = vld [vmem:[%s20305_s12 + $0x328] sm:$0x3] }
 0x3bd   : > { %18926 = vmatmul.mubr.msk.bf16.vlgmr.msra.gmra.mrb[96].mxu1 %vm324_vm12, %v25459_v15  ;;  %v11509_v15 = vrot.slane %v16849_v2, 6  ;;  %v16865_v2 = vld [vmem:[%s20305_s12 + $0x2b8] sm:$0x3] }
 0x3be   : > { %18929 = vmatprep.mubr.msk.bf16.mxu1 %vm324_vm12, %v25537_v26  ;;  %18958 = vmatpush3.bf16.msra.mxu1 %v14270_v33  ;;  %v11506_v26 = vsel %vm20527_vm7, %v11504_v34, %v11505_v62  ;;  %v11537_v33 = vrot.slane %v16861_v19, 6  ;;  %v11544_v34 = vrot.slane %v16864_v25, 6  ;;  %v16863_v62 = vld [vmem:[%s20305_s12 + $0x2b0] sm:$0xc]  ;;  %v11547_v59 = vrot.slane %v16865_v2, 6 }
 0x3bf   : > { %v16913_v37 = vcombine.low %v11503_v51, %v11506_v26  ;;  %v11511_v56 = vrot.slane %v11509_v15, 4  ;;  %v11540_v51 = vrot.slane %v16862_v16, 6  ;;  %v16899_v26 = vrot.slane %v16863_v62, 10  ;;  %v16880_v62 = vld [vmem:[%s20305_s12 + $0x344] sm:$0x3] }
 0x3c0   : > { %v11546_v13 = vrot.slane %v11544_v34, 4  ;;  %v11567_v19 = vrot.slane %v11565_v53, 4  ;;  %v16903_v25 = vrot.slane %v16875_v36, 10 }
 0x3c2   : > { %18738 = vmatmul.mubr.msk.bf16.gmra.mrb[60].mxu0 %vm731_vm4, %v27306_v23  ;;  %v16917_v23 = vcombine.low %v11531_v42, %v11534_v14  ;;  %v16882_v42 = vld [vmem:[%s20305_s12 + $0x35c] sm:$0xf] }
 0x3c3   : > { %18741 = vmatprep.mubr.msk.bf16.mxu0 %vm731_vm4, %v27307_v45  ;;  %v16898_v45 = vrot.slane %v16860_v6, 10  ;;  %v11586_v2 = vrot.slane %v16882_v42, 6  ;;  %v26064_v42 = vld [vmem:[%s26589_s2 + $0x2] ss:$0 sm:$0xff] }
 0x3c5   : > { %18930 = vmatmul.mubr.msk.bf16.gmra.mrb[100].mxu1 %vm324_vm12, %v25530_v47  ;;  %v11510_v47 = vsel %vm20527_vm7, %v16894_v4, %v11509_v15  ;;  %v11539_v15 = vrot.slane %v11537_v33, 4  ;;  %v11548_v4 = vsel %vm20527_vm7, %v11546_v13, %v11547_v59  ;;  %v11582_v13 = vrot.slane %v16880_v62, 6 }
 0x3c6   : > { %18933 = vmatprep.mubr.msk.bf16.mxu1 %vm324_vm12, %v25585_v58  ;;  %v11513_v58 = vsel %vm20527_vm7, %v11511_v56, %v11512_v22  ;;  %v16866_v56 = vld [vmem:[%s20305_s12 + $0x2cc] sm:$0xc]  ;;  %v16868_v22 = vld [vmem:[%s20305_s12 + $0x2d4] sm:$0x3]  ;;  %v11588_v63 = vrot.slane %v11586_v2, 4 }
 0x3c7   : > { %v16914_v27 = vcombine.low %v11510_v47, %v11513_v58  ;;  %v11541_v30 = vsel %vm20527_vm7, %v11539_v15, %v11540_v51  ;;  %v11553_v47 = vrot.slane %v11551_v49, 4  ;;  %v11554_v58 = vrot.slane %v16868_v22, 6  ;;  %v16886_v22 = vld [vmem:[%s20305_s12 + $0x37c] sm:$0x3] }
 0x3ca   : > { %18742 = vmatmul.mubr.msk.bf16.gmra.mrb[64].mxu0 %vm731_vm4, %v27308_v3  ;;  %v16900_v3 = vrot.slane %v16866_v56, 10  ;;  %v16884_v56 = vld [vmem:[%s20305_s12 + $0x374] sm:$0xc] }
 0x3cb   : > { %18749 = vmatprep.mubr.msk.bf16.mxu0 %vm731_vm4, %v16913_v37  ;;  %v11545_v37 = vsel %vm20527_vm7, %v16899_v26, %v11544_v34  ;;  %v16878_v34 = vld [vmem:[%s20305_s12 + $0x33c] sm:$0xc] }
 0x3cc   : > { %v16919_v7 = vcombine.low %v11545_v37, %v11548_v4  ;;  %v16904_v51 = vrot.slane %v16878_v34, 10 }
 0x3cd   : > { %18934 = vmatmul.mubr.msk.bf16.gmra.mrb[104].mxu1 %vm324_vm12, %v25578_v8  ;;  %v20158_v8 = vld [vmem:[%s26588_s1 + $0x198] sm:$0xff]  }
 0x3ce   : > { %18937 = vmatprep.mubr.msk.bf16.mxu1 %vm324_vm12, %v25630_v28  ;;  %v11524_v28 = vsel %vm20527_vm7, %v16896_v12, %v11523_v44  ;;  %v16901_v44 = vrot.slane %v16869_v46, 10  ;;  %v11572_v12 = vrot.slane %v16876_v10, 6  ;;  %v16887_v46 = vld [vmem:[%s20305_s12 + $0x390] sm:$0xc] }
 0x3cf   : > { %v16916_v35 = vcombine.low %v11524_v28, %v11527_v57  ;;  %v11575_v57 = vrot.slane %v16877_v40, 6 }
 0x3d0   : > { %v11574_v28 = vrot.slane %v11572_v12, 4  ;;  %v11573_v6 = vsel %vm20527_vm7, %v16903_v25, %v11572_v12  ;;  %v20161_v25 = vld [vmem:[%s20305_s12 + $0x40c] sm:$0xff]  }
 0x3d2   : > { %18750 = vmatmul.mubr.msk.bf16.vlgmr.msra.gmra.mrb[36].mxu0 %vm731_vm4, %v16914_v27  ;;  %v16872_v27 = vld [vmem:[%s20305_s12 + $0x304] sm:$0xc]  ;;  %v11576_v16 = vsel %vm20527_vm7, %v11574_v28, %v11575_v57  ;;  %v20162_v57 = vld [vmem:[%s20305_s12 + $0x428] sm:$0xff]  }
 0x3d3   : > { %18782 = vmatpush3.bf16.msra.mxu0 %v25835_v61  ;;  %18753 = vmatprep.mubr.msk.bf16.mxu0 %vm731_vm4, %v16915_v18  ;;  %v25950_v61 = vld [vmem:[%s26588_s1 + $0x1a0] sm:$0xff]   ;;  %v16874_v18 = vld [vmem:[%s20305_s12 + $0x30c] sm:$0x3]  ;;  %v16902_v1 = vrot.slane %v16872_v27, 10  ;;  %v16923_v15 = vcombine.low %v11573_v6, %v11576_v16 }
 0x3d4   : > { %18783 = vmatprep.subr.bf16.mxu0 %v20158_v8  ;;  %v930_v28 = vld [vmem:[#allocation2 + $0x200] sm:$0xff]  ;;  %v931_v16 = vld [vmem:[#allocation2 + $0x208] sm:$0xff] }
 0x3d5   : > { %18938 = vmatmul.mubr.msk.bf16.gmra.mrb[108].mxu1 %vm324_vm12, %v25623_v11  ;;  %v16870_v11 = vld [vmem:[%s20305_s12 + $0x2ec] sm:$0xf] }
 0x3d6   : > { %18941 = vmatprep.mubr.msk.bf16.mxu1 %vm324_vm12, %v25670_v50  ;;  %v11538_v50 = vsel %vm20527_vm7, %v16898_v45, %v11537_v33  ;;  %v11558_v54 = vrot.slane %v16870_v11, 6  ;;  %v16879_v33 = vld [vmem:[%s20305_s12 + $0x340] sm:$0xf] }
 0x3d7   : > { %18784 = vmatpush3.bf16.msra.mxu0 %v20158_v8  ;;  %v16918_v21 = vcombine.low %v11538_v50, %v11541_v30  ;;  %v11568_v8 = vrot.slane %v16874_v18, 6  ;;  %v11579_v14 = vrot.slane %v16879_v33, 6  ;;  %v16885_v50 = vld [vmem:[%s20305_s12 + $0x378] sm:$0xf]  ;;  %v16888_v30 = vld [vmem:[%s20305_s12 + $0x394] sm:$0xf] }
 0x3d8   : > { %18817 = vmatprep.subr.bf16.mxu0 %v25950_v61  ;;  %v11560_v60 = vrot.slane %v11558_v54, 4  ;;  %v11559_v17 = vsel %vm20527_vm7, %v16901_v44, %v11558_v54  ;;  %v11600_v54 = vrot.slane %v16888_v30, 6  ;;  %v16907_v44 = vrot.slane %v16887_v46, 10  ;;  %v20164_v30 = vld [vmem:[%s20305_s12 + $0x460] sm:$0xff]  }
 0x3d9   : > { %v11581_v26 = vrot.slane %v11579_v14, 4 }
 0x3da   : > { %18754 = vmatmul.mubr.msk.bf16.gmra.mrb[40].mxu0 %vm731_vm4, %v16916_v35  ;;  %v11562_v20 = vsel %vm20527_vm7, %v11560_v60, %v11561_v32  ;;  %v16881_v35 = vld [vmem:[%s20305_s12 + $0x358] sm:$0xc]  ;;  %v11602_v60 = vrot.slane %v11600_v54, 4  ;;  %v11603_v32 = vrot.slane %v16889_v48, 6 }
 0x3db   : > { %18757 = vmatprep.mubr.msk.bf16.mxu0 %vm731_vm4, %v16917_v23  ;;  %v16921_v39 = vcombine.low %v11559_v17, %v11562_v20  ;;  %v16883_v23 = vld [vmem:[%s20305_s12 + $0x360] sm:$0x3]  ;;  %v16905_v59 = vrot.slane %v16881_v35, 10  ;;  %v16890_v17 = vld [vmem:[%s20305_s12 + $0x3ac] sm:$0xc] }
 0x3dc   : > { %v11589_v11 = vrot.slane %v16883_v23, 6  ;;  %v16892_v20 = vld [vmem:[%s20305_s12 + $0x3b4] sm:$0x3]  ;;  %v16908_v12 = vrot.slane %v16890_v17, 10 }
 0x3dd   : > { %18942 = vmatmul.mubr.msk.bf16.gmra.mrb[112].mxu1 %vm324_vm12, %v25663_v38  ;;  %v11552_v38 = vsel %vm20527_vm7, %v16900_v3, %v11551_v49  ;;  %v11593_v49 = vrot.slane %v16885_v50, 6  ;;  %v11587_v37 = vsel %vm20527_vm7, %v16905_v59, %v11586_v2  ;;  %v16906_v3 = vrot.slane %v16884_v56, 10  ;;  %v936_v59 = vld [vmem:[#allocation2 + $0x230] sm:$0xff] }
 0x3de   : > { %18945 = vmatprep.mubr.msk.bf16.mxu1 %vm324_vm12, %v25717_v5  ;;  %v11555_v5 = vsel %vm20527_vm7, %v11553_v47, %v11554_v58  ;;  %v11590_v4 = vsel %vm20527_vm7, %v11588_v63, %v11589_v11  ;;  %v11596_v58 = vrot.slane %v16886_v22, 6  ;;  %v11610_v40 = vrot.slane %v16892_v20, 6  ;;  %v20163_v63 = vld [vmem:[%s20305_s12 + $0x444] sm:$0xff]  }
 0x3df   : > { %v16920_v43 = vcombine.low %v11552_v38, %v11555_v5  ;;  %v11595_v47 = vrot.slane %v11593_v49, 4  ;;  %v11607_v38 = vrot.slane %v16891_v9, 6  ;;  %v11601_v5 = vsel %vm20527_vm7, %v16907_v44, %v11600_v54  ;;  %v935_v54 = vld [vmem:[#allocation2 + $0x228] sm:$0xff]  ;;  %v940_v9 = vld [vmem:[#allocation2 + $0x250] sm:$0xff] }
 0x3e1   : > { %v11597_v10 = vsel %vm20527_vm7, %v11595_v47, %v11596_v58  ;;  %v11609_v36 = vrot.slane %v11607_v38, 4 }
 0x3e2   : > { %18758 = vmatmul.mubr.msk.bf16.gmra.mrb[44].mxu0 %vm731_vm4, %v16918_v21 }
 0x3e3   : > { %18761 = vmatprep.mubr.msk.bf16.mxu0 %vm731_vm4, %v16919_v7  ;;  %v16925_v7 = vcombine.low %v11587_v37, %v11590_v4  ;;  %v937_v37 = vld [vmem:[#allocation2 + $0x238] sm:$0xff] }
 0x3e5   : > { %18946 = vmatmul.mubr.msk.bf16.gmra.mrb[116].mxu1 %vm324_vm12, %v25709_v31  ;;  %v11566_v31 = vsel %vm20527_vm7, %v16902_v1, %v11565_v53  ;;  %v11604_v53 = vsel %vm20527_vm7, %v11602_v60, %v11603_v32 }
 0x3e6   : > { %18949 = vmatprep.mubr.msk.bf16.mxu1 %vm324_vm12, %v25750_v52  ;;  %v11569_v52 = vsel %vm20527_vm7, %v11567_v19, %v11568_v8  ;;  %v16927_v18 = vcombine.low %v11601_v5, %v11604_v53  ;;  %v20159_v19 = vld [vmem:[%s20305_s12 + $0x3f0] sm:$0xff]   ;;  %v938_v5 = vld [vmem:[#allocation2 + $0x240] sm:$0xff]  ;;  %v20166_v53 = vld [vmem:[%s20305_s12 + $0x498] sm:$0xff]  }
 0x3e7   : > { %v16922_v45 = vcombine.low %v11566_v31, %v11569_v52  ;;  %v932_v8 = vld [vmem:[#allocation2 + $0x210] sm:$0xff]  ;;  %v933_v31 = vld [vmem:[#allocation2 + $0x218] sm:$0xff]  ;;  %v20169_v52 = vld [vmem:[%s26588_s1 + $0x1a8] sm:$0xff]  }
 0x3ea   : > { %18762 = vmatmul.mubr.msk.bf16.gmra.mrb[48].mxu0 %vm731_vm4, %v16920_v43  ;;  %v11608_v43 = vsel %vm20527_vm7, %v16908_v12, %v11607_v38 }
 0x3eb   : > { %18765 = vmatprep.mubr.msk.bf16.mxu0 %vm731_vm4, %v16921_v39  ;;  %v11611_v39 = vsel %vm20527_vm7, %v11609_v36, %v11610_v40 }
 0x3ec   : > { %v16928_v1 = vcombine.low %v11608_v43, %v11611_v39  ;;  %v939_v43 = vld [vmem:[#allocation2 + $0x248] sm:$0xff] }
 0x3ed   : > { %18950 = vmatmul.mubr.msk.bf16.gmra.mrb[120].mxu1 %vm324_vm12, %v25741_v29  ;;  %v11580_v29 = vsel %vm20527_vm7, %v16904_v51, %v11579_v14  ;;  %v26077_v51 = vld [vmem:[%s26588_s1 + $0x1b0] sm:$0xff]  }
 0x3ee   : > { %18953 = vmatprep.mubr.msk.bf16.mxu1 %vm324_vm12, %v25774_v0  ;;  %v11583_v0 = vsel %vm20527_vm7, %v11581_v26, %v11582_v13 }
 0x3ef   : > { %v16924_v21 = vcombine.low %v11580_v29, %v11583_v0 }
 0x3f2   : > { %18766 = vmatmul.mubr.msk.bf16.gmra.mrb[52].mxu0 %vm731_vm4, %v16922_v45 }
 0x3f3   : > { %18769 = vmatprep.mubr.msk.bf16.mxu0 %vm731_vm4, %v16923_v15 }
 0x3f5   : > { %18954 = vmatmul.mubr.msk.bf16.gmra.mrb[124].mxu1 %vm324_vm12, %v25766_v55  ;;  %v11594_v55 = vsel %vm20527_vm7, %v16906_v3, %v11593_v49 }
 0x3f6   : > { %v16926_v27 = vcombine.low %v11594_v55, %v11597_v10  ;;  %v20165_v55 = vld [vmem:[%s20305_s12 + $0x47c] sm:$0xff]  }
 0x3fa   : > { %18770 = vmatmul.mubr.msk.bf16.gmra.mrb[56].mxu0 %vm731_vm4, %v16924_v21 }
 0x3fb   : > { %18773 = vmatprep.mubr.msk.bf16.mxu0 %vm731_vm4, %v16925_v7 }
 0x402   : > { %18774 = vmatmul.mubr.msk.bf16.gmra.mrb[60].mxu0 %vm731_vm4, %v16926_v27 }
 0x403   : > { %18777 = vmatprep.mubr.msk.bf16.mxu0 %vm731_vm4, %v16927_v18  ;;  %v941_v18 = vld [vmem:[#allocation2 + $0x258] sm:$0xff] }
 0x40a   : > { %18778 = vmatmul.mubr.msk.bf16.gmra.mrb[64].mxu0 %vm731_vm4, %v16928_v1 }
 0x40b   : > { %18785 = vmatprep.mubr.msk.bf16.mxu0 %vm731_vm4, %v20159_v19 }
 0x410   : > { %v18535_v33 = vpop.f32.mrb[64].mxu1 }
 0x411   : > { %v19089_v14 = vadd.f32 %v18535_v33, %v932_v8  ;;  %v9267_v6 = vpop.f32.mrb[65].mxu1 }
 0x412   : > { %v19090_v34 = vadd.f32 %v9267_v6, %v930_v28  ;;  %v18536_v62 = vpop.f32.mrb[66].mxu1  ;;  %18786 = vmatmul.mubr.msk.bf16.vlgmr.msra.gmra.mrb[36].mxu0 %vm731_vm4, %v20161_v25  ;;  %v20167_v6 = vld [vmem:[%s20305_s12 + $0x4b4] sm:$0xff]  }
 0x413   : > { %v14141_v2 = vadd.f32 %v19089_v14, %v26064_v42  ;;  %v19091_v35 = vadd.f32 %v18536_v62, %v933_v31  ;;  %v9270_v23 = vpop.f32.mrb[67].mxu1  ;;  %18818 = vmatpush3.bf16.msra.mxu0 %v25950_v61  ;;  %18789 = vmatprep.mubr.msk.bf16.mxu0 %vm731_vm4, %v20162_v57  ;;  %v934_v61 = vld [vmem:[#allocation2 + $0x220] sm:$0xff]  ;;  %v944_v14 = vld [vmem:[#allocation2 + $0x270] sm:$0xff] }
 0x414   : > { %v14139_v45 = vadd.f32 %v19090_v34, %v26064_v42  ;;  %v19092_v15 = vadd.f32 %v9270_v23, %v931_v16  ;;  %18819 = vmatprep.subr.bf16.mxu0 %v20169_v52  ;;  %v942_v62 = vld [vmem:[#allocation2 + $0x260] sm:$0xff] }
 0x415   : > { %v14142_v26 = vadd.f32 %v19091_v35, %v26064_v42  ;;  %v14173_v11 = vmax.f32 %v14141_v2, 0.0  ;;  %v20168_v2 = vld [vmem:[%s20305_s12 + $0x4d0] sm:$0xff]  }
 0x416   : > { %v14140_v13 = vadd.f32 %v19092_v15, %v26064_v42  ;;  %v14171_v29 = vmax.f32 %v14139_v45, 0.0  ;;  %v945_v15 = vld [vmem:[#allocation2 + $0x278] sm:$0xff] }
 0x417   : > { %v14174_v50 = vmax.f32 %v14142_v26, 0.0  ;;  %18820 = vmatpush3.bf16.msra.mxu0 %v20169_v52 }
 0x418   : > { %v14172_v0 = vmax.f32 %v14140_v13, 0.0  ;;  %v18539_v49 = vpop.f32.mrb[68].mxu1  ;;  %18853 = vmatprep.subr.bf16.mxu0 %v26077_v51 }
 0x419   : > { %v14204_v4 = vpack.c.bf16 %v14174_v50, %v14173_v11  ;;  %v19093_v56 = vadd.f32 %v18539_v49, %v936_v59  ;;  %v9283_v22 = vpop.f32.mrb[69].mxu1 }
 0x41a   : > { %v14203_v46 = vpack.c.bf16 %v14172_v0, %v14171_v29  ;;  %v19094_v48 = vadd.f32 %v9283_v22, %v934_v61  ;;  %v18540_v21 = vpop.f32.mrb[70].mxu1  ;;  %18790 = vmatmul.mubr.msk.bf16.gmra.mrb[40].mxu0 %vm731_vm4, %v20163_v63  ;;  %v943_v63 = vld [vmem:[#allocation2 + $0x268] sm:$0xff]  ;;  %v948_v22 = vld [vmem:[#allocation2 + $0x290] sm:$0xff] }
 0x41b   : > { %v14145_v7 = vadd.f32 %v19093_v56, %v26064_v42  ;;  %v19095_v3 = vadd.f32 %v18540_v21, %v937_v37  ;;  %v9286_v47 = vpop.f32.mrb[71].mxu1  ;;  %18793 = vmatprep.mubr.msk.bf16.mxu0 %vm731_vm4, %v20164_v30  ;;  %v946_v21 = vld [vmem:[#allocation2 + $0x280] sm:$0xff] }
 0x41c   : > { %v14143_v58 = vadd.f32 %v19094_v48, %v26064_v42  ;;  %v19096_v44 = vadd.f32 %v9286_v47, %v935_v54  ;;  %18959 = vmatprep.mubr.msk.bf16.mxu1 %vm324_vm12, %v14203_v46  ;;  %v20170_v54 = vld [vmem:[%s20305_s12 + $0x4ec] sm:$0xff]  }
 0x41d   : > { %v14146_v60 = vadd.f32 %v19095_v3, %v26064_v42  ;;  %18960 = vmatmul.mubr.msk.bf16.vlgmr.msra.gmra.mrb[96].mxu1 %vm324_vm12, %v14204_v4  ;;  %v14177_v10 = vmax.f32 %v14145_v7, 0.0  ;;  %v20171_v7 = vld [vmem:[%s20305_s12 + $0x508] sm:$0xff]  }
 0x41e   : > { %v14144_v32 = vadd.f32 %v19096_v44, %v26064_v42  ;;  %v14175_v17 = vmax.f32 %v14143_v58, 0.0  ;;  %v949_v44 = vld [vmem:[#allocation2 + $0x298] sm:$0xff] }
 0x41f   : > { %v14178_v38 = vmax.f32 %v14146_v60, 0.0 }
 0x420   : > { %v14176_v20 = vmax.f32 %v14144_v32, 0.0  ;;  %v18543_v27 = vpop.f32.mrb[72].mxu1 }
 0x421   : > { %v14206_v12 = vpack.c.bf16 %v14178_v38, %v14177_v10  ;;  %v19097_v36 = vadd.f32 %v18543_v27, %v940_v9  ;;  %v9299_v40 = vpop.f32.mrb[73].mxu1 }
 0x422   : > { %v14205_v39 = vpack.c.bf16 %v14176_v20, %v14175_v17  ;;  %v19098_v1 = vadd.f32 %v9299_v40, %v938_v5  ;;  %v18544_v19 = vpop.f32.mrb[74].mxu1  ;;  %18794 = vmatmul.mubr.msk.bf16.gmra.mrb[44].mxu0 %vm731_vm4, %v20165_v55  ;;  %v947_v55 = vld [vmem:[#allocation2 + $0x288] sm:$0xff]  ;;  %v952_v40 = vld [vmem:[#allocation2 + $0x2b0] sm:$0xff] }
 0x423   : > { %v14149_v8 = vadd.f32 %v19097_v36, %v26064_v42  ;;  %v19099_v25 = vadd.f32 %v18544_v19, %v941_v18  ;;  %v9302_v28 = vpop.f32.mrb[75].mxu1  ;;  %18797 = vmatprep.mubr.msk.bf16.mxu0 %vm731_vm4, %v20166_v53  ;;  %v950_v19 = vld [vmem:[#allocation2 + $0x2a0] sm:$0xff] }
 0x424   : > { %v14147_v57 = vadd.f32 %v19098_v1, %v26064_v42  ;;  %v19100_v33 = vadd.f32 %v9302_v28, %v939_v43  ;;  %18963 = vmatprep.mubr.msk.bf16.mxu1 %vm324_vm12, %v14205_v39  ;;  %v20172_v43 = vld [vmem:[%s20305_s12 + $0x524] sm:$0xff]  }
 0x425   : > { %v14150_v31 = vadd.f32 %v19099_v25, %v26064_v42  ;;  %18964 = vmatmul.mubr.msk.bf16.gmra.mrb[100].mxu1 %vm324_vm12, %v14206_v12  ;;  %v14181_v16 = vmax.f32 %v14149_v8, 0.0  ;;  %v20173_v8 = vld [vmem:[%s20305_s12 + $0x540] sm:$0xff]  }
 0x426   : > { %v14148_v52 = vadd.f32 %v19100_v33, %v26064_v42  ;;  %v14179_v35 = vmax.f32 %v14147_v57, 0.0  ;;  %v953_v33 = vld [vmem:[#allocation2 + $0x2b8] sm:$0xff] }
 0x427   : > { %v14182_v34 = vmax.f32 %v14150_v31, 0.0  ;;  %v17018_v31 = vld [vmem:[%s20305_s12 + $0x3fc] sm:$0xf] }
 0x428   : > { %v14180_v23 = vmax.f32 %v14148_v52, 0.0  ;;  %v18547_v45 = vpop.f32.mrb[76].mxu1 }
 0x429   : > { %v14208_v26 = vpack.c.bf16 %v14182_v34, %v14181_v16  ;;  %v19101_v13 = vadd.f32 %v18547_v45, %v944_v14  ;;  %v9315_v59 = vpop.f32.mrb[77].mxu1  ;;  %v951_v16 = vld [vmem:[#allocation2 + $0x2a8] sm:$0xff] }
 0x42a   : > { %v14207_v11 = vpack.c.bf16 %v14180_v23, %v14179_v35  ;;  %v19102_v50 = vadd.f32 %v9315_v59, %v942_v62  ;;  %v18548_v61 = vpop.f32.mrb[78].mxu1  ;;  %18798 = vmatmul.mubr.msk.bf16.gmra.mrb[48].mxu0 %vm731_vm4, %v20167_v6 }
 0x42b   : > { %v14153_v30 = vadd.f32 %v19101_v13, %v26064_v42  ;;  %v19103_v29 = vadd.f32 %v18548_v61, %v945_v15  ;;  %v9318_v0 = vpop.f32.mrb[79].mxu1  ;;  %18801 = vmatprep.mubr.msk.bf16.mxu0 %vm731_vm4, %v20168_v2  ;;  %v17017_v15 = vld [vmem:[%s20305_s12 + $0x3f8] sm:$0xe]  ;;  %v956_v61 = vld [vmem:[#allocation2 + $0x2d0] sm:$0xff] }
 0x42c   : > { %v14151_v49 = vadd.f32 %v19102_v50, %v26064_v42  ;;  %v19104_v37 = vadd.f32 %v9318_v0, %v943_v63  ;;  %18967 = vmatprep.mubr.msk.bf16.mxu1 %vm324_vm12, %v14207_v11  ;;  %v17019_v63 = vld [vmem:[%s20305_s12 + $0x400] sm:$0x1]  ;;  %v17021_v0 = vld [vmem:[%s20305_s12 + $0x418] sm:$0xf] }
 0x42d   : > { %v14154_v4 = vadd.f32 %v19103_v29, %v26064_v42  ;;  %18968 = vmatmul.mubr.msk.bf16.gmra.mrb[104].mxu1 %vm324_vm12, %v14208_v26  ;;  %v14185_v46 = vmax.f32 %v14153_v30, 0.0  ;;  %v12387_v26 = vrot.slane %v17018_v31, 5  ;;  %v20174_v30 = vld [vmem:[%s20305_s12 + $0x55c] sm:$0xff]   ;;  %v17065_v29 = vrot.slane %v17017_v15, 9  ;;  %v20176_v31 = vld [vmem:[%s20305_s12 + $0x594] sm:$0xff]  }
 0x42e   : > { %v14152_v56 = vadd.f32 %v19104_v37, %v26064_v42  ;;  %v14183_v3 = vmax.f32 %v14151_v49, 0.0  ;;  %v961_v15 = vld [vmem:[#allocation2 + $0x2f8] sm:$0xff] }
 0x42f   : > { %v14186_v48 = vmax.f32 %v14154_v4, 0.0  ;;  %v954_v4 = vld [vmem:[#allocation2 + $0x2c0] sm:$0xff] }
 0x430   : > { %v14184_v47 = vmax.f32 %v14152_v56, 0.0  ;;  %v18551_v58 = vpop.f32.mrb[80].mxu1  ;;  %v20175_v56 = vld [vmem:[%s20305_s12 + $0x578] sm:$0xff]  }
 0x431   : > { %v14210_v60 = vpack.c.bf16 %v14186_v48, %v14185_v46  ;;  %v19105_v32 = vadd.f32 %v18551_v58, %v948_v22  ;;  %v9331_v9 = vpop.f32.mrb[81].mxu1  ;;  %v12389_v22 = vrot.slane %v12387_v26, 4 }
 0x432   : > { %v14209_v10 = vpack.c.bf16 %v14184_v47, %v14183_v3  ;;  %v19106_v38 = vadd.f32 %v9331_v9, %v946_v21  ;;  %v18552_v5 = vpop.f32.mrb[82].mxu1  ;;  %18802 = vmatmul.mubr.msk.bf16.gmra.mrb[52].mxu0 %vm731_vm4, %v20170_v54  ;;  %v12390_v54 = vrot.slane %v17019_v63, 5  ;;  %v17024_v3 = vld [vmem:[%s20305_s12 + $0x434] sm:$0xf]  ;;  %v959_v63 = vld [vmem:[#allocation2 + $0x2e8] sm:$0xff] }
 0x433   : > { %v14157_v53 = vadd.f32 %v19105_v32, %v26064_v42  ;;  %v19107_v17 = vadd.f32 %v18552_v5, %v949_v44  ;;  %v9334_v20 = vpop.f32.mrb[83].mxu1  ;;  %18805 = vmatprep.mubr.msk.bf16.mxu0 %vm731_vm4, %v20171_v7  ;;  %v957_v7 = vld [vmem:[#allocation2 + $0x2d8] sm:$0xff]  ;;  %v12394_v32 = vrot.slane %v17021_v0, 5  ;;  %v17020_v5 = vld [vmem:[%s20305_s12 + $0x414] sm:$0xe] }
 0x434   : > { %v14155_v27 = vadd.f32 %v19106_v38, %v26064_v42  ;;  %v19108_v18 = vadd.f32 %v9334_v20, %v947_v55  ;;  %18971 = vmatprep.mubr.msk.bf16.mxu1 %vm324_vm12, %v14209_v10  ;;  %v12388_v38 = vsel %vm20288_vm2, %v17065_v29, %v12387_v26 }
 0x435   : > { %v14158_v12 = vadd.f32 %v19107_v17, %v26064_v42  ;;  %18972 = vmatmul.mubr.msk.bf16.gmra.mrb[108].mxu1 %vm324_vm12, %v14210_v60  ;;  %v14189_v39 = vmax.f32 %v14157_v53, 0.0  ;;  %v955_v60 = vld [vmem:[#allocation2 + $0x2c8] sm:$0xff]  ;;  %v17022_v53 = vld [vmem:[%s20305_s12 + $0x41c] sm:$0x1] }
 0x436   : > { %v14156_v36 = vadd.f32 %v19108_v18, %v26064_v42  ;;  %v14187_v25 = vmax.f32 %v14155_v27, 0.0  ;;  %v12391_v18 = vsel %vm20288_vm2, %v12389_v22, %v12390_v54 }
 0x437   : > { %v14190_v1 = vmax.f32 %v14158_v12, 0.0  ;;  %v17023_v12 = vld [vmem:[%s20305_s12 + $0x430] sm:$0xe] }
 0x438   : > { %v14188_v28 = vmax.f32 %v14156_v36, 0.0  ;;  %v18555_v57 = vpop.f32.mrb[84].mxu1  ;;  %v12401_v36 = vrot.slane %v17024_v3, 5 }
 0x439   : > { %v14212_v52 = vpack.c.bf16 %v14190_v1, %v14189_v39  ;;  %v19109_v14 = vadd.f32 %v18555_v57, %v952_v40  ;;  %v9347_v6 = vpop.f32.mrb[85].mxu1  ;;  %v17025_v39 = vld [vmem:[%s20305_s12 + $0x438] sm:$0x1]  ;;  %v960_v57 = vld [vmem:[#allocation2 + $0x2f0] sm:$0xff] }
 0x43a   : > { %v14211_v34 = vpack.c.bf16 %v14188_v28, %v14187_v25  ;;  %v19110_v62 = vadd.f32 %v9347_v6, %v950_v19  ;;  %v18556_v2 = vpop.f32.mrb[86].mxu1  ;;  %18806 = vmatmul.mubr.msk.bf16.gmra.mrb[56].mxu0 %vm731_vm4, %v20172_v43  ;;  %v17066_v19 = vrot.slane %v17020_v5, 9  ;;  %v12397_v25 = vrot.slane %v17022_v53, 5 }
 0x43b   : > { %v14161_v35 = vadd.f32 %v19109_v14, %v26064_v42  ;;  %v19111_v23 = vadd.f32 %v18556_v2, %v953_v33  ;;  %v9350_v45 = vpop.f32.mrb[87].mxu1  ;;  %18809 = vmatprep.mubr.msk.bf16.mxu0 %vm731_vm4, %v20173_v8  ;;  %v12396_v8 = vrot.slane %v12394_v32, 4  ;;  %v958_v33 = vld [vmem:[#allocation2 + $0x2e0] sm:$0xff]  ;;  %v17067_v14 = vrot.slane %v17023_v12, 9  ;;  %v17027_v2 = vld [vmem:[%s20305_s12 + $0x450] sm:$0xf] }
 0x43c   : > { %v14159_v13 = vadd.f32 %v19110_v62, %v26064_v42  ;;  %v19112_v59 = vadd.f32 %v9350_v45, %v951_v16  ;;  %18975 = vmatprep.mubr.msk.bf16.mxu1 %vm324_vm12, %v14211_v34  ;;  %v12403_v34 = vrot.slane %v12401_v36, 4  ;;  %v12404_v62 = vrot.slane %v17025_v39, 5  ;;  %v20178_v39 = vld [vmem:[%s26588_s1 + $0x1b8] sm:$0xff]  }
 0x43d   : > { %v14162_v11 = vadd.f32 %v19111_v23, %v26064_v42  ;;  %18976 = vmatmul.mubr.msk.bf16.gmra.mrb[112].mxu1 %vm324_vm12, %v14212_v52  ;;  %v14193_v49 = vmax.f32 %v14161_v35, 0.0  ;;  %v17085_v52 = vcombine.low %v12388_v38, %v12391_v18 }
 0x43e   : > { %v14160_v50 = vadd.f32 %v19112_v59, %v26064_v42  ;;  %v14191_v46 = vmax.f32 %v14159_v13, 0.0 }
 0x43f   : > { %v14194_v37 = vmax.f32 %v14162_v11, 0.0  ;;  %v12395_v11 = vsel %vm20288_vm2, %v17066_v19, %v12394_v32  ;;  %v17036_v19 = vld [vmem:[%s20305_s12 + $0x4a4] sm:$0xf] }
 0x440   : > { %v14192_v48 = vmax.f32 %v14160_v50, 0.0  ;;  %v18559_v21 = vpop.f32.mrb[88].mxu1  ;;  %v12398_v50 = vsel %vm20288_vm2, %v12396_v8, %v12397_v25 }
 0x441   : > { %v14214_v47 = vpack.c.bf16 %v14194_v37, %v14193_v49  ;;  %v19113_v58 = vadd.f32 %v18559_v21, %v956_v61  ;;  %v9363_v44 = vpop.f32.mrb[89].mxu1  ;;  %v17030_v61 = vld [vmem:[%s20305_s12 + $0x46c] sm:$0xf]  ;;  %v12402_v49 = vsel %vm20288_vm2, %v17067_v14, %v12401_v36  ;;  %v17028_v21 = vld [vmem:[%s20305_s12 + $0x454] sm:$0x1] }
 0x442   : > { %v14213_v9 = vpack.c.bf16 %v14192_v48, %v14191_v46  ;;  %v19114_v55 = vadd.f32 %v9363_v44, %v954_v4  ;;  %v18560_v10 = vpop.f32.mrb[90].mxu1  ;;  %18810 = vmatmul.mubr.msk.bf16.gmra.mrb[60].mxu0 %vm731_vm4, %v20174_v30  ;;  %v17026_v37 = vld [vmem:[%s20305_s12 + $0x44c] sm:$0xe]  ;;  %v12408_v4 = vrot.slane %v17027_v2, 5  ;;  %v12405_v48 = vsel %vm20288_vm2, %v12403_v34, %v12404_v62  ;;  %v17031_v44 = vld [vmem:[%s20305_s12 + $0x470] sm:$0x1] }
 0x443   : > { %v14165_v17 = vadd.f32 %v19113_v58, %v26064_v42  ;;  %v19115_v20 = vadd.f32 %v18560_v10, %v957_v7  ;;  %v9366_v27 = vpop.f32.mrb[91].mxu1  ;;  %18813 = vmatprep.mubr.msk.bf16.mxu0 %vm731_vm4, %v20175_v56  ;;  %v17278_v56 = vld [vmem:[%s26590_s3 + $0x6] sm:$0x3]  ;;  %v17029_v58 = vld [vmem:[%s20305_s12 + $0x468] sm:$0xe]  ;;  %v17087_v38 = vcombine.low %v12402_v49, %v12405_v48  ;;  %v12411_v53 = vrot.slane %v17028_v21, 5 }
 0x444   : > { %v14163_v40 = vadd.f32 %v19114_v55, %v26064_v42  ;;  %v19116_v43 = vadd.f32 %v9366_v27, %v955_v60  ;;  %18979 = vmatprep.mubr.msk.bf16.mxu1 %vm324_vm12, %v14213_v9  ;;  %20020 = vmatprep.subr.msk.bf16.mxu1 %vm1397_vm5, %v17278_v56  ;;  %v14604_v7 = vsel %vm1397_vm5, %v17278_v56, 0  ;;  %v12415_v60 = vrot.slane %v17030_v61, 5  ;;  %v17035_v14 = vld [vmem:[%s20305_s12 + $0x4a0] sm:$0xe]  ;;  %v17041_v49 = vld [vmem:[%s20305_s12 + $0x4d8] sm:$0xe] }
 0x445   : > { %v14166_v1 = vadd.f32 %v19115_v20, %v26064_v42  ;;  %18980 = vmatmul.mubr.msk.bf16.gmra.mrb[116].mxu1 %vm324_vm12, %v14214_v47  ;;  %v14197_v6 = vmax.f32 %v14165_v17, 0.0  ;;  %v17086_v9 = vcombine.low %v12395_v11, %v12398_v50  ;;  %v17068_v55 = vrot.slane %v17026_v37, 9  ;;  %v17043_v37 = vld [vmem:[%s20305_s12 + $0x4e0] sm:$0x1] }
 0x446   : > { %v14164_v28 = vadd.f32 %v19116_v43, %v26064_v42  ;;  %v14195_v35 = vmax.f32 %v14163_v40, 0.0  ;;  %18992 = vmatpush3.bf16.msra.mxu1 %v14604_v7  ;;  %v12410_v5 = vrot.slane %v12408_v4, 4  ;;  %v17069_v27 = vrot.slane %v17029_v58, 9  ;;  %v17033_v43 = vld [vmem:[%s20305_s12 + $0x488] sm:$0xf] }
 0x447   : > { %v14198_v16 = vmax.f32 %v14166_v1, 0.0  ;;  %v12418_v18 = vrot.slane %v17031_v44, 5  ;;  %v12417_v40 = vrot.slane %v12415_v60, 4  ;;  %v12409_v8 = vsel %vm20288_vm2, %v17068_v55, %v12408_v4  ;;  %v17044_v55 = vld [vmem:[%s20305_s12 + $0x4f4] sm:$0xe] }
 0x448   : > { %v14196_v23 = vmax.f32 %v14164_v28, 0.0  ;;  %v18563_v45 = vpop.f32.mrb[92].mxu1  ;;  %v12412_v25 = vsel %vm20288_vm2, %v12410_v5, %v12411_v53  ;;  %v12422_v28 = vrot.slane %v17033_v43, 5  ;;  %v17073_v48 = vrot.slane %v17041_v49, 9  ;;  %v17047_v5 = vld [vmem:[%s20305_s12 + $0x510] sm:$0xe] }
 0x449   : > { %v14216_v26 = vpack.c.bf16 %v14198_v16, %v14197_v6  ;;  %v19117_v13 = vadd.f32 %v18563_v45, %v960_v57  ;;  %v9379_v59 = vpop.f32.mrb[93].mxu1  ;;  %v12416_v57 = vsel %vm20288_vm2, %v17069_v27, %v12415_v60  ;;  %v17037_v6 = vld [vmem:[%s20305_s12 + $0x4a8] sm:$0x1]  ;;  %v17088_v16 = vcombine.low %v12409_v8, %v12412_v25  ;;  %v17049_v53 = vld [vmem:[%s20305_s12 + $0x518] sm:$0x1] }
 0x44a   : > { %v14215_v30 = vpack.c.bf16 %v14196_v23, %v14195_v35  ;;  %v19118_v29 = vadd.f32 %v9379_v59, %v958_v33  ;;  %v18564_v0 = vpop.f32.mrb[94].mxu1  ;;  %18814 = vmatmul.mubr.msk.bf16.gmra.mrb[64].mxu0 %vm731_vm4, %v20176_v31  ;;  %v12419_v33 = vsel %vm20288_vm2, %v12417_v40, %v12418_v18  ;;  %v17032_v31 = vld [vmem:[%s20305_s12 + $0x484] sm:$0xe]  ;;  %v12424_v2 = vrot.slane %v12422_v28, 4 }
 0x44b   : > { %v14169_v22 = vadd.f32 %v19117_v13, %v26064_v42  ;;  %v19119_v54 = vadd.f32 %v18564_v0, %v961_v15  ;;  %v9382_v46 = vpop.f32.mrb[95].mxu1  ;;  %18821 = vmatprep.mubr.msk.bf16.mxu0 %vm731_vm4, %v17085_v52  ;;  %v12429_v52 = vrot.slane %v17036_v19, 5  ;;  %v17089_v34 = vcombine.low %v12416_v57, %v12419_v33  ;;  %v17042_v13 = vld [vmem:[%s20305_s12 + $0x4dc] sm:$0xf]  ;;  %v17050_v57 = vld [vmem:[%s20305_s12 + $0x52c] sm:$0xe] }
 0x44c   : > { %v14167_v3 = vadd.f32 %v19118_v29, %v26064_v42  ;;  %v19120_v47 = vadd.f32 %v9382_v46, %v959_v63  ;;  %18983 = vmatprep.mubr.msk.bf16.mxu1 %vm324_vm12, %v14215_v30  ;;  %v17070_v62 = vrot.slane %v17032_v31, 9  ;;  %v17071_v23 = vrot.slane %v17035_v14, 9  ;;  %v17038_v30 = vld [vmem:[%s20305_s12 + $0x4bc] sm:$0xe]  ;;  %v17040_v29 = vld [vmem:[%s20305_s12 + $0x4c4] sm:$0x1] }
 0x44d   : > { %v14170_v32 = vadd.f32 %v19119_v54, %v26064_v42  ;;  %18984 = vmatmul.mubr.msk.bf16.gmra.mrb[120].mxu1 %vm324_vm12, %v14216_v26  ;;  %v14201_v17 = vmax.f32 %v14169_v22, 0.0  ;;  %v12431_v45 = vrot.slane %v12429_v52, 4  ;;  %v12432_v15 = vrot.slane %v17037_v6, 5  ;;  %v17039_v26 = vld [vmem:[%s20305_s12 + $0x4c0] sm:$0xf] }
 0x44e   : > { %v14168_v10 = vadd.f32 %v19120_v47, %v26064_v42  ;;  %v14199_v12 = vmax.f32 %v14167_v3, 0.0  ;;  %v12423_v59 = vsel %vm20288_vm2, %v17070_v62, %v12422_v28  ;;  %v12436_v11 = vrot.slane %v17039_v26, 5  ;;  %v17045_v3 = vld [vmem:[%s20305_s12 + $0x4f8] sm:$0xf]  ;;  %v17048_v47 = vld [vmem:[%s20305_s12 + $0x514] sm:$0xf] }
 0x44f   : > { %v14202_v20 = vmax.f32 %v14170_v32, 0.0  ;;  %v12430_v50 = vsel %vm20288_vm2, %v17071_v23, %v12429_v52  ;;  %v12433_v61 = vsel %vm20288_vm2, %v12431_v45, %v12432_v15  ;;  %v12443_v0 = vrot.slane %v17042_v13, 5  ;;  %v17052_v33 = vld [vmem:[%s20305_s12 + $0x534] sm:$0x1]  ;;  %v17055_v52 = vld [vmem:[%s20305_s12 + $0x550] sm:$0x1] }
 0x450   : > { %v14200_v36 = vmax.f32 %v14168_v10, 0.0  ;;  %v17091_v56 = vcombine.low %v12430_v50, %v12433_v61  ;;  %v17072_v22 = vrot.slane %v17038_v30, 9  ;;  %v12438_v54 = vrot.slane %v12436_v11, 4  ;;  %v17046_v10 = vld [vmem:[%s20305_s12 + $0x4fc] sm:$0x1] }
 0x451   : > { %v14218_v1 = vpack.c.bf16 %v14202_v20, %v14201_v17  ;;  %v12439_v46 = vrot.slane %v17040_v29, 5  ;;  %v12445_v21 = vrot.slane %v12443_v0, 4  ;;  %v12446_v7 = vrot.slane %v17043_v37, 5  ;;  %v17057_v45 = vld [vmem:[%s20305_s12 + $0x568] sm:$0xf] }
 0x452   : > { %v14217_v42 = vpack.c.bf16 %v14200_v36, %v14199_v12  ;;  %18822 = vmatmul.mubr.msk.bf16.vlgmr.msra.gmra.mrb[36].mxu0 %vm731_vm4, %v17086_v9  ;;  %v12437_v58 = vsel %vm20288_vm2, %v17072_v22, %v12436_v11  ;;  %v12450_v60 = vrot.slane %v17045_v3, 5  ;;  %v12444_v32 = vsel %vm20288_vm2, %v17073_v48, %v12443_v0  ;;  %v17060_v15 = vld [vmem:[%s20305_s12 + $0x584] sm:$0xf]  ;;  %v17058_v61 = vld [vmem:[%s20305_s12 + $0x56c] sm:$0x1] }
 0x453   : > { %18854 = vmatpush3.bf16.msra.mxu0 %v26077_v51  ;;  %18825 = vmatprep.mubr.msk.bf16.mxu0 %vm731_vm4, %v17087_v38  ;;  %v17034_v51 = vld [vmem:[%s20305_s12 + $0x48c] sm:$0x1]  ;;  %v12440_v44 = vsel %vm20288_vm2, %v12438_v54, %v12439_v46  ;;  %v12447_v9 = vsel %vm20288_vm2, %v12445_v21, %v12446_v7  ;;  %v12457_v38 = vrot.slane %v17048_v47, 5  ;;  %v17074_v27 = vrot.slane %v17044_v55, 9  ;;  %v17056_v50 = vld [vmem:[%s20305_s12 + $0x564] sm:$0xe] }
 0x454   : > { %18987 = vmatprep.mubr.msk.bf16.mxu1 %vm324_vm12, %v14217_v42  ;;  %18855 = vmatprep.subr.bf16.mxu0 %v20178_v39  ;;  %v12425_v35 = vrot.slane %v17034_v51, 5  ;;  %v17092_v17 = vcombine.low %v12437_v58, %v12440_v44  ;;  %v17093_v20 = vcombine.low %v12444_v32, %v12447_v9  ;;  %v12452_v18 = vrot.slane %v12450_v60, 4  ;;  %v17053_v51 = vld [vmem:[%s20305_s12 + $0x548] sm:$0xe]  ;;  %v17059_v29 = vld [vmem:[%s20305_s12 + $0x580] sm:$0xe] }
 0x455   : > { %18988 = vmatmul.mubr.msk.bf16.gmra.mrb[124].mxu1 %vm324_vm12, %v14218_v1  ;;  %v12453_v12 = vrot.slane %v17046_v10, 5  ;;  %v17075_v36 = vrot.slane %v17047_v5, 9  ;;  %v12459_v40 = vrot.slane %v12457_v38, 4  ;;  %v12460_v43 = vrot.slane %v17049_v53, 5  ;;  %v17054_v1 = vld [vmem:[%s20305_s12 + $0x54c] sm:$0xf] }
 0x456   : > { %v12426_v63 = vsel %vm20288_vm2, %v12424_v2, %v12425_v35  ;;  %v12451_v19 = vsel %vm20288_vm2, %v17074_v27, %v12450_v60  ;;  %v12471_v31 = vrot.slane %v17054_v1, 5  ;;  %v12467_v62 = vrot.slane %v17052_v33, 5  ;;  %v17061_v0 = vld [vmem:[%s20305_s12 + $0x588] sm:$0x1]  ;;  %v17063_v21 = vld [vmem:[%s20305_s12 + $0x5a0] sm:$0xf] }
 0x457   : > { %18856 = vmatpush3.bf16.msra.mxu0 %v20178_v39  ;;  %v17090_v4 = vcombine.low %v12423_v59, %v12426_v63  ;;  %v17051_v39 = vld [vmem:[%s20305_s12 + $0x530] sm:$0xf]  ;;  %v12454_v42 = vsel %vm20288_vm2, %v12452_v18, %v12453_v12  ;;  %v12458_v25 = vsel %vm20288_vm2, %v17075_v36, %v12457_v38  ;;  %v12461_v28 = vsel %vm20288_vm2, %v12459_v40, %v12460_v43  ;;  %v17120_v7 = vld [vmem:[%s20305_s12 + $0x404] sm:$0xf]  ;;  %v17062_v32 = vld [vmem:[%s20305_s12 + $0x59c] sm:$0xe] }
 0x458   : > { %v12464_v8 = vrot.slane %v17051_v39, 5  ;;  %v17094_v14 = vcombine.low %v12451_v19, %v12454_v42  ;;  %v17095_v6 = vcombine.low %v12458_v25, %v12461_v28  ;;  %v17077_v2 = vrot.slane %v17053_v51, 9  ;;  %v17064_v9 = vld [vmem:[%s20305_s12 + $0x5a4] sm:$0x1]  ;;  %v17119_v10 = vld [vmem:[%s20305_s12 + $0x400] sm:$0xc] }
 0x459   : > { %v12473_v35 = vrot.slane %v12471_v31, 4  ;;  %v12474_v23 = vrot.slane %v17055_v52, 5  ;;  %v12478_v59 = vrot.slane %v17057_v45, 5  ;;  %v12485_v30 = vrot.slane %v17060_v15, 5  ;;  %v17121_v38 = vld [vmem:[%s20305_s12 + $0x408] sm:$0x3] }
 0x45a   : > { %18826 = vmatmul.mubr.msk.bf16.gmra.mrb[40].mxu0 %vm731_vm4, %v17088_v16  ;;  %v17076_v16 = vrot.slane %v17050_v57, 9  ;;  %v12472_v63 = vsel %vm20288_vm2, %v17077_v2, %v12471_v31  ;;  %v12481_v22 = vrot.slane %v17058_v61, 5  ;;  %v17079_v54 = vrot.slane %v17059_v29, 9  ;;  %v17123_v40 = vld [vmem:[%s20305_s12 + $0x420] sm:$0xf] }
 0x45b   : > { %18829 = vmatprep.mubr.msk.bf16.mxu0 %vm731_vm4, %v17089_v34  ;;  %v12466_v34 = vrot.slane %v12464_v8, 4  ;;  %v12475_v11 = vsel %vm20288_vm2, %v12473_v35, %v12474_v23  ;;  %v12487_v46 = vrot.slane %v12485_v30, 4  ;;  %v12488_v48 = vrot.slane %v17061_v0, 5  ;;  %v17126_v43 = vld [vmem:[%s20305_s12 + $0x43c] sm:$0xf] }
 0x45c   : > { %v12465_v26 = vsel %vm20288_vm2, %v17076_v16, %v12464_v8  ;;  %v17097_v37 = vcombine.low %v12472_v63, %v12475_v11  ;;  %v12492_v58 = vrot.slane %v17063_v21, 5  ;;  %v12486_v44 = vsel %vm20288_vm2, %v17079_v54, %v12485_v30  ;;  %v17122_v25 = vld [vmem:[%s20305_s12 + $0x41c] sm:$0xc]  ;;  %v17124_v28 = vld [vmem:[%s20305_s12 + $0x424] sm:$0x3] }
 0x45d   : > { %v12468_v13 = vsel %vm20288_vm2, %v12466_v34, %v12467_v62  ;;  %v12489_v60 = vsel %vm20288_vm2, %v12487_v46, %v12488_v48  ;;  %v12901_v55 = vrot.slane %v17120_v7, 6  ;;  %v12495_v27 = vrot.slane %v17064_v9, 5  ;;  %v17125_v33 = vld [vmem:[%s20305_s12 + $0x438] sm:$0xc]  ;;  %v17127_v31 = vld [vmem:[%s20305_s12 + $0x440] sm:$0x3] }
 0x45e   : > { %v17096_v49 = vcombine.low %v12465_v26, %v12468_v13  ;;  %v17099_v53 = vcombine.low %v12486_v44, %v12489_v60  ;;  %v17167_v18 = vrot.slane %v17119_v10, 10  ;;  %v12904_v36 = vrot.slane %v17121_v38, 6  ;;  %v17129_v2 = vld [vmem:[%s20305_s12 + $0x458] sm:$0xf]  ;;  %v17132_v35 = vld [vmem:[%s20305_s12 + $0x474] sm:$0xf] }
 0x45f   : > { %v12903_v12 = vrot.slane %v12901_v55, 4  ;;  %v12908_v19 = vrot.slane %v17123_v40, 6  ;;  %v12915_v57 = vrot.slane %v17126_v43, 6  ;;  %v17169_v16 = vrot.slane %v17125_v33, 10  ;;  %v17130_v63 = vld [vmem:[%s20305_s12 + $0x45c] sm:$0x3] }
 0x460   : > { %v12902_v42 = vsel %vm20527_vm7, %v17167_v18, %v12901_v55  ;;  %v12918_v62 = vrot.slane %v17127_v31, 6  ;;  %v12922_v15 = vrot.slane %v17129_v2, 6  ;;  %v12929_v11 = vrot.slane %v17132_v35, 6  ;;  %v17133_v61 = vld [vmem:[%s20305_s12 + $0x478] sm:$0x3] }
 0x461   : > { %v12905_v8 = vsel %vm20527_vm7, %v12903_v12, %v12904_v36  ;;  %v12910_v41 = vrot.slane %v12908_v19, 4  ;;  %v12917_v34 = vrot.slane %v12915_v57, 4  ;;  %v12916_v26 = vsel %vm20527_vm7, %v17169_v16, %v12915_v57  ;;  %v17135_v54 = vld [vmem:[%s20305_s12 + $0x490] sm:$0xf]  ;;  %v17138_v46 = vld [vmem:[%s20305_s12 + $0x4ac] sm:$0xf] }
 0x462   : > { %18830 = vmatmul.mubr.msk.bf16.gmra.mrb[44].mxu0 %vm731_vm4, %v17090_v4  ;;  %v17078_v4 = vrot.slane %v17056_v50, 9  ;;  %v17187_v52 = vcombine.low %v12902_v42, %v12905_v8  ;;  %v17131_v50 = vld [vmem:[%s20305_s12 + $0x470] sm:$0xc]  ;;  %v12936_v7 = vrot.slane %v17135_v54, 6  ;;  %v17136_v44 = vld [vmem:[%s20305_s12 + $0x494] sm:$0x3] }
 0x463   : > { %18833 = vmatprep.mubr.msk.bf16.mxu0 %vm731_vm4, %v17091_v56  ;;  %v12480_v56 = vrot.slane %v12478_v59, 4  ;;  %v12919_v13 = vsel %vm20527_vm7, %v12917_v34, %v12918_v62  ;;  %v12943_v60 = vrot.slane %v17138_v46, 6  ;;  %v17139_v9 = vld [vmem:[%s20305_s12 + $0x4b0] sm:$0x3]  ;;  %v17141_v18 = vld [vmem:[%s20305_s12 + $0x4c8] sm:$0xf] }
 0x464   : > { %v12479_v3 = vsel %vm20288_vm2, %v17078_v4, %v12478_v59  ;;  %v17128_v59 = vld [vmem:[%s20305_s12 + $0x454] sm:$0xc]  ;;  %v17189_v29 = vcombine.low %v12916_v26, %v12919_v13  ;;  %v17171_v4 = vrot.slane %v17131_v50, 10  ;;  %v17144_v12 = vld [vmem:[%s20305_s12 + $0x4e4] sm:$0xf]  ;;  %v12950_v43 = vrot.slane %v17141_v18, 6 }
 0x465   : > { %v12482_v47 = vsel %vm20288_vm2, %v12480_v56, %v12481_v22  ;;  %v17170_v0 = vrot.slane %v17128_v59, 10  ;;  %v12931_v56 = vrot.slane %v12929_v11, 4  ;;  %v12932_v22 = vrot.slane %v17133_v61, 6  ;;  %v17142_v42 = vld [vmem:[%s20305_s12 + $0x4cc] sm:$0x3] }
 0x466   : > { %v17098_v5 = vcombine.low %v12479_v3, %v12482_v47  ;;  %v12930_v3 = vsel %vm20527_vm7, %v17171_v4, %v12929_v11  ;;  %v12957_v8 = vrot.slane %v17144_v12, 6  ;;  %v17147_v16 = vld [vmem:[%s20305_s12 + $0x500] sm:$0xf]  ;;  %v17150_v34 = vld [vmem:[%s20305_s12 + $0x51c] sm:$0xf] }
 0x467   : > { %v12923_v48 = vsel %vm20527_vm7, %v17170_v0, %v12922_v15  ;;  %v12933_v47 = vsel %vm20527_vm7, %v12931_v56, %v12932_v22  ;;  %v12964_v35 = vrot.slane %v17147_v16, 6  ;;  %v17148_v26 = vld [vmem:[%s20305_s12 + $0x504] sm:$0x3]  ;;  %v12971_v13 = vrot.slane %v17150_v34, 6  ;;  %v17149_v59 = vld [vmem:[%s20305_s12 + $0x518] sm:$0xc] }
 0x468   : > { %v17191_v10 = vcombine.low %v12930_v3, %v12933_v47  ;;  %v17177_v0 = vrot.slane %v17149_v59, 10  ;;  %v17153_v4 = vld [vmem:[%s20305_s12 + $0x538] sm:$0xf]  ;;  %v17156_v56 = vld [vmem:[%s20305_s12 + $0x554] sm:$0xf] }
 0x469   : > { %v12978_v46 = vrot.slane %v17153_v4, 6  ;;  %v17154_v3 = vld [vmem:[%s20305_s12 + $0x53c] sm:$0x3]  ;;  %v12985_v47 = vrot.slane %v17156_v56, 6  ;;  %v964_v4 = vld [vmem:[#allocation2 + $0x308] sm:$0xff] }
 0x46a   : > { %18834 = vmatmul.mubr.msk.bf16.gmra.mrb[48].mxu0 %vm731_vm4, %v17092_v17  ;;  %v17080_v17 = vrot.slane %v17062_v32, 9  ;;  %v17137_v32 = vld [vmem:[%s20305_s12 + $0x4a8] sm:$0xc] }
 0x46b   : > { %18837 = vmatprep.mubr.msk.bf16.mxu0 %vm731_vm4, %v17093_v20  ;;  %v12494_v20 = vrot.slane %v12492_v58, 4 }
 0x46c   : > { %v12493_v39 = vsel %vm20288_vm2, %v17080_v17, %v12492_v58  ;;  %v17134_v58 = vld [vmem:[%s20305_s12 + $0x48c] sm:$0xc]  ;;  %v17173_v17 = vrot.slane %v17137_v32, 10 }
 0x46d   : > { %v12496_v1 = vsel %vm20288_vm2, %v12494_v20, %v12495_v27  ;;  %v17172_v38 = vrot.slane %v17134_v58, 10  ;;  %v12945_v20 = vrot.slane %v12943_v60, 4  ;;  %v12946_v27 = vrot.slane %v17139_v9, 6  ;;  %v17155_v58 = vld [vmem:[%s20305_s12 + $0x550] sm:$0xc] }
 0x46e   : > { %v17100_v51 = vcombine.low %v12493_v39, %v12496_v1  ;;  %v12944_v39 = vsel %vm20527_vm7, %v17173_v17, %v12943_v60  ;;  %v17159_v17 = vld [vmem:[%s20305_s12 + $0x570] sm:$0xf] }
 0x46f   : > { %v12937_v36 = vsel %vm20527_vm7, %v17172_v38, %v12936_v7  ;;  %v12947_v1 = vsel %vm20527_vm7, %v12945_v20, %v12946_v27  ;;  %v17179_v38 = vrot.slane %v17155_v58, 10  ;;  %v17162_v20 = vld [vmem:[%s20305_s12 + $0x58c] sm:$0xf]  ;;  %v12992_v12 = vrot.slane %v17159_v17, 6 }
 0x470   : > { %v17193_v33 = vcombine.low %v12944_v39, %v12947_v1  ;;  %v17160_v39 = vld [vmem:[%s20305_s12 + $0x574] sm:$0x3]  ;;  %v12999_v1 = vrot.slane %v17162_v20, 6  ;;  %v968_v17 = vld [vmem:[#allocation2 + $0x328] sm:$0xff] }
 0x472   : > { %18838 = vmatmul.mubr.msk.bf16.gmra.mrb[52].mxu0 %vm731_vm4, %v17094_v14  ;;  %v17168_v14 = vrot.slane %v17122_v25, 10  ;;  %v17143_v25 = vld [vmem:[%s20305_s12 + $0x4e0] sm:$0xc] }
 0x473   : > { %18841 = vmatprep.mubr.msk.bf16.mxu0 %vm731_vm4, %v17095_v6  ;;  %v12911_v6 = vrot.slane %v17124_v28, 6  ;;  %v17145_v28 = vld [vmem:[%s20305_s12 + $0x4e8] sm:$0x3] }
 0x474   : > { %v12909_v23 = vsel %vm20527_vm7, %v17168_v14, %v12908_v19  ;;  %v17140_v19 = vld [vmem:[%s20305_s12 + $0x4c4] sm:$0xc]  ;;  %v17175_v14 = vrot.slane %v17143_v25, 10 }
 0x475   : > { %v12912_v45 = vsel %vm20527_vm7, %v12910_v41, %v12911_v6  ;;  %v17174_v31 = vrot.slane %v17140_v19, 10  ;;  %v12959_v41 = vrot.slane %v12957_v8, 4  ;;  %v12960_v6 = vrot.slane %v17145_v28, 6  ;;  %v17161_v19 = vld [vmem:[%s20305_s12 + $0x588] sm:$0xc] }
 0x476   : > { %v17188_v30 = vcombine.low %v12909_v23, %v12912_v45  ;;  %v12958_v23 = vsel %vm20527_vm7, %v17175_v14, %v12957_v8  ;;  %v17165_v14 = vld [vmem:[%s20305_s12 + $0x5a8] sm:$0xf] }
 0x477   : > { %v12951_v62 = vsel %vm20527_vm7, %v17174_v31, %v12950_v43  ;;  %v12961_v45 = vsel %vm20527_vm7, %v12959_v41, %v12960_v6  ;;  %v17181_v31 = vrot.slane %v17161_v19, 10  ;;  %v13006_v16 = vrot.slane %v17165_v14, 6 }
 0x478   : > { %v17195_v50 = vcombine.low %v12958_v23, %v12961_v45 }
 0x479   : > { %v13000_v34 = vsel %vm20527_vm7, %v17181_v31, %v12999_v1 }
 0x47a   : > { %18842 = vmatmul.mubr.msk.bf16.gmra.mrb[56].mxu0 %vm731_vm4, %v17096_v49  ;;  %v12924_v49 = vrot.slane %v12922_v15, 4  ;;  %v17146_v15 = vld [vmem:[%s20305_s12 + $0x4fc] sm:$0xc] }
 0x47b   : > { %18845 = vmatprep.mubr.msk.bf16.mxu0 %vm731_vm4, %v17097_v37  ;;  %v12925_v37 = vrot.slane %v17130_v63, 6  ;;  %v17151_v63 = vld [vmem:[%s20305_s12 + $0x520] sm:$0x3]  ;;  %v17176_v61 = vrot.slane %v17146_v15, 10 }
 0x47d   : > { %v12926_v21 = vsel %vm20527_vm7, %v12924_v49, %v12925_v37  ;;  %v12973_v49 = vrot.slane %v12971_v13, 4  ;;  %v12974_v37 = vrot.slane %v17151_v63, 6  ;;  %v12965_v22 = vsel %vm20527_vm7, %v17176_v61, %v12964_v35  ;;  %v963_v61 = vld [vmem:[#allocation2 + $0x300] sm:$0xff] }
 0x47e   : > { %v17190_v55 = vcombine.low %v12923_v48, %v12926_v21  ;;  %v12972_v48 = vsel %vm20527_vm7, %v17177_v0, %v12971_v13  ;;  %v966_v0 = vld [vmem:[#allocation2 + $0x318] sm:$0xff] }
 0x47f   : > { %v12975_v21 = vsel %vm20527_vm7, %v12973_v49, %v12974_v37 }
 0x480   : > { %v17197_v32 = vcombine.low %v12972_v48, %v12975_v21 }
 0x482   : > { %18846 = vmatmul.mubr.msk.bf16.gmra.mrb[60].mxu0 %vm731_vm4, %v17098_v5  ;;  %v12938_v5 = vrot.slane %v12936_v7, 4  ;;  %v17152_v7 = vld [vmem:[%s20305_s12 + $0x534] sm:$0xc] }
 0x483   : > { %18849 = vmatprep.mubr.msk.bf16.mxu0 %vm731_vm4, %v17099_v53  ;;  %v12939_v53 = vrot.slane %v17136_v44, 6  ;;  %v17157_v44 = vld [vmem:[%s20305_s12 + $0x558] sm:$0x3]  ;;  %v17178_v9 = vrot.slane %v17152_v7, 10 }
 0x485   : > { %v12940_v40 = vsel %vm20527_vm7, %v12938_v5, %v12939_v53  ;;  %v12987_v5 = vrot.slane %v12985_v47, 4  ;;  %v12988_v53 = vrot.slane %v17157_v44, 6  ;;  %v12979_v27 = vsel %vm20527_vm7, %v17178_v9, %v12978_v46 }
 0x486   : > { %v17192_v57 = vcombine.low %v12937_v36, %v12940_v40  ;;  %v12986_v36 = vsel %vm20527_vm7, %v17179_v38, %v12985_v47  ;;  %v969_v47 = vld [vmem:[#allocation2 + $0x330] sm:$0xff] }
 0x487   : > { %v12989_v40 = vsel %vm20527_vm7, %v12987_v5, %v12988_v53 }
 0x488   : > { %v17199_v25 = vcombine.low %v12986_v36, %v12989_v40 }
 0x48a   : > { %18850 = vmatmul.mubr.msk.bf16.gmra.mrb[64].mxu0 %vm731_vm4, %v17100_v51  ;;  %v12952_v51 = vrot.slane %v12950_v43, 4  ;;  %v17158_v43 = vld [vmem:[%s20305_s12 + $0x56c] sm:$0xc] }
 0x48b   : > { %18857 = vmatprep.mubr.msk.bf16.mxu0 %vm731_vm4, %v17187_v52  ;;  %v12953_v52 = vrot.slane %v17142_v42, 6  ;;  %v17163_v42 = vld [vmem:[%s20305_s12 + $0x590] sm:$0x3]  ;;  %v17180_v28 = vrot.slane %v17158_v43, 10 }
 0x48d   : > { %v12954_v2 = vsel %vm20527_vm7, %v12952_v51, %v12953_v52  ;;  %v13001_v51 = vrot.slane %v12999_v1, 4  ;;  %v13002_v52 = vrot.slane %v17163_v42, 6  ;;  %v12993_v41 = vsel %vm20527_vm7, %v17180_v28, %v12992_v12  ;;  %v973_v42 = vld [vmem:[#allocation2 + $0x350] sm:$0xff]  ;;  %v971_v28 = vld [vmem:[#allocation2 + $0x340] sm:$0xff] }
 0x48e   : > { %v17194_v11 = vcombine.low %v12951_v62, %v12954_v2  ;;  %v17164_v2 = vld [vmem:[%s20305_s12 + $0x5a4] sm:$0xc] }
 0x48f   : > { %v13003_v62 = vsel %vm20527_vm7, %v13001_v51, %v13002_v52  ;;  %v17182_v15 = vrot.slane %v17164_v2, 10  ;;  %v974_v51 = vld [vmem:[#allocation2 + $0x358] sm:$0xff] }
 0x490   : > { %v17201_v45 = vcombine.low %v13000_v34, %v13003_v62 }
 0x491   : > { %v13007_v59 = vsel %vm20527_vm7, %v17182_v15, %v13006_v16 }
 0x492   : > { %18858 = vmatmul.mubr.msk.bf16.vlgmr.msra.gmra.mrb[36].mxu0 %vm731_vm4, %v17188_v30  ;;  %v12966_v30 = vrot.slane %v12964_v35, 4  ;;  %v17166_v35 = vld [vmem:[%s20305_s12 + $0x5ac] sm:$0x3] }
 0x493   : > { %18861 = vmatprep.mubr.msk.bf16.mxu0 %vm731_vm4, %v17189_v29  ;;  %v12967_v29 = vrot.slane %v17148_v26, 6  ;;  %v13008_v26 = vrot.slane %v13006_v16, 4  ;;  %v13009_v13 = vrot.slane %v17166_v35, 6 }
 0x495   : > { %v12968_v54 = vsel %vm20527_vm7, %v12966_v30, %v12967_v29  ;;  %v13010_v63 = vsel %vm20527_vm7, %v13008_v26, %v13009_v13  ;;  %v26420_v29 = vld [vmem:[%s26589_s2 + $0x3] ss:$0 sm:$0xff] }
 0x496   : > { %v17196_v60 = vcombine.low %v12965_v22, %v12968_v54 }
 0x49a   : > { %18862 = vmatmul.mubr.msk.bf16.gmra.mrb[40].mxu0 %vm731_vm4, %v17190_v55  ;;  %v12980_v55 = vrot.slane %v12978_v46, 4 }
 0x49b   : > { %18865 = vmatprep.mubr.msk.bf16.mxu0 %vm731_vm4, %v17191_v10  ;;  %v12981_v10 = vrot.slane %v17154_v3, 6 }
 0x49d   : > { %v12982_v18 = vsel %vm20527_vm7, %v12980_v55, %v12981_v10  ;;  %v970_v10 = vld [vmem:[#allocation2 + $0x338] sm:$0xff] }
 0x49e   : > { %v17198_v8 = vcombine.low %v12979_v27, %v12982_v18 }
 0x4a2   : > { %18866 = vmatmul.mubr.msk.bf16.gmra.mrb[44].mxu0 %vm731_vm4, %v17192_v57  ;;  %v12994_v57 = vrot.slane %v12992_v12, 4 }
 0x4a3   : > { %18869 = vmatprep.mubr.msk.bf16.mxu0 %vm731_vm4, %v17193_v33  ;;  %v12995_v33 = vrot.slane %v17160_v39, 6 }
 0x4a5   : > { %v12996_v6 = vsel %vm20527_vm7, %v12994_v57, %v12995_v33 }
 0x4a6   : > { %v17200_v23 = vcombine.low %v12993_v41, %v12996_v6  ;;  %v972_v6 = vld [vmem:[#allocation2 + $0x348] sm:$0xff] }
 0x4aa   : > { %18870 = vmatmul.mubr.msk.bf16.gmra.mrb[48].mxu0 %vm731_vm4, %v17194_v11  ;;  %v17202_v11 = vcombine.low %v13007_v59, %v13010_v63  ;;  %v977_v59 = vld [vmem:[#allocation2 + $0x370] sm:$0xff] }
 0x4ab   : > { %18873 = vmatprep.mubr.msk.bf16.mxu0 %vm731_vm4, %v17195_v50  ;;  %v965_v50 = vld [vmem:[#allocation2 + $0x310] sm:$0xff] }
 0x4b2   : > { %18874 = vmatmul.mubr.msk.bf16.gmra.mrb[52].mxu0 %vm731_vm4, %v17196_v60  ;;  %v967_v60 = vld [vmem:[#allocation2 + $0x320] sm:$0xff] }
 0x4b3   : > { %18877 = vmatprep.mubr.msk.bf16.mxu0 %vm731_vm4, %v17197_v32 }
 0x4ba   : > { %18878 = vmatmul.mubr.msk.bf16.gmra.mrb[56].mxu0 %vm731_vm4, %v17198_v8 }
 0x4bb   : > { %18881 = vmatprep.mubr.msk.bf16.mxu0 %vm731_vm4, %v17199_v25 }
 0x4c2   : > { %18882 = vmatmul.mubr.msk.bf16.gmra.mrb[60].mxu0 %vm731_vm4, %v17200_v23 }
 0x4c3   : > { %18885 = vmatprep.mubr.msk.bf16.mxu0 %vm731_vm4, %v17201_v45 }
 0x4ca   : > { %18886 = vmatmul.mubr.msk.bf16.gmra.mrb[64].mxu0 %vm731_vm4, %v17202_v11 }
 0x565   : > { %v18859_v30 = vpop.f32.mrb[36].mxu0 }
 0x566   : > { %v19121_v49 = vadd.f32 %v18859_v30, %v965_v50  ;;  %v13158_v37 = vpop.f32.mrb[37].mxu0  ;;  %v975_v50 = vld [vmem:[#allocation2 + $0x360] sm:$0xff] }
 0x567   : > { %v19122_v56 = vadd.f32 %v13158_v37, %v963_v61  ;;  %v18860_v22 = vpop.f32.mrb[38].mxu0 }
 0x568   : > { %v14475_v24 = vadd.f32 %v19121_v49, %v26420_v29  ;;  %v19123_v54 = vadd.f32 %v18860_v22, %v966_v0  ;;  %v13161_v46 = vpop.f32.mrb[39].mxu0  ;;  %v978_v49 = vld [vmem:[#allocation2 + $0x378] sm:$0xff]  ;;  %v976_v22 = vld [vmem:[#allocation2 + $0x368] sm:$0xff] }
 0x569   : > { %v14473_v48 = vadd.f32 %v19122_v56, %v26420_v29  ;;  %v19124_v21 = vadd.f32 %v13161_v46, %v964_v4 }
 0x56a   : > { %v14476_v7 = vadd.f32 %v19123_v54, %v26420_v29  ;;  %v14507_v58 = vmax.f32 %v14475_v24, 0.0 }
 0x56b   : > { %v14474_v3 = vadd.f32 %v19124_v21, %v26420_v29  ;;  %v14505_v32 = vmax.f32 %v14473_v48, 0.0 }
 0x56c   : > { %v14508_v44 = vmax.f32 %v14476_v7, 0.0 }
 0x56d   : > { %v14506_v9 = vmax.f32 %v14474_v3, 0.0  ;;  %v18863_v55 = vpop.f32.mrb[40].mxu0 }
 0x56e   : > { %v14538_v38 = vpack.c.bf16 %v14508_v44, %v14507_v58  ;;  %v19125_v5 = vadd.f32 %v18863_v55, %v969_v47  ;;  %v13174_v53 = vpop.f32.mrb[41].mxu0  ;;  %v979_v55 = vld [vmem:[#allocation2 + $0x380] sm:$0xff] }
 0x56f   : > { %v14537_v20 = vpack.c.bf16 %v14506_v9, %v14505_v32  ;;  %v19126_v27 = vadd.f32 %v13174_v53, %v967_v60  ;;  %v18864_v18 = vpop.f32.mrb[42].mxu0  ;;  %v981_v60 = vld [vmem:[#allocation2 + $0x390] sm:$0xff]  ;;  %v982_v53 = vld [vmem:[#allocation2 + $0x398] sm:$0xff] }
 0x570   : > { %v14479_v12 = vadd.f32 %v19125_v5, %v26420_v29  ;;  %v19127_v36 = vadd.f32 %v18864_v18, %v970_v10  ;;  %v13177_v40 = vpop.f32.mrb[43].mxu0  ;;  %v980_v18 = vld [vmem:[#allocation2 + $0x388] sm:$0xff] }
 0x571   : > { %v14477_v43 = vadd.f32 %v19126_v27, %v26420_v29  ;;  %v19128_v39 = vadd.f32 %v13177_v40, %v968_v17  ;;  %18993 = vmatprep.mubr.msk.bf16.mxu1 %vm324_vm12, %v14537_v20 }
 0x572   : > { %v14480_v1 = vadd.f32 %v19127_v36, %v26420_v29  ;;  %18994 = vmatmul.mubr.msk.bf16.vlgmr.msra.gmra.mrb[96].mxu1 %vm324_vm12, %v14538_v38  ;;  %v14511_v8 = vmax.f32 %v14479_v12, 0.0 }
 0x573   : > { %v14478_v19 = vadd.f32 %v19128_v39, %v26420_v29  ;;  %v14509_v57 = vmax.f32 %v14477_v43, 0.0 }
 0x574   : > { %v14512_v25 = vmax.f32 %v14480_v1, 0.0 }
 0x575   : > { %v14510_v33 = vmax.f32 %v14478_v19, 0.0  ;;  %v18867_v31 = vpop.f32.mrb[44].mxu0 }
 0x576   : > { %v14540_v52 = vpack.c.bf16 %v14512_v25, %v14511_v8  ;;  %v19129_v14 = vadd.f32 %v18867_v31, %v973_v42  ;;  %v13190_v41 = vpop.f32.mrb[45].mxu0  ;;  %v983_v31 = vld [vmem:[#allocation2 + $0x3a0] sm:$0xff] }
 0x577   : > { %v14539_v16 = vpack.c.bf16 %v14510_v33, %v14509_v57  ;;  %v19130_v34 = vadd.f32 %v13190_v41, %v971_v28  ;;  %v18868_v62 = vpop.f32.mrb[46].mxu0  ;;  %v985_v28 = vld [vmem:[#allocation2 + $0x3b0] sm:$0xff]  ;;  %v986_v41 = vld [vmem:[#allocation2 + $0x3b8] sm:$0xff] }
 0x578   : > { %v14483_v2 = vadd.f32 %v19129_v14, %v26420_v29  ;;  %v19131_v35 = vadd.f32 %v18868_v62, %v974_v51  ;;  %v13193_v23 = vpop.f32.mrb[47].mxu0  ;;  %v984_v62 = vld [vmem:[#allocation2 + $0x3a8] sm:$0xff] }
 0x579   : > { %v14481_v45 = vadd.f32 %v19130_v34, %v26420_v29  ;;  %v19132_v15 = vadd.f32 %v13193_v23, %v972_v6  ;;  %18997 = vmatprep.mubr.msk.bf16.mxu1 %vm324_vm12, %v14539_v16 }
 0x57a   : > { %v14484_v26 = vadd.f32 %v19131_v35, %v26420_v29  ;;  %18998 = vmatmul.mubr.msk.bf16.gmra.mrb[100].mxu1 %vm324_vm12, %v14540_v52  ;;  %v14515_v63 = vmax.f32 %v14483_v2, 0.0 }
 0x57b   : > { %v14482_v13 = vadd.f32 %v19132_v15, %v26420_v29  ;;  %v14513_v61 = vmax.f32 %v14481_v45, 0.0 }
 0x57c   : > { %v14516_v11 = vmax.f32 %v14484_v26, 0.0 }
 0x57d   : > { %v14514_v30 = vmax.f32 %v14482_v13, 0.0  ;;  %v18871_v0 = vpop.f32.mrb[48].mxu0 }
 0x57e   : > { %v14542_v37 = vpack.c.bf16 %v14516_v11, %v14515_v63  ;;  %v19133_v4 = vadd.f32 %v18871_v0, %v977_v59  ;;  %v13206_v56 = vpop.f32.mrb[49].mxu0  ;;  %v987_v0 = vld [vmem:[#allocation2 + $0x3c0] sm:$0xff] }
 0x57f   : > { %v14541_v24 = vpack.c.bf16 %v14514_v30, %v14513_v61  ;;  %v19134_v54 = vadd.f32 %v13206_v56, %v975_v50  ;;  %v18872_v46 = vpop.f32.mrb[50].mxu0  ;;  %v989_v50 = vld [vmem:[#allocation2 + $0x3d0] sm:$0xff]  ;;  %v990_v56 = vld [vmem:[#allocation2 + $0x3d8] sm:$0xff] }
 0x580   : > { %v14487_v48 = vadd.f32 %v19133_v4, %v26420_v29  ;;  %v19135_v21 = vadd.f32 %v18872_v46, %v978_v49  ;;  %v13209_v7 = vpop.f32.mrb[51].mxu0  ;;  %v988_v46 = vld [vmem:[#allocation2 + $0x3c8] sm:$0xff] }
 0x581   : > { %v14485_v3 = vadd.f32 %v19134_v54, %v26420_v29  ;;  %v19136_v47 = vadd.f32 %v13209_v7, %v976_v22  ;;  %19001 = vmatprep.mubr.msk.bf16.mxu1 %vm324_vm12, %v14541_v24 }
 0x582   : > { %v14488_v58 = vadd.f32 %v19135_v21, %v26420_v29  ;;  %19002 = vmatmul.mubr.msk.bf16.gmra.mrb[104].mxu1 %vm324_vm12, %v14542_v37  ;;  %v14519_v32 = vmax.f32 %v14487_v48, 0.0 }
 0x583   : > { %v14486_v44 = vadd.f32 %v19136_v47, %v26420_v29  ;;  %v14517_v10 = vmax.f32 %v14485_v3, 0.0 }
 0x584   : > { %v14520_v9 = vmax.f32 %v14488_v58, 0.0 }
 0x585   : > { %v14518_v38 = vmax.f32 %v14486_v44, 0.0  ;;  %v18875_v5 = vpop.f32.mrb[52].mxu0 }
 0x586   : > { %v14544_v17 = vpack.c.bf16 %v14520_v9, %v14519_v32  ;;  %v19137_v20 = vadd.f32 %v18875_v5, %v981_v60  ;;  %v13222_v27 = vpop.f32.mrb[53].mxu0  ;;  %v991_v5 = vld [vmem:[#allocation2 + $0x3e0] sm:$0xff] }
 0x587   : > { %v14543_v12 = vpack.c.bf16 %v14518_v38, %v14517_v10  ;;  %v19138_v36 = vadd.f32 %v13222_v27, %v979_v55  ;;  %v18876_v40 = vpop.f32.mrb[54].mxu0  ;;  %v993_v55 = vld [vmem:[#allocation2 + $0x3f0] sm:$0xff]  ;;  %v994_v27 = vld [vmem:[#allocation2 + $0x3f8] sm:$0xff] }
 0x588   : > { %v14491_v43 = vadd.f32 %v19137_v20, %v26420_v29  ;;  %v19139_v39 = vadd.f32 %v18876_v40, %v982_v53  ;;  %v13225_v1 = vpop.f32.mrb[55].mxu0  ;;  %v992_v40 = vld [vmem:[#allocation2 + $0x3e8] sm:$0xff] }
 0x589   : > { %v14489_v19 = vadd.f32 %v19138_v36, %v26420_v29  ;;  %v19140_v42 = vadd.f32 %v13225_v1, %v980_v18  ;;  %19005 = vmatprep.mubr.msk.bf16.mxu1 %vm324_vm12, %v14543_v12 }
 0x58a   : > { %v14492_v8 = vadd.f32 %v19139_v39, %v26420_v29  ;;  %19006 = vmatmul.mubr.msk.bf16.gmra.mrb[108].mxu1 %vm324_vm12, %v14544_v17  ;;  %v14523_v57 = vmax.f32 %v14491_v43, 0.0 }
 0x58b   : > { %v14490_v25 = vadd.f32 %v19140_v42, %v26420_v29  ;;  %v14521_v51 = vmax.f32 %v14489_v19, 0.0 }
 0x58c   : > { %v14524_v33 = vmax.f32 %v14492_v8, 0.0 }
 0x58d   : > { %v14522_v52 = vmax.f32 %v14490_v25, 0.0  ;;  %v18879_v14 = vpop.f32.mrb[56].mxu0 }
 0x58e   : > { %v14546_v6 = vpack.c.bf16 %v14524_v33, %v14523_v57  ;;  %v19141_v16 = vadd.f32 %v18879_v14, %v985_v28  ;;  %v13238_v34 = vpop.f32.mrb[57].mxu0 }
 0x58f   : > { %v14545_v2 = vpack.c.bf16 %v14522_v52, %v14521_v51  ;;  %v19142_v35 = vadd.f32 %v13238_v34, %v983_v31  ;;  %v18880_v23 = vpop.f32.mrb[58].mxu0  ;;  %v803_v34 = vld [vmem:[#allocation3] sm:$0x1] }
 0x590   : > { %v14495_v45 = vadd.f32 %v19141_v16, %v26420_v29  ;;  %v19143_v15 = vadd.f32 %v18880_v23, %v986_v41  ;;  %v13241_v26 = vpop.f32.mrb[59].mxu0  ;;  %v13760_v16 = vlaneseq }
 0x591   : > { %v14493_v13 = vadd.f32 %v19142_v35, %v26420_v29  ;;  %v19144_v59 = vadd.f32 %v13241_v26, %v984_v62  ;;  %19009 = vmatprep.mubr.msk.bf16.mxu1 %vm324_vm12, %v14545_v2  ;;  %v27309_v62 = vld [vmem:[#allocation58_spill] sm:$0xff] }
 0x592   : > { %v14496_v63 = vadd.f32 %v19143_v15, %v26420_v29  ;;  %19010 = vmatmul.mubr.msk.bf16.gmra.mrb[112].mxu1 %vm324_vm12, %v14546_v6  ;;  %v14527_v61 = vmax.f32 %v14495_v45, 0.0  ;;  %v863_v2 = vadd.f32 %v27309_v62, %v803_v34  ;;  %v13761_v35 = vshrl.u32 %v13760_v16, 7 }
 0x593   : > { %v14494_v11 = vadd.f32 %v19144_v59, %v26420_v29  ;;  %v14525_v49 = vmax.f32 %v14493_v13, 0.0 }
 0x594   : > { %v14528_v30 = vmax.f32 %v14496_v63, 0.0  ;;  %v13762_v45 = vsub.s32 0, %v13761_v35 }
 0x595   : > { %v14526_v37 = vmax.f32 %v14494_v11, 0.0  ;;  %v18883_v4 = vpop.f32.mrb[60].mxu0 }
 0x596   : > { %v14548_v22 = vpack.c.bf16 %v14528_v30, %v14527_v61  ;;  %v19145_v24 = vadd.f32 %v18883_v4, %v989_v50  ;;  %v13254_v54 = vpop.f32.mrb[61].mxu0 }
 0x597   : > { %v14547_v48 = vpack.c.bf16 %v14526_v37, %v14525_v49  ;;  %v19146_v21 = vadd.f32 %v13254_v54, %v987_v0  ;;  %v18884_v7 = vpop.f32.mrb[62].mxu0 }
 0x598   : > { %v14499_v3 = vadd.f32 %v19145_v24, %v26420_v29  ;;  %v19147_v47 = vadd.f32 %v18884_v7, %v990_v56  ;;  %v13257_v58 = vpop.f32.mrb[63].mxu0 }
 0x599   : > { %v14497_v44 = vadd.f32 %v19146_v21, %v26420_v29  ;;  %v19148_v60 = vadd.f32 %v13257_v58, %v988_v46  ;;  %19013 = vmatprep.mubr.msk.bf16.mxu1 %vm324_vm12, %v14547_v48 }
 0x59a   : > { %v14500_v32 = vadd.f32 %v19147_v47, %v26420_v29  ;;  %19014 = vmatmul.mubr.msk.bf16.gmra.mrb[116].mxu1 %vm324_vm12, %v14548_v22  ;;  %v14531_v10 = vmax.f32 %v14499_v3, 0.0 }
 0x59b   : > { %v14498_v9 = vadd.f32 %v19148_v60, %v26420_v29  ;;  %v14529_v53 = vmax.f32 %v14497_v44, 0.0 }
 0x59c   : > { %v14532_v38 = vmax.f32 %v14500_v32, 0.0 }
 0x59d   : > { %v14530_v17 = vmax.f32 %v14498_v9, 0.0  ;;  %v18887_v20 = vpop.f32.mrb[64].mxu0 }
 0x59e   : > { %v14550_v18 = vpack.c.bf16 %v14532_v38, %v14531_v10  ;;  %v19149_v12 = vadd.f32 %v18887_v20, %v993_v55  ;;  %v13270_v36 = vpop.f32.mrb[65].mxu0 }
 0x59f   : > { %v14549_v43 = vpack.c.bf16 %v14530_v17, %v14529_v53  ;;  %v19150_v39 = vadd.f32 %v13270_v36, %v991_v5  ;;  %v18888_v1 = vpop.f32.mrb[66].mxu0 }
 0x5a0   : > { %v14503_v19 = vadd.f32 %v19149_v12, %v26420_v29  ;;  %v19151_v42 = vadd.f32 %v18888_v1, %v994_v27  ;;  %v13273_v8 = vpop.f32.mrb[67].mxu0 }
 0x5a1   : > { %v14501_v25 = vadd.f32 %v19150_v39, %v26420_v29  ;;  %v19152_v28 = vadd.f32 %v13273_v8, %v992_v40  ;;  %19017 = vmatprep.mubr.msk.bf16.mxu1 %vm324_vm12, %v14549_v43 }
 0x5a2   : > { %v14504_v57 = vadd.f32 %v19151_v42, %v26420_v29  ;;  %19018 = vmatmul.mubr.msk.bf16.gmra.mrb[120].mxu1 %vm324_vm12, %v14550_v18  ;;  %v14535_v31 = vmax.f32 %v14503_v19, 0.0 }
 0x5a3   : > { %v14502_v33 = vadd.f32 %v19152_v28, %v26420_v29  ;;  %v14533_v52 = vmax.f32 %v14501_v25, 0.0  ;;  %v13455_v29 = vld [vmem:[%s26592_s5] sm:$0x1] }
 0x5a4   : > { %v14536_v51 = vmax.f32 %v14504_v57, 0.0  ;;  %v13456_v23 = vadd.f32 %v13455_v29, %v863_v2 }
 0x5a5   : > { %v14534_v14 = vmax.f32 %v14502_v33, 0.0 }
 0x5a6   : > { %v14552_v41 = vpack.c.bf16 %v14536_v51, %v14535_v31  ;;  %v26474_v15 = vrot.slane %v13456_v23, %v13762_v45 }
 0x5a7   : > { %v14551_v6 = vpack.c.bf16 %v14534_v14, %v14533_v52 }
 0x5a9   : > { %19021 = vmatprep.mubr.msk.bf16.mxu1 %vm324_vm12, %v14551_v6 }
 0x5aa   : > { %19022 = vmatmul.mubr.msk.bf16.gmra.mrb[124].mxu1 %vm324_vm12, %v14552_v41 }
 0x645   : > { %v18995_v26 = vpop.f32.mrb[96].mxu1 }
 0x646   : > { %v19153_v13 = vadd.f32 %v18995_v26, %v26474_v15  ;;  %v14640_v59 = vpop.f32.mrb[97].mxu1 }
 0x647   : > { %v19154_v63 = vadd.f32 %v14640_v59, %v26474_v15  ;;  %v18996_v11 = vpop.f32.mrb[98].mxu1 }
 0x648   : > { %v14801_v50 = vmax.f32 %v19153_v13, 0.0  ;;  %v19155_v61 = vadd.f32 %v18996_v11, %v26474_v15  ;;  %v14643_v30 = vpop.f32.mrb[99].mxu1 }
 0x649   : > { %v14799_v0 = vmax.f32 %v19154_v63, 0.0  ;;  %v19156_v49 = vadd.f32 %v14643_v30, %v26474_v15 }
 0x64a   : > { %14834 = vst.msk [vmem:[%s26481_s11 + $0x10] sm:$0xff] %vm14831_vm13, %v14801_v50  ;;  %v14802_v37 = vmax.f32 %v19155_v61, 0.0 }
 0x64b   : > { %14832 = vst.msk [vmem:[%s26481_s11] sm:$0xff] %vm14831_vm13, %v14799_v0  ;;  %v14800_v4 = vmax.f32 %v19156_v49, 0.0 }
 0x64c   : > { %14835 = vst.msk [vmem:[%s26481_s11 + $0x18] sm:$0xff] %vm14831_vm13, %v14802_v37 }
 0x64d   : > { %14833 = vst.msk [vmem:[%s26481_s11 + $0x8] sm:$0xff] %vm14831_vm13, %v14800_v4  ;;  %v18999_v56 = vpop.f32.mrb[100].mxu1 }
 0x64e   : > { %v19157_v22 = vadd.f32 %v18999_v56, %v26474_v15  ;;  %v14656_v24 = vpop.f32.mrb[101].mxu1 }
 0x64f   : > { %v19158_v54 = vadd.f32 %v14656_v24, %v26474_v15  ;;  %v19000_v46 = vpop.f32.mrb[102].mxu1 }
 0x650   : > { %v14805_v48 = vmax.f32 %v19157_v22, 0.0  ;;  %v19159_v21 = vadd.f32 %v19000_v46, %v26474_v15  ;;  %v14659_v7 = vpop.f32.mrb[103].mxu1 }
 0x651   : > { %v14803_v3 = vmax.f32 %v19158_v54, 0.0  ;;  %v19160_v47 = vadd.f32 %v14659_v7, %v26474_v15 }
 0x652   : > { %14838 = vst.msk [vmem:[%s26481_s11 + $0x30] sm:$0xff] %vm14831_vm13, %v14805_v48  ;;  %v14806_v58 = vmax.f32 %v19159_v21, 0.0 }
 0x653   : > { %14836 = vst.msk [vmem:[%s26481_s11 + $0x20] sm:$0xff] %vm14831_vm13, %v14803_v3  ;;  %v14804_v44 = vmax.f32 %v19160_v47, 0.0 }
 0x654   : > { %14839 = vst.msk [vmem:[%s26481_s11 + $0x38] sm:$0xff] %vm14831_vm13, %v14806_v58 }
 0x655   : > { %14837 = vst.msk [vmem:[%s26481_s11 + $0x28] sm:$0xff] %vm14831_vm13, %v14804_v44  ;;  %v19003_v60 = vpop.f32.mrb[104].mxu1 }
 0x656   : > { %v19161_v32 = vadd.f32 %v19003_v60, %v26474_v15  ;;  %v14672_v9 = vpop.f32.mrb[105].mxu1 }
 0x657   : > { %v19162_v55 = vadd.f32 %v14672_v9, %v26474_v15  ;;  %v19004_v10 = vpop.f32.mrb[106].mxu1 }
 0x658   : > { %v14809_v38 = vmax.f32 %v19161_v32, 0.0  ;;  %v19163_v5 = vadd.f32 %v19004_v10, %v26474_v15  ;;  %v14675_v53 = vpop.f32.mrb[107].mxu1 }
 0x659   : > { %v14807_v17 = vmax.f32 %v19162_v55, 0.0  ;;  %v19164_v20 = vadd.f32 %v14675_v53, %v26474_v15 }
 0x65a   : > { %14842 = vst.msk [vmem:[%s26481_s11 + $0x50] sm:$0xff] %vm14831_vm13, %v14809_v38  ;;  %v14810_v27 = vmax.f32 %v19163_v5, 0.0 }
 0x65b   : > { %14840 = vst.msk [vmem:[%s26481_s11 + $0x40] sm:$0xff] %vm14831_vm13, %v14807_v17  ;;  %v14808_v18 = vmax.f32 %v19164_v20, 0.0 }
 0x65c   : > { %14843 = vst.msk [vmem:[%s26481_s11 + $0x58] sm:$0xff] %vm14831_vm13, %v14810_v27 }
 0x65d   : > { %14841 = vst.msk [vmem:[%s26481_s11 + $0x48] sm:$0xff] %vm14831_vm13, %v14808_v18  ;;  %v19007_v12 = vpop.f32.mrb[108].mxu1 }
 0x65e   : > { %v19165_v36 = vadd.f32 %v19007_v12, %v26474_v15  ;;  %v14688_v40 = vpop.f32.mrb[109].mxu1 }
 0x65f   : > { %v19166_v43 = vadd.f32 %v14688_v40, %v26474_v15  ;;  %v19008_v39 = vpop.f32.mrb[110].mxu1 }
 0x660   : > { %v14813_v1 = vmax.f32 %v19165_v36, 0.0  ;;  %v19167_v19 = vadd.f32 %v19008_v39, %v26474_v15  ;;  %v14691_v42 = vpop.f32.mrb[111].mxu1 }
 0x661   : > { %v14811_v8 = vmax.f32 %v19166_v43, 0.0  ;;  %v19168_v25 = vadd.f32 %v14691_v42, %v26474_v15 }
 0x662   : > { %14846 = vst.msk [vmem:[%s26481_s11 + $0x70] sm:$0xff] %vm14831_vm13, %v14813_v1  ;;  %v14814_v28 = vmax.f32 %v19167_v19, 0.0 }
 0x663   : > { %14844 = vst.msk [vmem:[%s26481_s11 + $0x60] sm:$0xff] %vm14831_vm13, %v14811_v8  ;;  %v14812_v57 = vmax.f32 %v19168_v25, 0.0 }
 0x664   : > { %14847 = vst.msk [vmem:[%s26481_s11 + $0x78] sm:$0xff] %vm14831_vm13, %v14814_v28 }
 0x665   : > { %14845 = vst.msk [vmem:[%s26481_s11 + $0x68] sm:$0xff] %vm14831_vm13, %v14812_v57  ;;  %v19011_v33 = vpop.f32.mrb[112].mxu1 }
 0x666   : > { %v19169_v31 = vadd.f32 %v19011_v33, %v26474_v15  ;;  %v14704_v51 = vpop.f32.mrb[113].mxu1 }
 0x667   : > { %v19170_v52 = vadd.f32 %v14704_v51, %v26474_v15  ;;  %v19012_v14 = vpop.f32.mrb[114].mxu1 }
 0x668   : > { %v14817_v41 = vmax.f32 %v19169_v31, 0.0  ;;  %v19171_v6 = vadd.f32 %v19012_v14, %v26474_v15  ;;  %v14707_v16 = vpop.f32.mrb[115].mxu1 }
 0x669   : > { %v14815_v34 = vmax.f32 %v19170_v52, 0.0  ;;  %v19172_v62 = vadd.f32 %v14707_v16, %v26474_v15 }
 0x66a   : > { %14850 = vst.msk [vmem:[%s26481_s11 + $0x90] sm:$0xff] %vm14831_vm13, %v14817_v41  ;;  %v14818_v2 = vmax.f32 %v19171_v6, 0.0 }
 0x66b   : > { %14848 = vst.msk [vmem:[%s26481_s11 + $0x80] sm:$0xff] %vm14831_vm13, %v14815_v34  ;;  %v14816_v35 = vmax.f32 %v19172_v62, 0.0 }
 0x66c   : > { %14851 = vst.msk [vmem:[%s26481_s11 + $0x98] sm:$0xff] %vm14831_vm13, %v14818_v2 }
 0x66d   : > { %14849 = vst.msk [vmem:[%s26481_s11 + $0x88] sm:$0xff] %vm14831_vm13, %v14816_v35  ;;  %v19015_v29 = vpop.f32.mrb[116].mxu1 }
 0x66e   : > { %v19173_v23 = vadd.f32 %v19015_v29, %v26474_v15  ;;  %v14720_v45 = vpop.f32.mrb[117].mxu1 }
 0x66f   : > { %v19174_v26 = vadd.f32 %v14720_v45, %v26474_v15  ;;  %v19016_v13 = vpop.f32.mrb[118].mxu1 }
 0x670   : > { %v14821_v59 = vmax.f32 %v19173_v23, 0.0  ;;  %v19175_v63 = vadd.f32 %v19016_v13, %v26474_v15  ;;  %v14723_v11 = vpop.f32.mrb[119].mxu1 }
 0x671   : > { %v14819_v50 = vmax.f32 %v19174_v26, 0.0  ;;  %v19176_v61 = vadd.f32 %v14723_v11, %v26474_v15 }
 0x672   : > { %14854 = vst.msk [vmem:[%s26481_s11 + $0xb0] sm:$0xff] %vm14831_vm13, %v14821_v59  ;;  %v14822_v30 = vmax.f32 %v19175_v63, 0.0 }
 0x673   : > { %14852 = vst.msk [vmem:[%s26481_s11 + $0xa0] sm:$0xff] %vm14831_vm13, %v14819_v50  ;;  %v14820_v0 = vmax.f32 %v19176_v61, 0.0 }
 0x674   : > { %14855 = vst.msk [vmem:[%s26481_s11 + $0xb8] sm:$0xff] %vm14831_vm13, %v14822_v30 }
 0x675   : > { %14853 = vst.msk [vmem:[%s26481_s11 + $0xa8] sm:$0xff] %vm14831_vm13, %v14820_v0  ;;  %v19019_v49 = vpop.f32.mrb[120].mxu1 }
 0x676   : > { %v19177_v37 = vadd.f32 %v19019_v49, %v26474_v15  ;;  %v14736_v4 = vpop.f32.mrb[121].mxu1 }
 0x677   : > { %v19178_v56 = vadd.f32 %v14736_v4, %v26474_v15  ;;  %v19020_v22 = vpop.f32.mrb[122].mxu1 }
 0x678   : > { %v14825_v24 = vmax.f32 %v19177_v37, 0.0  ;;  %v19179_v54 = vadd.f32 %v19020_v22, %v26474_v15  ;;  %v14739_v46 = vpop.f32.mrb[123].mxu1 }
 0x679   : > { %v14823_v48 = vmax.f32 %v19178_v56, 0.0  ;;  %v19180_v21 = vadd.f32 %v14739_v46, %v26474_v15 }
 0x67a   : > { %14858 = vst.msk [vmem:[%s26481_s11 + $0xd0] sm:$0xff] %vm14831_vm13, %v14825_v24  ;;  %v14826_v7 = vmax.f32 %v19179_v54, 0.0 }
 0x67b   : > { %14856 = vst.msk [vmem:[%s26481_s11 + $0xc0] sm:$0xff] %vm14831_vm13, %v14823_v48  ;;  %v14824_v3 = vmax.f32 %v19180_v21, 0.0 }
 0x67c   : > { %14859 = vst.msk [vmem:[%s26481_s11 + $0xd8] sm:$0xff] %vm14831_vm13, %v14826_v7 }
 0x67d   : > { %14857 = vst.msk [vmem:[%s26481_s11 + $0xc8] sm:$0xff] %vm14831_vm13, %v14824_v3  ;;  %v19023_v47 = vpop.f32.mrb[124].mxu1 }
 0x67e   : > { %v19181_v58 = vadd.f32 %v19023_v47, %v26474_v15  ;;  %v14752_v44 = vpop.f32.mrb[125].mxu1 }
 0x67f   : > { %v19182_v60 = vadd.f32 %v14752_v44, %v26474_v15  ;;  %v19024_v32 = vpop.f32.mrb[126].mxu1 }
 0x680   : > { %v14829_v9 = vmax.f32 %v19181_v58, 0.0  ;;  %v19183_v55 = vadd.f32 %v19024_v32, %v26474_v15  ;;  %v14755_v10 = vpop.f32.mrb[127].mxu1 }
 0x681   : > { %v14827_v38 = vmax.f32 %v19182_v60, 0.0  ;;  %v19184_v5 = vadd.f32 %v14755_v10, %v26474_v15 }
 0x682   : > { %14862 = vst.msk [vmem:[%s26481_s11 + $0xf0] sm:$0xff] %vm14831_vm13, %v14829_v9  ;;  %v14830_v53 = vmax.f32 %v19183_v55, 0.0 }
 0x683   : > { %14860 = vst.msk [vmem:[%s26481_s11 + $0xe0] sm:$0xff] %vm14831_vm13, %v14827_v38  ;;  %v14828_v17 = vmax.f32 %v19184_v5, 0.0 }
 0x684   : > { %14863 = vst.msk [vmem:[%s26481_s11 + $0xf8] sm:$0xff] %vm14831_vm13, %v14830_v53 }
 0x685   : > { %14861 = vst.msk [vmem:[%s26481_s11 + $0xe8] sm:$0xff] %vm14831_vm13, %v14828_v17 }
 0x686 PF: > { %s16_s23 = sadd.s32 1, %s20222_s23   ;;  %s27310_s21 = smov %s20218_s22 }
 0x687   : > { %p13_p5 = scmp.ge.s32.totalorder %s16_s23, 4   ;;  %s27311_s22 = smov %s27313_s24 }
 0x689   :  { %15 = sbr.rel (!%p13_p5) target bundleno = 2 (0x2), region = 134 }

</bundles_post_ra>
